<compile_context>
chip_gen: v7x
topology: tpu7x:2x2x1
jax: 0.10.0
libtpu: 0.0.40
codegen_flags: <defaults>
</compile_context>

<pallas_src>
import functools

import jax
import jax.numpy as jnp
from jax import lax
from jax.experimental import pallas as pl
from jax.experimental.pallas import tpu as pltpu

LANES = 128  # TPU lane width.


def _choose_tile_h(h_out, w_out, max_tile_hw):
    """Largest divisor TILE_H of Hout with TILE_H*Wout <= max_tile_hw and % 128 == 0."""
    if h_out * w_out <= max_tile_hw:
        return h_out
    for th in range(h_out, 0, -1):
        if h_out % th:
            continue
        thw = th * w_out
        if thw <= max_tile_hw and thw % 128 == 0:
            return th
    # TODO(synk): no 128-aligned divisor tile found; fall back to the full feature map.
    return h_out


def _mosaic_params(dims, est_bytes):
    limit = None
    if est_bytes > 14 * 1024 * 1024:
        limit = min(int(est_bytes * 1.5), 64 * 1024 * 1024)
    return pltpu.CompilerParams(dimension_semantics=dims, vmem_limit_bytes=limit)


def _convt_gemm_kernel(x_ref, w_ref, y_ref, st_ref, col_ref, *,
                       ksize, tile_h, w_out, c_in, n_h_tiles):
    """One (image, Cout lane-group, output-row tile) block of the transposed conv.

    x_ref:   (1, Hp, Wp, Cin)       bf16  dilated + padded image (full image, revisited per n)
    w_ref:   (K*K*Cin, CT)          bf16  flipped kernel, one Cout lane group (CT = 128 or 256)
    y_ref:   (1, TILE_HW, CT)       bf16  conv output tile
    st_ref:  (1, 1, 2, CT)          f32   per-(image, row-tile) [sum, sum_sq] of the bf16 y values
    col_ref: (TILE_HW, K*K*Cin)     bf16  VMEM im2col scratch (lane-dense GEMM LHS)
    """
    tile_hw = tile_h * w_out
    # Assemble the lane-dense im2col LHS once; K*K statically unrolled shifted slices of the
    # VMEM-resident image (no im2col matrix ever touches HBM).
    for kh in range(ksize):
        for kw in range(ksize):
            tap = kh * ksize + kw
            if n_h_tiles == 1:
                a = x_ref[0, kh:kh + tile_h, kw:kw + w_out, :]
            else:
                row0 = pl.multiple_of(pl.program_id(2) * tile_h, tile_h)
                a = x_ref[0, pl.ds(row0 + kh, tile_h), kw:kw + w_out, :]
            col_ref[:, tap * c_in:(tap + 1) * c_in] = a.reshape(tile_hw, c_in)
    # Single MXU GEMM with contraction K*K*Cin (>= 128 even for small Cin); f32 accumulation.
    acc = jnp.dot(col_ref[...], w_ref[...], preferred_element_type=jnp.float32)
    yb = acc.astype(y_ref.dtype)
    y_ref[0] = yb
    # Partial BatchNorm statistics, taken from the rounded values kernel 2 will actually read.
    yf = yb.astype(jnp.float32)
    st_ref[0, 0, 0:1, :] = jnp.sum(yf, axis=0, keepdims=True)
    st_ref[0, 0, 1:2, :] = jnp.sum(yf * yf, axis=0, keepdims=True)


def _bn_relu_nchw_kernel(y_ref, scale_ref, shift_ref, o_ref):
    """BN affine + ReLU + (HW, C)->(C, HW) transpose for one tile (NCHW fold + un-padding).

    y_ref:     (1, TILE_HW, CT)     bf16
    scale_ref: (1, CT)              f32
    shift_ref: (1, CT)              f32
    o_ref:     (1, C_blk, TILE_HW)  f32   (C_blk <= CT; channel un-padding folded into the store)
    """
    z = y_ref[0].astype(jnp.float32) * scale_ref[...] + shift_ref[...]
    z = jnp.maximum(z, 0.0)
    zt = z.T  # XLU transpose -> lane-dense (C, HW) store, no trailing XLA transpose needed.
    o_ref[0] = zt[: o_ref.shape[1], :].astype(o_ref.dtype)


def conv_transpose_block(x, weight, gamma, beta, *, stride, padding, eps=1e-5,
                         compute_dtype=jnp.bfloat16, max_tile_hw=2048):
    """Forward of ConvTransposeBlock.

    x:      (N, Cin, H, W)     float32
    weight: (Cin, Cout, K, K)  float32  (PyTorch ConvTranspose2d weight layout)
    gamma, beta: (Cout,)       float32  (BatchNorm2d affine parameters)
    returns (N, Cout, Hout, Wout) float32
    """
    N, Cin, H, W = x.shape
    wCin, Cout, K, K2 = weight.shape
    assert wCin == Cin and K == K2
    pad = K - 1 - padding
    assert pad >= 0, "kernel assumes padding <= kernel_size - 1"
    Hout = (H - 1) * stride - 2 * padding + K
    Wout = (W - 1) * stride - 2 * padding + K
    HW = Hout * Wout
    KKCin = K * K * Cin

    Cpad = ((Cout + LANES - 1) // LANES) * LANES
    ct = 256 if (Cpad % 256 == 0) else LANES      # 256-wide Cout tiles fill the v6e/v7x MXU
    nc = Cpad // ct

    tile_h = _choose_tile_h(Hout, Wout, max_tile_hw)
    tile_hw = tile_h * Wout
    n_ht = Hout // tile_h

    # ---- plain-JAX prep on the (small) input / weights ------------------------------------
    Hd, Wd = (H - 1) * stride + 1, (W - 1) * stride + 1
    x_nhwc = jnp.transpose(x, (0, 2, 3, 1)).astype(compute_dtype)
    xd = jnp.zeros((N, Hd, Wd, Cin), compute_dtype).at[:, ::stride, ::stride, :].set(x_nhwc)
    xp = jnp.pad(xd, ((0, 0), (pad, pad), (pad, pad), (0, 0)))
    Hp, Wp = Hd + 2 * pad, Wd + 2 * pad

    # Dense-conv equivalent weights: flip spatially, layout (kh*K*Cin + kw*Cin + ci, co).
    wf = weight[:, :, ::-1, ::-1]
    Wm = jnp.transpose(wf, (2, 3, 0, 1)).reshape(KKCin, Cout).astype(compute_dtype)
    Wm = jnp.pad(Wm, ((0, 0), (0, Cpad - Cout)))

    # ---- kernel 1: fused im2col-in-VMEM GEMM + partial BN statistics -----------------------
    k1_vmem = (2 * Hp * Wp * Cin * 2 + 2 * KKCin * ct * 2 + 2 * tile_hw * ct * 2
               + tile_hw * KKCin * 2 + tile_hw * ct * 4)
    y, part = pl.pallas_call(
        functools.partial(_convt_gemm_kernel, ksize=K, tile_h=tile_h, w_out=Wout,
                          c_in=Cin, n_h_tiles=n_ht),
        out_shape=(
            jax.ShapeDtypeStruct((N, HW, Cpad), compute_dtype),
            jax.ShapeDtypeStruct((N, n_ht, 2, Cpad), jnp.float32),
        ),
        grid=(N, nc, n_ht),
        in_specs=[
            pl.BlockSpec((1, Hp, Wp, Cin), lambda n, c, t: (n, 0, 0, 0)),  # revisited per image
            pl.BlockSpec((KKCin, ct), lambda n, c, t: (0, c)),
        ],
        out_specs=(
            pl.BlockSpec((1, tile_hw, ct), lambda n, c, t: (n, t, c)),
            pl.BlockSpec((1, 1, 2, ct), lambda n, c, t: (n, t, 0, c)),
        ),
        scratch_shapes=[pltpu.VMEM((tile_hw, KKCin), compute_dtype)],
        compiler_params=_mosaic_params(("parallel", "arbitrary", "arbitrary"), k1_vmem),
    )(xp, Wm)

    # ---- global BatchNorm statistics (training mode, biased variance) ----------------------
    # NOTE: one-pass E[x^2] - mean^2 in f32 (clamped at 0); fine at DCGAN scales, can lose
    # precision for very large N*HW.
    s = jnp.sum(part, axis=(0, 1))                  # (2, Cpad)
    m = float(N * HW)                               # true element count (no padded rows)
    mean = s[0] / m
    var = jnp.maximum(s[1] / m - mean * mean, 0.0)
    inv = lax.rsqrt(var + eps)
    g = jnp.pad(gamma.astype(jnp.float32), (0, Cpad - Cout))
    b = jnp.pad(beta.astype(jnp.float32), (0, Cpad - Cout))
    scale = (g * inv).reshape(1, Cpad)
    shift = (b - mean * g * inv).reshape(1, Cpad)

    # ---- kernel 2: BN apply + ReLU + NHWC->NCHW fold + channel un-padding -------------------
    if Cout <= LANES or Cout % ct == 0:
        c_store, c_blk = Cout, min(ct, Cout)
    else:
        # TODO(synk): odd Cout > 128 keeps padded channels and slices once in XLA (rare case).
        c_store, c_blk = Cpad, ct
    k2_vmem = 2 * tile_hw * ct * 2 + 2 * c_blk * tile_hw * 4 + 2 * tile_hw * ct * 4
    out_flat = pl.pallas_call(
        _bn_relu_nchw_kernel,
        out_shape=jax.ShapeDtypeStruct((N, c_store, HW), jnp.float32),
        grid=(N, nc, n_ht),
        in_specs=[
            pl.BlockSpec((1, tile_hw, ct), lambda n, c, t: (n, t, c)),
            pl.BlockSpec((1, ct), lambda n, c, t: (0, c)),
            pl.BlockSpec((1, ct), lambda n, c, t: (0, c)),
        ],
        out_specs=pl.BlockSpec((1, c_blk, tile_hw), lambda n, c, t: (n, c, t)),
        compiler_params=_mosaic_params(("parallel", "parallel", "parallel"), k2_vmem),
    )(y, scale, shift)

    out = out_flat.reshape(N, c_store, Hout, Wout)
    if c_store != Cout:
        out = out[:, :Cout]
    return out


def _reference(x, weight, gamma, beta, *, stride, padding, eps=1e-5):
    """Pure-JAX f32 reference matching PyTorch ConvTranspose2d + BatchNorm2d(train) + ReLU."""
    K = weight.shape[-1]
    w_conv = jnp.transpose(weight[:, :, ::-1, ::-1], (1, 0, 2, 3))  # (Cout, Cin, K, K)
    y = lax.conv_general_dilated(
        x, w_conv,
        window_strides=(1, 1),
        padding=[(K - 1 - padding, K - 1 - padding)] * 2,
        lhs_dilation=(stride, stride),
        rhs_dilation=(1, 1),
        dimension_numbers=("NCHW", "OIHW", "NCHW"),
    )
    mean = jnp.mean(y, axis=(0, 2, 3), keepdims=True)
    var = jnp.mean((y - mean) ** 2, axis=(0, 2, 3), keepdims=True)
    yn = (y - mean) * lax.rsqrt(var + eps)
    yn = yn * gamma[None, :, None, None] + beta[None, :, None, None]
    return jnp.maximum(yn, 0.0)


if __name__ == "__main__":
    cases = [
        # (N, Cin, Cout, H, W, K, stride, padding)
        (2, 8, 16, 8, 8, 4, 2, 1),       # small DCGAN-style upsampling block
        (1, 16, 512, 32, 32, 4, 2, 1),   # exercises HW tiling, 256-wide Cout tiles, 2 C-groups
        (2, 32, 64, 1, 1, 4, 1, 0),      # DCGAN first block style: 1x1 -> 4x4, stride 1, pad 0
    ]
    key = jax.random.PRNGKey(0)
    for (N, Cin, Cout, H, W, K, stride, padding) in cases:
        key, kx, kw, kg, kb = jax.random.split(key, 5)
        x = jax.random.normal(kx, (N, Cin, H, W), dtype=jnp.float32)
        weight = 0.02 * jax.random.normal(kw, (Cin, Cout, K, K), dtype=jnp.float32)
        gamma = 1.0 + 0.1 * jax.random.normal(kg, (Cout,), dtype=jnp.float32)
        beta = 0.1 * jax.random.normal(kb, (Cout,), dtype=jnp.float32)

        out = conv_transpose_block(x, weight, gamma, beta, stride=stride, padding=padding)
        out = jax.block_until_ready(out)

        Hout = (H - 1) * stride - 2 * padding + K
        Wout = (W - 1) * stride - 2 * padding + K
        assert out.shape == (N, Cout, Hout, Wout), out.shape

        ref = _reference(x, weight, gamma, beta, stride=stride, padding=padding)
        # bf16 MXU operands (f32 accumulation) + bf16 intermediate y -> ~1e-2-level error on O(1)
        # normalized values.
        err = float(jnp.max(jnp.abs(out - ref)))
        assert jnp.allclose(out, ref, rtol=3e-2, atol=3e-2), err

    print("KERNEL_OK")
</pallas_src>

<mosaic_0001>
module attributes {stable_mosaic.version = 11 : i64} {
  func.func @_convt_gemm_kernel(%arg0: i32, %arg1: i32, %arg2: i32, %arg3: memref<1x19x19x8xbf16, #tpu.memory_space<vmem>>, %arg4: memref<128x128xbf16, #tpu.memory_space<vmem>>, %arg5: memref<1x256x128xbf16, #tpu.memory_space<vmem>>, %arg6: memref<1x1x2x128xf32, #tpu.memory_space<vmem>>, %arg7: memref<256x128xbf16, #tpu.memory_space<vmem>>) attributes {dimension_semantics = [#tpu.dimension_semantics<parallel>, #tpu.dimension_semantics<arbitrary>, #tpu.dimension_semantics<arbitrary>], iteration_bounds = array<i64: 2, 1, 1>, scalar_prefetch = 0 : i64, scratch_operands = 1 : i64, tpu.core_type = #tpu.core_type<tc>, window_params = [{transform_indices = @transform_0, window_bounds = array<i64: 1, 19, 19, 8>}, {transform_indices = @transform_1, window_bounds = array<i64: 128, 128>}, {transform_indices = @transform_2, window_bounds = array<i64: 1, 256, 128>}, {transform_indices = @transform_3, window_bounds = array<i64: 1, 1, 2, 128>}]} {
    %c0 = arith.constant 0 : index
    %c0_0 = arith.constant 0 : index
    %c0_1 = arith.constant 0 : index
    %c0_2 = arith.constant 0 : index
    %0 = vector.load %arg3[%c0, %c0_0, %c0_1, %c0_2] : memref<1x19x19x8xbf16, #tpu.memory_space<vmem>>, vector<1x16x16x8xbf16>
    %1 = vector.shape_cast %0 : vector<1x16x16x8xbf16> to vector<16x16x8xbf16>
    %2 = vector.shape_cast %1 : vector<16x16x8xbf16> to vector<256x8xbf16>
    %c0_3 = arith.constant 0 : index
    %c0_4 = arith.constant 0 : index
    %3 = vector.load %arg7[%c0_3, %c0_4] : memref<256x128xbf16, #tpu.memory_space<vmem>>, vector<256x8xbf16>
    tpu.vector_store %arg7[%c0_3, %c0_4], %2 {strides = array<i32>} : memref<256x128xbf16, #tpu.memory_space<vmem>>, vector<256x8xbf16>,
    %c0_5 = arith.constant 0 : index
    %c0_6 = arith.constant 0 : index
    %c1 = arith.constant 1 : index
    %c0_7 = arith.constant 0 : index
    %4 = vector.load %arg3[%c0_5, %c0_6, %c1, %c0_7] : memref<1x19x19x8xbf16, #tpu.memory_space<vmem>>, vector<1x16x16x8xbf16>
    %5 = vector.shape_cast %4 : vector<1x16x16x8xbf16> to vector<16x16x8xbf16>
    %6 = vector.shape_cast %5 : vector<16x16x8xbf16> to vector<256x8xbf16>
    %c0_8 = arith.constant 0 : index
    %c8 = arith.constant 8 : index
    %7 = vector.load %arg7[%c0_8, %c8] : memref<256x128xbf16, #tpu.memory_space<vmem>>, vector<256x8xbf16>
    tpu.vector_store %arg7[%c0_8, %c8], %6 {strides = array<i32>} : memref<256x128xbf16, #tpu.memory_space<vmem>>, vector<256x8xbf16>,
    %c0_9 = arith.constant 0 : index
    %c0_10 = arith.constant 0 : index
    %c2 = arith.constant 2 : index
    %c0_11 = arith.constant 0 : index
    %8 = vector.load %arg3[%c0_9, %c0_10, %c2, %c0_11] : memref<1x19x19x8xbf16, #tpu.memory_space<vmem>>, vector<1x16x16x8xbf16>
    %9 = vector.shape_cast %8 : vector<1x16x16x8xbf16> to vector<16x16x8xbf16>
    %10 = vector.shape_cast %9 : vector<16x16x8xbf16> to vector<256x8xbf16>
    %c0_12 = arith.constant 0 : index
    %c16 = arith.constant 16 : index
    %11 = vector.load %arg7[%c0_12, %c16] : memref<256x128xbf16, #tpu.memory_space<vmem>>, vector<256x8xbf16>
    tpu.vector_store %arg7[%c0_12, %c16], %10 {strides = array<i32>} : memref<256x128xbf16, #tpu.memory_space<vmem>>, vector<256x8xbf16>,
    %c0_13 = arith.constant 0 : index
    %c0_14 = arith.constant 0 : index
    %c3 = arith.constant 3 : index
    %c0_15 = arith.constant 0 : index
    %12 = vector.load %arg3[%c0_13, %c0_14, %c3, %c0_15] : memref<1x19x19x8xbf16, #tpu.memory_space<vmem>>, vector<1x16x16x8xbf16>
    %13 = vector.shape_cast %12 : vector<1x16x16x8xbf16> to vector<16x16x8xbf16>
    %14 = vector.shape_cast %13 : vector<16x16x8xbf16> to vector<256x8xbf16>
    %c0_16 = arith.constant 0 : index
    %c24 = arith.constant 24 : index
    %15 = vector.load %arg7[%c0_16, %c24] : memref<256x128xbf16, #tpu.memory_space<vmem>>, vector<256x8xbf16>
    tpu.vector_store %arg7[%c0_16, %c24], %14 {strides = array<i32>} : memref<256x128xbf16, #tpu.memory_space<vmem>>, vector<256x8xbf16>,
    %c0_17 = arith.constant 0 : index
    %c1_18 = arith.constant 1 : index
    %c0_19 = arith.constant 0 : index
    %c0_20 = arith.constant 0 : index
    %16 = vector.load %arg3[%c0_17, %c1_18, %c0_19, %c0_20] : memref<1x19x19x8xbf16, #tpu.memory_space<vmem>>, vector<1x16x16x8xbf16>
    %17 = vector.shape_cast %16 : vector<1x16x16x8xbf16> to vector<16x16x8xbf16>
    %18 = vector.shape_cast %17 : vector<16x16x8xbf16> to vector<256x8xbf16>
    %c0_21 = arith.constant 0 : index
    %c32 = arith.constant 32 : index
    %19 = vector.load %arg7[%c0_21, %c32] : memref<256x128xbf16, #tpu.memory_space<vmem>>, vector<256x8xbf16>
    tpu.vector_store %arg7[%c0_21, %c32], %18 {strides = array<i32>} : memref<256x128xbf16, #tpu.memory_space<vmem>>, vector<256x8xbf16>,
    %c0_22 = arith.constant 0 : index
    %c1_23 = arith.constant 1 : index
    %c1_24 = arith.constant 1 : index
    %c0_25 = arith.constant 0 : index
    %20 = vector.load %arg3[%c0_22, %c1_23, %c1_24, %c0_25] : memref<1x19x19x8xbf16, #tpu.memory_space<vmem>>, vector<1x16x16x8xbf16>
    %21 = vector.shape_cast %20 : vector<1x16x16x8xbf16> to vector<16x16x8xbf16>
    %22 = vector.shape_cast %21 : vector<16x16x8xbf16> to vector<256x8xbf16>
    %c0_26 = arith.constant 0 : index
    %c40 = arith.constant 40 : index
    %23 = vector.load %arg7[%c0_26, %c40] : memref<256x128xbf16, #tpu.memory_space<vmem>>, vector<256x8xbf16>
    tpu.vector_store %arg7[%c0_26, %c40], %22 {strides = array<i32>} : memref<256x128xbf16, #tpu.memory_space<vmem>>, vector<256x8xbf16>,
    %c0_27 = arith.constant 0 : index
    %c1_28 = arith.constant 1 : index
    %c2_29 = arith.constant 2 : index
    %c0_30 = arith.constant 0 : index
    %24 = vector.load %arg3[%c0_27, %c1_28, %c2_29, %c0_30] : memref<1x19x19x8xbf16, #tpu.memory_space<vmem>>, vector<1x16x16x8xbf16>
    %25 = vector.shape_cast %24 : vector<1x16x16x8xbf16> to vector<16x16x8xbf16>
    %26 = vector.shape_cast %25 : vector<16x16x8xbf16> to vector<256x8xbf16>
    %c0_31 = arith.constant 0 : index
    %c48 = arith.constant 48 : index
    %27 = vector.load %arg7[%c0_31, %c48] : memref<256x128xbf16, #tpu.memory_space<vmem>>, vector<256x8xbf16>
    tpu.vector_store %arg7[%c0_31, %c48], %26 {strides = array<i32>} : memref<256x128xbf16, #tpu.memory_space<vmem>>, vector<256x8xbf16>,
    %c0_32 = arith.constant 0 : index
    %c1_33 = arith.constant 1 : index
    %c3_34 = arith.constant 3 : index
    %c0_35 = arith.constant 0 : index
    %28 = vector.load %arg3[%c0_32, %c1_33, %c3_34, %c0_35] : memref<1x19x19x8xbf16, #tpu.memory_space<vmem>>, vector<1x16x16x8xbf16>
    %29 = vector.shape_cast %28 : vector<1x16x16x8xbf16> to vector<16x16x8xbf16>
    %30 = vector.shape_cast %29 : vector<16x16x8xbf16> to vector<256x8xbf16>
    %c0_36 = arith.constant 0 : index
    %c56 = arith.constant 56 : index
    %31 = vector.load %arg7[%c0_36, %c56] : memref<256x128xbf16, #tpu.memory_space<vmem>>, vector<256x8xbf16>
    tpu.vector_store %arg7[%c0_36, %c56], %30 {strides = array<i32>} : memref<256x128xbf16, #tpu.memory_space<vmem>>, vector<256x8xbf16>,
    %c0_37 = arith.constant 0 : index
    %c2_38 = arith.constant 2 : index
    %c0_39 = arith.constant 0 : index
    %c0_40 = arith.constant 0 : index
    %32 = vector.load %arg3[%c0_37, %c2_38, %c0_39, %c0_40] : memref<1x19x19x8xbf16, #tpu.memory_space<vmem>>, vector<1x16x16x8xbf16>
    %33 = vector.shape_cast %32 : vector<1x16x16x8xbf16> to vector<16x16x8xbf16>
    %34 = vector.shape_cast %33 : vector<16x16x8xbf16> to vector<256x8xbf16>
    %c0_41 = arith.constant 0 : index
    %c64 = arith.constant 64 : index
    %35 = vector.load %arg7[%c0_41, %c64] : memref<256x128xbf16, #tpu.memory_space<vmem>>, vector<256x8xbf16>
    tpu.vector_store %arg7[%c0_41, %c64], %34 {strides = array<i32>} : memref<256x128xbf16, #tpu.memory_space<vmem>>, vector<256x8xbf16>,
    %c0_42 = arith.constant 0 : index
    %c2_43 = arith.constant 2 : index
    %c1_44 = arith.constant 1 : index
    %c0_45 = arith.constant 0 : index
    %36 = vector.load %arg3[%c0_42, %c2_43, %c1_44, %c0_45] : memref<1x19x19x8xbf16, #tpu.memory_space<vmem>>, vector<1x16x16x8xbf16>
    %37 = vector.shape_cast %36 : vector<1x16x16x8xbf16> to vector<16x16x8xbf16>
    %38 = vector.shape_cast %37 : vector<16x16x8xbf16> to vector<256x8xbf16>
    %c0_46 = arith.constant 0 : index
    %c72 = arith.constant 72 : index
    %39 = vector.load %arg7[%c0_46, %c72] : memref<256x128xbf16, #tpu.memory_space<vmem>>, vector<256x8xbf16>
    tpu.vector_store %arg7[%c0_46, %c72], %38 {strides = array<i32>} : memref<256x128xbf16, #tpu.memory_space<vmem>>, vector<256x8xbf16>,
    %c0_47 = arith.constant 0 : index
    %c2_48 = arith.constant 2 : index
    %c2_49 = arith.constant 2 : index
    %c0_50 = arith.constant 0 : index
    %40 = vector.load %arg3[%c0_47, %c2_48, %c2_49, %c0_50] : memref<1x19x19x8xbf16, #tpu.memory_space<vmem>>, vector<1x16x16x8xbf16>
    %41 = vector.shape_cast %40 : vector<1x16x16x8xbf16> to vector<16x16x8xbf16>
    %42 = vector.shape_cast %41 : vector<16x16x8xbf16> to vector<256x8xbf16>
    %c0_51 = arith.constant 0 : index
    %c80 = arith.constant 80 : index
    %43 = vector.load %arg7[%c0_51, %c80] : memref<256x128xbf16, #tpu.memory_space<vmem>>, vector<256x8xbf16>
    tpu.vector_store %arg7[%c0_51, %c80], %42 {strides = array<i32>} : memref<256x128xbf16, #tpu.memory_space<vmem>>, vector<256x8xbf16>,
    %c0_52 = arith.constant 0 : index
    %c2_53 = arith.constant 2 : index
    %c3_54 = arith.constant 3 : index
    %c0_55 = arith.constant 0 : index
    %44 = vector.load %arg3[%c0_52, %c2_53, %c3_54, %c0_55] : memref<1x19x19x8xbf16, #tpu.memory_space<vmem>>, vector<1x16x16x8xbf16>
    %45 = vector.shape_cast %44 : vector<1x16x16x8xbf16> to vector<16x16x8xbf16>
    %46 = vector.shape_cast %45 : vector<16x16x8xbf16> to vector<256x8xbf16>
    %c0_56 = arith.constant 0 : index
    %c88 = arith.constant 88 : index
    %47 = vector.load %arg7[%c0_56, %c88] : memref<256x128xbf16, #tpu.memory_space<vmem>>, vector<256x8xbf16>
    tpu.vector_store %arg7[%c0_56, %c88], %46 {strides = array<i32>} : memref<256x128xbf16, #tpu.memory_space<vmem>>, vector<256x8xbf16>,
    %c0_57 = arith.constant 0 : index
    %c3_58 = arith.constant 3 : index
    %c0_59 = arith.constant 0 : index
    %c0_60 = arith.constant 0 : index
    %48 = vector.load %arg3[%c0_57, %c3_58, %c0_59, %c0_60] : memref<1x19x19x8xbf16, #tpu.memory_space<vmem>>, vector<1x16x16x8xbf16>
    %49 = vector.shape_cast %48 : vector<1x16x16x8xbf16> to vector<16x16x8xbf16>
    %50 = vector.shape_cast %49 : vector<16x16x8xbf16> to vector<256x8xbf16>
    %c0_61 = arith.constant 0 : index
    %c96 = arith.constant 96 : index
    %51 = vector.load %arg7[%c0_61, %c96] : memref<256x128xbf16, #tpu.memory_space<vmem>>, vector<256x8xbf16>
    tpu.vector_store %arg7[%c0_61, %c96], %50 {strides = array<i32>} : memref<256x128xbf16, #tpu.memory_space<vmem>>, vector<256x8xbf16>,
    %c0_62 = arith.constant 0 : index
    %c3_63 = arith.constant 3 : index
    %c1_64 = arith.constant 1 : index
    %c0_65 = arith.constant 0 : index
    %52 = vector.load %arg3[%c0_62, %c3_63, %c1_64, %c0_65] : memref<1x19x19x8xbf16, #tpu.memory_space<vmem>>, vector<1x16x16x8xbf16>
    %53 = vector.shape_cast %52 : vector<1x16x16x8xbf16> to vector<16x16x8xbf16>
    %54 = vector.shape_cast %53 : vector<16x16x8xbf16> to vector<256x8xbf16>
    %c0_66 = arith.constant 0 : index
    %c104 = arith.constant 104 : index
    %55 = vector.load %arg7[%c0_66, %c104] : memref<256x128xbf16, #tpu.memory_space<vmem>>, vector<256x8xbf16>
    tpu.vector_store %arg7[%c0_66, %c104], %54 {strides = array<i32>} : memref<256x128xbf16, #tpu.memory_space<vmem>>, vector<256x8xbf16>,
    %c0_67 = arith.constant 0 : index
    %c3_68 = arith.constant 3 : index
    %c2_69 = arith.constant 2 : index
    %c0_70 = arith.constant 0 : index
    %56 = vector.load %arg3[%c0_67, %c3_68, %c2_69, %c0_70] : memref<1x19x19x8xbf16, #tpu.memory_space<vmem>>, vector<1x16x16x8xbf16>
    %57 = vector.shape_cast %56 : vector<1x16x16x8xbf16> to vector<16x16x8xbf16>
    %58 = vector.shape_cast %57 : vector<16x16x8xbf16> to vector<256x8xbf16>
    %c0_71 = arith.constant 0 : index
    %c112 = arith.constant 112 : index
    %59 = vector.load %arg7[%c0_71, %c112] : memref<256x128xbf16, #tpu.memory_space<vmem>>, vector<256x8xbf16>
    tpu.vector_store %arg7[%c0_71, %c112], %58 {strides = array<i32>} : memref<256x128xbf16, #tpu.memory_space<vmem>>, vector<256x8xbf16>,
    %c0_72 = arith.constant 0 : index
    %c3_73 = arith.constant 3 : index
    %c3_74 = arith.constant 3 : index
    %c0_75 = arith.constant 0 : index
    %60 = vector.load %arg3[%c0_72, %c3_73, %c3_74, %c0_75] : memref<1x19x19x8xbf16, #tpu.memory_space<vmem>>, vector<1x16x16x8xbf16>
    %61 = vector.shape_cast %60 : vector<1x16x16x8xbf16> to vector<16x16x8xbf16>
    %62 = vector.shape_cast %61 : vector<16x16x8xbf16> to vector<256x8xbf16>
    %c0_76 = arith.constant 0 : index
    %c120 = arith.constant 120 : index
    %63 = vector.load %arg7[%c0_76, %c120] : memref<256x128xbf16, #tpu.memory_space<vmem>>, vector<256x8xbf16>
    tpu.vector_store %arg7[%c0_76, %c120], %62 {strides = array<i32>} : memref<256x128xbf16, #tpu.memory_space<vmem>>, vector<256x8xbf16>,
    %c0_77 = arith.constant 0 : index
    %c0_78 = arith.constant 0 : index
    %64 = vector.load %arg7[%c0_77, %c0_78] : memref<256x128xbf16, #tpu.memory_space<vmem>>, vector<256x128xbf16>
    %c0_79 = arith.constant 0 : index
    %c0_80 = arith.constant 0 : index
    %65 = vector.load %arg4[%c0_79, %c0_80] : memref<128x128xbf16, #tpu.memory_space<vmem>>, vector<128x128xbf16>
    %cst = arith.constant dense<0.000000e+00> : vector<256x128xf32>
    %66 = tpu.matmul %64, %65, %cst {dimension_numbers = #tpu.dot_dimension_numbers<[1], [0], [0], [1], [0, 0, 1, 1], [], []>} : vector<256x128xbf16>, vector<128x128xbf16>, vector<256x128xf32> -> vector<256x128xf32>
    %67 = arith.truncf %66 : vector<256x128xf32> to vector<256x128xbf16>
    %c0_81 = arith.constant 0 : index
    %c0_82 = arith.constant 0 : index
    %c0_83 = arith.constant 0 : index
    %68 = vector.load %arg5[%c0_81, %c0_82, %c0_83] : memref<1x256x128xbf16, #tpu.memory_space<vmem>>, vector<1x256x128xbf16>
    %69 = vector.shape_cast %68 : vector<1x256x128xbf16> to vector<256x128xbf16>
    %70 = vector.shape_cast %67 : vector<256x128xbf16> to vector<1x256x128xbf16>
    tpu.vector_store %arg5[%c0_81, %c0_82, %c0_83], %70 {strides = array<i32>} : memref<1x256x128xbf16, #tpu.memory_space<vmem>>, vector<1x256x128xbf16>,
    %71 = arith.extf %67 : vector<256x128xbf16> to vector<256x128xf32>
    %cst_84 = arith.constant dense<0.000000e+00> : vector<128xf32>
    %72 = vector.multi_reduction <add>, %71, %cst_84 [0] : vector<256x128xf32> to vector<128xf32>
    %73 = vector.shape_cast %72 : vector<128xf32> to vector<1x128xf32>
    %c0_85 = arith.constant 0 : index
    %c0_86 = arith.constant 0 : index
    %c0_87 = arith.constant 0 : index
    %c0_88 = arith.constant 0 : index
    %74 = vector.load %arg6[%c0_85, %c0_86, %c0_87, %c0_88] : memref<1x1x2x128xf32, #tpu.memory_space<vmem>>, vector<1x1x1x128xf32>
    %75 = vector.shape_cast %74 : vector<1x1x1x128xf32> to vector<1x128xf32>
    %76 = vector.shape_cast %73 : vector<1x128xf32> to vector<1x1x1x128xf32>
    tpu.vector_store %arg6[%c0_85, %c0_86, %c0_87, %c0_88], %76 {strides = array<i32>} : memref<1x1x2x128xf32, #tpu.memory_space<vmem>>, vector<1x1x1x128xf32>,
    %77 = arith.mulf %71, %71 : vector<256x128xf32>
    %cst_89 = arith.constant dense<0.000000e+00> : vector<128xf32>
    %78 = vector.multi_reduction <add>, %77, %cst_89 [0] : vector<256x128xf32> to vector<128xf32>
    %79 = vector.shape_cast %78 : vector<128xf32> to vector<1x128xf32>
    %c0_90 = arith.constant 0 : index
    %c0_91 = arith.constant 0 : index
    %c1_92 = arith.constant 1 : index
    %c0_93 = arith.constant 0 : index
    %80 = vector.load %arg6[%c0_90, %c0_91, %c1_92, %c0_93] : memref<1x1x2x128xf32, #tpu.memory_space<vmem>>, vector<1x1x1x128xf32>
    %81 = vector.shape_cast %80 : vector<1x1x1x128xf32> to vector<1x128xf32>
    %82 = vector.shape_cast %79 : vector<1x128xf32> to vector<1x1x1x128xf32>
    tpu.vector_store %arg6[%c0_90, %c0_91, %c1_92, %c0_93], %82 {strides = array<i32>} : memref<1x1x2x128xf32, #tpu.memory_space<vmem>>, vector<1x1x1x128xf32>,
    return
  }
  func.func @transform_0(%arg0: i32, %arg1: i32, %arg2: i32) -> (i32, i32, i32, i32) {
    %c0_i32 = arith.constant 0 : i32
    %c0_i32_0 = arith.constant 0 : i32
    %c0_i32_1 = arith.constant 0 : i32
    %c0_i32_2 = arith.constant 0 : i32
    return %arg0, %c0_i32, %c0_i32_0, %c0_i32_1 : i32, i32, i32, i32
  }
  func.func @transform_1(%arg0: i32, %arg1: i32, %arg2: i32) -> (i32, i32) {
    %c0_i32 = arith.constant 0 : i32
    %c0_i32_0 = arith.constant 0 : i32
    return %c0_i32, %arg1 : i32, i32
  }
  func.func @transform_2(%arg0: i32, %arg1: i32, %arg2: i32) -> (i32, i32, i32) {
    %c0_i32 = arith.constant 0 : i32
    return %arg0, %arg2, %arg1 : i32, i32, i32
  }
  func.func @transform_3(%arg0: i32, %arg1: i32, %arg2: i32) -> (i32, i32, i32, i32) {
    %c0_i32 = arith.constant 0 : i32
    %c0_i32_0 = arith.constant 0 : i32
    return %arg0, %arg2, %c0_i32, %arg1 : i32, i32, i32, i32
  }
}

</mosaic_0001>

<bundles_post_ra>
// kernel: tpu_custom_call.1
= control target key start
LH: loop header
LB: loop body
LE: loop exit
PB: predicated region body
PF: predicated region fallthrough
CT: control target
= control target key end

     0   :  { %9 = vsyncpa [#allocation4], 0  ;;  %s11327_s0 = inlined_call_operand.vmem [shape: bf16[2,19,19,8], index: 0, kind: input, shape index: {}]   ;;  %s11328_s1 = inlined_call_operand.vmem [shape: bf16[128,128], index: 1, kind: input, shape index: {}]   ;;  %s11329_s2 = inlined_call_operand.hbm [shape: bf16[2,256,128], index: 2, kind: output, shape index: {0}]   ;;  %s11330_s3 = inlined_call_operand.hbm [shape: f32[2,1,2,128], index: 3, kind: output, shape index: {1}]  }
   0x1   :  { %11 = vsyncpa [#allocation4 + $0x1], 0 }
   0x2   :  { %12 = vsyncpa [#allocation6], 0 }
   0x3   :  { %14 = vsyncpa [#allocation6 + $0x1], 0  ;;  %s8937_s12 = smov 0   ;;  %s8939_s13 = smov 0  }
   0x4   :  { %s8941_s14 = smov 0   ;;  %s8943_s15 = smov 0  }
   0x5   :  { %s8945_s16 = smov 0   ;;  %s8947_s17 = smov 0  }
   0x6 LB: > { %s7518_s18 = sadd.s32 4294967295, %s8897_s17   ;;  %s7519_s19 = sadd.s32 4294967294, %s8897_s17   ;;  %s8897_s17 = sphi %s8947_s17, %s20_s17   ;;  %s8893_s16 = sphi %s8945_s16, %s11343_s16   ;;  %s8889_s15 = sphi %s8943_s15, %s11342_s15   ;;  %s8885_s14 = sphi %s8941_s14, %s11341_s14   ;;  %s8881_s13 = sphi %s8939_s13, %s11340_s13   ;;  %s8877_s12 = sphi %s8937_s12, %s11339_s12  }
   0x7   : > { %s39_s20 = sadd.s32 1, %s8893_s16  ;;  %s102_s21 = sadd.s32 1, %s8885_s14 }
   0x8   : > { %p41_p0 = scmp.ge.s32.totalorder %s39_s20, 2  ;;  %p112_p1 = scmp.ne.s32.totalorder %s8885_s14, %s8881_s13 }
   0x9   : > { %p113_p2 = scmp.eq.s32.totalorder %s7518_s18, 1  ;;  %p118_p3 = scmp.ne.s32.totalorder %s8881_s13, %s8877_s12 }
   0xa   : > { %s11345_s20 = smov (%p41_p0, %s39_s20), 0  ;;  %p119_p5 = scmp.eq.s32.totalorder %s7519_s19, 1 }
   0xb   : > { %p8977_p4 = por %p113_p2, %p112_p1  ;;  %s95_s23 = ssub.s32 %s8893_s16, %s11345_s20 }
   0xc   : > { %p7523_p6 = scmp.ge.s32.totalorder %s8897_s17, 1  ;;  %p100_p7 = scmp.eq.s32.totalorder %s95_s23, 0 }
   0xd   : > { %p8984_p8 = por %p119_p5, %p118_p3  ;;  %p182_p9 = scmp.lt.s32.totalorder %s8897_s17, 3 }
   0xe   : > { %s8990_s25 = scalar_select %p100_p7, %s8885_s14, %s102_s21  }
   0xf   : > { %p183_p10 = pnand %p7523_p6, %p182_p9 }
  0x10   : > { %p215_p11 = scmp.lt.s32.totalorder (!%p183_p10), %s8889_s15, 1  ;;  %vm419_vm0 = vsmask.f32 (!%p183_p10), 3328  ;;  %vm420_vm1 = vsmask.f32 (!%p183_p10), 7440  ;;  %s8899_s4 = smov (!%p183_p10), 8  }
  0x11   : > { %186 = sbr.rel (%p183_p10) target bundleno = 1132 (0x46c), region = 28  ;;  %vm9009_vm2 = vmor (!%p183_p10), %vm419_vm0, %vm420_vm1  ;;  %vm1015_vm3 = vcmask (!%p183_p10), 1042432   ;;  %vm1016_vm4 = vcmask (!%p183_p10), 1046532   ;;  %s8900_s5 = smov (!%p183_p10), 16   ;;  %vm1291_vm6 = vsmask.f32 (!%p183_p10), 2304 }
  0x12   : > { %vm9129_vm5 = vmor (!%p183_p10), %vm1015_vm3, %vm1016_vm4  ;;  %vm1292_vm7 = vsmask.f32 (!%p183_p10), 6416  ;;  %s8901_s6 = smov (!%p183_p10), 24   ;;  %s8902_s7 = smov (!%p183_p10), 32   ;;  %vm354_vm9 = vcmask (!%p183_p10), 64512   ;;  %vm902_vm10 = vcmask (!%p183_p10), 130112  }
  0x13   : > { %vm9272_vm8 = vmor (!%p183_p10), %vm1291_vm6, %vm1292_vm7  ;;  %s8903_s8 = smov (!%p183_p10), 40   ;;  %s8904_s9 = smov (!%p183_p10), 48   ;;  %vm1226_vm11 = vcmask (!%p183_p10), 195712   ;;  %vm1838_vm12 = vcmask (!%p183_p10), 261312   ;;  %vm2016_vm13 = vcmask (!%p183_p10), 326912   ;;  %vm2561_vm14 = vcmask (!%p183_p10), 392512  }
  0x14   : > { %s8905_s10 = smov (!%p183_p10), 56   ;;  %s8906_s11 = smov (!%p183_p10), 64   ;;  %vm2882_vm15 = vcmask (!%p183_p10), 458112   ;;  %vm3491_vm0 = vcmask (!%p183_p10), 523712   ;;  %vm3669_vm1 = vcmask (!%p183_p10), 589312   ;;  %vm4214_vm3 = vcmask (!%p183_p10), 654912  }
  0x15   : > { %s8907_s18 = smov (!%p183_p10), 72   ;;  %s8908_s19 = smov (!%p183_p10), 80   ;;  %vm4535_vm4 = vcmask (!%p183_p10), 720512   ;;  %vm5144_vm6 = vcmask (!%p183_p10), 786112   ;;  %vm5322_vm7 = vcmask (!%p183_p10), 851712  }
  0x16   : > { %s8909_s21 = smov (!%p183_p10), 88   ;;  %s8910_s23 = smov (!%p183_p10), 96  }
  0x17   : > { %s8913_s28 = smov (!%p183_p10), 120  }
  0x18   : > { %s216_s26 = scalar_select %p215_p11, %s8889_s15, 1 }
  0x1a   : > { %s8638_s27 = smul.u32 228, %s216_s26  ;;  %s8911_s26 = smov 104  }
  0x1c   : > { %s8997_s30 = scalar_lea.vmem %s11327_s0, %s8638_s27  ;;  %s8912_s27 = smov 112  }
  0x1d   : > { %v377_v0 = vld [vmem:[%s8997_s30 + $0x18] sm:$0xf]  ;;  %v378_v1 = vld [vmem:[%s8997_s30 + $0x1c] sm:$0xf]  ;;  %v379_v2 = vld [vmem:[%s8997_s30 + $0x20] sm:$0x1] }
  0x1e   : > { %v471_v3 = vshrl.u32 %v377_v0, 16  ;;  %v474_v4 = vshll.u32 %v377_v0, 16  ;;  %v480_v5 = vshll.u32 %v378_v1, 16  ;;  %v484_v6 = vshrl.u32 %v378_v1, 16  ;;  %v371_v7 = vld [vmem:[%s8997_s30] sm:$0xf] }
  0x1f   : > { %v490_v8 = vshll.u32 %v379_v2, 16  ;;  %v372_v9 = vld [vmem:[%s8997_s30 + $0x4] sm:$0xf]  ;;  %v373_v10 = vld [vmem:[%s8997_s30 + $0x8] sm:$0x1]  ;;  %v423_v11 = vshrl.u32 %v371_v7, 16 }
  0x20   : > { %v473_v12 = vrot.slane %v471_v3, 4  ;;  %v476_v13 = vrot.slane %v474_v4, 5  ;;  %v482_v14 = vrot.slane %v480_v5, 5  ;;  %v486_v15 = vrot.slane %v484_v6, 4  ;;  %v380_v16 = vld [vmem:[%s8997_s30 + $0x24] sm:$0xf] }
  0x21   : > { %v492_v17 = vrot.slane %v490_v8, 5  ;;  %v425_v18 = vrot.slane %v423_v11, 4  ;;  %v426_v19 = vshll.u32 %v371_v7, 16  ;;  %v432_v20 = vshll.u32 %v372_v9, 16  ;;  %v381_v25 = vld [vmem:[%s8997_s30 + $0x28] sm:$0xf] }
  0x22   : > { %v477_v21 = vor.u32 %v476_v13, %v473_v12  ;;  %v487_v22 = vor.u32 %v486_v15, %v482_v14  ;;  %v436_v23 = vshrl.u32 %v372_v9, 16  ;;  %v442_v24 = vshll.u32 %v373_v10, 16  ;;  %v382_v35 = vld [vmem:[%s8997_s30 + $0x2c] sm:$0x1]  ;;  %v375_v45 = vld [vmem:[%s8997_s30 + $0x10] sm:$0xf] }
  0x23   : > { %v428_v27 = vrot.slane %v426_v19, 5  ;;  %v434_v28 = vrot.slane %v432_v20, 5  ;;  %v495_v29 = vshrl.u32 %v380_v16, 16  ;;  %v498_v30 = vshll.u32 %v380_v16, 16  ;;  %v374_v40 = vld [vmem:[%s8997_s30 + $0xc] sm:$0xf] }
  0x24   : > { %v478_v31 = vrot.slane %v477_v21, 4  ;;  %v488_v32 = vrot.slane %v487_v22, 4  ;;  %v438_v33 = vrot.slane %v436_v23, 4  ;;  %v444_v34 = vrot.slane %v442_v24, 5  ;;  %v376_v53 = vld [vmem:[%s8997_s30 + $0x14] sm:$0x1] }
  0x25   : > { %v429_v36 = vor.u32 %v428_v27, %v425_v18  ;;  %v497_v37 = vrot.slane %v495_v29, 4  ;;  %v500_v38 = vrot.slane %v498_v30, 5  ;;  %v504_v39 = vshll.u32 %v381_v25, 16  ;;  %v386_v59 = vld [vmem:[%s8997_s30 + $0x3c] sm:$0xf] }
  0x26   : > { %v483_v41 = vsel %vm9009_vm2, %v478_v31, %v482_v14  ;;  %v493_v42 = vsel %vm9009_vm2, %v488_v32, %v492_v17  ;;  %v439_v43 = vor.u32 %v438_v33, %v434_v28  ;;  %v508_v44 = vshrl.u32 %v381_v25, 16  ;;  %v387_v0 = vld [vmem:[%s8997_s30 + $0x40] sm:$0xf]  ;;  %v388_v8 = vld [vmem:[%s8997_s30 + $0x44] sm:$0x1] }
  0x27   : > { %v7545_v46 = vcombine.low %v483_v41, %v493_v42  ;;  %v430_v47 = vrot.slane %v429_v36, 4  ;;  %v501_v48 = vor.u32 %v500_v38, %v497_v37  ;;  %v506_v49 = vrot.slane %v504_v39, 5  ;;  %v383_v14 = vld [vmem:[%s8997_s30 + $0x30] sm:$0xf]  ;;  %v384_v19 = vld [vmem:[%s8997_s30 + $0x34] sm:$0xf] }
  0x28   : > { %v440_v50 = vrot.slane %v439_v43, 4  ;;  %v510_v51 = vrot.slane %v508_v44, 4  ;;  %v514_v52 = vshll.u32 %v382_v35, 16  ;;  %v447_v54 = vshrl.u32 %v374_v40, 16  ;;  %v385_v31 = vld [vmem:[%s8997_s30 + $0x38] sm:$0x1] }
  0x29   : > { %858 = vrot.lane.b32.xlu1 %v7545_v46, %s8899_s4  ;;  %v435_v55 = vsel %vm9009_vm2, %v430_v47, %v434_v28  ;;  %v502_v56 = vrot.slane %v501_v48, 4  ;;  %v450_v57 = vshll.u32 %v374_v40, 16  ;;  %v456_v58 = vshll.u32 %v375_v45, 16  ;;  %v393_v46 = vld [vmem:[%s8997_s30 + $0x58] sm:$0xf] }
  0x2a   : > { %v445_v60 = vsel %vm9009_vm2, %v440_v50, %v444_v34  ;;  %v511_v61 = vor.u32 %v510_v51, %v506_v49  ;;  %v516_v62 = vrot.slane %v514_v52, 5  ;;  %v449_v63 = vrot.slane %v447_v54, 4  ;;  %v392_v34 = vld [vmem:[%s8997_s30 + $0x54] sm:$0xf]  ;;  %v394_v52 = vld [vmem:[%s8997_s30 + $0x5c] sm:$0x1] }
  0x2b   : > { %v7543_v1 = vcombine.low %v435_v55, %v445_v60  ;;  %v507_v2 = vsel %vm9009_vm2, %v502_v56, %v506_v49  ;;  %v452_v3 = vrot.slane %v450_v57, 5  ;;  %v458_v4 = vrot.slane %v456_v58, 5 }
  0x2c   : > { %v512_v5 = vrot.slane %v511_v61, 4  ;;  %v460_v6 = vshrl.u32 %v375_v45, 16  ;;  %v466_v7 = vshll.u32 %v376_v53, 16  ;;  %v543_v9 = vshrl.u32 %v386_v59, 16  ;;  %v389_v53 = vld [vmem:[%s8997_s30 + $0x48] sm:$0xf] }
  0x2d   : > { %854 = vrot.lane.b32.xlu0 %v7543_v1, %s8899_s4  ;;  %v453_v10 = vor.u32 %v452_v3, %v449_v63  ;;  %v546_v11 = vshll.u32 %v386_v59, 16  ;;  %v552_v12 = vshll.u32 %v387_v0, 16  ;;  %v556_v13 = vshrl.u32 %v387_v0, 16  ;;  %v390_v1 = vld [vmem:[%s8997_s30 + $0x4c] sm:$0xf] }
  0x2e   : > { %v517_v15 = vsel %vm9009_vm2, %v512_v5, %v516_v62  ;;  %v462_v16 = vrot.slane %v460_v6, 4  ;;  %v468_v17 = vrot.slane %v466_v7, 5  ;;  %v545_v18 = vrot.slane %v543_v9, 4  ;;  %v391_v6 = vld [vmem:[%s8997_s30 + $0x50] sm:$0x1] }
  0x2f   : > { %v7546_v20 = vcombine.low %v507_v2, %v517_v15  ;;  %v454_v21 = vrot.slane %v453_v10, 4  ;;  %v548_v22 = vrot.slane %v546_v11, 5  ;;  %v554_v23 = vrot.slane %v552_v12, 5  ;;  %v398_v12 = vld [vmem:[%s8997_s30 + $0x6c] sm:$0xf] }
  0x30   : > { %v463_v24 = vor.u32 %v462_v16, %v458_v4  ;;  %v558_v25 = vrot.slane %v556_v13, 4  ;;  %v562_v27 = vshll.u32 %v388_v8, 16  ;;  %v519_v28 = vshrl.u32 %v383_v14, 16 }
  0x31   : > { %860 = vrot.lane.b32.xlu1 %v7546_v20, %s8899_s4  ;;  %v459_v29 = vsel %vm9009_vm2, %v454_v21, %v458_v4  ;;  %v549_v30 = vor.u32 %v548_v22, %v545_v18  ;;  %v522_v32 = vshll.u32 %v383_v14, 16  ;;  %v528_v33 = vshll.u32 %v384_v19, 16  ;;  %v399_v21 = vld [vmem:[%s8997_s30 + $0x70] sm:$0xf] }
  0x32   : > { %v464_v35 = vrot.slane %v463_v24, 4  ;;  %v559_v36 = vor.u32 %v558_v25, %v554_v23  ;;  %v564_v37 = vrot.slane %v562_v27, 5  ;;  %v521_v38 = vrot.slane %v519_v28, 4  ;;  %v400_v25 = vld [vmem:[%s8997_s30 + $0x74] sm:$0x1] }
  0x33   : > { %v550_v39 = vrot.slane %v549_v30, 4  ;;  %v524_v40 = vrot.slane %v522_v32, 5  ;;  %v530_v41 = vrot.slane %v528_v33, 5  ;;  %v532_v42 = vshrl.u32 %v384_v19, 16 }
  0x34   : > { %v469_v43 = vsel %vm9009_vm2, %v464_v35, %v468_v17  ;;  %v560_v44 = vrot.slane %v559_v36, 4  ;;  %v538_v45 = vshll.u32 %v385_v31, 16  ;;  %v591_v47 = vshrl.u32 %v392_v34, 16  ;;  %v395_v36 = vld [vmem:[%s8997_s30 + $0x60] sm:$0xf] }
  0x35   : > { %v7544_v48 = vcombine.low %v459_v29, %v469_v43  ;;  %v555_v49 = vsel %vm9009_vm2, %v550_v39, %v554_v23  ;;  %v525_v50 = vor.u32 %v524_v40, %v521_v38  ;;  %v534_v51 = vrot.slane %v532_v42, 4 }
  0x36   : > { %v565_v54 = vsel %vm9009_vm2, %v560_v44, %v564_v37  ;;  %v540_v55 = vrot.slane %v538_v45, 5  ;;  %v593_v56 = vrot.slane %v591_v47, 4  ;;  %v594_v57 = vshll.u32 %v392_v34, 16 }
  0x37   : > { %856 = vrot.lane.b32.xlu0 %v7544_v48, %s8899_s4  ;;  %v7548_v58 = vcombine.low %v555_v49, %v565_v54  ;;  %v526_v59 = vrot.slane %v525_v50, 4  ;;  %v535_v60 = vor.u32 %v534_v51, %v530_v41  ;;  %v600_v61 = vshll.u32 %v393_v46, 16  ;;  %v397_v49 = vld [vmem:[%s8997_s30 + $0x68] sm:$0x1] }
  0x38   : > { %v596_v62 = vrot.slane %v594_v57, 5  ;;  %v604_v63 = vshrl.u32 %v393_v46, 16  ;;  %v610_v0 = vshll.u32 %v394_v52, 16  ;;  %v567_v2 = vshrl.u32 %v389_v53, 16 }
  0x39   : > { %864 = vrot.lane.b32.xlu1 %v7548_v58, %s8899_s4  ;;  %v531_v3 = vsel %vm9009_vm2, %v526_v59, %v530_v41  ;;  %v536_v4 = vrot.slane %v535_v60, 4  ;;  %v602_v5 = vrot.slane %v600_v61, 5  ;;  %v570_v7 = vshll.u32 %v389_v53, 16  ;;  %v396_v41 = vld [vmem:[%s8997_s30 + $0x64] sm:$0xf] }
  0x3a   : > { %v597_v8 = vor.u32 %v596_v62, %v593_v56  ;;  %v606_v9 = vrot.slane %v604_v63, 4  ;;  %v612_v10 = vrot.slane %v610_v0, 5  ;;  %v569_v11 = vrot.slane %v567_v2, 4  ;;  %v405_v60 = vld [vmem:[%s8997_s30 + $0x88] sm:$0xf] }
  0x3b   : > { %v541_v13 = vsel %vm9009_vm2, %v536_v4, %v540_v55  ;;  %v572_v14 = vrot.slane %v570_v7, 5  ;;  %v576_v15 = vshll.u32 %v390_v1, 16  ;;  %v580_v16 = vshrl.u32 %v390_v1, 16  ;;  %v404_v55 = vld [vmem:[%s8997_s30 + $0x84] sm:$0xf] }
  0x3c   : > { %v7547_v17 = vcombine.low %v531_v3, %v541_v13  ;;  %v598_v18 = vrot.slane %v597_v8, 4  ;;  %v607_v19 = vor.u32 %v606_v9, %v602_v5  ;;  %v586_v20 = vshll.u32 %v391_v6, 16  ;;  %v406_v8 = vld [vmem:[%s8997_s30 + $0x8c] sm:$0x1] }
  0x3d   : > { %v573_v22 = vor.u32 %v572_v14, %v569_v11  ;;  %v578_v23 = vrot.slane %v576_v15, 5  ;;  %v582_v24 = vrot.slane %v580_v16, 4  ;;  %v639_v27 = vshrl.u32 %v398_v12, 16  ;;  %v402_v15 = vld [vmem:[%s8997_s30 + $0x7c] sm:$0xf] }
  0x3e   : > { %862 = vrot.lane.b32.xlu0 %v7547_v17, %s8899_s4  ;;  %v603_v28 = vsel %vm9009_vm2, %v598_v18, %v602_v5  ;;  %v608_v29 = vrot.slane %v607_v19, 4  ;;  %v588_v30 = vrot.slane %v586_v20, 5  ;;  %v642_v31 = vshll.u32 %v398_v12, 16 }
  0x3f   : > { %v574_v32 = vrot.slane %v573_v22, 4  ;;  %v583_v33 = vor.u32 %v582_v24, %v578_v23  ;;  %v641_v34 = vrot.slane %v639_v27, 4  ;;  %v648_v35 = vshll.u32 %v399_v21, 16  ;;  %v403_v27 = vld [vmem:[%s8997_s30 + $0x80] sm:$0x1] }
  0x40   : > { %v613_v37 = vsel %vm9009_vm2, %v608_v29, %v612_v10  ;;  %v644_v38 = vrot.slane %v642_v31, 5  ;;  %v652_v39 = vshrl.u32 %v399_v21, 16  ;;  %v658_v40 = vshll.u32 %v400_v25, 16  ;;  %v401_v10 = vld [vmem:[%s8997_s30 + $0x78] sm:$0xf] }
  0x41   : > { %v7550_v42 = vcombine.low %v603_v28, %v613_v37  ;;  %v579_v43 = vsel %vm9009_vm2, %v574_v32, %v578_v23  ;;  %v584_v44 = vrot.slane %v583_v33, 4  ;;  %v650_v45 = vrot.slane %v648_v35, 5  ;;  %v411_v35 = vld [vmem:[%s8997_s30 + $0xa0] sm:$0xf] }
  0x42   : > { %v645_v46 = vor.u32 %v644_v38, %v641_v34  ;;  %v654_v47 = vrot.slane %v652_v39, 4  ;;  %v660_v48 = vrot.slane %v658_v40, 5  ;;  %v615_v50 = vshrl.u32 %v395_v36, 16 }
  0x43   : > { %868 = vrot.lane.b32.xlu1 %v7550_v42, %s8899_s4  ;;  %v589_v51 = vsel %vm9009_vm2, %v584_v44, %v588_v30  ;;  %v618_v52 = vshll.u32 %v395_v36, 16  ;;  %v624_v53 = vshll.u32 %v396_v41, 16  ;;  %v628_v54 = vshrl.u32 %v396_v41, 16  ;;  %v410_v30 = vld [vmem:[%s8997_s30 + $0x9c] sm:$0xf] }
  0x44   : > { %v7549_v56 = vcombine.low %v579_v43, %v589_v51  ;;  %v646_v57 = vrot.slane %v645_v46, 4  ;;  %v655_v58 = vor.u32 %v654_v47, %v650_v45  ;;  %v617_v59 = vrot.slane %v615_v50, 4  ;;  %v412_v43 = vld [vmem:[%s8997_s30 + $0xa4] sm:$0x1] }
  0x45   : > { %v620_v61 = vrot.slane %v618_v52, 5  ;;  %v626_v62 = vrot.slane %v624_v53, 5  ;;  %v630_v63 = vrot.slane %v628_v54, 4  ;;  %v634_v0 = vshll.u32 %v397_v49, 16  ;;  %v407_v49 = vld [vmem:[%s8997_s30 + $0x90] sm:$0xf] }
  0x46   : > { %866 = vrot.lane.b32.xlu0 %v7549_v56, %s8899_s4  ;;  %v651_v1 = vsel %vm9009_vm2, %v646_v57, %v650_v45  ;;  %v656_v2 = vrot.slane %v655_v58, 4  ;;  %v687_v3 = vshrl.u32 %v404_v55, 16  ;;  %v690_v4 = vshll.u32 %v404_v55, 16  ;;  %v408_v58 = vld [vmem:[%s8997_s30 + $0x94] sm:$0xf] }
  0x47   : > { %v621_v5 = vor.u32 %v620_v61, %v617_v59  ;;  %v631_v6 = vor.u32 %v630_v63, %v626_v62  ;;  %v636_v7 = vrot.slane %v634_v0, 5  ;;  %v696_v9 = vshll.u32 %v405_v60, 16 }
  0x48   : > { %v661_v11 = vsel %vm9009_vm2, %v656_v2, %v660_v48  ;;  %v689_v12 = vrot.slane %v687_v3, 4  ;;  %v692_v13 = vrot.slane %v690_v4, 5  ;;  %v700_v14 = vshrl.u32 %v405_v60, 16  ;;  %v409_v2 = vld [vmem:[%s8997_s30 + $0x98] sm:$0x1] }
  0x49   : > { %v7552_v16 = vcombine.low %v651_v1, %v661_v11  ;;  %v622_v17 = vrot.slane %v621_v5, 4  ;;  %v632_v18 = vrot.slane %v631_v6, 4  ;;  %v698_v19 = vrot.slane %v696_v9, 5 }
  0x4a   : > { %v693_v20 = vor.u32 %v692_v13, %v689_v12  ;;  %v702_v21 = vrot.slane %v700_v14, 4  ;;  %v706_v22 = vshll.u32 %v406_v8, 16  ;;  %v663_v23 = vshrl.u32 %v401_v10, 16  ;;  %v416_v8 = vld [vmem:[%s8997_s30 + $0xb4] sm:$0xf] }
  0x4b   : > { %872 = vrot.lane.b32.xlu1 %v7552_v16, %s8899_s4  ;;  %v627_v24 = vsel %vm9009_vm2, %v622_v17, %v626_v62  ;;  %v637_v25 = vsel %vm9009_vm2, %v632_v18, %v636_v7  ;;  %v666_v28 = vshll.u32 %v401_v10, 16  ;;  %v672_v29 = vshll.u32 %v402_v15, 16  ;;  %v417_v13 = vld [vmem:[%s8997_s30 + $0xb8] sm:$0xf] }
  0x4c   : > { %v7551_v31 = vcombine.low %v627_v24, %v637_v25  ;;  %v694_v32 = vrot.slane %v693_v20, 4  ;;  %v703_v33 = vor.u32 %v702_v21, %v698_v19  ;;  %v708_v34 = vrot.slane %v706_v22, 5  ;;  %v418_v21 = vld [vmem:[%s8997_s30 + $0xbc] sm:$0x1] }
  0x4d   : > { %v665_v36 = vrot.slane %v663_v23, 4  ;;  %v668_v37 = vrot.slane %v666_v28, 5  ;;  %v674_v38 = vrot.slane %v672_v29, 5  ;;  %v676_v39 = vshrl.u32 %v402_v15, 16  ;;  %v413_v28 = vld [vmem:[%s8997_s30 + $0xa8] sm:$0xf] }
  0x4e   : > { %870 = vrot.lane.b32.xlu0 %v7551_v31, %s8899_s4  ;;  %v699_v40 = vsel %vm9009_vm2, %v694_v32, %v698_v19  ;;  %v704_v41 = vrot.slane %v703_v33, 4  ;;  %v682_v42 = vshll.u32 %v403_v27, 16  ;;  %v735_v44 = vshrl.u32 %v410_v30, 16  ;;  %v414_v33 = vld [vmem:[%s8997_s30 + $0xac] sm:$0xf] }
  0x4f   : > { %v669_v45 = vor.u32 %v668_v37, %v665_v36  ;;  %v678_v46 = vrot.slane %v676_v39, 4  ;;  %v738_v47 = vshll.u32 %v410_v30, 16  ;;  %v744_v48 = vshll.u32 %v411_v35, 16 }
  0x50   : > { %v709_v50 = vsel %vm9009_vm2, %v704_v41, %v708_v34  ;;  %v684_v51 = vrot.slane %v682_v42, 5  ;;  %v737_v52 = vrot.slane %v735_v44, 4  ;;  %v748_v53 = vshrl.u32 %v411_v35, 16 }
  0x51   : > { %v7554_v54 = vcombine.low %v699_v40, %v709_v50  ;;  %v670_v55 = vrot.slane %v669_v45, 4  ;;  %v679_v56 = vor.u32 %v678_v46, %v674_v38  ;;  %v740_v57 = vrot.slane %v738_v47, 5 }
  0x52   : > { %v746_v59 = vrot.slane %v744_v48, 5  ;;  %v750_v60 = vrot.slane %v748_v53, 4  ;;  %v754_v61 = vshll.u32 %v412_v43, 16  ;;  %v711_v62 = vshrl.u32 %v407_v49, 16  ;;  %v922_v43 = vld [vmem:[%s8997_s30 + $0xc] sm:$0xe] }
  0x53   : > { %876 = vrot.lane.b32.xlu1 %v7554_v54, %s8899_s4  ;;  %v675_v63 = vsel %vm9009_vm2, %v670_v55, %v674_v38  ;;  %v680_v0 = vrot.slane %v679_v56, 4  ;;  %v741_v1 = vor.u32 %v740_v57, %v737_v52  ;;  %v714_v3 = vshll.u32 %v407_v49, 16  ;;  %v415_v38 = vld [vmem:[%s8997_s30 + $0xb0] sm:$0x1]  ;;  %v924_v53 = vld [vmem:[%s8997_s30 + $0x14] sm:$0x1] }
  0x54   : > { %v751_v4 = vor.u32 %v750_v60, %v746_v59  ;;  %v756_v5 = vrot.slane %v754_v61, 5  ;;  %v713_v6 = vrot.slane %v711_v62, 4  ;;  %v720_v7 = vshll.u32 %v408_v58, 16  ;;  %v923_v48 = vld [vmem:[%s8997_s30 + $0x10] sm:$0xf] }
  0x55   : > { %v685_v9 = vsel %vm9009_vm2, %v680_v0, %v684_v51  ;;  %v742_v10 = vrot.slane %v741_v1, 4  ;;  %v716_v11 = vrot.slane %v714_v3, 5  ;;  %v724_v12 = vshrl.u32 %v408_v58, 16  ;;  %v919_v58 = vld [vmem:[%s8997_s30] sm:$0xe] }
  0x56   : > { %v7553_v14 = vcombine.low %v675_v63, %v685_v9  ;;  %v752_v15 = vrot.slane %v751_v4, 4  ;;  %v722_v16 = vrot.slane %v720_v7, 5  ;;  %v730_v17 = vshll.u32 %v409_v2, 16  ;;  %v921_v1 = vld [vmem:[%s8997_s30 + $0x8] sm:$0x1] }
  0x57   : > { %v747_v18 = vsel %vm9009_vm2, %v742_v10, %v746_v59  ;;  %v717_v19 = vor.u32 %v716_v11, %v713_v6  ;;  %v726_v20 = vrot.slane %v724_v12, 4  ;;  %v783_v22 = vshrl.u32 %v416_v8, 16  ;;  %v920_v59 = vld [vmem:[%s8997_s30 + $0x4] sm:$0xf]  ;;  %v929_v11 = vld [vmem:[%s8997_s30 + $0x28] sm:$0xf] }
  0x58   : > { %874 = vrot.lane.b32.xlu0 %v7553_v14, %s8899_s4  ;;  %v757_v23 = vsel %vm9009_vm2, %v752_v15, %v756_v5  ;;  %v732_v24 = vrot.slane %v730_v17, 5  ;;  %v786_v25 = vshll.u32 %v416_v8, 16  ;;  %v792_v27 = vshll.u32 %v417_v13, 16  ;;  %v928_v6 = vld [vmem:[%s8997_s30 + $0x24] sm:$0xe] }
  0x59   : > { %v7556_v29 = vcombine.low %v747_v18, %v757_v23  ;;  %v718_v30 = vrot.slane %v717_v19, 4  ;;  %v727_v31 = vor.u32 %v726_v20, %v722_v16  ;;  %v785_v32 = vrot.slane %v783_v22, 4  ;;  %v925_v17 = vld [vmem:[%s8997_s30 + $0x18] sm:$0xe]  ;;  %v926_v22 = vld [vmem:[%s8997_s30 + $0x1c] sm:$0xf] }
  0x5a   : > { %v788_v34 = vrot.slane %v786_v25, 5  ;;  %v794_v35 = vrot.slane %v792_v27, 5  ;;  %v796_v36 = vshrl.u32 %v417_v13, 16  ;;  %v802_v37 = vshll.u32 %v418_v21, 16  ;;  %v927_v23 = vld [vmem:[%s8997_s30 + $0x20] sm:$0x1] }
  0x5b   : > { %880 = vrot.lane.b32.xlu1 %v7556_v29, %s8899_s4  ;;  %v723_v39 = vsel %vm9009_vm2, %v718_v30, %v722_v16  ;;  %v728_v40 = vrot.slane %v727_v31, 4  ;;  %v759_v41 = vshrl.u32 %v413_v28, 16  ;;  %v762_v42 = vshll.u32 %v413_v28, 16  ;;  %v930_v16 = vld [vmem:[%s8997_s30 + $0x2c] sm:$0x1] }
  0x5c   : > { %v789_v44 = vor.u32 %v788_v34, %v785_v32  ;;  %v798_v45 = vrot.slane %v796_v36, 4  ;;  %v804_v46 = vrot.slane %v802_v37, 5  ;;  %v768_v47 = vshll.u32 %v414_v33, 16  ;;  %v934_v29 = vld [vmem:[%s8997_s30 + $0x3c] sm:$0xe] }
  0x5d   : > { %v733_v49 = vsel %vm9009_vm2, %v728_v40, %v732_v24  ;;  %v761_v50 = vrot.slane %v759_v41, 4  ;;  %v764_v51 = vrot.slane %v762_v42, 5  ;;  %v772_v52 = vshrl.u32 %v414_v33, 16  ;;  %v935_v30 = vld [vmem:[%s8997_s30 + $0x40] sm:$0xf] }
  0x5e   : > { %v7555_v54 = vcombine.low %v723_v39, %v733_v49  ;;  %v790_v55 = vrot.slane %v789_v44, 4  ;;  %v799_v56 = vor.u32 %v798_v45, %v794_v35  ;;  %v770_v57 = vrot.slane %v768_v47, 5  ;;  %v931_v36 = vld [vmem:[%s8997_s30 + $0x30] sm:$0xe]  ;;  %v932_v41 = vld [vmem:[%s8997_s30 + $0x34] sm:$0xf] }
  0x5f   : > { %v765_v60 = vor.u32 %v764_v51, %v761_v50  ;;  %v774_v61 = vrot.slane %v772_v52, 4  ;;  %v778_v62 = vshll.u32 %v415_v38, 16  ;;  %v7560_v0 = vrot.slane %v922_v43, 9  ;;  %v933_v42 = vld [vmem:[%s8997_s30 + $0x38] sm:$0x1] }
  0x60   : > { %878 = vrot.lane.b32.xlu0 %v7555_v54, %s8899_s4  ;;  %v795_v2 = vsel %vm9009_vm2, %v790_v55, %v794_v35  ;;  %v800_v3 = vrot.slane %v799_v56, 4  ;;  %v1027_v4 = vrot.slane %v923_v48, 5  ;;  %v1030_v5 = vrot.slane %v924_v53, 5  ;;  %v936_v35 = vld [vmem:[%s8997_s30 + $0x44] sm:$0x1] }
  0x61   : > { %v766_v7 = vrot.slane %v765_v60, 4  ;;  %v775_v8 = vor.u32 %v774_v61, %v770_v57  ;;  %v780_v9 = vrot.slane %v778_v62, 5  ;;  %v7559_v10 = vrot.slane %v919_v58, 9  ;;  %v940_v47 = vld [vmem:[%s8997_s30 + $0x54] sm:$0xe] }
  0x62   : > { %v805_v12 = vsel %vm9009_vm2, %v800_v3, %v804_v46  ;;  %v1028_v13 = vsel %vm9129_vm5, %v7560_v0, %v1027_v4  ;;  %v1029_v14 = vrot.slane %v1027_v4, 4  ;;  %v1020_v15 = vrot.slane %v920_v59, 5  ;;  %v941_v48 = vld [vmem:[%s8997_s30 + $0x58] sm:$0xf]  ;;  %v942_v49 = vld [vmem:[%s8997_s30 + $0x5c] sm:$0x1] }
  0x63   : > { %v7558_v18 = vcombine.low %v795_v2, %v805_v12  ;;  %v771_v19 = vsel %vm9009_vm2, %v766_v7, %v770_v57  ;;  %v776_v20 = vrot.slane %v775_v8, 4  ;;  %v1023_v21 = vrot.slane %v921_v1, 5  ;;  %v937_v54 = vld [vmem:[%s8997_s30 + $0x48] sm:$0xe]  ;;  %v938_v59 = vld [vmem:[%s8997_s30 + $0x4c] sm:$0xf] }
  0x64   : > { %v1031_v24 = vsel %vm9129_vm5, %v1029_v14, %v1030_v5  ;;  %v1021_v25 = vsel %vm9129_vm5, %v7559_v10, %v1020_v15  ;;  %v1022_v27 = vrot.slane %v1020_v15, 4  ;;  %v7562_v28 = vrot.slane %v928_v6, 9  ;;  %v939_v1 = vld [vmem:[%s8997_s30 + $0x50] sm:$0x1]  ;;  %v946_v2 = vld [vmem:[%s8997_s30 + $0x6c] sm:$0xe] }
  0x65   : > { %884 = vrot.lane.b32.xlu1 %v7558_v18, %s8899_s4  ;;  %v781_v31 = vsel %vm9009_vm2, %v776_v20, %v780_v9  ;;  %v7576_v32 = vcombine.low %v1028_v13, %v1031_v24  ;;  %v1041_v33 = vrot.slane %v929_v11, 5  ;;  %v1044_v34 = vrot.slane %v930_v16, 5  ;;  %v947_v7 = vld [vmem:[%s8997_s30 + $0x70] sm:$0xf]  ;;  %v948_v8 = vld [vmem:[%s8997_s30 + $0x74] sm:$0x1] }
  0x66   : > { %v7557_v37 = vcombine.low %v771_v19, %v781_v31  ;;  %v1024_v38 = vsel %vm9129_vm5, %v1022_v27, %v1023_v21  ;;  %v7561_v39 = vrot.slane %v925_v17, 9  ;;  %v1034_v40 = vrot.slane %v926_v22, 5  ;;  %v943_v13 = vld [vmem:[%s8997_s30 + $0x60] sm:$0xe]  ;;  %v944_v18 = vld [vmem:[%s8997_s30 + $0x64] sm:$0xf] }
  0x67   : > { %v7575_v43 = vcombine.low %v1021_v25, %v1024_v38  ;;  %v1042_v44 = vsel %vm9129_vm5, %v7562_v28, %v1041_v33  ;;  %v1043_v45 = vrot.slane %v1041_v33, 4  ;;  %v1037_v46 = vrot.slane %v927_v23, 5  ;;  %v945_v19 = vld [vmem:[%s8997_s30 + $0x68] sm:$0x1]  ;;  %v952_v24 = vld [vmem:[%s8997_s30 + $0x84] sm:$0xe] }
  0x68   : > { %882 = vrot.lane.b32.xlu0 %v7557_v37, %s8899_s4  ;;  %v1035_v50 = vsel %vm9129_vm5, %v7561_v39, %v1034_v40  ;;  %v1036_v51 = vrot.slane %v1034_v40, 4  ;;  %v7564_v52 = vrot.slane %v934_v29, 9  ;;  %v1055_v53 = vrot.slane %v935_v30, 5  ;;  %v953_v25 = vld [vmem:[%s8997_s30 + $0x88] sm:$0xf] }
  0x69   : > { %1180 = vrot.lane.b32.xlu1 %v7576_v32, %s8900_s5  ;;  %v1045_v55 = vsel %vm9129_vm5, %v1043_v45, %v1044_v34  ;;  %v1058_v56 = vrot.slane %v936_v35, 5  ;;  %v7563_v57 = vrot.slane %v931_v36, 9  ;;  %v1048_v58 = vrot.slane %v932_v41, 5  ;;  %v954_v31 = vld [vmem:[%s8997_s30 + $0x8c] sm:$0x1] }
  0x6a   : > { %v7578_v60 = vcombine.low %v1042_v44, %v1045_v55  ;;  %v1038_v61 = vsel %vm9129_vm5, %v1036_v51, %v1037_v46  ;;  %v1056_v62 = vsel %vm9129_vm5, %v7564_v52, %v1055_v53  ;;  %v1057_v0 = vrot.slane %v1055_v53, 4  ;;  %v949_v36 = vld [vmem:[%s8997_s30 + $0x78] sm:$0xe]  ;;  %v950_v41 = vld [vmem:[%s8997_s30 + $0x7c] sm:$0xf] }
  0x6b   : > { %v7577_v3 = vcombine.low %v1035_v50, %v1038_v61  ;;  %v1049_v4 = vsel %vm9129_vm5, %v7563_v57, %v1048_v58  ;;  %v1050_v5 = vrot.slane %v1048_v58, 4  ;;  %v1051_v6 = vrot.slane %v933_v42, 5  ;;  %v951_v42 = vld [vmem:[%s8997_s30 + $0x80] sm:$0x1]  ;;  %v960_v53 = vld [vmem:[%s8997_s30 + $0xa4] sm:$0x1] }
  0x6c   : > { %1178 = vrot.lane.b32.xlu0 %v7575_v43, %s8900_s5  ;;  %v1059_v9 = vsel %vm9129_vm5, %v1057_v0, %v1058_v56  ;;  %v7566_v10 = vrot.slane %v940_v47, 9  ;;  %v1069_v11 = vrot.slane %v941_v48, 5  ;;  %v1072_v12 = vrot.slane %v942_v49, 5  ;;  %v958_v47 = vld [vmem:[%s8997_s30 + $0x9c] sm:$0xe] }
  0x6d   : > { %1184 = vrot.lane.b32.xlu1 %v7578_v60, %s8900_s5  ;;  %v7580_v14 = vcombine.low %v1056_v62, %v1059_v9  ;;  %v1052_v15 = vsel %vm9129_vm5, %v1050_v5, %v1051_v6  ;;  %v7565_v16 = vrot.slane %v937_v54, 9  ;;  %v1062_v17 = vrot.slane %v938_v59, 5  ;;  %v959_v48 = vld [vmem:[%s8997_s30 + $0xa0] sm:$0xf]  ;;  %v955_v58 = vld [vmem:[%s8997_s30 + $0x90] sm:$0xe] }
  0x6e   : > { %v7579_v20 = vcombine.low %v1049_v4, %v1052_v15  ;;  %v1070_v21 = vsel %vm9129_vm5, %v7566_v10, %v1069_v11  ;;  %v1071_v22 = vrot.slane %v1069_v11, 4  ;;  %v1065_v23 = vrot.slane %v939_v1, 5  ;;  %v956_v59 = vld [vmem:[%s8997_s30 + $0x94] sm:$0xf]  ;;  %v957_v1 = vld [vmem:[%s8997_s30 + $0x98] sm:$0x1] }
  0x6f   : > { %v1063_v27 = vsel %vm9129_vm5, %v7565_v16, %v1062_v17  ;;  %v1064_v28 = vrot.slane %v1062_v17, 4  ;;  %v7568_v29 = vrot.slane %v946_v2, 9  ;;  %v1083_v30 = vrot.slane %v947_v7, 5  ;;  %v964_v2 = vld [vmem:[%s8997_s30 + $0xb4] sm:$0xe] }
  0x70   : > { %1182 = vrot.lane.b32.xlu0 %v7577_v3, %s8900_s5  ;;  %v1073_v32 = vsel %vm9129_vm5, %v1071_v22, %v1072_v12  ;;  %v1086_v33 = vrot.slane %v948_v8, 5  ;;  %v7567_v34 = vrot.slane %v943_v13, 9  ;;  %v1076_v35 = vrot.slane %v944_v18, 5  ;;  %v965_v7 = vld [vmem:[%s8997_s30 + $0xb8] sm:$0xf] }
  0x71   : > { %1188 = vrot.lane.b32.xlu1 %v7580_v14, %s8900_s5  ;;  %v7582_v37 = vcombine.low %v1070_v21, %v1073_v32  ;;  %v1066_v38 = vsel %vm9129_vm5, %v1064_v28, %v1065_v23  ;;  %v1084_v39 = vsel %vm9129_vm5, %v7568_v29, %v1083_v30  ;;  %v1085_v40 = vrot.slane %v1083_v30, 4  ;;  %v966_v12 = vld [vmem:[%s8997_s30 + $0xbc] sm:$0x1]  ;;  %v961_v17 = vld [vmem:[%s8997_s30 + $0xa8] sm:$0xe] }
  0x72   : > { %v7581_v43 = vcombine.low %v1063_v27, %v1066_v38  ;;  %v1077_v44 = vsel %vm9129_vm5, %v7567_v34, %v1076_v35  ;;  %v1078_v45 = vrot.slane %v1076_v35, 4  ;;  %v1079_v46 = vrot.slane %v945_v19, 5  ;;  %v962_v18 = vld [vmem:[%s8997_s30 + $0xac] sm:$0xf]  ;;  %v963_v23 = vld [vmem:[%s8997_s30 + $0xb0] sm:$0x1] }
  0x73   : > { %v1087_v49 = vsel %vm9129_vm5, %v1085_v40, %v1086_v33  ;;  %v7570_v50 = vrot.slane %v952_v24, 9  ;;  %v1097_v51 = vrot.slane %v953_v25, 5  ;;  %v1100_v52 = vrot.slane %v954_v31, 5  ;;  %v1246_v29 = vld [vmem:[%s8997_s30 + $0xc] sm:$0xe] }
  0x74   : > { %1186 = vrot.lane.b32.xlu0 %v7579_v20, %s8900_s5  ;;  %v7584_v54 = vcombine.low %v1084_v39, %v1087_v49  ;;  %v1080_v55 = vsel %vm9129_vm5, %v1078_v45, %v1079_v46  ;;  %v7569_v56 = vrot.slane %v949_v36, 9  ;;  %v1090_v57 = vrot.slane %v950_v41, 5  ;;  %v1247_v34 = vld [vmem:[%s8997_s30 + $0x10] sm:$0xf]  ;;  %v1248_v35 = vld [vmem:[%s8997_s30 + $0x14] sm:$0x3] }
  0x75   : > { %1192 = vrot.lane.b32.xlu1 %v7582_v37, %s8900_s5  ;;  %v7583_v60 = vcombine.low %v1077_v44, %v1080_v55  ;;  %v1098_v61 = vsel %vm9129_vm5, %v7570_v50, %v1097_v51  ;;  %v1099_v62 = vrot.slane %v1097_v51, 4  ;;  %v1093_v0 = vrot.slane %v951_v42, 5 }
  0x76   : > { %v1091_v3 = vsel %vm9129_vm5, %v7569_v56, %v1090_v57  ;;  %v1092_v4 = vrot.slane %v1090_v57, 4  ;;  %v7572_v5 = vrot.slane %v958_v47, 9  ;;  %v1111_v6 = vrot.slane %v959_v48, 5  ;;  %v1243_v48 = vld [vmem:[%s8997_s30] sm:$0xe] }
  0x77   : > { %v1101_v8 = vsel %vm9129_vm5, %v1099_v62, %v1100_v52  ;;  %v1114_v9 = vrot.slane %v960_v53, 5  ;;  %v7571_v10 = vrot.slane %v955_v58, 9  ;;  %v1104_v11 = vrot.slane %v956_v59, 5  ;;  %v1244_v53 = vld [vmem:[%s8997_s30 + $0x4] sm:$0xf] }
  0x78   : > { %1190 = vrot.lane.b32.xlu0 %v7581_v43, %s8900_s5  ;;  %v7586_v13 = vcombine.low %v1098_v61, %v1101_v8  ;;  %v1094_v14 = vsel %vm9129_vm5, %v1092_v4, %v1093_v0  ;;  %v1112_v15 = vsel %vm9129_vm5, %v7572_v5, %v1111_v6  ;;  %v1113_v16 = vrot.slane %v1111_v6, 4  ;;  %v1252_v5 = vld [vmem:[%s8997_s30 + $0x24] sm:$0xe] }
  0x79   : > { %1196 = vrot.lane.b32.xlu1 %v7584_v54, %s8900_s5  ;;  %v7585_v19 = vcombine.low %v1091_v3, %v1094_v14  ;;  %v1105_v20 = vsel %vm9129_vm5, %v7571_v10, %v1104_v11  ;;  %v1106_v21 = vrot.slane %v1104_v11, 4  ;;  %v1107_v22 = vrot.slane %v957_v1, 5  ;;  %v1245_v54 = vld [vmem:[%s8997_s30 + $0x8] sm:$0x3] }
  0x7a   : > { %v1115_v24 = vsel %vm9129_vm5, %v1113_v16, %v1114_v9  ;;  %v7574_v25 = vrot.slane %v964_v2, 9  ;;  %v1125_v27 = vrot.slane %v965_v7, 5  ;;  %v1128_v28 = vrot.slane %v966_v12, 5  ;;  %v1253_v10 = vld [vmem:[%s8997_s30 + $0x28] sm:$0xf] }
  0x7b   : > { %v7588_v30 = vcombine.low %v1112_v15, %v1115_v24  ;;  %v1108_v31 = vsel %vm9129_vm5, %v1106_v21, %v1107_v22  ;;  %v7573_v32 = vrot.slane %v961_v17, 9  ;;  %v1118_v33 = vrot.slane %v962_v18, 5 }
  0x7c   : > { %1194 = vrot.lane.b32.xlu0 %v7583_v60, %s8900_s5  ;;  %v7587_v36 = vcombine.low %v1105_v20, %v1108_v31  ;;  %v1126_v37 = vsel %vm9129_vm5, %v7574_v25, %v1125_v27  ;;  %v1127_v38 = vrot.slane %v1125_v27, 4  ;;  %v1121_v39 = vrot.slane %v963_v23, 5  ;;  %v1249_v20 = vld [vmem:[%s8997_s30 + $0x18] sm:$0xe]  ;;  %v1250_v25 = vld [vmem:[%s8997_s30 + $0x1c] sm:$0xf] }
  0x7d   : > { %1200 = vrot.lane.b32.xlu1 %v7586_v13, %s8900_s5  ;;  %v1119_v40 = vsel %vm9129_vm5, %v7573_v32, %v1118_v33  ;;  %v1120_v41 = vrot.slane %v1118_v33, 4  ;;  %v1323_v42 = vshrl.u32 %v1246_v29, 16  ;;  %v1326_v43 = vshll.u32 %v1246_v29, 16 }
  0x7e   : > { %v1129_v44 = vsel %vm9129_vm5, %v1127_v38, %v1128_v28  ;;  %v1332_v45 = vshrl.u32 %v1247_v34, 16  ;;  %v1335_v46 = vshll.u32 %v1247_v34, 16  ;;  %v1342_v47 = vshrl.u32 %v1248_v35, 16 }
  0x7f   : > { %v7590_v49 = vcombine.low %v1126_v37, %v1129_v44  ;;  %v1122_v50 = vsel %vm9129_vm5, %v1120_v41, %v1121_v39  ;;  %v1325_v51 = vrot.slane %v1323_v42, 5  ;;  %v1328_v52 = vrot.slane %v1326_v43, 6  ;;  %v1251_v42 = vld [vmem:[%s8997_s30 + $0x20] sm:$0x3] }
  0x80   : > { %1198 = vrot.lane.b32.xlu0 %v7585_v19, %s8900_s5  ;;  %v7589_v55 = vcombine.low %v1119_v40, %v1122_v50  ;;  %v1334_v56 = vrot.slane %v1332_v45, 5  ;;  %v1337_v57 = vrot.slane %v1335_v46, 6  ;;  %v1344_v58 = vrot.slane %v1342_v47, 5  ;;  %v1254_v19 = vld [vmem:[%s8997_s30 + $0x2c] sm:$0x3] }
  0x81   : > { %1204 = vrot.lane.b32.xlu1 %v7588_v30, %s8900_s5  ;;  %v1329_v59 = vor.u32 %v1328_v52, %v1325_v51  ;;  %v1345_v60 = vshll.u32 %v1248_v35, 16  ;;  %v1295_v61 = vshrl.u32 %v1243_v48, 16  ;;  %v1298_v62 = vshll.u32 %v1243_v48, 16  ;;  %v1258_v48 = vld [vmem:[%s8997_s30 + $0x3c] sm:$0xe] }
  0x82   : > { %v1338_v1 = vor.u32 %v1337_v57, %v1334_v56  ;;  %v1304_v2 = vshrl.u32 %v1244_v53, 16  ;;  %v1307_v3 = vshll.u32 %v1244_v53, 16  ;;  %v1314_v4 = vshrl.u32 %v1245_v54, 16 }
  0x83   : > { %v1330_v6 = vrot.slane %v1329_v59, 4  ;;  %v1347_v7 = vrot.slane %v1345_v60, 6  ;;  %v1297_v8 = vrot.slane %v1295_v61, 5  ;;  %v1300_v9 = vrot.slane %v1298_v62, 6 }
  0x84   : > { %1202 = vrot.lane.b32.xlu0 %v7587_v36, %s8900_s5  ;;  %v1340_v11 = vrot.slane %v1338_v1, 4  ;;  %v1306_v12 = vrot.slane %v1304_v2, 5  ;;  %v1309_v13 = vrot.slane %v1307_v3, 6  ;;  %v1316_v14 = vrot.slane %v1314_v4, 5  ;;  %v1260_v2 = vld [vmem:[%s8997_s30 + $0x44] sm:$0x3] }
  0x85   : > { %1208 = vrot.lane.b32.xlu1 %v7590_v49, %s8900_s5  ;;  %v1339_v15 = vsel %vm9272_vm8, %v1330_v6, %v1338_v1  ;;  %v1348_v16 = vor.u32 %v1347_v7, %v1344_v58  ;;  %v1301_v17 = vor.u32 %v1300_v9, %v1297_v8  ;;  %v1317_v18 = vshll.u32 %v1245_v54, 16  ;;  %v1259_v49 = vld [vmem:[%s8997_s30 + $0x40] sm:$0xf]  ;;  %v1255_v9 = vld [vmem:[%s8997_s30 + $0x30] sm:$0xe] }
  0x86   : > { %v1310_v21 = vor.u32 %v1309_v13, %v1306_v12  ;;  %v1379_v22 = vshrl.u32 %v1252_v5, 16  ;;  %v1382_v23 = vshll.u32 %v1252_v5, 16  ;;  %v1388_v24 = vshrl.u32 %v1253_v10, 16 }
  0x87   : > { %v1349_v27 = vsel %vm9272_vm8, %v1340_v11, %v1348_v16  ;;  %v1302_v28 = vrot.slane %v1301_v17, 4  ;;  %v1319_v29 = vrot.slane %v1317_v18, 6  ;;  %v1391_v30 = vshll.u32 %v1253_v10, 16 }
  0x88   : > { %1206 = vrot.lane.b32.xlu0 %v7589_v55, %s8900_s5  ;;  %v7592_v31 = vcombine.low %v1339_v15, %v1349_v27  ;;  %v1312_v32 = vrot.slane %v1310_v21, 4  ;;  %v1381_v33 = vrot.slane %v1379_v22, 5  ;;  %v1384_v34 = vrot.slane %v1382_v23, 6 }
  0x89   : > { %v1311_v35 = vsel %vm9272_vm8, %v1302_v28, %v1310_v21  ;;  %v1320_v36 = vor.u32 %v1319_v29, %v1316_v14  ;;  %v1390_v37 = vrot.slane %v1388_v24, 5  ;;  %v1393_v38 = vrot.slane %v1391_v30, 6  ;;  %v1256_v21 = vld [vmem:[%s8997_s30 + $0x34] sm:$0xf]  ;;  %v1257_v30 = vld [vmem:[%s8997_s30 + $0x38] sm:$0x3] }
  0x8a   : > { %1792 = vrot.lane.b32.xlu1 %v7592_v31, %s8901_s6  ;;  %v1385_v39 = vor.u32 %v1384_v34, %v1381_v33  ;;  %v1398_v40 = vshrl.u32 %v1254_v19, 16  ;;  %v1401_v41 = vshll.u32 %v1254_v19, 16  ;;  %v1351_v43 = vshrl.u32 %v1249_v20, 16 }
  0x8b   : > { %v1321_v44 = vsel %vm9272_vm8, %v1312_v32, %v1320_v36  ;;  %v1394_v45 = vor.u32 %v1393_v38, %v1390_v37  ;;  %v1354_v46 = vshll.u32 %v1249_v20, 16  ;;  %v1360_v47 = vshrl.u32 %v1250_v25, 16  ;;  %v1264_v37 = vld [vmem:[%s8997_s30 + $0x54] sm:$0xe]  ;;  %v1265_v38 = vld [vmem:[%s8997_s30 + $0x58] sm:$0xf] }
  0x8c   : > { %v7591_v50 = vcombine.low %v1311_v35, %v1321_v44  ;;  %v1386_v51 = vrot.slane %v1385_v39, 4  ;;  %v1400_v52 = vrot.slane %v1398_v40, 5  ;;  %v1403_v53 = vrot.slane %v1401_v41, 6 }
  0x8d   : > { %v1396_v54 = vrot.slane %v1394_v45, 4  ;;  %v1353_v55 = vrot.slane %v1351_v43, 5  ;;  %v1356_v56 = vrot.slane %v1354_v46, 6  ;;  %v1362_v57 = vrot.slane %v1360_v47, 5  ;;  %v1266_v47 = vld [vmem:[%s8997_s30 + $0x5c] sm:$0x3] }
  0x8e   : > { %1790 = vrot.lane.b32.xlu0 %v7591_v50, %s8901_s6  ;;  %v1395_v58 = vsel %vm9272_vm8, %v1386_v51, %v1394_v45  ;;  %v1404_v59 = vor.u32 %v1403_v53, %v1400_v52  ;;  %v1363_v60 = vshll.u32 %v1250_v25, 16  ;;  %v1370_v61 = vshrl.u32 %v1251_v42, 16 }
  0x8f   : > { %v1357_v62 = vor.u32 %v1356_v56, %v1353_v55  ;;  %v1373_v1 = vshll.u32 %v1251_v42, 16  ;;  %v1435_v3 = vshrl.u32 %v1258_v48, 16  ;;  %v1438_v4 = vshll.u32 %v1258_v48, 16 }
  0x90   : > { %v1405_v5 = vsel %vm9272_vm8, %v1396_v54, %v1404_v59  ;;  %v1365_v6 = vrot.slane %v1363_v60, 6  ;;  %v1372_v7 = vrot.slane %v1370_v61, 5  ;;  %v1444_v8 = vshrl.u32 %v1259_v49, 16  ;;  %v1261_v60 = vld [vmem:[%s8997_s30 + $0x48] sm:$0xe] }
  0x91   : > { %v7594_v10 = vcombine.low %v1395_v58, %v1405_v5  ;;  %v1358_v11 = vrot.slane %v1357_v62, 4  ;;  %v1375_v12 = vrot.slane %v1373_v1, 6  ;;  %v1437_v13 = vrot.slane %v1435_v3, 5  ;;  %v1262_v3 = vld [vmem:[%s8997_s30 + $0x4c] sm:$0xf] }
  0x92   : > { %v1366_v14 = vor.u32 %v1365_v6, %v1362_v57  ;;  %v1440_v15 = vrot.slane %v1438_v4, 6  ;;  %v1446_v16 = vrot.slane %v1444_v8, 5  ;;  %v1447_v17 = vshll.u32 %v1259_v49, 16  ;;  %v1263_v8 = vld [vmem:[%s8997_s30 + $0x50] sm:$0x3] }
  0x93   : > { %1796 = vrot.lane.b32.xlu1 %v7594_v10, %s8901_s6  ;;  %v1376_v18 = vor.u32 %v1375_v12, %v1372_v7  ;;  %v1454_v19 = vshrl.u32 %v1260_v2, 16  ;;  %v1457_v20 = vshll.u32 %v1260_v2, 16  ;;  %v1407_v22 = vshrl.u32 %v1255_v9, 16 }
  0x94   : > { %v1367_v23 = vsel %vm9272_vm8, %v1358_v11, %v1366_v14  ;;  %v1368_v24 = vrot.slane %v1366_v14, 4  ;;  %v1441_v25 = vor.u32 %v1440_v15, %v1437_v13  ;;  %v1449_v27 = vrot.slane %v1447_v17, 6 }
  0x95   : > { %v1456_v28 = vrot.slane %v1454_v19, 5  ;;  %v1459_v29 = vrot.slane %v1457_v20, 6  ;;  %v1409_v31 = vrot.slane %v1407_v22, 5  ;;  %v1410_v32 = vshll.u32 %v1255_v9, 16 }
  0x96   : > { %v1377_v33 = vsel %vm9272_vm8, %v1368_v24, %v1376_v18  ;;  %v1442_v34 = vrot.slane %v1441_v25, 4  ;;  %v1450_v35 = vor.u32 %v1449_v27, %v1446_v16  ;;  %v1416_v36 = vshrl.u32 %v1256_v21, 16  ;;  %v1271_v27 = vld [vmem:[%s8997_s30 + $0x70] sm:$0xf] }
  0x97   : > { %v7593_v39 = vcombine.low %v1367_v23, %v1377_v33  ;;  %v1460_v40 = vor.u32 %v1459_v29, %v1456_v28  ;;  %v1412_v41 = vrot.slane %v1410_v32, 6  ;;  %v1419_v42 = vshll.u32 %v1256_v21, 16  ;;  %v1270_v21 = vld [vmem:[%s8997_s30 + $0x6c] sm:$0xe]  ;;  %v1272_v32 = vld [vmem:[%s8997_s30 + $0x74] sm:$0x3] }
  0x98   : > { %v1451_v43 = vsel %vm9272_vm8, %v1442_v34, %v1450_v35  ;;  %v1452_v44 = vrot.slane %v1450_v35, 4  ;;  %v1418_v45 = vrot.slane %v1416_v36, 5  ;;  %v1426_v46 = vshrl.u32 %v1257_v30, 16 }
  0x99   : > { %1794 = vrot.lane.b32.xlu0 %v7593_v39, %s8901_s6  ;;  %v1413_v48 = vor.u32 %v1412_v41, %v1409_v31  ;;  %v1421_v49 = vrot.slane %v1419_v42, 6  ;;  %v1429_v50 = vshll.u32 %v1257_v30, 16  ;;  %v1491_v51 = vshrl.u32 %v1264_v37, 16  ;;  %v1268_v42 = vld [vmem:[%s8997_s30 + $0x64] sm:$0xf] }
  0x9a   : > { %v1461_v52 = vsel %vm9272_vm8, %v1452_v44, %v1460_v40  ;;  %v1428_v53 = vrot.slane %v1426_v46, 5  ;;  %v1494_v54 = vshll.u32 %v1264_v37, 16  ;;  %v1500_v55 = vshrl.u32 %v1265_v38, 16  ;;  %v1267_v37 = vld [vmem:[%s8997_s30 + $0x60] sm:$0xe] }
  0x9b   : > { %v7596_v56 = vcombine.low %v1451_v43, %v1461_v52  ;;  %v1414_v57 = vrot.slane %v1413_v48, 4  ;;  %v1422_v58 = vor.u32 %v1421_v49, %v1418_v45  ;;  %v1431_v59 = vrot.slane %v1429_v50, 6 }
  0x9c   : > { %v1493_v61 = vrot.slane %v1491_v51, 5  ;;  %v1496_v62 = vrot.slane %v1494_v54, 6  ;;  %v1502_v1 = vrot.slane %v1500_v55, 5  ;;  %v1503_v2 = vshll.u32 %v1265_v38, 16 }
  0x9d   : > { %1800 = vrot.lane.b32.xlu1 %v7596_v56, %s8901_s6  ;;  %v1423_v4 = vsel %vm9272_vm8, %v1414_v57, %v1422_v58  ;;  %v1424_v5 = vrot.slane %v1422_v58, 4  ;;  %v1432_v6 = vor.u32 %v1431_v59, %v1428_v53  ;;  %v1510_v7 = vshrl.u32 %v1266_v47, 16 }
  0x9e   : > { %v1497_v9 = vor.u32 %v1496_v62, %v1493_v61  ;;  %v1505_v10 = vrot.slane %v1503_v2, 6  ;;  %v1513_v11 = vshll.u32 %v1266_v47, 16  ;;  %v1463_v12 = vshrl.u32 %v1261_v60, 16  ;;  %v1269_v61 = vld [vmem:[%s8997_s30 + $0x68] sm:$0x3] }
  0x9f   : > { %v1433_v13 = vsel %vm9272_vm8, %v1424_v5, %v1432_v6  ;;  %v1512_v14 = vrot.slane %v1510_v7, 5  ;;  %v1466_v15 = vshll.u32 %v1261_v60, 16  ;;  %v1472_v16 = vshrl.u32 %v1262_v3, 16  ;;  %v1276_v6 = vld [vmem:[%s8997_s30 + $0x84] sm:$0xe] }
  0xa0   : > { %v7595_v17 = vcombine.low %v1423_v4, %v1433_v13  ;;  %v1498_v18 = vrot.slane %v1497_v9, 4  ;;  %v1506_v19 = vor.u32 %v1505_v10, %v1502_v1  ;;  %v1515_v20 = vrot.slane %v1513_v11, 6  ;;  %v1277_v7 = vld [vmem:[%s8997_s30 + $0x88] sm:$0xf] }
  0xa1   : > { %v1465_v22 = vrot.slane %v1463_v12, 5  ;;  %v1468_v23 = vrot.slane %v1466_v15, 6  ;;  %v1474_v24 = vrot.slane %v1472_v16, 5  ;;  %v1475_v25 = vshll.u32 %v1262_v3, 16 }
  0xa2   : > { %1798 = vrot.lane.b32.xlu0 %v7595_v17, %s8901_s6  ;;  %v1507_v28 = vsel %vm9272_vm8, %v1498_v18, %v1506_v19  ;;  %v1508_v29 = vrot.slane %v1506_v19, 4  ;;  %v1516_v30 = vor.u32 %v1515_v20, %v1512_v14  ;;  %v1482_v31 = vshrl.u32 %v1263_v8, 16 }
  0xa3   : > { %v1469_v33 = vor.u32 %v1468_v23, %v1465_v22  ;;  %v1477_v34 = vrot.slane %v1475_v25, 6  ;;  %v1485_v35 = vshll.u32 %v1263_v8, 16  ;;  %v1547_v36 = vshrl.u32 %v1270_v21, 16  ;;  %v1278_v22 = vld [vmem:[%s8997_s30 + $0x8c] sm:$0x3]  ;;  %v9350_v25 = vpop.permute.xlu1 %858 }
  0xa4   : > { %v1517_v38 = vsel %vm9272_vm8, %v1508_v29, %v1516_v30  ;;  %v1484_v39 = vrot.slane %v1482_v31, 5  ;;  %v1550_v40 = vshll.u32 %v1270_v21, 16  ;;  %v1556_v41 = vshrl.u32 %v1271_v27, 16  ;;  %v1273_v31 = vld [vmem:[%s8997_s30 + $0x78] sm:$0xe] }
  0xa5   : > { %v7598_v43 = vcombine.low %v1507_v28, %v1517_v38  ;;  %v1470_v44 = vrot.slane %v1469_v33, 4  ;;  %v1478_v45 = vor.u32 %v1477_v34, %v1474_v24  ;;  %v1487_v46 = vrot.slane %v1485_v35, 6 }
  0xa6   : > { %v1549_v47 = vrot.slane %v1547_v36, 5  ;;  %v1552_v48 = vrot.slane %v1550_v40, 6  ;;  %v1558_v49 = vrot.slane %v1556_v41, 5  ;;  %v1559_v50 = vshll.u32 %v1271_v27, 16  ;;  %v1274_v36 = vld [vmem:[%s8997_s30 + $0x7c] sm:$0xf] }
  0xa7   : > { %1804 = vrot.lane.b32.xlu1 %v7598_v43, %s8901_s6  ;;  %v1479_v51 = vsel %vm9272_vm8, %v1470_v44, %v1478_v45  ;;  %v1480_v52 = vrot.slane %v1478_v45, 4  ;;  %v1488_v53 = vor.u32 %v1487_v46, %v1484_v39  ;;  %v1566_v54 = vshrl.u32 %v1272_v32, 16 }
  0xa8   : > { %v1553_v55 = vor.u32 %v1552_v48, %v1549_v47  ;;  %v1561_v56 = vrot.slane %v1559_v50, 6  ;;  %v1569_v57 = vshll.u32 %v1272_v32, 16  ;;  %v1519_v58 = vshrl.u32 %v1267_v37, 16  ;;  %v1282_v47 = vld [vmem:[%s8997_s30 + $0x9c] sm:$0xe] }
  0xa9   : > { %v1489_v59 = vsel %vm9272_vm8, %v1480_v52, %v1488_v53  ;;  %v1568_v60 = vrot.slane %v1566_v54, 5  ;;  %v1522_v62 = vshll.u32 %v1267_v37, 16  ;;  %v1528_v1 = vshrl.u32 %v1268_v42, 16  ;;  %v9354_v37 = vpop.permute.xlu0 %854  ;;  %v1283_v52 = vld [vmem:[%s8997_s30 + $0xa0] sm:$0xf] }
  0xaa   : > { %v7597_v2 = vcombine.low %v1479_v51, %v1489_v59  ;;  %v1554_v3 = vrot.slane %v1553_v55, 4  ;;  %v1562_v4 = vor.u32 %v1561_v56, %v1558_v49  ;;  %v1571_v5 = vrot.slane %v1569_v57, 6  ;;  %v9364_v57 = vpop.permute.xlu1 %860 }
  0xab   : > { %v1521_v8 = vrot.slane %v1519_v58, 5  ;;  %v1524_v9 = vrot.slane %v1522_v62, 6  ;;  %v1530_v10 = vrot.slane %v1528_v1, 5  ;;  %v1531_v11 = vshll.u32 %v1268_v42, 16  ;;  %v1275_v42 = vld [vmem:[%s8997_s30 + $0x80] sm:$0x3] }
  0xac   : > { %1802 = vrot.lane.b32.xlu0 %v7597_v2, %s8901_s6  ;;  %v1563_v12 = vsel %vm9272_vm8, %v1554_v3, %v1562_v4  ;;  %v1564_v13 = vrot.slane %v1562_v4, 4  ;;  %v1572_v14 = vor.u32 %v1571_v5, %v1568_v60  ;;  %v1538_v15 = vshrl.u32 %v1269_v61, 16  ;;  %v1284_v4 = vld [vmem:[%s8997_s30 + $0xa4] sm:$0x3] }
  0xad   : > { %v1525_v16 = vor.u32 %v1524_v9, %v1521_v8  ;;  %v1533_v17 = vrot.slane %v1531_v11, 6  ;;  %v1541_v18 = vshll.u32 %v1269_v61, 16  ;;  %v1603_v19 = vshrl.u32 %v1276_v6, 16  ;;  %v9370_v5 = vpop.permute.xlu0 %856 }
  0xae   : > { %v1573_v20 = vsel %vm9272_vm8, %v1564_v13, %v1572_v14  ;;  %v1540_v21 = vrot.slane %v1538_v15, 5  ;;  %v1606_v23 = vshll.u32 %v1276_v6, 16  ;;  %v1612_v24 = vshrl.u32 %v1277_v7, 16  ;;  %v1280_v15 = vld [vmem:[%s8997_s30 + $0x94] sm:$0xf] }
  0xaf   : > { %v7600_v27 = vcombine.low %v1563_v12, %v1573_v20  ;;  %v1526_v28 = vrot.slane %v1525_v16, 4  ;;  %v1534_v29 = vor.u32 %v1533_v17, %v1530_v10  ;;  %v1543_v30 = vrot.slane %v1541_v18, 6  ;;  %v1279_v10 = vld [vmem:[%s8997_s30 + $0x90] sm:$0xe] }
  0xb0   : > { %v1605_v32 = vrot.slane %v1603_v19, 5  ;;  %v1608_v33 = vrot.slane %v1606_v23, 6  ;;  %v1614_v34 = vrot.slane %v1612_v24, 5  ;;  %v1615_v35 = vshll.u32 %v1277_v7, 16  ;;  %v9376_v24 = vpop.permute.xlu1 %864 }
  0xb1   : > { %1808 = vrot.lane.b32.xlu1 %v7600_v27, %s8901_s6  ;;  %v1535_v38 = vsel %vm9272_vm8, %v1526_v28, %v1534_v29  ;;  %v1536_v39 = vrot.slane %v1534_v29, 4  ;;  %v1544_v40 = vor.u32 %v1543_v30, %v1540_v21  ;;  %v1622_v41 = vshrl.u32 %v1278_v22, 16 }
  0xb2   : > { %v1609_v43 = vor.u32 %v1608_v33, %v1605_v32  ;;  %v1617_v44 = vrot.slane %v1615_v35, 6  ;;  %v1625_v45 = vshll.u32 %v1278_v22, 16  ;;  %v1575_v46 = vshrl.u32 %v1273_v31, 16  ;;  %v9381_v35 = vpop.permute.xlu0 %862 }
  0xb3   : > { %v1545_v48 = vsel %vm9272_vm8, %v1536_v39, %v1544_v40  ;;  %v1624_v49 = vrot.slane %v1622_v41, 5  ;;  %v1578_v50 = vshll.u32 %v1273_v31, 16  ;;  %v1584_v51 = vshrl.u32 %v1274_v36, 16  ;;  %v1281_v39 = vld [vmem:[%s8997_s30 + $0x98] sm:$0x3] }
  0xb4   : > { %v7599_v53 = vcombine.low %v1535_v38, %v1545_v48  ;;  %v1610_v54 = vrot.slane %v1609_v43, 4  ;;  %v1618_v55 = vor.u32 %v1617_v44, %v1614_v34  ;;  %v1627_v56 = vrot.slane %v1625_v45, 6 }
  0xb5   : > { %v1577_v58 = vrot.slane %v1575_v46, 5  ;;  %v1580_v59 = vrot.slane %v1578_v50, 6  ;;  %v1586_v60 = vrot.slane %v1584_v51, 5  ;;  %v1587_v61 = vshll.u32 %v1274_v36, 16  ;;  %v1288_v46 = vld [vmem:[%s8997_s30 + $0xb4] sm:$0xe] }
  0xb6   : > { %1806 = vrot.lane.b32.xlu0 %v7599_v53, %s8901_s6  ;;  %v1619_v62 = vsel %vm9272_vm8, %v1610_v54, %v1618_v55  ;;  %v1620_v1 = vrot.slane %v1618_v55, 4  ;;  %v1628_v2 = vor.u32 %v1627_v56, %v1624_v49  ;;  %v1594_v3 = vshrl.u32 %v1275_v42, 16  ;;  %v9391_v56 = vpop.permute.xlu1 %868 }
  0xb7   : > { %v1581_v6 = vor.u32 %v1580_v59, %v1577_v58  ;;  %v1589_v7 = vrot.slane %v1587_v61, 6  ;;  %v1597_v8 = vshll.u32 %v1275_v42, 16  ;;  %v1659_v9 = vshrl.u32 %v1282_v47, 16 }
  0xb8   : > { %v1629_v11 = vsel %vm9272_vm8, %v1620_v1, %v1628_v2  ;;  %v1596_v12 = vrot.slane %v1594_v3, 5  ;;  %v1662_v13 = vshll.u32 %v1282_v47, 16  ;;  %v1668_v14 = vshrl.u32 %v1283_v52, 16  ;;  %v1289_v47 = vld [vmem:[%s8997_s30 + $0xb8] sm:$0xf] }
  0xb9   : > { %v7602_v16 = vcombine.low %v1619_v62, %v1629_v11  ;;  %v1582_v17 = vrot.slane %v1581_v6, 4  ;;  %v1590_v18 = vor.u32 %v1589_v7, %v1586_v60  ;;  %v1599_v19 = vrot.slane %v1597_v8, 6  ;;  %v1290_v2 = vld [vmem:[%s8997_s30 + $0xbc] sm:$0x3]  ;;  %v9396_v6 = vpop.permute.xlu0 %866  ;;  %v1285_v11 = vld [vmem:[%s8997_s30 + $0xa8] sm:$0xe] }
  0xba   : > { %v1661_v20 = vrot.slane %v1659_v9, 5  ;;  %v1664_v21 = vrot.slane %v1662_v13, 6  ;;  %v1670_v22 = vrot.slane %v1668_v14, 5  ;;  %v1671_v23 = vshll.u32 %v1283_v52, 16 }
  0xbb   : > { %1812 = vrot.lane.b32.xlu1 %v7602_v16, %s8901_s6  ;;  %v1591_v27 = vsel %vm9272_vm8, %v1582_v17, %v1590_v18  ;;  %v1592_v28 = vrot.slane %v1590_v18, 4  ;;  %v1600_v29 = vor.u32 %v1599_v19, %v1596_v12  ;;  %v1678_v30 = vshrl.u32 %v1284_v4, 16  ;;  %v1286_v16 = vld [vmem:[%s8997_s30 + $0xac] sm:$0xf] }
  0xbc   : > { %v1665_v31 = vor.u32 %v1664_v21, %v1661_v20  ;;  %v1673_v32 = vrot.slane %v1671_v23, 6  ;;  %v1681_v33 = vshll.u32 %v1284_v4, 16  ;;  %v1631_v34 = vshrl.u32 %v1279_v10, 16  ;;  %v1287_v21 = vld [vmem:[%s8997_s30 + $0xb0] sm:$0x3] }
  0xbd   : > { %v1601_v36 = vsel %vm9272_vm8, %v1592_v28, %v1600_v29  ;;  %v1680_v38 = vrot.slane %v1678_v30, 5  ;;  %v1634_v40 = vshll.u32 %v1279_v10, 16  ;;  %v1640_v41 = vshrl.u32 %v1280_v15, 16  ;;  %v7655_v29 = vld [vmem:[%s8997_s30 + $0xc] sm:$0xf]  ;;  %v9405_v30 = vpop.permute.xlu1 %872 }
  0xbe   : > { %v7601_v42 = vcombine.low %v1591_v27, %v1601_v36  ;;  %v1666_v43 = vrot.slane %v1665_v31, 4  ;;  %v1674_v44 = vor.u32 %v1673_v32, %v1670_v22  ;;  %v1683_v45 = vrot.slane %v1681_v33, 6 }
  0xbf   : > { %v1633_v48 = vrot.slane %v1631_v34, 5  ;;  %v1636_v49 = vrot.slane %v1634_v40, 6  ;;  %v1642_v50 = vrot.slane %v1640_v41, 5  ;;  %v1643_v51 = vshll.u32 %v1280_v15, 16 }
  0xc0   : > { %1810 = vrot.lane.b32.xlu0 %v7601_v42, %s8901_s6  ;;  %v1675_v52 = vsel %vm9272_vm8, %v1666_v43, %v1674_v44  ;;  %v1676_v53 = vrot.slane %v1674_v44, 4  ;;  %v1684_v54 = vor.u32 %v1683_v45, %v1680_v38  ;;  %v1650_v55 = vshrl.u32 %v1281_v39, 16  ;;  %v9409_v41 = vpop.permute.xlu0 %870 }
  0xc1   : > { %v1637_v58 = vor.u32 %v1636_v49, %v1633_v48  ;;  %v1645_v59 = vrot.slane %v1643_v51, 6  ;;  %v1653_v60 = vshll.u32 %v1281_v39, 16  ;;  %v1715_v61 = vshrl.u32 %v1288_v46, 16 }
  0xc2   : > { %v1685_v62 = vsel %vm9272_vm8, %v1676_v53, %v1684_v54  ;;  %v1652_v1 = vrot.slane %v1650_v55, 5  ;;  %v1718_v3 = vshll.u32 %v1288_v46, 16  ;;  %v1724_v4 = vshrl.u32 %v1289_v47, 16  ;;  %v7656_v46 = vld [vmem:[%s8997_s30 + $0x10] sm:$0xf] }
  0xc3   : > { %v7604_v7 = vcombine.low %v1675_v52, %v1685_v62  ;;  %v1638_v8 = vrot.slane %v1637_v58, 4  ;;  %v1646_v9 = vor.u32 %v1645_v59, %v1642_v50  ;;  %v1655_v10 = vrot.slane %v1653_v60, 6  ;;  %v7657_v54 = vld [vmem:[%s8997_s30 + $0x14] sm:$0x1]  ;;  %v7719_v62 = vld [vmem:[%s8997_s30 + $0xc] sm:$0xe] }
  0xc4   : > { %v1717_v12 = vrot.slane %v1715_v61, 5  ;;  %v1720_v13 = vrot.slane %v1718_v3, 6  ;;  %v1726_v14 = vrot.slane %v1724_v4, 5  ;;  %v1727_v15 = vshll.u32 %v1289_v47, 16 }
  0xc5   : > { %1816 = vrot.lane.b32.xlu1 %v7604_v7, %s8901_s6  ;;  %v1647_v17 = vsel %vm9272_vm8, %v1638_v8, %v1646_v9  ;;  %v1648_v18 = vrot.slane %v1646_v9, 4  ;;  %v1656_v19 = vor.u32 %v1655_v10, %v1652_v1  ;;  %v1734_v20 = vshrl.u32 %v1290_v2, 16  ;;  %v9419_v1 = vpop.permute.xlu1 %876  ;;  %v7720_v8 = vld [vmem:[%s8997_s30 + $0x10] sm:$0xf]  ;;  %v7721_v9 = vld [vmem:[%s8997_s30 + $0x14] sm:$0x1] }
  0xc6   : > { %v1721_v22 = vor.u32 %v1720_v13, %v1717_v12  ;;  %v1729_v23 = vrot.slane %v1727_v15, 6  ;;  %v1737_v27 = vshll.u32 %v1290_v2, 16  ;;  %v1687_v28 = vshrl.u32 %v1285_v11, 16 }
  0xc7   : > { %v1657_v31 = vsel %vm9272_vm8, %v1648_v18, %v1656_v19  ;;  %v1736_v32 = vrot.slane %v1734_v20, 5  ;;  %v1690_v33 = vshll.u32 %v1285_v11, 16  ;;  %v1696_v34 = vshrl.u32 %v1286_v16, 16  ;;  %v8715_v19 = vld [vmem:[%s8997_s30 + $0x18] sm:$0xff]  }
  0xc8   : > { %v7603_v36 = vcombine.low %v1647_v17, %v1657_v31  ;;  %v1722_v38 = vrot.slane %v1721_v22, 4  ;;  %v1730_v39 = vor.u32 %v1729_v23, %v1726_v14  ;;  %v1739_v40 = vrot.slane %v1737_v27, 6  ;;  %v7658_v14 = vld [vmem:[%s8997_s30 + $0x18] sm:$0xf] }
  0xc9   : > { %v1689_v42 = vrot.slane %v1687_v28, 5  ;;  %v1692_v43 = vrot.slane %v1690_v33, 6  ;;  %v1698_v44 = vrot.slane %v1696_v34, 5  ;;  %v1699_v45 = vshll.u32 %v1286_v16, 16  ;;  %v7659_v28 = vld [vmem:[%s8997_s30 + $0x1c] sm:$0xf] }
  0xca   : > { %1814 = vrot.lane.b32.xlu0 %v7603_v36, %s8901_s6  ;;  %v1731_v47 = vsel %vm9272_vm8, %v1722_v38, %v1730_v39  ;;  %v1732_v48 = vrot.slane %v1730_v39, 4  ;;  %v1740_v49 = vor.u32 %v1739_v40, %v1736_v32  ;;  %v1706_v50 = vshrl.u32 %v1287_v21, 16  ;;  %v9424_v15 = vpop.permute.xlu0 %874  ;;  %v7660_v33 = vld [vmem:[%s8997_s30 + $0x20] sm:$0x1] }
  0xcb   : > { %v1693_v51 = vor.u32 %v1692_v43, %v1689_v42  ;;  %v1701_v52 = vrot.slane %v1699_v45, 6  ;;  %v1709_v53 = vshll.u32 %v1287_v21, 16  ;;  %v2082_v55 = vshrl.u32 %v7655_v29, 16  ;;  %v7799_v42 = vld [vmem:[%s8997_s30 + $0xc] sm:$0xe] }
  0xcc   : > { %v1741_v58 = vsel %vm9272_vm8, %v1732_v48, %v1740_v49  ;;  %v1708_v59 = vrot.slane %v1706_v50, 5  ;;  %v2085_v60 = vshll.u32 %v7655_v29, 16  ;;  %v2091_v61 = vshll.u32 %v7656_v46, 16  ;;  %v8716_v49 = vld [vmem:[%s8997_s30 + $0xc] sm:$0xff]  }
  0xcd   : > { %v7606_v2 = vcombine.low %v1731_v47, %v1741_v58  ;;  %v1694_v3 = vrot.slane %v1693_v51, 4  ;;  %v1702_v4 = vor.u32 %v1701_v52, %v1698_v44  ;;  %v1711_v7 = vrot.slane %v1709_v53, 6  ;;  %v9439_v43 = vpop.permute.xlu1 %880  ;;  %v8717_v44 = vld [vmem:[%s8997_s30 + $0x30] sm:$0xff]  }
  0xce   : > { %v2084_v10 = vrot.slane %v2082_v55, 4  ;;  %v2087_v11 = vrot.slane %v2085_v60, 5  ;;  %v2093_v12 = vrot.slane %v2091_v61, 5  ;;  %v2095_v13 = vshrl.u32 %v7656_v46, 16  ;;  %v7801_v61 = vld [vmem:[%s8997_s30 + $0x14] sm:$0x3] }
  0xcf   : > { %1820 = vrot.lane.b32.xlu1 %v7606_v2, %s8901_s6  ;;  %v1703_v16 = vsel %vm9272_vm8, %v1694_v3, %v1702_v4  ;;  %v1704_v17 = vrot.slane %v1702_v4, 4  ;;  %v1712_v18 = vor.u32 %v1711_v7, %v1708_v59  ;;  %v2101_v20 = vshll.u32 %v7657_v54, 16  ;;  %v7800_v54 = vld [vmem:[%s8997_s30 + $0x10] sm:$0xf]  ;;  %v8718_v2 = vld [vmem:[%s8997_s30 + $0x24] sm:$0xff]  }
  0xd0   : > { %v2088_v21 = vor.u32 %v2087_v11, %v2084_v10  ;;  %v2097_v22 = vrot.slane %v2095_v13, 4  ;;  %v7767_v23 = vrot.slane %v7719_v62, 9  ;;  %v2676_v27 = vrot.slane %v7720_v8, 5 }
  0xd1   : > { %v1713_v29 = vsel %vm9272_vm8, %v1704_v17, %v1712_v18  ;;  %v2103_v31 = vrot.slane %v2101_v20, 5  ;;  %v2679_v32 = vrot.slane %v7721_v9, 5  ;;  %v2106_v34 = vshrl.u32 %v7658_v14, 16  ;;  %v7722_v9 = vld [vmem:[%s8997_s30 + $0x18] sm:$0xe]  ;;  %v8723_v17 = vld [vmem:[%s8997_s30 + $0x24] sm:$0xff]  }
  0xd2   : > { %v7605_v36 = vcombine.low %v1703_v16, %v1713_v29  ;;  %v2089_v38 = vrot.slane %v2088_v21, 4  ;;  %v2098_v39 = vor.u32 %v2097_v22, %v2093_v12  ;;  %v9436_v40 = vsel %vm9129_vm5, %v7767_v23, %v2676_v27  ;;  %v9448_v55 = vpop.permute.xlu0 %878  ;;  %v8721_v16 = vld [vmem:[%s8997_s30] sm:$0xff]   ;;  %v8724_v18 = vld [vmem:[%s8997_s30 + $0xc] sm:$0xff]   ;;  %v8728_v21 = vld [vmem:[%s8997_s30 + $0x54] sm:$0xff]   ;;  %358 = vst.msk [vmem:[#allocation2 + $0x18] sm:$0xff] %vm354_vm9, %v8723_v17 }
  0xd3   : > { %1970 = vrot.lane.b32.xlu1 %v8715_v19, %s8902_s7  ;;  %v2678_v45 = vrot.slane %v2676_v27, 4  ;;  %v2108_v46 = vrot.slane %v2106_v34, 4  ;;  %v2109_v47 = vshll.u32 %v7658_v14, 16  ;;  %v2115_v48 = vshll.u32 %v7659_v28, 16  ;;  %v8720_v14 = vld [vmem:[%s8997_s30 + $0x18] sm:$0xff]   ;;  %v8727_v20 = vld [vmem:[%s8997_s30 + $0x30] sm:$0xff]  }
  0xd4   : > { %1818 = vrot.lane.b32.xlu0 %v7605_v36, %s8901_s6  ;;  %v2094_v50 = vsel %vm9009_vm2, %v2089_v38, %v2093_v12  ;;  %v2099_v51 = vrot.slane %v2098_v39, 4  ;;  %v2119_v52 = vshrl.u32 %v7659_v28, 16  ;;  %v2125_v53 = vshll.u32 %v7660_v33, 16  ;;  %v8726_v19 = vld [vmem:[%s8997_s30 + $0x3c] sm:$0xff]   ;;  %v8729_v22 = vld [vmem:[%s8997_s30 + $0x48] sm:$0xff]   ;;  %v8738_v33 = vld [vmem:[%s8997_s30 + $0xb4] sm:$0xff]  }
  0xd5   : > { %v9452_v58 = vsel %vm9129_vm5, %v2678_v45, %v2679_v32  ;;  %v2111_v59 = vrot.slane %v2109_v47, 5  ;;  %v9454_v60 = vrot.slane %v2115_v48, 5  ;;  %v2948_v62 = vshrl.u32 %v7799_v42, 16  ;;  %v8730_v23 = vld [vmem:[%s8997_s30 + $0x6c] sm:$0xff]   ;;  %v8731_v27 = vld [vmem:[%s8997_s30 + $0x60] sm:$0xff]   ;;  %v8734_v29 = vld [vmem:[%s8997_s30 + $0x78] sm:$0xff]  }
  0xd6   : > { %v2104_v3 = vsel %vm9009_vm2, %v2099_v51, %v2103_v31  ;;  %v7783_v4 = vcombine.low %v9436_v40, %v9452_v58  ;;  %v2121_v7 = vrot.slane %v2119_v52, 4  ;;  %v2127_v8 = vrot.slane %v2125_v53, 5  ;;  %v8733_v28 = vld [vmem:[%s8997_s30 + $0x84] sm:$0xff]   ;;  %v8736_v31 = vld [vmem:[%s8997_s30 + $0x9c] sm:$0xff]   ;;  %v8737_v32 = vld [vmem:[%s8997_s30 + $0x90] sm:$0xff]   ;;  %357 = vst.msk [vmem:[#allocation2 + $0x10] sm:$0xff] %vm354_vm9, %v8720_v14 }
  0xd7   : > { %1974 = vrot.lane.b32.xlu1 %v8717_v44, %s8902_s7  ;;  %v7703_v10 = vcombine.low %v2094_v50, %v2104_v3  ;;  %v2112_v11 = vor.u32 %v2111_v59, %v2108_v46  ;;  %v2950_v12 = vrot.slane %v2948_v62, 5  ;;  %v2951_v13 = vshll.u32 %v7799_v42, 16  ;;  %v7723_v42 = vld [vmem:[%s8997_s30 + $0x1c] sm:$0xf]  ;;  %v9482_v44 = vpop.permute.xlu1 %884  ;;  %v8739_v45 = vld [vmem:[%s8997_s30 + $0xa8] sm:$0xff]   ;;  %355 = vst.msk [vmem:[#allocation2] sm:$0xff] %vm354_vm9, %v8721_v16 }
  0xd8   : > { %1968 = vrot.lane.b32.xlu0 %v8716_v49, %s8902_s7  ;;  %v2122_v34 = vor.u32 %v2121_v7, %v9454_v60  ;;  %v2957_v36 = vshrl.u32 %v7800_v54, 16  ;;  %v2960_v38 = vshll.u32 %v7800_v54, 16  ;;  %v2967_v39 = vshrl.u32 %v7801_v61, 16  ;;  %v9486_v50 = vld [vmem:[%s8997_s30 + $0x20] sm:$0x1]  ;;  %356 = vst.msk [vmem:[#allocation2 + $0x8] sm:$0xff] %vm354_vm9, %v8724_v18 }
  0xd9   : > { %v2113_v46 = vrot.slane %v2112_v11, 4  ;;  %v2953_v47 = vrot.slane %v2951_v13, 6  ;;  %v2970_v48 = vshll.u32 %v7801_v61, 16  ;;  %v7768_v51 = vrot.slane %v7722_v9, 9  ;;  %v9489_v52 = vld [vmem:[%s8997_s30 + $0x3c] sm:$0xff]   ;;  %360 = vst.msk [vmem:[#allocation2 + $0x28] sm:$0xff] %vm354_vm9, %v8726_v19 }
  0xda   : > { %v2123_v49 = vrot.slane %v2122_v34, 4  ;;  %v2959_v53 = vrot.slane %v2957_v36, 5  ;;  %v2962_v59 = vrot.slane %v2960_v38, 6  ;;  %v9491_v54 = vrot.slane %v2967_v39, 5  ;;  %v9493_v62 = vpop.permute.xlu0 %882  ;;  %v9500_v11 = vld [vmem:[%s8997_s30 + $0x18] sm:$0xe] }
  0xdb   : > { %2513 = vrot.lane.b32.xlu1 %v7703_v10, %s8903_s8  ;;  %v2118_v61 = vsel %vm9009_vm2, %v2113_v46, %v9454_v60  ;;  %v2954_v3 = vor.u32 %v2953_v47, %v2950_v12  ;;  %v2972_v7 = vrot.slane %v2970_v48, 6  ;;  %v2683_v9 = vrot.slane %v7723_v42, 5  ;;  %v9503_v13 = vld [vmem:[%s8997_s30 + $0x1c] sm:$0xf]  ;;  %v9510_v10 = vld [vmem:[%s8997_s30 + $0x20] sm:$0x3]  ;;  %v9536_v16 = vpop.permute.xlu1 %1180 }
  0xdc   : > { %1972 = vrot.lane.b32.xlu0 %v8718_v2, %s8902_s7  ;;  %v2128_v34 = vsel %vm9009_vm2, %v2123_v49, %v2127_v8  ;;  %v2963_v36 = vor.u32 %v2962_v59, %v2959_v53  ;;  %v2686_v38 = vrot.slane %v9486_v50, 5  ;;  %359 = vst.msk [vmem:[#allocation2 + $0x20] sm:$0xff] %vm354_vm9, %v8727_v20  ;;  %362 = vst.msk [vmem:[#allocation2 + $0x38] sm:$0xff] %vm354_vm9, %v8728_v21  ;;  %v2976_v14 = vshrl.u32 %v9500_v11, 16  ;;  %v7911_v40 = vld [vmem:[%s8997_s30 + $0x18] sm:$0xf] }
  0xdd   : > { %v9512_v39 = vcombine.low %v2118_v61, %v2128_v34  ;;  %v2955_v60 = vrot.slane %v2954_v3, 4  ;;  %v2973_v12 = vor.u32 %v2972_v7, %v9491_v54  ;;  %v9517_v42 = vsel %vm9129_vm5, %v7768_v51, %v2683_v9  ;;  %361 = vst.msk [vmem:[#allocation2 + $0x30] sm:$0xff] %vm354_vm9, %v8729_v22  ;;  %364 = vst.msk [vmem:[#allocation2 + $0x48] sm:$0xff] %vm354_vm9, %v8730_v23  ;;  %v7975_v58 = vld [vmem:[%s8997_s30 + $0x18] sm:$0xe] }
  0xde   : > { %363 = vst.msk [vmem:[#allocation2 + $0x40] sm:$0xff] %vm354_vm9, %v8731_v27  ;;  %366 = vst.msk [vmem:[#allocation2 + $0x58] sm:$0xff] %vm354_vm9, %v8733_v28  ;;  %v2965_v2 = vrot.slane %v2963_v36, 4  ;;  %v2685_v8 = vrot.slane %v2683_v9, 4  ;;  %v9538_v17 = vpop.permute.xlu0 %1178  ;;  %v2979_v19 = vshll.u32 %v9500_v11, 16  ;;  %v2985_v20 = vshrl.u32 %v9503_v13, 16 }
  0xdf   : > { %365 = vst.msk [vmem:[#allocation2 + $0x50] sm:$0xff] %vm354_vm9, %v8734_v29  ;;  %368 = vst.msk [vmem:[#allocation2 + $0x68] sm:$0xff] %vm354_vm9, %v8736_v31  ;;  %2834 = vrot.lane.b32.xlu1 %v7783_v4, %s8904_s9  ;;  %v2964_v18 = vsel %vm9272_vm8, %v2955_v60, %v2963_v36  ;;  %v2988_v21 = vshll.u32 %v9503_v13, 16  ;;  %v8722_v4 = vld [vmem:[%s8997_s30 + $0x18] sm:$0xff]   ;;  %v3738_v23 = vshll.u32 %v7911_v40, 16  ;;  %v9600_v46 = vpop.permute.xlu1 %1184 }
  0xe0   : > { %367 = vst.msk [vmem:[#allocation2 + $0x60] sm:$0xff] %vm354_vm9, %v8737_v32  ;;  %370 = vst.msk [vmem:[#allocation2 + $0x78] sm:$0xff] %vm354_vm9, %v8738_v33  ;;  %1976 = vrot.lane.b32.xlu0 %v9489_v52, %s8902_s7  ;;  %v7976_v29 = vld [vmem:[%s8997_s30 + $0x1c] sm:$0xf]  ;;  %v7914_v49 = vld [vmem:[%s8997_s30 + $0x24] sm:$0xf] }
  0xe1   : > { %369 = vst.msk [vmem:[#allocation2 + $0x70] sm:$0xff] %vm354_vm9, %v8739_v45  ;;  %v7977_v45 = vld [vmem:[%s8997_s30 + $0x20] sm:$0x1]  ;;  %v3740_v50 = vrot.slane %v3738_v23, 5  ;;  %v4329_v9 = vrot.slane %v7976_v29, 5  ;;  %vm5867_vm9 = vcmask 917312  }
  0xe2   : > { %905 = vst.msk [vmem:[#allocation2 + $0x10] sm:$0xff] %vm902_vm10, %v9350_v25  ;;  %903 = vst.msk [vmem:[#allocation2] sm:$0xff] %vm902_vm10, %v9354_v37  ;;  %v2974_v25 = vsel %vm9272_vm8, %v2965_v2, %v2973_v12  ;;  %v2687_v37 = vsel %vm9129_vm5, %v2685_v8, %v2686_v38  ;;  %v9602_v47 = vpop.permute.xlu0 %1182  ;;  %v7915_v11 = vld [vmem:[%s8997_s30 + $0x28] sm:$0xf]  ;;  %v4332_v34 = vrot.slane %v7977_v45, 5  ;;  %v3759_v38 = vshrl.u32 %v7914_v49, 16 }
  0xe3   : > { %906 = vst.msk [vmem:[#allocation2 + $0x18] sm:$0xff] %vm902_vm10, %v9364_v57  ;;  %904 = vst.msk [vmem:[#allocation2 + $0x8] sm:$0xff] %vm902_vm10, %v9370_v5  ;;  %v2978_v57 = vrot.slane %v2976_v14, 5  ;;  %v2995_v5 = vshrl.u32 %v9510_v10, 16  ;;  %v7916_v36 = vld [vmem:[%s8997_s30 + $0x2c] sm:$0x1] }
  0xe4   : > { %908 = vst.msk [vmem:[#allocation2 + $0x28] sm:$0xff] %vm902_vm10, %v9376_v24  ;;  %907 = vst.msk [vmem:[#allocation2 + $0x20] sm:$0xff] %vm902_vm10, %v9381_v35  ;;  %v7912_v24 = vld [vmem:[%s8997_s30 + $0x1c] sm:$0xf]  ;;  %v7847_v35 = vcombine.low %v2964_v18, %v2974_v25  ;;  %2515 = vrot.lane.b32.xlu0 %v9512_v39, %s8903_s8  ;;  %v4331_v2 = vrot.slane %v4329_v9, 4  ;;  %v3761_v8 = vrot.slane %v3759_v38, 4 }
  0xe5   : > { %910 = vst.msk [vmem:[#allocation2 + $0x38] sm:$0xff] %vm902_vm10, %v9391_v56  ;;  %909 = vst.msk [vmem:[#allocation2 + $0x30] sm:$0xff] %vm902_vm10, %v9396_v6  ;;  %v7784_v56 = vcombine.low %v9517_v42, %v2687_v37  ;;  %v2981_v6 = vrot.slane %v2979_v19, 6  ;;  %v3744_v27 = vshll.u32 %v7912_v24, 16  ;;  %v3748_v28 = vshrl.u32 %v7912_v24, 16 }
  0xe6   : > { %912 = vst.msk [vmem:[#allocation2 + $0x48] sm:$0xff] %vm902_vm10, %v9405_v30  ;;  %911 = vst.msk [vmem:[#allocation2 + $0x40] sm:$0xff] %vm902_vm10, %v9409_v41  ;;  %v2987_v30 = vrot.slane %v2985_v20, 5  ;;  %v7913_v41 = vld [vmem:[%s8997_s30 + $0x20] sm:$0x1]  ;;  %3443 = vrot.lane.b32.xlu1 %v7847_v35, %s8905_s10  ;;  %v3768_v18 = vshll.u32 %v7915_v11, 16  ;;  %v9616_v20 = vpop.permute.xlu1 %1188 }
  0xe7   : > { %914 = vst.msk [vmem:[#allocation2 + $0x58] sm:$0xff] %vm902_vm10, %v9419_v1  ;;  %913 = vst.msk [vmem:[#allocation2 + $0x50] sm:$0xff] %vm902_vm10, %v9424_v15  ;;  %v2990_v1 = vrot.slane %v2988_v21, 6  ;;  %v2997_v15 = vrot.slane %v2995_v5, 5  ;;  %v2982_v22 = vor.u32 %v2981_v6, %v2978_v57  ;;  %v3746_v51 = vrot.slane %v3744_v27, 5  ;;  %v9618_v21 = vpop.permute.xlu0 %1186 }
  0xe8   : > { %916 = vst.msk [vmem:[#allocation2 + $0x68] sm:$0xff] %vm902_vm10, %v9439_v43  ;;  %915 = vst.msk [vmem:[#allocation2 + $0x60] sm:$0xff] %vm902_vm10, %v9448_v55  ;;  %v2998_v43 = vshll.u32 %v9510_v10, 16  ;;  %v3735_v55 = vshrl.u32 %v7911_v40, 16  ;;  %v3750_v52 = vrot.slane %v3748_v28, 4  ;;  %2836 = vrot.lane.b32.xlu0 %v7784_v56, %s8904_s9  ;;  %v3762_v10 = vshll.u32 %v7914_v49, 16 }
  0xe9   : > { %918 = vst.msk [vmem:[#allocation2 + $0x78] sm:$0xff] %vm902_vm10, %v9482_v44  ;;  %917 = vst.msk [vmem:[#allocation2 + $0x70] sm:$0xff] %vm902_vm10, %v9493_v62  ;;  %v2991_v31 = vor.u32 %v2990_v1, %v2987_v30  ;;  %v3754_v44 = vshll.u32 %v7913_v41, 16  ;;  %v2983_v48 = vrot.slane %v2982_v22, 4  ;;  %v8023_v62 = vrot.slane %v7975_v58, 9  ;;  %v8725_v56 = vld [vmem:[%s8997_s30 + $0x24] sm:$0xff]  }
  0xea   : > { %v3000_v32 = vrot.slane %v2998_v43, 6  ;;  %v3737_v33 = vrot.slane %v3735_v55, 4  ;;  %3621 = vrot.lane.b32.xlu1 %v8722_v4, %s8906_s11  ;;  %v3751_v7 = vor.u32 %v3750_v52, %v3746_v51  ;;  %v3764_v14 = vrot.slane %v3762_v10, 5  ;;  %v8055_v19 = vld [vmem:[%s8997_s30 + $0x18] sm:$0xe]  ;;  %v9638_v49 = vpop.permute.xlu1 %1192  ;;  %1228 = vst.msk [vmem:[#allocation2 + $0x8] sm:$0xff] %vm1226_vm11, %v9536_v16 }
  0xeb   : > { %v2993_v53 = vrot.slane %v2991_v31, 4  ;;  %v3756_v54 = vrot.slane %v3754_v44, 5  ;;  %v2992_v61 = vsel %vm9272_vm8, %v2983_v48, %v2991_v31  ;;  %v4330_v42 = vsel %vm9129_vm5, %v8023_v62, %v4329_v9  ;;  %v8056_v5 = vld [vmem:[%s8997_s30 + $0x1c] sm:$0xf]  ;;  %v8057_v24 = vld [vmem:[%s8997_s30 + $0x20] sm:$0x3] }
  0xec   : > { %v3001_v59 = vor.u32 %v3000_v32, %v2997_v15  ;;  %v3741_v3 = vor.u32 %v3740_v50, %v3737_v33  ;;  %v3752_v12 = vrot.slane %v3751_v7, 4  ;;  %v3772_v37 = vshrl.u32 %v7915_v11, 16  ;;  %v7978_v1 = vld [vmem:[%s8997_s30 + $0x24] sm:$0xe]  ;;  %v7979_v4 = vld [vmem:[%s8997_s30 + $0x28] sm:$0xf] }
  0xed   : > { %v3778_v57 = vshll.u32 %v7916_v36, 16  ;;  %v4333_v6 = vsel %vm9129_vm5, %v4331_v2, %v4332_v34  ;;  %v3765_v30 = vor.u32 %v3764_v14, %v3761_v8  ;;  %v3770_v41 = vrot.slane %v3768_v18, 5  ;;  %v7980_v44 = vld [vmem:[%s8997_s30 + $0x2c] sm:$0x1]  ;;  %v8058_v52 = vld [vmem:[%s8997_s30 + $0x24] sm:$0xe] }
  0xee   : > { %v3002_v13 = vsel %vm9272_vm8, %v2993_v53, %v3001_v59  ;;  %v3742_v60 = vrot.slane %v3741_v3, 4  ;;  %v3757_v25 = vsel %vm9009_vm2, %v3752_v12, %v3756_v54  ;;  %v8039_v15 = vcombine.low %v4330_v42, %v4333_v6  ;;  %v9640_v53 = vpop.permute.xlu0 %1190  ;;  %v8059_v3 = vld [vmem:[%s8997_s30 + $0x28] sm:$0xf]  ;;  %v8060_v38 = vld [vmem:[%s8997_s30 + $0x2c] sm:$0x3]  ;;  %1227 = vst.msk [vmem:[#allocation2] sm:$0xff] %vm1226_vm11, %v9538_v17 }
  0xef   : > { %v7848_v39 = vcombine.low %v2992_v61, %v3002_v13  ;;  %v3774_v43 = vrot.slane %v3772_v37, 4  ;;  %v3780_v55 = vrot.slane %v3778_v57, 5  ;;  %v4601_v58 = vshrl.u32 %v8055_v19, 16  ;;  %1230 = vst.msk [vmem:[#allocation2 + $0x18] sm:$0xff] %vm1226_vm11, %v9600_v46  ;;  %1229 = vst.msk [vmem:[#allocation2 + $0x10] sm:$0xff] %vm1226_vm11, %v9602_v47 }
  0xf0   : > { %v3747_v40 = vsel %vm9009_vm2, %v3742_v60, %v3746_v51  ;;  %v3766_v22 = vrot.slane %v3765_v30, 4  ;;  %v4604_v23 = vshll.u32 %v8055_v19, 16  ;;  %v4610_v27 = vshrl.u32 %v8056_v5, 16  ;;  %1232 = vst.msk [vmem:[#allocation2 + $0x28] sm:$0xff] %vm1226_vm11, %v9616_v20  ;;  %1231 = vst.msk [vmem:[#allocation2 + $0x20] sm:$0xff] %vm1226_vm11, %v9618_v21 }
  0xf1   : > { %3445 = vrot.lane.b32.xlu0 %v7848_v39, %s8905_s10  ;;  %v7959_v35 = vcombine.low %v3747_v40, %v3757_v25  ;;  %v4613_v28 = vshll.u32 %v8056_v5, 16  ;;  %v3775_v29 = vor.u32 %v3774_v43, %v3770_v41  ;;  %v4603_v31 = vrot.slane %v4601_v58, 5  ;;  %v7661_v5 = vld [vmem:[%s8997_s30 + $0x24] sm:$0xf]  ;;  %1234 = vst.msk [vmem:[#allocation2 + $0x38] sm:$0xff] %vm1226_vm11, %v9638_v49  ;;  %1233 = vst.msk [vmem:[#allocation2 + $0x30] sm:$0xff] %vm1226_vm11, %v9640_v53 }
  0xf2   : > { %v4620_v32 = vshrl.u32 %v8057_v24, 16  ;;  %v4623_v33 = vshll.u32 %v8057_v24, 16  ;;  %v3771_v45 = vsel %vm9009_vm2, %v3766_v22, %v3770_v41  ;;  %v4606_v48 = vrot.slane %v4604_v23, 6  ;;  %v7662_v24 = vld [vmem:[%s8997_s30 + $0x28] sm:$0xf] }
  0xf3   : > { %4166 = vrot.lane.b32.xlu1 %v7959_v35, %s8907_s18  ;;  %v4612_v50 = vrot.slane %v4610_v27, 5  ;;  %v4615_v51 = vrot.slane %v4613_v28, 6  ;;  %v3776_v59 = vrot.slane %v3775_v29, 4  ;;  %v8024_v61 = vrot.slane %v7978_v1, 9  ;;  %v9656_v35 = vpop.permute.xlu1 %1196  ;;  %v7664_v22 = vld [vmem:[%s8997_s30 + $0x30] sm:$0xf] }
  0xf4   : > { %v4622_v54 = vrot.slane %v4620_v32, 5  ;;  %v4625_v62 = vrot.slane %v4623_v33, 6  ;;  %v4607_v7 = vor.u32 %v4606_v48, %v4603_v31  ;;  %v4336_v11 = vrot.slane %v7979_v4, 5  ;;  %v8732_v23 = vld [vmem:[%s8997_s30 + $0x24] sm:$0xff]   ;;  %1236 = vst.msk [vmem:[#allocation2 + $0x48] sm:$0xff] %vm1226_vm11, %v9656_v35 }
  0xf5   : > { %3623 = vrot.lane.b32.xlu0 %v8725_v56, %s8906_s11  ;;  %v4616_v9 = vor.u32 %v4615_v51, %v4612_v50  ;;  %v4339_v13 = vrot.slane %v7980_v44, 5  ;;  %v3781_v34 = vsel %vm9009_vm2, %v3776_v59, %v3780_v55  ;;  %v4629_v10 = vshrl.u32 %v8058_v52, 16  ;;  %v9658_v56 = vpop.permute.xlu0 %1194  ;;  %v8234_v20 = vld [vmem:[%s8997_s30 + $0x30] sm:$0xe]  ;;  %v8235_v21 = vld [vmem:[%s8997_s30 + $0x34] sm:$0xf] }
  0xf6   : > { %v4626_v36 = vor.u32 %v4625_v62, %v4622_v54  ;;  %v4632_v39 = vshll.u32 %v8058_v52, 16  ;;  %v7960_v60 = vcombine.low %v3771_v45, %v3781_v34  ;;  %v4608_v12 = vrot.slane %v4607_v7, 4  ;;  %v7665_v52 = vld [vmem:[%s8997_s30 + $0x34] sm:$0xf]  ;;  %v7666_v7 = vld [vmem:[%s8997_s30 + $0x38] sm:$0x1] }
  0xf7   : > { %4487 = vrot.lane.b32.xlu1 %v8039_v15, %s8908_s19  ;;  %v4618_v42 = vrot.slane %v4616_v9, 4  ;;  %v4337_v2 = vsel %vm9129_vm5, %v8024_v61, %v4336_v11  ;;  %v4338_v8 = vrot.slane %v4336_v11, 4  ;;  %v4631_v14 = vrot.slane %v4629_v10, 5  ;;  %v7663_v15 = vld [vmem:[%s8997_s30 + $0x2c] sm:$0x1]  ;;  %1235 = vst.msk [vmem:[#allocation2 + $0x40] sm:$0xff] %vm1226_vm11, %v9658_v56 }
  0xf8   : > { %v4634_v18 = vrot.slane %v4632_v39, 6  ;;  %v4638_v19 = vshrl.u32 %v8059_v3, 16  ;;  %v4617_v40 = vsel %vm9272_vm8, %v4608_v12, %v4616_v9  ;;  %v4641_v37 = vshll.u32 %v8059_v3, 16  ;;  %v9671_v9 = vpop.permute.xlu1 %1200  ;;  %v8167_v39 = vld [vmem:[%s8997_s30 + $0x24] sm:$0xf] }
  0xf9   : > { %4168 = vrot.lane.b32.xlu0 %v7960_v60, %s8907_s18  ;;  %v4627_v25 = vsel %vm9272_vm8, %v4618_v42, %v4626_v36  ;;  %v4648_v57 = vshrl.u32 %v8060_v38, 16  ;;  %v4340_v30 = vsel %vm9129_vm5, %v4338_v8, %v4339_v13  ;;  %v4651_v4 = vshll.u32 %v8060_v38, 16  ;;  %v9673_v11 = vpop.permute.xlu0 %1198  ;;  %v8735_v13 = vld [vmem:[%s8997_s30 + $0x30] sm:$0xff]   ;;  %1238 = vst.msk [vmem:[#allocation2 + $0x58] sm:$0xff] %vm1226_vm11, %v9671_v9  ;;  %v8236_v9 = vld [vmem:[%s8997_s30 + $0x38] sm:$0x1] }
  0xfa   : > { %v8103_v6 = vcombine.low %v4617_v40, %v4627_v25  ;;  %v4635_v41 = vor.u32 %v4634_v18, %v4631_v14  ;;  %v4640_v1 = vrot.slane %v4638_v19, 5  ;;  %v8040_v43 = vcombine.low %v4337_v2, %v4340_v30  ;;  %v8168_v40 = vld [vmem:[%s8997_s30 + $0x28] sm:$0xf]  ;;  %1237 = vst.msk [vmem:[#allocation2 + $0x50] sm:$0xff] %vm1226_vm11, %v9673_v11  ;;  %v7805_v11 = vld [vmem:[%s8997_s30 + $0x24] sm:$0xe] }
  0xfb   : > { %v4643_v55 = vrot.slane %v4641_v37, 6  ;;  %v4650_v58 = vrot.slane %v4648_v57, 5  ;;  %v2130_v28 = vshrl.u32 %v7661_v5, 16  ;;  %v2133_v29 = vshll.u32 %v7661_v5, 16 }
  0xfc   : > { %5096 = vrot.lane.b32.xlu1 %v8103_v6, %s8909_s21  ;;  %v4636_v27 = vrot.slane %v4635_v41, 4  ;;  %v2139_v31 = vshll.u32 %v7662_v24, 16  ;;  %v4653_v33 = vrot.slane %v4651_v4, 6  ;;  %v2143_v44 = vshrl.u32 %v7662_v24, 16  ;;  %v8169_v41 = vld [vmem:[%s8997_s30 + $0x2c] sm:$0x1] }
  0xfd   : > { %4489 = vrot.lane.b32.xlu0 %v8040_v43, %s8908_s19  ;;  %v4644_v32 = vor.u32 %v4643_v55, %v4640_v1  ;;  %v2149_v45 = vshll.u32 %v7663_v15, 16  ;;  %v2132_v48 = vrot.slane %v2130_v28, 4  ;;  %v2135_v50 = vrot.slane %v2133_v29, 5  ;;  %v8170_v15 = vld [vmem:[%s8997_s30 + $0x30] sm:$0xf] }
  0xfe   : > { %v2141_v51 = vrot.slane %v2139_v31, 5  ;;  %v2154_v59 = vshrl.u32 %v7664_v22, 16  ;;  %v4654_v61 = vor.u32 %v4653_v33, %v4650_v58  ;;  %v2145_v3 = vrot.slane %v2143_v44, 4 }
  0xff   : > { %v4645_v54 = vsel %vm9272_vm8, %v4636_v27, %v4644_v32  ;;  %v4646_v62 = vrot.slane %v4644_v32, 4  ;;  %v2136_v34 = vor.u32 %v2135_v50, %v2132_v48  ;;  %v2151_v36 = vrot.slane %v2149_v45, 5  ;;  %v8171_v32 = vld [vmem:[%s8997_s30 + $0x34] sm:$0xf]  ;;  %v8172_v48 = vld [vmem:[%s8997_s30 + $0x38] sm:$0x1] }
 0x100   : > { %5274 = vrot.lane.b32.xlu1 %v8732_v23, %s8910_s23  ;;  %v2156_v38 = vrot.slane %v2154_v59, 4  ;;  %v2157_v10 = vshll.u32 %v7664_v22, 16  ;;  %v2146_v12 = vor.u32 %v2145_v3, %v2141_v51  ;;  %v2163_v42 = vshll.u32 %v7665_v52, 16  ;;  %v9689_v22 = vpop.permute.xlu1 %1204  ;;  %v9691_v23 = vpop.permute.xlu0 %1202 }
 0x101   : > { %v4655_v60 = vsel %vm9272_vm8, %v4646_v62, %v4654_v61  ;;  %v2167_v2 = vshrl.u32 %v7665_v52, 16  ;;  %v2137_v14 = vrot.slane %v2136_v34, 4  ;;  %v2173_v19 = vshll.u32 %v7666_v7, 16  ;;  %v7725_v62 = vld [vmem:[%s8997_s30 + $0x24] sm:$0xe]  ;;  %1240 = vst.msk [vmem:[#allocation2 + $0x68] sm:$0xff] %vm1226_vm11, %v9689_v22 }
 0x102   : > { %v8104_v8 = vcombine.low %v4645_v54, %v4655_v60  ;;  %v2159_v18 = vrot.slane %v2157_v10, 5  ;;  %v2147_v25 = vrot.slane %v2146_v12, 4  ;;  %v2165_v37 = vrot.slane %v2163_v42, 5  ;;  %v7726_v61 = vld [vmem:[%s8997_s30 + $0x28] sm:$0xf]  ;;  %1239 = vst.msk [vmem:[#allocation2 + $0x60] sm:$0xff] %vm1226_vm11, %v9691_v23 }
 0x103   : > { %v2169_v57 = vrot.slane %v2167_v2, 4  ;;  %v5388_v5 = vshrl.u32 %v8167_v39, 16  ;;  %v2142_v24 = vsel %vm9009_vm2, %v2137_v14, %v2141_v51  ;;  %v2175_v30 = vrot.slane %v2173_v19, 5  ;;  %v7728_v12 = vld [vmem:[%s8997_s30 + $0x30] sm:$0xe] }
 0x104   : > { %5098 = vrot.lane.b32.xlu0 %v8104_v8, %s8909_s21  ;;  %5276 = vrot.lane.b32.xlu1 %v8735_v13, %s8910_s23  ;;  %v2160_v6 = vor.u32 %v2159_v18, %v2156_v38  ;;  %v5391_v1 = vshll.u32 %v8167_v39, 16  ;;  %v2152_v43 = vsel %vm9009_vm2, %v2147_v25, %v2151_v36  ;;  %v5397_v4 = vshll.u32 %v8168_v40, 16  ;;  %v7727_v36 = vld [vmem:[%s8997_s30 + $0x2c] sm:$0x1]  ;;  %v7729_v42 = vld [vmem:[%s8997_s30 + $0x34] sm:$0xf]  ;;  %v1209_v19 = vpop.permute.xlu1 %1208 }
 0x105   : > { %v2170_v55 = vor.u32 %v2169_v57, %v2165_v37  ;;  %v5390_v58 = vrot.slane %v5388_v5, 4  ;;  %v7705_v27 = vcombine.low %v2142_v24, %v2152_v43  ;;  %v5401_v31 = vshrl.u32 %v8168_v40, 16  ;;  %v1207_v40 = vpop.permute.xlu0 %1206  ;;  %v7730_v24 = vld [vmem:[%s8997_s30 + $0x38] sm:$0x1]  ;;  %v8233_v43 = vld [vmem:[%s8997_s30 + $0x2c] sm:$0x1] }
 0x106   : > { %v2161_v28 = vrot.slane %v2160_v6, 4  ;;  %v5393_v29 = vrot.slane %v5391_v1, 5  ;;  %v5399_v44 = vrot.slane %v5397_v4, 5  ;;  %v5407_v45 = vshll.u32 %v8169_v41, 16  ;;  %v8231_v6 = vld [vmem:[%s8997_s30 + $0x24] sm:$0xe] }
 0x107   : > { %v2171_v33 = vrot.slane %v2170_v55, 4  ;;  %v5412_v50 = vshrl.u32 %v8170_v15, 16  ;;  %v5403_v59 = vrot.slane %v5401_v31, 4  ;;  %v5415_v54 = vshll.u32 %v8170_v15, 16  ;;  %v8232_v15 = vld [vmem:[%s8997_s30 + $0x28] sm:$0xf] }
 0x108   : > { %2517 = vrot.lane.b32.xlu0 %v7705_v27, %s8903_s8  ;;  %v2166_v51 = vsel %vm9009_vm2, %v2161_v28, %v2165_v37  ;;  %v5394_v52 = vor.u32 %v5393_v29, %v5390_v58  ;;  %v5409_v7 = vrot.slane %v5407_v45, 5  ;;  %v5421_v34 = vshll.u32 %v8171_v32, 16  ;;  %1242 = vst.msk [vmem:[#allocation2 + $0x78] sm:$0xff] %vm1226_vm11, %v1209_v19  ;;  %1241 = vst.msk [vmem:[#allocation2 + $0x70] sm:$0xff] %vm1226_vm11, %v1207_v40  ;;  %v7809_v19 = vld [vmem:[%s8997_s30 + $0x34] sm:$0xf] }
 0x109   : > { %v2176_v3 = vsel %vm9009_vm2, %v2171_v33, %v2175_v30  ;;  %v5414_v13 = vrot.slane %v5412_v50, 4  ;;  %v5404_v39 = vor.u32 %v5403_v59, %v5399_v44  ;;  %v5417_v60 = vrot.slane %v5415_v54, 5  ;;  %v7810_v40 = vld [vmem:[%s8997_s30 + $0x38] sm:$0x3] }
 0x10a   : > { %v7706_v38 = vcombine.low %v2166_v51, %v2176_v3  ;;  %v5395_v10 = vrot.slane %v5394_v52, 4  ;;  %v9705_v2 = vrot.slane %v5421_v34, 5  ;;  %v5425_v8 = vshrl.u32 %v8171_v32, 16  ;;  %v7806_v51 = vld [vmem:[%s8997_s30 + $0x28] sm:$0xf] }
 0x10b   : > { %v5431_v14 = vshll.u32 %v8172_v48, 16  ;;  %v7769_v18 = vrot.slane %v7725_v62, 9  ;;  %v5405_v37 = vrot.slane %v5404_v39, 4  ;;  %v5418_v57 = vor.u32 %v5417_v60, %v5414_v13  ;;  %v7807_v52 = vld [vmem:[%s8997_s30 + $0x2c] sm:$0x3] }
 0x10c   : > { %2519 = vrot.lane.b32.xlu1 %v7706_v38, %s8903_s8  ;;  %v5400_v25 = vsel %vm9009_vm2, %v5395_v10, %v5399_v44  ;;  %v2690_v5 = vrot.slane %v7726_v61, 5  ;;  %v5427_v30 = vrot.slane %v5425_v8, 4  ;;  %v2693_v1 = vrot.slane %v7727_v36, 5 }
 0x10d   : > { %v5433_v41 = vrot.slane %v5431_v14, 5  ;;  %v5410_v55 = vsel %vm9009_vm2, %v5405_v37, %v5409_v7  ;;  %v5419_v58 = vrot.slane %v5418_v57, 4  ;;  %v7770_v46 = vrot.slane %v7728_v12, 9  ;;  %v7808_v12 = vld [vmem:[%s8997_s30 + $0x30] sm:$0xe] }
 0x10e   : > { %v2691_v4 = vsel %vm9129_vm5, %v7769_v18, %v2690_v5  ;;  %v2692_v27 = vrot.slane %v2690_v5, 4  ;;  %v8215_v16 = vcombine.low %v5400_v25, %v5410_v55  ;;  %v5428_v17 = vor.u32 %v5427_v30, %v9705_v2 }
 0x10f   : > { %v2697_v47 = vrot.slane %v7729_v42, 5  ;;  %v5424_v49 = vsel %vm9009_vm2, %v5419_v58, %v9705_v2  ;;  %v2700_v35 = vrot.slane %v7730_v24, 5  ;;  %v8279_v56 = vrot.slane %v8231_v6, 9  ;;  %v9776_v42 = vpop.permute.xlu1 %1792  ;;  %v8311_v58 = vld [vmem:[%s8997_s30 + $0x24] sm:$0xe] }
 0x110   : > { %v2694_v53 = vsel %vm9129_vm5, %v2692_v27, %v2693_v1  ;;  %5819 = vrot.lane.b32.xlu0 %v8215_v16, %s8911_s26  ;;  %v5429_v22 = vrot.slane %v5428_v17, 4  ;;  %v5982_v31 = vrot.slane %v8232_v15, 5  ;;  %v5985_v32 = vrot.slane %v8233_v43, 5  ;;  %1840 = vst.msk [vmem:[#allocation2 + $0x8] sm:$0xff] %vm1838_vm12, %v9776_v42 }
 0x111   : > { %v7785_v23 = vcombine.low %v2691_v4, %v2694_v53  ;;  %v2698_v28 = vsel %vm9129_vm5, %v7770_v46, %v2697_v47  ;;  %v2699_v29 = vrot.slane %v2697_v47, 4  ;;  %v8280_v33 = vrot.slane %v8234_v20, 9  ;;  %v8312_v46 = vld [vmem:[%s8997_s30 + $0x28] sm:$0xf]  ;;  %v9786_v47 = vpop.permute.xlu0 %1790 }
 0x112   : > { %v5989_v44 = vrot.slane %v8235_v21, 5  ;;  %v5434_v45 = vsel %vm9009_vm2, %v5429_v22, %v5433_v41  ;;  %v5992_v50 = vrot.slane %v8236_v9, 5  ;;  %v3004_v59 = vshrl.u32 %v7805_v11, 16  ;;  %1839 = vst.msk [vmem:[#allocation2] sm:$0xff] %vm1838_vm12, %v9786_v47 }
 0x113   : > { %v2701_v48 = vsel %vm9129_vm5, %v2699_v29, %v2700_v35  ;;  %v8216_v54 = vcombine.low %v5424_v49, %v5434_v45  ;;  %v5983_v61 = vsel %vm9129_vm5, %v8279_v56, %v5982_v31  ;;  %v5984_v3 = vrot.slane %v5982_v31, 4  ;;  %v8313_v35 = vld [vmem:[%s8997_s30 + $0x2c] sm:$0x3]  ;;  %v9789_v56 = vpop.permute.xlu1 %1796 }
 0x114   : > { %v7786_v62 = vcombine.low %v2698_v28, %v2701_v48  ;;  %2838 = vrot.lane.b32.xlu0 %v7785_v23, %s8904_s9  ;;  %v5990_v7 = vsel %vm9129_vm5, %v8280_v33, %v5989_v44  ;;  %v5991_v13 = vrot.slane %v5989_v44, 4  ;;  %v3006_v34 = vrot.slane %v3004_v59, 5  ;;  %1842 = vst.msk [vmem:[#allocation2 + $0x18] sm:$0xff] %vm1838_vm12, %v9789_v56  ;;  %v7669_v56 = vld [vmem:[%s8997_s30 + $0x44] sm:$0x1] }
 0x115   : > { %v3007_v36 = vshll.u32 %v7805_v11, 16  ;;  %5821 = vrot.lane.b32.xlu1 %v8216_v54, %s8911_s26  ;;  %v5986_v38 = vsel %vm9129_vm5, %v5984_v3, %v5985_v32  ;;  %v3013_v10 = vshrl.u32 %v7806_v51, 16  ;;  %v3016_v39 = vshll.u32 %v7806_v51, 16 }
 0x116   : > { %v3023_v60 = vshrl.u32 %v7807_v52, 16  ;;  %v8295_v2 = vcombine.low %v5983_v61, %v5986_v38  ;;  %v5993_v8 = vsel %vm9129_vm5, %v5991_v13, %v5992_v50  ;;  %v3026_v18 = vshll.u32 %v7807_v52, 16  ;;  %v8314_v50 = vld [vmem:[%s8997_s30 + $0x30] sm:$0xe] }
 0x117   : > { %v3009_v14 = vrot.slane %v3007_v36, 6  ;;  %v8296_v25 = vcombine.low %v5990_v7, %v5993_v8  ;;  %v3015_v37 = vrot.slane %v3013_v10, 5  ;;  %v3018_v57 = vrot.slane %v3016_v39, 6 }
 0x118   : > { %v3025_v5 = vrot.slane %v3023_v60, 5  ;;  %6140 = vrot.lane.b32.xlu0 %v8295_v2, %s8912_s27  ;;  %v3028_v6 = vrot.slane %v3026_v18, 6  ;;  %v3032_v30 = vshrl.u32 %v7808_v12, 16  ;;  %v3035_v41 = vshll.u32 %v7808_v12, 16  ;;  %v9803_v60 = vpop.permute.xlu1 %1800 }
 0x119   : > { %v3010_v24 = vor.u32 %v3009_v14, %v3006_v34  ;;  %2840 = vrot.lane.b32.xlu1 %v7786_v62, %s8904_s9  ;;  %v3019_v1 = vor.u32 %v3018_v57, %v3015_v37  ;;  %v3041_v15 = vshrl.u32 %v7809_v19, 16  ;;  %v3044_v43 = vshll.u32 %v7809_v19, 16  ;;  %v8315_v62 = vld [vmem:[%s8997_s30 + $0x34] sm:$0xf]  ;;  %v9801_v34 = vpop.permute.xlu0 %1794  ;;  %v8316_v14 = vld [vmem:[%s8997_s30 + $0x38] sm:$0x3] }
 0x11a   : > { %v3051_v55 = vshrl.u32 %v7810_v40, 16  ;;  %v3029_v27 = vor.u32 %v3028_v6, %v3025_v5  ;;  %v3034_v16 = vrot.slane %v3032_v30, 5  ;;  %v3037_v17 = vrot.slane %v3035_v41, 6  ;;  %v7917_v57 = vld [vmem:[%s8997_s30 + $0x30] sm:$0xf]  ;;  %1841 = vst.msk [vmem:[#allocation2 + $0x10] sm:$0xff] %vm1838_vm12, %v9801_v34 }
 0x11b   : > { %v3011_v4 = vrot.slane %v3010_v24, 4  ;;  %v3021_v20 = vrot.slane %v3019_v1, 4  ;;  %v3043_v21 = vrot.slane %v3041_v15, 5  ;;  %v3046_v49 = vrot.slane %v3044_v43, 6  ;;  %v7918_v41 = vld [vmem:[%s8997_s30 + $0x34] sm:$0xf] }
 0x11c   : > { %v3053_v53 = vrot.slane %v3051_v55, 5  ;;  %v3038_v11 = vor.u32 %v3037_v17, %v3034_v16  ;;  %v3054_v22 = vshll.u32 %v7810_v40, 16  ;;  %v6254_v23 = vshrl.u32 %v8311_v58, 16  ;;  %1844 = vst.msk [vmem:[#allocation2 + $0x28] sm:$0xff] %vm1838_vm12, %v9803_v60 }
 0x11d   : > { %v3020_v9 = vsel %vm9272_vm8, %v3011_v4, %v3019_v1  ;;  %6142 = vrot.lane.b32.xlu1 %v8296_v25, %s8912_s27  ;;  %v3030_v28 = vsel %vm9272_vm8, %v3021_v20, %v3029_v27  ;;  %v3047_v29 = vor.u32 %v3046_v49, %v3043_v21  ;;  %v6257_v31 = vshll.u32 %v8311_v58, 16  ;;  %v7919_v27 = vld [vmem:[%s8997_s30 + $0x38] sm:$0x1] }
 0x11e   : > { %v6263_v32 = vshrl.u32 %v8312_v46, 16  ;;  %v7849_v33 = vcombine.low %v3020_v9, %v3030_v28  ;;  %v3039_v44 = vrot.slane %v3038_v11, 4  ;;  %v3056_v45 = vrot.slane %v3054_v22, 6  ;;  %v9819_v9 = vpop.permute.xlu1 %1804 }
 0x11f   : > { %v6256_v48 = vrot.slane %v6254_v23, 5  ;;  %v3049_v51 = vrot.slane %v3047_v29, 4  ;;  %v6259_v52 = vrot.slane %v6257_v31, 6  ;;  %v6266_v54 = vshll.u32 %v8312_v46, 16  ;;  %v9814_v46 = vpop.permute.xlu0 %1798  ;;  %1846 = vst.msk [vmem:[#allocation2 + $0x38] sm:$0xff] %vm1838_vm12, %v9819_v9 }
 0x120   : > { %v6265_v59 = vrot.slane %v6263_v32, 5  ;;  %3447 = vrot.lane.b32.xlu0 %v7849_v33, %s8905_s10  ;;  %v3048_v61 = vsel %vm9272_vm8, %v3039_v44, %v3047_v29  ;;  %v3057_v3 = vor.u32 %v3056_v45, %v3053_v53  ;;  %v6273_v7 = vshrl.u32 %v8313_v35, 16  ;;  %v7921_v29 = vld [vmem:[%s8997_s30 + $0x40] sm:$0xf]  ;;  %1843 = vst.msk [vmem:[#allocation2 + $0x20] sm:$0xff] %vm1838_vm12, %v9814_v46 }
 0x121   : > { %v6276_v13 = vshll.u32 %v8313_v35, 16  ;;  %v6260_v36 = vor.u32 %v6259_v52, %v6256_v48  ;;  %v6268_v38 = vrot.slane %v6266_v54, 6  ;;  %v6282_v10 = vshrl.u32 %v8314_v50, 16  ;;  %v7920_v35 = vld [vmem:[%s8997_s30 + $0x3c] sm:$0xf] }
 0x122   : > { %v6285_v39 = vshll.u32 %v8314_v50, 16  ;;  %v3058_v12 = vsel %vm9272_vm8, %v3049_v51, %v3057_v3  ;;  %v6275_v2 = vrot.slane %v6273_v7, 5  ;;  %v6291_v18 = vshrl.u32 %v8315_v62, 16  ;;  %v8740_v50 = vld [vmem:[%s8997_s30 + $0x30] sm:$0xff]   ;;  %v7922_v52 = vld [vmem:[%s8997_s30 + $0x44] sm:$0x1] }
 0x123   : > { %v6278_v8 = vrot.slane %v6276_v13, 6  ;;  %v7850_v19 = vcombine.low %v3048_v61, %v3058_v12  ;;  %v6261_v40 = vrot.slane %v6260_v36, 4  ;;  %v6269_v25 = vor.u32 %v6268_v38, %v6265_v59  ;;  %v7981_v7 = vld [vmem:[%s8997_s30 + $0x30] sm:$0xe]  ;;  %v9831_v12 = vpop.permute.xlu0 %1802 }
 0x124   : > { %v6284_v37 = vrot.slane %v6282_v10, 5  ;;  %v6287_v24 = vrot.slane %v6285_v39, 6  ;;  %v6293_v6 = vrot.slane %v6291_v18, 5  ;;  %v6294_v30 = vshll.u32 %v8315_v62, 16  ;;  %v7982_v39 = vld [vmem:[%s8997_s30 + $0x34] sm:$0xf] }
 0x125   : > { %v6279_v5 = vor.u32 %v6278_v8, %v6275_v2  ;;  %3449 = vrot.lane.b32.xlu1 %v7850_v19, %s8905_s10  ;;  %v6270_v1 = vsel %vm9272_vm8, %v6261_v40, %v6269_v25  ;;  %v6271_v15 = vrot.slane %v6269_v25, 4  ;;  %v6301_v43 = vshrl.u32 %v8316_v14, 16  ;;  %v8751_v2 = vld [vmem:[%s11328_s1] sm:$0xff]   ;;  %v7983_v40 = vld [vmem:[%s8997_s30 + $0x38] sm:$0x1]  ;;  %1845 = vst.msk [vmem:[#allocation2 + $0x30] sm:$0xff] %vm1838_vm12, %v9831_v12 }
 0x126   : > { %v6304_v55 = vshll.u32 %v8316_v14, 16  ;;  %v6288_v58 = vor.u32 %v6287_v24, %v6284_v37  ;;  %v6296_v4 = vrot.slane %v6294_v30, 6  ;;  %v3783_v16 = vshrl.u32 %v7917_v57, 16  ;;  %v7984_v25 = vld [vmem:[%s8997_s30 + $0x3c] sm:$0xe]  ;;  %v9838_v37 = vpop.permute.xlu1 %1808  ;;  %8574 = vmatprep.subr.bf16.mxu0 %v8751_v2  ;;  %8622 = vmatprep.subr.bf16.mxu1 %v8751_v2 }
 0x127   : > { %v3786_v17 = vshll.u32 %v7917_v57, 16  ;;  %v6280_v20 = vsel %vm9272_vm8, %v6271_v15, %v6279_v5  ;;  %v6303_v21 = vrot.slane %v6301_v43, 5  ;;  %v3792_v53 = vshll.u32 %v7918_v41, 16  ;;  %v8741_v57 = vld [vmem:[%s8997_s30 + $0x3c] sm:$0xff]   ;;  %8575 = vmatpush3.bf16.msra.mxu0 %v8751_v2  ;;  %8630 = vmatpush3.bf16.msra.mxu1 %v8751_v2  ;;  %1848 = vst.msk [vmem:[#allocation2 + $0x48] sm:$0xff] %vm1838_vm12, %v9838_v37 }
 0x128   : > { %v6306_v49 = vrot.slane %v6304_v55, 6  ;;  %v8359_v11 = vcombine.low %v6270_v1, %v6280_v20  ;;  %v6289_v22 = vrot.slane %v6288_v58, 4  ;;  %v6297_v23 = vor.u32 %v6296_v4, %v6293_v6  ;;  %v7985_v55 = vld [vmem:[%s8997_s30 + $0x40] sm:$0xf]  ;;  %v7986_v58 = vld [vmem:[%s8997_s30 + $0x44] sm:$0x1] }
 0x129   : > { %v3785_v28 = vrot.slane %v3783_v16, 4  ;;  %v3788_v32 = vrot.slane %v3786_v17, 5  ;;  %v3794_v33 = vrot.slane %v3792_v53, 5  ;;  %v3796_v44 = vshrl.u32 %v7918_v41, 16  ;;  %v8061_v20 = vld [vmem:[%s8997_s30 + $0x30] sm:$0xe] }
 0x12a   : > { %v6307_v31 = vor.u32 %v6306_v49, %v6303_v21  ;;  %6749 = vrot.lane.b32.xlu0 %v8359_v11, %s8913_s28  ;;  %v6298_v45 = vsel %vm9272_vm8, %v6289_v22, %v6297_v23  ;;  %v6299_v48 = vrot.slane %v6297_v23, 4  ;;  %v3802_v51 = vshll.u32 %v7919_v27, 16 }
 0x12b   : > { %v3807_v59 = vshrl.u32 %v7920_v35, 16  ;;  %v3789_v54 = vor.u32 %v3788_v32, %v3785_v28  ;;  %v3798_v62 = vrot.slane %v3796_v44, 4  ;;  %v3810_v61 = vshll.u32 %v7920_v35, 16  ;;  %v8753_v32 = vld [vmem:[%s11328_s1 + $0x8] sm:$0xff]  }
 0x12c   : > { %v3816_v3 = vshll.u32 %v7921_v29, 16  ;;  %v6308_v13 = vsel %vm9272_vm8, %v6299_v48, %v6307_v31  ;;  %v3804_v36 = vrot.slane %v3802_v51, 5  ;;  %v3820_v10 = vshrl.u32 %v7921_v29, 16  ;;  %v8062_v29 = vld [vmem:[%s8997_s30 + $0x34] sm:$0xf]  ;;  %v9854_v31 = vpop.permute.xlu0 %1806  ;;  %8576 = vmatprep.subr.bf16.mxu0 %v8753_v32  ;;  %8623 = vmatprep.subr.bf16.mxu1 %v8753_v32 }
 0x12d   : > { %v3809_v38 = vrot.slane %v3807_v59, 4  ;;  %v8360_v8 = vcombine.low %v6298_v45, %v6308_v13  ;;  %v3790_v14 = vrot.slane %v3789_v54, 4  ;;  %v3799_v18 = vor.u32 %v3798_v62, %v3794_v33  ;;  %v8063_v45 = vld [vmem:[%s8997_s30 + $0x38] sm:$0x3]  ;;  %v9864_v51 = vpop.permute.xlu1 %1812  ;;  %8577 = vmatpush3.bf16.msra.mxu0 %v8753_v32  ;;  %8631 = vmatpush3.bf16.msra.mxu1 %v8753_v32  ;;  %1847 = vst.msk [vmem:[#allocation2 + $0x40] sm:$0xff] %vm1838_vm12, %v9854_v31 }
 0x12e   : > { %v3812_v19 = vrot.slane %v3810_v61, 5  ;;  %3625 = vrot.lane.b32.xlu0 %v8740_v50, %s8906_s11  ;;  %v3818_v5 = vrot.slane %v3816_v3, 5  ;;  %v3822_v24 = vrot.slane %v3820_v10, 4  ;;  %v3826_v6 = vshll.u32 %v7922_v52, 16  ;;  %v8064_v61 = vld [vmem:[%s8997_s30 + $0x3c] sm:$0xe] }
 0x12f   : > { %v8025_v30 = vrot.slane %v7981_v7, 9  ;;  %6751 = vrot.lane.b32.xlu1 %v8360_v8, %s8913_s28  ;;  %v3795_v41 = vsel %vm9009_vm2, %v3790_v14, %v3794_v33  ;;  %v3800_v1 = vrot.slane %v3799_v18, 4  ;;  %v4343_v43 = vrot.slane %v7982_v39, 5  ;;  %v8065_v8 = vld [vmem:[%s8997_s30 + $0x40] sm:$0xf]  ;;  %v8755_v14 = vld [vmem:[%s11328_s1 + $0x10] sm:$0xff]  }
 0x130   : > { %v3813_v15 = vor.u32 %v3812_v19, %v3809_v38  ;;  %v3823_v4 = vor.u32 %v3822_v24, %v3818_v5  ;;  %v3828_v27 = vrot.slane %v3826_v6, 5  ;;  %v4346_v16 = vrot.slane %v7983_v40, 5  ;;  %8578 = vmatprep.subr.bf16.mxu0 %v8755_v14  ;;  %8624 = vmatprep.subr.bf16.mxu1 %v8755_v14  ;;  %1850 = vst.msk [vmem:[#allocation2 + $0x58] sm:$0xff] %vm1838_vm12, %v9864_v51  ;;  %v8756_v32 = vld [vmem:[%s11328_s1 + $0x18] sm:$0xff]  }
 0x131   : > { %v8026_v17 = vrot.slane %v7984_v25, 9  ;;  %v3805_v21 = vsel %vm9009_vm2, %v3800_v1, %v3804_v36  ;;  %v4344_v53 = vsel %vm9129_vm5, %v8025_v30, %v4343_v43  ;;  %v4345_v35 = vrot.slane %v4343_v43, 4  ;;  %v8066_v25 = vld [vmem:[%s8997_s30 + $0x44] sm:$0x3]  ;;  %8579 = vmatpush3.bf16.msra.mxu0 %v8755_v14  ;;  %8632 = vmatpush3.bf16.msra.mxu1 %v8755_v14 }
 0x132   : > { %v3814_v49 = vrot.slane %v3813_v15, 4  ;;  %3627 = vrot.lane.b32.xlu0 %v8741_v57, %s8906_s11  ;;  %v7961_v11 = vcombine.low %v3795_v41, %v3805_v21  ;;  %v3824_v22 = vrot.slane %v3823_v4, 4  ;;  %v4350_v23 = vrot.slane %v7985_v55, 5  ;;  %v1811_v41 = vpop.permute.xlu0 %1810  ;;  %8580 = vmatprep.subr.bf16.mxu0 %v8756_v32  ;;  %v8757_v14 = vld [vmem:[%s11328_s1 + $0x20] sm:$0xff]  }
 0x133   : > { %v4353_v28 = vrot.slane %v7986_v58, 5  ;;  %v4347_v44 = vsel %vm9129_vm5, %v4345_v35, %v4346_v16  ;;  %v4657_v48 = vshrl.u32 %v8061_v20, 16  ;;  %v4660_v50 = vshll.u32 %v8061_v20, 16  ;;  %v7667_v20 = vld [vmem:[%s8997_s30 + $0x3c] sm:$0xf]  ;;  %1849 = vst.msk [vmem:[#allocation2 + $0x50] sm:$0xff] %vm1838_vm12, %v1811_v41  ;;  %8625 = vmatprep.subr.bf16.mxu1 %v8756_v32 }
 0x134   : > { %v3819_v33 = vsel %vm9009_vm2, %v3814_v49, %v3818_v5  ;;  %4170 = vrot.lane.b32.xlu1 %v7961_v11, %s8907_s18  ;;  %v3829_v52 = vsel %vm9009_vm2, %v3824_v22, %v3828_v27  ;;  %v8041_v59 = vcombine.low %v4344_v53, %v4347_v44  ;;  %v4351_v54 = vsel %vm9129_vm5, %v8026_v17, %v4350_v23  ;;  %v7668_v35 = vld [vmem:[%s8997_s30 + $0x40] sm:$0xf] }
 0x135   : > { %v4352_v62 = vrot.slane %v4350_v23, 4  ;;  %v7962_v3 = vcombine.low %v3819_v33, %v3829_v52  ;;  %v4659_v7 = vrot.slane %v4657_v48, 5  ;;  %v4662_v13 = vrot.slane %v4660_v50, 6  ;;  %v8174_v50 = vld [vmem:[%s8997_s30 + $0x40] sm:$0xf]  ;;  %8581 = vmatpush3.bf16.msra.mxu0 %v8756_v32  ;;  %8633 = vmatpush3.bf16.msra.mxu1 %v8756_v32 }
 0x136   : > { %v4666_v36 = vshrl.u32 %v8062_v29, 16  ;;  %v4669_v10 = vshll.u32 %v8062_v29, 16  ;;  %v4676_v39 = vshrl.u32 %v8063_v45, 16  ;;  %v4679_v2 = vshll.u32 %v8063_v45, 16  ;;  %v8173_v29 = vld [vmem:[%s8997_s30 + $0x3c] sm:$0xf]  ;;  %8582 = vmatprep.subr.bf16.mxu0 %v8757_v14  ;;  %8626 = vmatprep.subr.bf16.mxu1 %v8757_v14 }
 0x137   : > { %v4354_v38 = vsel %vm9129_vm5, %v4352_v62, %v4353_v28  ;;  %4172 = vrot.lane.b32.xlu0 %v7962_v3, %s8907_s18  ;;  %v4663_v19 = vor.u32 %v4662_v13, %v4659_v7  ;;  %v4685_v57 = vshrl.u32 %v8064_v61, 16  ;;  %v4688_v30 = vshll.u32 %v8064_v61, 16  ;;  %v1817_v58 = vpop.permute.xlu1 %1816  ;;  %v8742_v61 = vld [vmem:[%s8997_s30 + $0x3c] sm:$0xff]   ;;  %v8175_v7 = vld [vmem:[%s8997_s30 + $0x44] sm:$0x1] }
 0x138   : > { %v8042_v18 = vcombine.low %v4351_v54, %v4354_v38  ;;  %v4668_v40 = vrot.slane %v4666_v36, 5  ;;  %4491 = vrot.lane.b32.xlu1 %v8041_v59, %s8908_s19  ;;  %v4671_v5 = vrot.slane %v4669_v10, 6  ;;  %v4678_v24 = vrot.slane %v4676_v39, 5  ;;  %1852 = vst.msk [vmem:[#allocation2 + $0x68] sm:$0xff] %vm1838_vm12, %v1817_v58 }
 0x139   : > { %v4681_v6 = vrot.slane %v4679_v2, 6  ;;  %v4664_v1 = vrot.slane %v4663_v19, 4  ;;  %v4687_v15 = vrot.slane %v4685_v57, 5  ;;  %v4694_v43 = vshrl.u32 %v8065_v8, 16  ;;  %v7671_v57 = vld [vmem:[%s8997_s30 + $0x4c] sm:$0xf]  ;;  %8583 = vmatpush3.bf16.msra.mxu0 %v8757_v14  ;;  %8634 = vmatpush3.bf16.msra.mxu1 %v8757_v14 }
 0x13a   : > { %v4697_v55 = vshll.u32 %v8065_v8, 16  ;;  %v4672_v4 = vor.u32 %v4671_v5, %v4668_v40  ;;  %v4690_v16 = vrot.slane %v4688_v30, 6  ;;  %v4704_v17 = vshrl.u32 %v8066_v25, 16  ;;  %v7670_v8 = vld [vmem:[%s8997_s30 + $0x48] sm:$0xf] }
 0x13b   : > { %v4682_v27 = vor.u32 %v4681_v6, %v4678_v24  ;;  %4493 = vrot.lane.b32.xlu0 %v8042_v18, %s8908_s19  ;;  %v4696_v21 = vrot.slane %v4694_v43, 5  ;;  %v4707_v53 = vshll.u32 %v8066_v25, 16  ;;  %v2178_v34 = vshrl.u32 %v7667_v20, 16  ;;  %v8743_v24 = vld [vmem:[%s8997_s30 + $0x48] sm:$0xff]  }
 0x13c   : > { %v4699_v49 = vrot.slane %v4697_v55, 6  ;;  %v4673_v11 = vsel %vm9272_vm8, %v4664_v1, %v4672_v4  ;;  %v4674_v22 = vrot.slane %v4672_v4, 4  ;;  %v4691_v23 = vor.u32 %v4690_v16, %v4687_v15  ;;  %v1815_v31 = vpop.permute.xlu0 %1814  ;;  %v7672_v55 = vld [vmem:[%s8997_s30 + $0x50] sm:$0x1] }
 0x13d   : > { %v4706_v28 = vrot.slane %v4704_v17, 5  ;;  %v4709_v47 = vrot.slane %v4707_v53, 6  ;;  %v2181_v60 = vshll.u32 %v7667_v20, 16  ;;  %v2187_v12 = vshll.u32 %v7668_v35, 16  ;;  %1851 = vst.msk [vmem:[#allocation2 + $0x60] sm:$0xff] %vm1838_vm12, %v1815_v31  ;;  %v8744_v17 = vld [vmem:[%s8997_s30 + $0x48] sm:$0xff]  }
 0x13e   : > { %v4700_v42 = vor.u32 %v4699_v49, %v4696_v21  ;;  %v4683_v46 = vsel %vm9272_vm8, %v4674_v22, %v4682_v27  ;;  %v4692_v9 = vrot.slane %v4691_v23, 4  ;;  %v2191_v37 = vshrl.u32 %v7668_v35, 16  ;;  %v7731_v49 = vld [vmem:[%s8997_s30 + $0x3c] sm:$0xe]  ;;  %v7732_v53 = vld [vmem:[%s8997_s30 + $0x40] sm:$0xf] }
 0x13f   : > { %v8105_v33 = vcombine.low %v4673_v11, %v4683_v46  ;;  %v4710_v45 = vor.u32 %v4709_v47, %v4706_v28  ;;  %v2180_v48 = vrot.slane %v2178_v34, 4  ;;  %v2183_v52 = vrot.slane %v2181_v60, 5  ;;  %v7733_v28 = vld [vmem:[%s8997_s30 + $0x44] sm:$0x1] }
 0x140   : > { %v4702_v44 = vrot.slane %v4700_v42, 4  ;;  %v4701_v51 = vsel %vm9272_vm8, %v4692_v9, %v4700_v42  ;;  %v2189_v59 = vrot.slane %v2187_v12, 5  ;;  %v2193_v54 = vrot.slane %v2191_v37, 4  ;;  %v8176_v42 = vld [vmem:[%s8997_s30 + $0x48] sm:$0xf] }
 0x141   : > { %5100 = vrot.lane.b32.xlu1 %v8105_v33, %s8909_s21  ;;  %v2197_v3 = vshll.u32 %v7669_v56, 16  ;;  %v5436_v13 = vshrl.u32 %v8173_v29, 16  ;;  %v5439_v36 = vshll.u32 %v8173_v29, 16  ;;  %v2184_v10 = vor.u32 %v2183_v52, %v2180_v48  ;;  %v1821_v5 = vpop.permute.xlu1 %1820  ;;  %v8177_v9 = vld [vmem:[%s8997_s30 + $0x4c] sm:$0xf] }
 0x142   : > { %v4711_v62 = vsel %vm9272_vm8, %v4702_v44, %v4710_v45  ;;  %v2194_v39 = vor.u32 %v2193_v54, %v2189_v59  ;;  %v5445_v2 = vshll.u32 %v8174_v50, 16  ;;  %v5449_v25 = vshrl.u32 %v8174_v50, 16  ;;  %1854 = vst.msk [vmem:[#allocation2 + $0x78] sm:$0xff] %vm1838_vm12, %v1821_v5  ;;  %v8178_v50 = vld [vmem:[%s8997_s30 + $0x50] sm:$0x1]  ;;  %v8759_v52 = vld [vmem:[%s11328_s1 + $0x28] sm:$0xff]  }
 0x143   : > { %v8106_v38 = vcombine.low %v4701_v51, %v4711_v62  ;;  %v2199_v18 = vrot.slane %v2197_v3, 5  ;;  %v5438_v19 = vrot.slane %v5436_v13, 4  ;;  %v5441_v40 = vrot.slane %v5439_v36, 5  ;;  %v8237_v51 = vld [vmem:[%s8997_s30 + $0x3c] sm:$0xe]  ;;  %8584 = vmatprep.subr.bf16.mxu0 %v8759_v52  ;;  %8627 = vmatprep.subr.bf16.mxu1 %v8759_v52 }
 0x144   : > { %v2185_v6 = vrot.slane %v2184_v10, 4  ;;  %v2195_v30 = vrot.slane %v2194_v39, 4  ;;  %v5447_v41 = vrot.slane %v5445_v2, 5  ;;  %v5455_v1 = vshll.u32 %v8175_v7, 16  ;;  %v8238_v3 = vld [vmem:[%s8997_s30 + $0x40] sm:$0xf]  ;;  %8585 = vmatpush3.bf16.msra.mxu0 %v8759_v52  ;;  %8635 = vmatpush3.bf16.msra.mxu1 %v8759_v52 }
 0x145   : > { %5102 = vrot.lane.b32.xlu0 %v8106_v38, %s8909_s21  ;;  %5278 = vrot.lane.b32.xlu1 %v8742_v61, %s8910_s23  ;;  %v5442_v15 = vor.u32 %v5441_v40, %v5438_v19  ;;  %v5451_v43 = vrot.slane %v5449_v25, 4  ;;  %v2202_v58 = vshrl.u32 %v7670_v8, 16  ;;  %v2205_v4 = vshll.u32 %v7670_v8, 16  ;;  %v9945_v47 = vpop.permute.xlu1 %1970  ;;  %v8239_v7 = vld [vmem:[%s8997_s30 + $0x44] sm:$0x1] }
 0x146   : > { %v2190_v27 = vsel %vm9009_vm2, %v2185_v6, %v2189_v59  ;;  %v2200_v16 = vsel %vm9009_vm2, %v2195_v30, %v2199_v18  ;;  %v5457_v20 = vrot.slane %v5455_v1, 5  ;;  %v2211_v21 = vshll.u32 %v7671_v57, 16  ;;  %v1819_v12 = vpop.permute.xlu0 %1818  ;;  %v7734_v2 = vld [vmem:[%s8997_s30 + $0x48] sm:$0xe]  ;;  %v7735_v25 = vld [vmem:[%s8997_s30 + $0x4c] sm:$0xf] }
 0x147   : > { %v7707_v35 = vcombine.low %v2190_v27, %v2200_v16  ;;  %v5443_v11 = vrot.slane %v5442_v15, 4  ;;  %v5452_v22 = vor.u32 %v5451_v43, %v5447_v41  ;;  %v2204_v23 = vrot.slane %v2202_v58, 4  ;;  %1853 = vst.msk [vmem:[#allocation2 + $0x70] sm:$0xff] %vm1838_vm12, %v1819_v12  ;;  %v7736_v30 = vld [vmem:[%s8997_s30 + $0x50] sm:$0x1] }
 0x148   : > { %v2207_v56 = vrot.slane %v2205_v4, 5  ;;  %v2213_v34 = vrot.slane %v2211_v21, 5  ;;  %v2215_v60 = vshrl.u32 %v7671_v57, 16  ;;  %v2221_v46 = vshll.u32 %v7672_v55, 16  ;;  %v8761_v4 = vld [vmem:[%s11328_s1 + $0x30] sm:$0xff]   ;;  %2018 = vst.msk [vmem:[#allocation2 + $0x8] sm:$0xff] %vm2016_vm13, %v9945_v47 }
 0x149   : > { %1978 = vrot.lane.b32.xlu0 %v8743_v24, %s8902_s7  ;;  %2521 = vrot.lane.b32.xlu1 %v7707_v35, %s8903_s8  ;;  %v5448_v37 = vsel %vm9009_vm2, %v5443_v11, %v5447_v41  ;;  %v5453_v29 = vrot.slane %v5452_v22, 4  ;;  %v7771_v31 = vrot.slane %v7731_v49, 9  ;;  %v2704_v32 = vrot.slane %v7732_v53, 5  ;;  %v9964_v13 = vpop.permute.xlu1 %1974  ;;  %v7811_v41 = vld [vmem:[%s8997_s30 + $0x3c] sm:$0xe] }
 0x14a   : > { %v2208_v33 = vor.u32 %v2207_v56, %v2204_v23  ;;  %v2217_v44 = vrot.slane %v2215_v60, 4  ;;  %v2223_v45 = vrot.slane %v2221_v46, 5  ;;  %v2707_v48 = vrot.slane %v7733_v28, 5  ;;  %v9968_v8 = vpop.permute.xlu0 %1968  ;;  %v7812_v22 = vld [vmem:[%s8997_s30 + $0x40] sm:$0xf]  ;;  %8586 = vmatprep.subr.bf16.mxu0 %v8761_v4  ;;  %8628 = vmatprep.subr.bf16.mxu1 %v8761_v4  ;;  %v8763_v60 = vld [vmem:[%s11328_s1 + $0x38] sm:$0xff]  }
 0x14b   : > { %v5458_v59 = vsel %vm9009_vm2, %v5453_v29, %v5457_v20  ;;  %v2705_v54 = vsel %vm9129_vm5, %v7771_v31, %v2704_v32  ;;  %v2706_v62 = vrot.slane %v2704_v32, 4  ;;  %v5460_v61 = vshrl.u32 %v8176_v42, 16  ;;  %8587 = vmatpush3.bf16.msra.mxu0 %v8761_v4  ;;  %v8240_v29 = vld [vmem:[%s8997_s30 + $0x48] sm:$0xe]  ;;  %8636 = vmatpush3.bf16.msra.mxu1 %v8761_v4  ;;  %v8319_v4 = vld [vmem:[%s8997_s30 + $0x44] sm:$0x3] }
 0x14c   : > { %v8217_v36 = vcombine.low %v5448_v37, %v5458_v59  ;;  %v2209_v38 = vrot.slane %v2208_v33, 4  ;;  %v2218_v10 = vor.u32 %v2217_v44, %v2213_v34  ;;  %v5463_v39 = vshll.u32 %v8176_v42, 16  ;;  %8588 = vmatprep.subr.bf16.mxu0 %v8763_v60  ;;  %8629 = vmatprep.subr.bf16.mxu1 %v8763_v60  ;;  %2017 = vst.msk [vmem:[#allocation2] sm:$0xff] %vm2016_vm13, %v9968_v8 }
 0x14d   : > { %5280 = vrot.lane.b32.xlu0 %v8744_v17, %s8910_s23  ;;  %v2708_v14 = vsel %vm9129_vm5, %v2706_v62, %v2707_v48  ;;  %v5462_v18 = vrot.slane %v5460_v61, 4  ;;  %v5469_v19 = vshll.u32 %v8177_v9, 16  ;;  %v5473_v40 = vshrl.u32 %v8177_v9, 16  ;;  %v9978_v58 = vpop.permute.xlu1 %2513  ;;  %2020 = vst.msk [vmem:[#allocation2 + $0x18] sm:$0xff] %vm2016_vm13, %v9964_v13  ;;  %v8746_v13 = vld [vmem:[%s8997_s30 + $0x54] sm:$0xff]  }
 0x14e   : > { %5823 = vrot.lane.b32.xlu1 %v8217_v36, %s8911_s26  ;;  %v2214_v57 = vsel %vm9009_vm2, %v2209_v38, %v2213_v34  ;;  %v2219_v5 = vrot.slane %v2218_v10, 4  ;;  %v7787_v24 = vcombine.low %v2705_v54, %v2708_v14  ;;  %v5465_v6 = vrot.slane %v5463_v39, 5  ;;  %v9985_v21 = vpop.permute.xlu0 %1972  ;;  %v7813_v34 = vld [vmem:[%s8997_s30 + $0x44] sm:$0x3]  ;;  %v8241_v54 = vld [vmem:[%s8997_s30 + $0x4c] sm:$0xf] }
 0x14f   : > { %v5471_v1 = vrot.slane %v5469_v19, 5  ;;  %v5475_v15 = vrot.slane %v5473_v40, 4  ;;  %v5479_v43 = vshll.u32 %v8178_v50, 16  ;;  %v8281_v55 = vrot.slane %v8237_v51, 9  ;;  %v8242_v36 = vld [vmem:[%s8997_s30 + $0x50] sm:$0x1]  ;;  %8589 = vmatpush3.bf16.msra.mxu0 %v8763_v60  ;;  %8637 = vmatpush3.bf16.msra.mxu1 %v8763_v60 }
 0x150   : > { %v2224_v27 = vsel %vm9009_vm2, %v2219_v5, %v2223_v45  ;;  %v5466_v16 = vor.u32 %v5465_v6, %v5462_v18  ;;  %v5996_v17 = vrot.slane %v8238_v3, 5  ;;  %v5999_v20 = vrot.slane %v8239_v7, 5  ;;  %v8317_v14 = vld [vmem:[%s8997_s30 + $0x3c] sm:$0xe]  ;;  %v8318_v5 = vld [vmem:[%s8997_s30 + $0x40] sm:$0xf] }
 0x151   : > { %v7708_v49 = vcombine.low %v2214_v57, %v2224_v27  ;;  %v5476_v53 = vor.u32 %v5475_v15, %v5471_v1  ;;  %v5481_v35 = vrot.slane %v5479_v43, 5  ;;  %v7772_v11 = vrot.slane %v7734_v2, 9  ;;  %v9997_v31 = vpop.permute.xlu1 %2834  ;;  %2019 = vst.msk [vmem:[#allocation2 + $0x10] sm:$0xff] %vm2016_vm13, %v9985_v21  ;;  %v7928_v21 = vld [vmem:[%s8997_s30 + $0x5c] sm:$0x1] }
 0x152   : > { %2842 = vrot.lane.b32.xlu1 %v7787_v24, %s8904_s9  ;;  %v5467_v23 = vrot.slane %v5466_v16, 4  ;;  %v5997_v28 = vsel %vm9129_vm5, %v8281_v55, %v5996_v17  ;;  %v5998_v42 = vrot.slane %v5996_v17, 4  ;;  %v2711_v56 = vrot.slane %v7735_v25, 5  ;;  %v10005_v48 = vpop.permute.xlu0 %1976  ;;  %2562 = vst.msk [vmem:[#allocation2] sm:$0xff] %vm2561_vm14, %v9978_v58  ;;  %v8072_v58 = vld [vmem:[%s8997_s30 + $0x5c] sm:$0x3] }
 0x153   : > { %2523 = vrot.lane.b32.xlu0 %v7708_v49, %s8903_s8  ;;  %v5477_v46 = vrot.slane %v5476_v53, 4  ;;  %v2714_v9 = vrot.slane %v7736_v30, 5  ;;  %v3060_v12 = vshrl.u32 %v7811_v41, 16  ;;  %v3063_v37 = vshll.u32 %v7811_v41, 16  ;;  %v7814_v53 = vld [vmem:[%s8997_s30 + $0x48] sm:$0xe] }
 0x154   : > { %v5472_v32 = vsel %vm9009_vm2, %v5467_v23, %v5471_v1  ;;  %v6000_v33 = vsel %vm9129_vm5, %v5998_v42, %v5999_v20  ;;  %v2712_v44 = vsel %vm9129_vm5, %v7772_v11, %v2711_v56  ;;  %v2713_v45 = vrot.slane %v2711_v56, 4  ;;  %2021 = vst.msk [vmem:[#allocation2 + $0x20] sm:$0xff] %vm2016_vm13, %v10005_v48 }
 0x155   : > { %v5482_v50 = vsel %vm9009_vm2, %v5477_v46, %v5481_v35  ;;  %v8297_v51 = vcombine.low %v5997_v28, %v6000_v33  ;;  %v3062_v52 = vrot.slane %v3060_v12, 5  ;;  %v3065_v59 = vrot.slane %v3063_v37, 6  ;;  %2883 = vst.msk [vmem:[#allocation2] sm:$0xff] %vm2882_vm15, %v9997_v31 }
 0x156   : > { %v8218_v62 = vcombine.low %v5472_v32, %v5482_v50  ;;  %v2715_v61 = vsel %vm9129_vm5, %v2713_v45, %v2714_v9  ;;  %v3069_v3 = vshrl.u32 %v7812_v22, 16  ;;  %v3072_v7 = vshll.u32 %v7812_v22, 16  ;;  %v10019_v24 = vpop.permute.xlu0 %2515  ;;  %v7815_v9 = vld [vmem:[%s8997_s30 + $0x4c] sm:$0xf]  ;;  %v7816_v50 = vld [vmem:[%s8997_s30 + $0x50] sm:$0x3] }
 0x157   : > { %6144 = vrot.lane.b32.xlu1 %v8297_v51, %s8912_s27  ;;  %v7788_v38 = vcombine.low %v2712_v44, %v2715_v61  ;;  %v3066_v10 = vor.u32 %v3065_v59, %v3062_v52  ;;  %v3079_v39 = vshrl.u32 %v7813_v34, 16  ;;  %v3082_v2 = vshll.u32 %v7813_v34, 16  ;;  %v8320_v61 = vld [vmem:[%s8997_s30 + $0x48] sm:$0xe]  ;;  %2563 = vst.msk [vmem:[#allocation2 + $0x8] sm:$0xff] %vm2561_vm14, %v10019_v24 }
 0x158   : > { %v10015_v18 = vpop.permute.xlu1 %3443  ;;  %5825 = vrot.lane.b32.xlu0 %v8218_v62, %s8911_s26  ;;  %v3071_v19 = vrot.slane %v3069_v3, 5  ;;  %v3074_v40 = vrot.slane %v3072_v7, 6  ;;  %v8282_v25 = vrot.slane %v8240_v29, 9  ;;  %v6003_v57 = vrot.slane %v8241_v54, 5 }
 0x159   : > { %v3067_v6 = vrot.slane %v3066_v10, 4  ;;  %v3081_v30 = vrot.slane %v3079_v39, 5  ;;  %v3084_v41 = vrot.slane %v3082_v2, 6  ;;  %v6006_v1 = vrot.slane %v8242_v36, 5  ;;  %3492 = vst.msk [vmem:[#allocation2] sm:$0xff] %vm3491_vm0, %v10015_v18 }
 0x15a   : > { %v3075_v15 = vor.u32 %v3074_v40, %v3071_v19  ;;  %v6004_v43 = vsel %vm9129_vm5, %v8282_v25, %v6003_v57  ;;  %v6005_v55 = vrot.slane %v6003_v57, 4  ;;  %v6310_v27 = vshrl.u32 %v8317_v14, 16  ;;  %v10030_v28 = vpop.permute.xlu0 %2836 }
 0x15b   : > { %v3085_v16 = vor.u32 %v3084_v41, %v3081_v30  ;;  %v6313_v17 = vshll.u32 %v8317_v14, 16  ;;  %v6319_v20 = vshrl.u32 %v8318_v5, 16  ;;  %v6322_v49 = vshll.u32 %v8318_v5, 16  ;;  %2884 = vst.msk [vmem:[#allocation2 + $0x8] sm:$0xff] %vm2882_vm15, %v10030_v28  ;;  %v8747_v28 = vld [vmem:[%s8997_s30 + $0x54] sm:$0xff]  }
 0x15c   : > { %2844 = vrot.lane.b32.xlu0 %v7788_v38, %s8904_s9  ;;  %v3076_v35 = vsel %vm9272_vm8, %v3067_v6, %v3075_v15  ;;  %v3077_v11 = vrot.slane %v3075_v15, 4  ;;  %v6007_v22 = vsel %vm9129_vm5, %v6005_v55, %v6006_v1  ;;  %v6312_v23 = vrot.slane %v6310_v27, 5  ;;  %v10032_v42 = vpop.permute.xlu1 %3621  ;;  %v8321_v6 = vld [vmem:[%s8997_s30 + $0x4c] sm:$0xf] }
 0x15d   : > { %v8298_v56 = vcombine.low %v6004_v43, %v6007_v22  ;;  %v6315_v34 = vrot.slane %v6313_v17, 6  ;;  %v6321_v60 = vrot.slane %v6319_v20, 5  ;;  %v6324_v46 = vrot.slane %v6322_v49, 6  ;;  %v8322_v43 = vld [vmem:[%s8997_s30 + $0x50] sm:$0x3]  ;;  %3670 = vst.msk [vmem:[#allocation2] sm:$0xff] %vm3669_vm1, %v10032_v42 }
 0x15e   : > { %v3086_v12 = vsel %vm9272_vm8, %v3077_v11, %v3085_v16  ;;  %v6329_v37 = vshrl.u32 %v8319_v4, 16  ;;  %v6332_v29 = vshll.u32 %v8319_v4, 16  ;;  %v3088_v32 = vshrl.u32 %v7814_v53, 16  ;;  %v7923_v22 = vld [vmem:[%s8997_s30 + $0x48] sm:$0xf] }
 0x15f   : > { %v7851_v33 = vcombine.low %v3076_v35, %v3086_v12  ;;  %v6316_v44 = vor.u32 %v6315_v34, %v6312_v23  ;;  %v6325_v45 = vor.u32 %v6324_v46, %v6321_v60  ;;  %v3091_v51 = vshll.u32 %v7814_v53, 16  ;;  %v8745_v34 = vld [vmem:[%s8997_s30 + $0x48] sm:$0xff]  }
 0x160   : > { %6146 = vrot.lane.b32.xlu0 %v8298_v56, %s8912_s27  ;;  %v6331_v52 = vrot.slane %v6329_v37, 5  ;;  %v6334_v59 = vrot.slane %v6332_v29, 6  ;;  %v3090_v54 = vrot.slane %v3088_v32, 5  ;;  %v3097_v62 = vshrl.u32 %v7815_v9, 16  ;;  %v7924_v32 = vld [vmem:[%s8997_s30 + $0x4c] sm:$0xf] }
 0x161   : > { %3451 = vrot.lane.b32.xlu1 %v7851_v33, %s8905_s10  ;;  %v6317_v7 = vrot.slane %v6316_v44, 4  ;;  %v6327_v36 = vrot.slane %v6325_v45, 4  ;;  %v3093_v38 = vrot.slane %v3091_v51, 6  ;;  %v3100_v10 = vshll.u32 %v7815_v9, 16 }
 0x162   : > { %v6335_v39 = vor.u32 %v6334_v59, %v6331_v52  ;;  %v3099_v2 = vrot.slane %v3097_v62, 5  ;;  %v3107_v14 = vshrl.u32 %v7816_v50, 16  ;;  %v3110_v19 = vshll.u32 %v7816_v50, 16  ;;  %v7925_v50 = vld [vmem:[%s8997_s30 + $0x50] sm:$0x1] }
 0x163   : > { %v10040_v3 = vpop.permute.xlu0 %3445  ;;  %v6326_v25 = vsel %vm9272_vm8, %v6317_v7, %v6325_v45  ;;  %v3094_v57 = vor.u32 %v3093_v38, %v3090_v54  ;;  %v3102_v5 = vrot.slane %v3100_v10, 6  ;;  %v6338_v30 = vshrl.u32 %v8320_v61, 16  ;;  %v7926_v62 = vld [vmem:[%s8997_s30 + $0x54] sm:$0xf] }
 0x164   : > { %v6336_v41 = vsel %vm9272_vm8, %v6327_v36, %v6335_v39  ;;  %v3109_v1 = vrot.slane %v3107_v14, 5  ;;  %v3112_v15 = vrot.slane %v3110_v19, 6  ;;  %v6341_v55 = vshll.u32 %v8320_v61, 16  ;;  %v7927_v61 = vld [vmem:[%s8997_s30 + $0x58] sm:$0xf]  ;;  %3493 = vst.msk [vmem:[#allocation2 + $0x8] sm:$0xff] %vm3491_vm0, %v10040_v3 }
 0x165   : > { %v10043_v40 = vpop.permute.xlu1 %4166  ;;  %v8361_v27 = vcombine.low %v6326_v25, %v6336_v41  ;;  %v3095_v16 = vrot.slane %v3094_v57, 4  ;;  %v3103_v17 = vor.u32 %v3102_v5, %v3099_v2  ;;  %v6340_v20 = vrot.slane %v6338_v30, 5  ;;  %v8748_v3 = vld [vmem:[%s8997_s30 + $0x54] sm:$0xff]  }
 0x166   : > { %v3113_v49 = vor.u32 %v3112_v15, %v3109_v1  ;;  %v6343_v53 = vrot.slane %v6341_v55, 6  ;;  %v6347_v35 = vshrl.u32 %v8321_v6, 16  ;;  %v6350_v11 = vshll.u32 %v8321_v6, 16  ;;  %v7987_v6 = vld [vmem:[%s8997_s30 + $0x48] sm:$0xe]  ;;  %4215 = vst.msk [vmem:[#allocation2] sm:$0xff] %vm4214_vm3, %v10043_v40 }
 0x167   : > { %v10051_v4 = vpop.permute.xlu0 %3623  ;;  %6753 = vrot.lane.b32.xlu1 %v8361_v27, %s8913_s28  ;;  %v3104_v23 = vsel %vm9272_vm8, %v3095_v16, %v3103_v17  ;;  %v3105_v56 = vrot.slane %v3103_v17, 4  ;;  %v6357_v60 = vshrl.u32 %v8322_v43, 16  ;;  %v6360_v46 = vshll.u32 %v8322_v43, 16  ;;  %v7988_v55 = vld [vmem:[%s8997_s30 + $0x4c] sm:$0xf] }
 0x168   : > { %v6344_v12 = vor.u32 %v6343_v53, %v6340_v20  ;;  %v6349_v37 = vrot.slane %v6347_v35, 5  ;;  %v6352_v29 = vrot.slane %v6350_v11, 6  ;;  %v3831_v51 = vshrl.u32 %v7923_v22, 16  ;;  %v7989_v27 = vld [vmem:[%s8997_s30 + $0x50] sm:$0x1]  ;;  %3671 = vst.msk [vmem:[#allocation2 + $0x8] sm:$0xff] %vm3669_vm1, %v10051_v4 }
 0x169   : > { %v10058_v9 = vpop.permute.xlu1 %4487  ;;  %v3114_v33 = vsel %vm9272_vm8, %v3105_v56, %v3113_v49  ;;  %v6359_v44 = vrot.slane %v6357_v60, 5  ;;  %v6362_v45 = vrot.slane %v6360_v46, 6  ;;  %v3834_v47 = vshll.u32 %v7923_v22, 16  ;;  %v7990_v53 = vld [vmem:[%s8997_s30 + $0x54] sm:$0xe] }
 0x16a   : > { %v7852_v52 = vcombine.low %v3104_v23, %v3114_v33  ;;  %v6345_v59 = vrot.slane %v6344_v12, 4  ;;  %v6353_v54 = vor.u32 %v6352_v29, %v6349_v37  ;;  %v3833_v36 = vrot.slane %v3831_v51, 4  ;;  %v7992_v29 = vld [vmem:[%s8997_s30 + $0x5c] sm:$0x1]  ;;  %v8067_v51 = vld [vmem:[%s8997_s30 + $0x48] sm:$0xe] }
 0x16b   : > { %v10076_v7 = vpop.permute.xlu0 %4168  ;;  %3629 = vrot.lane.b32.xlu1 %v8745_v34, %s8906_s11  ;;  %v6363_v8 = vor.u32 %v6362_v45, %v6359_v44  ;;  %v3840_v38 = vshll.u32 %v7924_v32, 16  ;;  %v3844_v10 = vshrl.u32 %v7924_v32, 16  ;;  %v3836_v2 = vrot.slane %v3834_v47, 5  ;;  %v7991_v34 = vld [vmem:[%s8997_s30 + $0x58] sm:$0xf]  ;;  %4536 = vst.msk [vmem:[#allocation2] sm:$0xff] %vm4535_vm4, %v10058_v9 }
 0x16c   : > { %3453 = vrot.lane.b32.xlu0 %v7852_v52, %s8905_s10  ;;  %v6354_v48 = vsel %vm9272_vm8, %v6345_v59, %v6353_v54  ;;  %v6355_v39 = vrot.slane %v6353_v54, 4  ;;  %v3850_v14 = vshll.u32 %v7925_v50, 16  ;;  %v3855_v57 = vshrl.u32 %v7926_v62, 16  ;;  %4216 = vst.msk [vmem:[#allocation2 + $0x8] sm:$0xff] %vm4214_vm3, %v10076_v7 }
 0x16d   : > { %v3842_v19 = vrot.slane %v3840_v38, 5  ;;  %v3846_v25 = vrot.slane %v3844_v10, 4  ;;  %v3858_v5 = vshll.u32 %v7926_v62, 16  ;;  %v3837_v1 = vor.u32 %v3836_v2, %v3833_v36  ;;  %v8068_v62 = vld [vmem:[%s8997_s30 + $0x4c] sm:$0xf] }
 0x16e   : > { %v10085_v30 = vpop.permute.xlu1 %5096  ;;  %v6364_v41 = vsel %vm9272_vm8, %v6355_v39, %v6363_v8  ;;  %v3852_v15 = vrot.slane %v3850_v14, 5  ;;  %v3864_v43 = vshll.u32 %v7927_v61, 16  ;;  %v3857_v20 = vrot.slane %v3855_v57, 4  ;;  %v8069_v38 = vld [vmem:[%s8997_s30 + $0x50] sm:$0x3] }
 0x16f   : > { %v8362_v16 = vcombine.low %v6354_v48, %v6364_v41  ;;  %3631 = vrot.lane.b32.xlu1 %v8746_v13, %s8906_s11  ;;  %v3847_v17 = vor.u32 %v3846_v25, %v3842_v19  ;;  %v3860_v49 = vrot.slane %v3858_v5, 5  ;;  %v10093_v35 = vpop.permute.xlu0 %4489  ;;  %v3838_v11 = vrot.slane %v3837_v1, 4  ;;  %v8070_v57 = vld [vmem:[%s8997_s30 + $0x54] sm:$0xe]  ;;  %5145 = vst.msk [vmem:[#allocation2] sm:$0xff] %vm5144_vm6, %v10085_v30 }
 0x170   : > { %v3866_v22 = vrot.slane %v3864_v43, 5  ;;  %v3868_v23 = vshrl.u32 %v7927_v61, 16  ;;  %v3874_v56 = vshll.u32 %v7928_v21, 16  ;;  %v8027_v12 = vrot.slane %v7987_v6, 9  ;;  %4537 = vst.msk [vmem:[#allocation2 + $0x8] sm:$0xff] %vm4535_vm4, %v10093_v35 }
 0x171   : > { %6755 = vrot.lane.b32.xlu0 %v8362_v16, %s8913_s28  ;;  %v3848_v60 = vrot.slane %v3847_v17, 4  ;;  %v3861_v46 = vor.u32 %v3860_v49, %v3857_v20  ;;  %v4357_v37 = vrot.slane %v7988_v55, 5  ;;  %v3843_v33 = vsel %vm9009_vm2, %v3838_v11, %v3842_v19 }
 0x172   : > { %v10098_v32 = vpop.permute.xlu1 %5274  ;;  %v3870_v44 = vrot.slane %v3868_v23, 4  ;;  %v3876_v45 = vrot.slane %v3874_v56, 5  ;;  %v4360_v50 = vrot.slane %v7989_v27, 5  ;;  %v8028_v13 = vrot.slane %v7990_v53, 9 }
 0x173   : > { %v3853_v52 = vsel %vm9009_vm2, %v3848_v60, %v3852_v15  ;;  %v3862_v59 = vrot.slane %v3861_v46, 4  ;;  %v4358_v54 = vsel %vm9129_vm5, %v8027_v12, %v4357_v37  ;;  %v4359_v47 = vrot.slane %v4357_v37, 4  ;;  %v8071_v15 = vld [vmem:[%s8997_s30 + $0x58] sm:$0xf]  ;;  %5323 = vst.msk [vmem:[#allocation2] sm:$0xff] %vm5322_vm7, %v10098_v32 }
 0x174   : > { %v7963_v61 = vcombine.low %v3843_v33, %v3853_v52  ;;  %v3871_v8 = vor.u32 %v3870_v44, %v3866_v22  ;;  %v4364_v36 = vrot.slane %v7991_v34, 5  ;;  %v4367_v48 = vrot.slane %v7992_v29, 5 }
 0x175   : > { %v3867_v10 = vsel %vm9009_vm2, %v3862_v59, %v3866_v22  ;;  %v4361_v21 = vsel %vm9129_vm5, %v4359_v47, %v4360_v50  ;;  %v4713_v5 = vshrl.u32 %v8067_v51, 16  ;;  %v4716_v6 = vshll.u32 %v8067_v51, 16  ;;  %v7673_v59 = vld [vmem:[%s8997_s30 + $0x54] sm:$0xf] }
 0x176   : > { %v10113_v39 = vpop.permute.xlu0 %5098  ;;  %4174 = vrot.lane.b32.xlu0 %v7963_v61, %s8907_s18  ;;  %v3872_v2 = vrot.slane %v3871_v8, 4  ;;  %v8043_v14 = vcombine.low %v4358_v54, %v4361_v21  ;;  %v4365_v19 = vsel %vm9129_vm5, %v8028_v13, %v4364_v36  ;;  %v4366_v25 = vrot.slane %v4364_v36, 4  ;;  %v10124_v43 = vpop.permute.xlu1 %5276  ;;  %v7674_v13 = vld [vmem:[%s8997_s30 + $0x58] sm:$0xf] }
 0x177   : > { %v4722_v41 = vshrl.u32 %v8068_v62, 16  ;;  %v4725_v1 = vshll.u32 %v8068_v62, 16  ;;  %v4732_v16 = vshrl.u32 %v8069_v38, 16  ;;  %v4735_v17 = vshll.u32 %v8069_v38, 16  ;;  %5146 = vst.msk [vmem:[#allocation2 + $0x8] sm:$0xff] %vm5144_vm6, %v10113_v39 }
 0x178   : > { %v3877_v55 = vsel %vm9009_vm2, %v3872_v2, %v3876_v45  ;;  %v4368_v27 = vsel %vm9129_vm5, %v4366_v25, %v4367_v48  ;;  %v4715_v24 = vrot.slane %v4713_v5, 5  ;;  %v4718_v53 = vrot.slane %v4716_v6, 6  ;;  %v7675_v2 = vld [vmem:[%s8997_s30 + $0x5c] sm:$0x1]  ;;  %v8179_v6 = vld [vmem:[%s8997_s30 + $0x54] sm:$0xf] }
 0x179   : > { %v7964_v20 = vcombine.low %v3867_v10, %v3877_v55  ;;  %v8044_v49 = vcombine.low %v4365_v19, %v4368_v27  ;;  %v4724_v22 = vrot.slane %v4722_v41, 5  ;;  %v4727_v23 = vrot.slane %v4725_v1, 6  ;;  %v8246_v39 = vld [vmem:[%s8997_s30 + $0x60] sm:$0xe]  ;;  %5324 = vst.msk [vmem:[#allocation2 + $0x8] sm:$0xff] %vm5322_vm7, %v10124_v43 }
 0x17a   : > { %v2518_v11 = vpop.permute.xlu0 %2517  ;;  %4495 = vrot.lane.b32.xlu0 %v8043_v14, %s8908_s19  ;;  %v4734_v56 = vrot.slane %v4732_v16, 5  ;;  %v4737_v34 = vrot.slane %v4735_v17, 6  ;;  %v4719_v60 = vor.u32 %v4718_v53, %v4715_v24  ;;  %v4741_v46 = vshrl.u32 %v8070_v57, 16  ;;  %v8181_v53 = vld [vmem:[%s8997_s30 + $0x5c] sm:$0x1] }
 0x17b   : > { %2564 = vst.msk [vmem:[#allocation2 + $0x10] sm:$0xff] %vm2561_vm14, %v2518_v11  ;;  %4176 = vrot.lane.b32.xlu1 %v7964_v20, %s8907_s18  ;;  %v4744_v12 = vshll.u32 %v8070_v57, 16  ;;  %v4728_v37 = vor.u32 %v4727_v23, %v4724_v22  ;;  %v4750_v33 = vshrl.u32 %v8071_v15, 16  ;;  %v4753_v44 = vshll.u32 %v8071_v15, 16  ;;  %v8180_v20 = vld [vmem:[%s8997_s30 + $0x58] sm:$0xf] }
 0x17c   : > { %v4738_v29 = vor.u32 %v4737_v34, %v4734_v56  ;;  %v4720_v45 = vrot.slane %v4719_v60, 4  ;;  %v4743_v50 = vrot.slane %v4741_v46, 5  ;;  %v4760_v52 = vshrl.u32 %v8072_v58, 16  ;;  %v7676_v60 = vld [vmem:[%s8997_s30 + $0x60] sm:$0xf] }
 0x17d   : > { %v4746_v51 = vrot.slane %v4744_v12, 6  ;;  %v4730_v47 = vrot.slane %v4728_v37, 4  ;;  %v4752_v62 = vrot.slane %v4750_v33, 5  ;;  %v4755_v61 = vrot.slane %v4753_v44, 6  ;;  %v7677_v46 = vld [vmem:[%s8997_s30 + $0x64] sm:$0xf] }
 0x17e   : > { %v2520_v54 = vpop.permute.xlu1 %2519  ;;  %v4763_v8 = vshll.u32 %v8072_v58, 16  ;;  %v4729_v31 = vsel %vm9272_vm8, %v4720_v45, %v4728_v37  ;;  %v4762_v38 = vrot.slane %v4760_v52, 5  ;;  %v2226_v14 = vshrl.u32 %v7673_v59, 16  ;;  %v8749_v12 = vld [vmem:[%s8997_s30 + $0x60] sm:$0xff]   ;;  %v7678_v52 = vld [vmem:[%s8997_s30 + $0x68] sm:$0x1] }
 0x17f   : > { %2565 = vst.msk [vmem:[#allocation2 + $0x18] sm:$0xff] %vm2561_vm14, %v2520_v54  ;;  %4497 = vrot.lane.b32.xlu1 %v8044_v49, %s8908_s19  ;;  %v4747_v36 = vor.u32 %v4746_v51, %v4743_v50  ;;  %v4739_v10 = vsel %vm9272_vm8, %v4730_v47, %v4738_v29  ;;  %v4756_v21 = vor.u32 %v4755_v61, %v4752_v62  ;;  %v2229_v57 = vshll.u32 %v7673_v59, 16  ;;  %v7737_v61 = vld [vmem:[%s8997_s30 + $0x54] sm:$0xe] }
 0x180   : > { %v4765_v48 = vrot.slane %v4763_v8, 6  ;;  %v8107_v19 = vcombine.low %v4729_v31, %v4739_v10  ;;  %v2235_v5 = vshll.u32 %v7674_v13, 16  ;;  %v2228_v15 = vrot.slane %v2226_v14, 4 }
 0x181   : > { %v4748_v25 = vrot.slane %v4747_v36, 4  ;;  %v4758_v41 = vrot.slane %v4756_v21, 4  ;;  %v2239_v55 = vshrl.u32 %v7674_v13, 16  ;;  %v2231_v16 = vrot.slane %v2229_v57, 5  ;;  %v7738_v36 = vld [vmem:[%s8997_s30 + $0x58] sm:$0xf] }
 0x182   : > { %v4766_v1 = vor.u32 %v4765_v48, %v4762_v38  ;;  %v10153_v27 = vpop.permute.xlu0 %5819  ;;  %5104 = vrot.lane.b32.xlu0 %v8107_v19, %s8909_s21  ;;  %v2237_v17 = vrot.slane %v2235_v5, 5  ;;  %v2245_v58 = vshll.u32 %v7675_v2, 16  ;;  %v5484_v11 = vshrl.u32 %v8179_v6, 16  ;;  %v8750_v2 = vld [vmem:[%s8997_s30 + $0x60] sm:$0xff]  }
 0x183   : > { %1980 = vrot.lane.b32.xlu1 %v8747_v28, %s8902_s7  ;;  %v4757_v18 = vsel %vm9272_vm8, %v4748_v25, %v4756_v21  ;;  %v2241_v24 = vrot.slane %v2239_v55, 4  ;;  %v2232_v23 = vor.u32 %v2231_v16, %v2228_v15  ;;  %v5487_v34 = vshll.u32 %v8179_v6, 16  ;;  %v7739_v25 = vld [vmem:[%s8997_s30 + $0x5c] sm:$0x1]  ;;  %5868 = vst.msk [vmem:[#allocation2] sm:$0xff] %vm5867_vm9, %v10153_v27 }
 0x184   : > { %v4767_v49 = vsel %vm9272_vm8, %v4758_v41, %v4766_v1  ;;  %v2247_v56 = vrot.slane %v2245_v58, 5  ;;  %v5486_v29 = vrot.slane %v5484_v11, 4  ;;  %v5493_v33 = vshll.u32 %v8180_v20, 16  ;;  %v8183_v58 = vld [vmem:[%s8997_s30 + $0x64] sm:$0xf] }
 0x185   : > { %v8108_v22 = vcombine.low %v4757_v18, %v4767_v49  ;;  %v2242_v37 = vor.u32 %v2241_v24, %v2237_v17  ;;  %v5497_v44 = vshrl.u32 %v8180_v20, 16  ;;  %v2233_v50 = vrot.slane %v2232_v23, 4 }
 0x186   : > { %v2839_v45 = vpop.permute.xlu0 %2838  ;;  %v5489_v42 = vrot.slane %v5487_v34, 5  ;;  %v5503_v51 = vshll.u32 %v8181_v53, 16  ;;  %v5495_v54 = vrot.slane %v5493_v33, 5  ;;  %v2250_v62 = vshrl.u32 %v7676_v60, 16  ;;  %v8184_v53 = vld [vmem:[%s8997_s30 + $0x68] sm:$0x1] }
 0x187   : > { %5106 = vrot.lane.b32.xlu0 %v8108_v22, %s8909_s21  ;;  %5282 = vrot.lane.b32.xlu1 %v8748_v3, %s8910_s23  ;;  %v10174_v4 = vpop.permute.xlu1 %5821  ;;  %2885 = vst.msk [vmem:[#allocation2 + $0x10] sm:$0xff] %vm2882_vm15, %v2839_v45  ;;  %v2243_v59 = vrot.slane %v2242_v37, 4  ;;  %v5499_v47 = vrot.slane %v5497_v44, 4  ;;  %v2238_v8 = vsel %vm9009_vm2, %v2233_v50, %v2237_v17  ;;  %v2253_v28 = vshll.u32 %v7676_v60, 16  ;;  %v8182_v17 = vld [vmem:[%s8997_s30 + $0x60] sm:$0xf] }
 0x188   : > { %v5490_v13 = vor.u32 %v5489_v42, %v5486_v29  ;;  %v5505_v31 = vrot.slane %v5503_v51, 5  ;;  %v2252_v21 = vrot.slane %v2250_v62, 4  ;;  %v2259_v48 = vshll.u32 %v7677_v46, 16  ;;  %v8243_v34 = vld [vmem:[%s8997_s30 + $0x54] sm:$0xe]  ;;  %5869 = vst.msk [vmem:[#allocation2 + $0x8] sm:$0xff] %vm5867_vm9, %v10174_v4 }
 0x189   : > { %v2248_v38 = vsel %vm9009_vm2, %v2243_v59, %v2247_v56  ;;  %v5500_v10 = vor.u32 %v5499_v47, %v5495_v54  ;;  %v2255_v7 = vrot.slane %v2253_v28, 5  ;;  %v2263_v19 = vshrl.u32 %v7677_v46, 16  ;;  %v8244_v60 = vld [vmem:[%s8997_s30 + $0x58] sm:$0xf]  ;;  %v8245_v33 = vld [vmem:[%s8997_s30 + $0x5c] sm:$0x1] }
 0x18a   : > { %v7709_v40 = vcombine.low %v2238_v8, %v2248_v38  ;;  %v5491_v14 = vrot.slane %v5490_v13, 4  ;;  %v2261_v6 = vrot.slane %v2259_v48, 5  ;;  %v2269_v41 = vshll.u32 %v7678_v52, 16  ;;  %v10191_v15 = vpop.permute.xlu0 %6140  ;;  %v7740_v44 = vld [vmem:[%s8997_s30 + $0x60] sm:$0xe] }
 0x18b   : > { %1982 = vrot.lane.b32.xlu0 %v8749_v12, %s8902_s7  ;;  %v2841_v57 = vpop.permute.xlu1 %2840  ;;  %v5501_v5 = vrot.slane %v5500_v10, 4  ;;  %v7773_v1 = vrot.slane %v7737_v61, 9  ;;  %v2256_v18 = vor.u32 %v2255_v7, %v2252_v21  ;;  %v2265_v3 = vrot.slane %v2263_v19, 4  ;;  %v7741_v47 = vld [vmem:[%s8997_s30 + $0x64] sm:$0xf] }
 0x18c   : > { %2886 = vst.msk [vmem:[#allocation2 + $0x18] sm:$0xff] %vm2882_vm15, %v2841_v57  ;;  %2525 = vrot.lane.b32.xlu1 %v7709_v40, %s8903_s8  ;;  %v5496_v55 = vsel %vm9009_vm2, %v5491_v14, %v5495_v54  ;;  %v2718_v16 = vrot.slane %v7738_v36, 5  ;;  %v2271_v49 = vrot.slane %v2269_v41, 5  ;;  %v2721_v24 = vrot.slane %v7739_v25, 5  ;;  %v7742_v21 = vld [vmem:[%s8997_s30 + $0x68] sm:$0x1] }
 0x18d   : > { %v5506_v20 = vsel %vm9009_vm2, %v5501_v5, %v5505_v31  ;;  %v2257_v22 = vrot.slane %v2256_v18, 4  ;;  %v2266_v23 = vor.u32 %v2265_v3, %v2261_v6  ;;  %v5508_v12 = vshrl.u32 %v8182_v17, 16  ;;  %v7817_v48 = vld [vmem:[%s8997_s30 + $0x54] sm:$0xe]  ;;  %v7818_v41 = vld [vmem:[%s8997_s30 + $0x58] sm:$0xf] }
 0x18e   : > { %v8219_v11 = vcombine.low %v5496_v55, %v5506_v20  ;;  %v2719_v56 = vsel %vm9129_vm5, %v7773_v1, %v2718_v16  ;;  %v2720_v46 = vrot.slane %v2718_v16, 4  ;;  %v5511_v37 = vshll.u32 %v8182_v17, 16 }
 0x18f   : > { %5284 = vrot.lane.b32.xlu0 %v8750_v2, %s8910_s23  ;;  %v5517_v29 = vshll.u32 %v8183_v58, 16  ;;  %v2262_v45 = vsel %vm9009_vm2, %v2257_v22, %v2261_v6  ;;  %v2267_v50 = vrot.slane %v2266_v23, 4  ;;  %v5521_v42 = vshrl.u32 %v8183_v58, 16  ;;  %v10215_v51 = vpop.permute.xlu1 %6142  ;;  %v7819_v58 = vld [vmem:[%s8997_s30 + $0x5c] sm:$0x3] }
 0x190   : > { %5827 = vrot.lane.b32.xlu1 %v8219_v11, %s8911_s26  ;;  %v5527_v9 = vshll.u32 %v8184_v53, 16  ;;  %v2722_v35 = vsel %vm9129_vm5, %v2720_v46, %v2721_v24  ;;  %v5510_v52 = vrot.slane %v5508_v12, 4  ;;  %v5513_v59 = vrot.slane %v5511_v37, 5 }
 0x191   : > { %v5519_v54 = vrot.slane %v5517_v29, 5  ;;  %v2272_v61 = vsel %vm9009_vm2, %v2267_v50, %v2271_v49  ;;  %v7789_v8 = vcombine.low %v2719_v56, %v2722_v35  ;;  %v5523_v13 = vrot.slane %v5521_v42, 4  ;;  %v8324_v42 = vld [vmem:[%s8997_s30 + $0x58] sm:$0xf] }
 0x192   : > { %v3448_v62 = vpop.permute.xlu0 %3447  ;;  %v5529_v31 = vrot.slane %v5527_v9, 5  ;;  %v7710_v28 = vcombine.low %v2262_v45, %v2272_v61  ;;  %v5514_v36 = vor.u32 %v5513_v59, %v5510_v52  ;;  %v8283_v38 = vrot.slane %v8243_v34, 9  ;;  %v8247_v34 = vld [vmem:[%s8997_s30 + $0x64] sm:$0xf]  ;;  %v8325_v61 = vld [vmem:[%s8997_s30 + $0x5c] sm:$0x3] }
 0x193   : > { %3494 = vst.msk [vmem:[#allocation2 + $0x10] sm:$0xff] %vm3491_vm0, %v3448_v62  ;;  %v6010_v10 = vrot.slane %v8244_v60, 5  ;;  %v5524_v40 = vor.u32 %v5523_v13, %v5519_v54  ;;  %v6013_v2 = vrot.slane %v8245_v33, 5  ;;  %v7774_v14 = vrot.slane %v7740_v44, 9  ;;  %v8248_v60 = vld [vmem:[%s8997_s30 + $0x68] sm:$0x1] }
 0x194   : > { %2846 = vrot.lane.b32.xlu1 %v7789_v8, %s8904_s9  ;;  %2527 = vrot.lane.b32.xlu0 %v7710_v28, %s8903_s8  ;;  %v5515_v7 = vrot.slane %v5514_v36, 4  ;;  %v2725_v57 = vrot.slane %v7741_v47, 5  ;;  %v2728_v6 = vrot.slane %v7742_v21, 5  ;;  %v3116_v1 = vshrl.u32 %v7817_v48, 16  ;;  %v8323_v33 = vld [vmem:[%s8997_s30 + $0x54] sm:$0xe] }
 0x195   : > { %v6011_v19 = vsel %vm9129_vm5, %v8283_v38, %v6010_v10  ;;  %v6012_v25 = vrot.slane %v6010_v10, 4  ;;  %v5525_v5 = vrot.slane %v5524_v40, 4  ;;  %v3119_v55 = vshll.u32 %v7817_v48, 16  ;;  %v7820_v10 = vld [vmem:[%s8997_s30 + $0x60] sm:$0xe] }
 0x196   : > { %v5520_v3 = vsel %vm9009_vm2, %v5515_v7, %v5519_v54  ;;  %v2726_v30 = vsel %vm9129_vm5, %v7774_v14, %v2725_v57  ;;  %v2727_v17 = vrot.slane %v2725_v57, 4  ;;  %v3118_v24 = vrot.slane %v3116_v1, 5  ;;  %v7821_v40 = vld [vmem:[%s8997_s30 + $0x64] sm:$0xf] }
 0x197   : > { %v3450_v18 = vpop.permute.xlu1 %3449  ;;  %v6014_v16 = vsel %vm9129_vm5, %v6012_v25, %v6013_v2  ;;  %v5530_v20 = vsel %vm9009_vm2, %v5525_v5, %v5529_v31  ;;  %v3121_v53 = vrot.slane %v3119_v55, 6  ;;  %v3125_v23 = vshrl.u32 %v7818_v41, 16  ;;  %v7822_v55 = vld [vmem:[%s8997_s30 + $0x68] sm:$0x3] }
 0x198   : > { %3495 = vst.msk [vmem:[#allocation2 + $0x18] sm:$0xff] %vm3491_vm0, %v3450_v18  ;;  %v8299_v49 = vcombine.low %v6011_v19, %v6014_v16  ;;  %v8220_v11 = vcombine.low %v5520_v3, %v5530_v20  ;;  %v2729_v22 = vsel %vm9129_vm5, %v2727_v17, %v2728_v6  ;;  %v3128_v56 = vshll.u32 %v7818_v41, 16 }
 0x199   : > { %v7790_v46 = vcombine.low %v2726_v30, %v2729_v22  ;;  %v3122_v12 = vor.u32 %v3121_v53, %v3118_v24  ;;  %v3135_v37 = vshrl.u32 %v7819_v58, 16  ;;  %v3138_v29 = vshll.u32 %v7819_v58, 16 }
 0x19a   : > { %6148 = vrot.lane.b32.xlu1 %v8299_v49, %s8912_s27  ;;  %5829 = vrot.lane.b32.xlu0 %v8220_v11, %s8911_s26  ;;  %v3127_v44 = vrot.slane %v3125_v23, 5  ;;  %v3130_v45 = vrot.slane %v3128_v56, 6  ;;  %v8284_v50 = vrot.slane %v8246_v39, 9  ;;  %v6017_v54 = vrot.slane %v8247_v34, 5  ;;  %v8326_v49 = vld [vmem:[%s8997_s30 + $0x60] sm:$0xe] }
 0x19b   : > { %v3123_v35 = vrot.slane %v3122_v12, 4  ;;  %v3137_v52 = vrot.slane %v3135_v37, 5  ;;  %v3140_v59 = vrot.slane %v3138_v29, 6  ;;  %v6020_v62 = vrot.slane %v8248_v60, 5  ;;  %v8327_v56 = vld [vmem:[%s8997_s30 + $0x64] sm:$0xf] }
 0x19c   : > { %v10253_v9 = vpop.permute.xlu0 %6749  ;;  %v3131_v47 = vor.u32 %v3130_v45, %v3127_v44  ;;  %v6366_v8 = vshrl.u32 %v8323_v33, 16  ;;  %v6369_v13 = vshll.u32 %v8323_v33, 16  ;;  %v6018_v28 = vsel %vm9129_vm5, %v8284_v50, %v6017_v54 }
 0x19d   : > { %v3141_v31 = vor.u32 %v3140_v59, %v3137_v52  ;;  %v6019_v36 = vrot.slane %v6017_v54, 4  ;;  %v6375_v38 = vshrl.u32 %v8324_v42, 16  ;;  %v6378_v19 = vshll.u32 %v8324_v42, 16  ;;  %v8328_v54 = vld [vmem:[%s8997_s30 + $0x68] sm:$0x3] }
 0x19e   : > { %2848 = vrot.lane.b32.xlu0 %v7790_v46, %s8904_s9  ;;  %v3132_v32 = vsel %vm9272_vm8, %v3123_v35, %v3131_v47  ;;  %v3133_v43 = vrot.slane %v3131_v47, 4  ;;  %v6368_v21 = vrot.slane %v6366_v8, 5  ;;  %v6371_v48 = vrot.slane %v6369_v13, 6 }
 0x19f   : > { %v6021_v14 = vsel %vm9129_vm5, %v6019_v36, %v6020_v62  ;;  %v6377_v7 = vrot.slane %v6375_v38, 5  ;;  %v6385_v25 = vshrl.u32 %v8325_v61, 16  ;;  %v6388_v1 = vshll.u32 %v8325_v61, 16  ;;  %v7929_v61 = vld [vmem:[%s8997_s30 + $0x60] sm:$0xf] }
 0x1a0   : > { %v3626_v2 = vpop.permute.xlu0 %3625  ;;  %v3142_v5 = vsel %vm9272_vm8, %v3133_v43, %v3141_v31  ;;  %v8300_v6 = vcombine.low %v6018_v28, %v6021_v14  ;;  %v6372_v41 = vor.u32 %v6371_v48, %v6368_v21  ;;  %v6380_v3 = vrot.slane %v6378_v19, 6  ;;  %v7930_v38 = vld [vmem:[%s8997_s30 + $0x64] sm:$0xf] }
 0x1a1   : > { %v10269_v57 = vpop.permute.xlu1 %6751  ;;  %3672 = vst.msk [vmem:[#allocation2 + $0x10] sm:$0xff] %vm3669_vm1, %v3626_v2  ;;  %v7853_v18 = vcombine.low %v3132_v32, %v3142_v5  ;;  %v6387_v16 = vrot.slane %v6385_v25, 5  ;;  %v3144_v30 = vshrl.u32 %v7820_v10, 16  ;;  %v6390_v58 = vrot.slane %v6388_v1, 6  ;;  %v8752_v48 = vld [vmem:[%s8997_s30 + $0x60] sm:$0xff]  }
 0x1a2   : > { %6150 = vrot.lane.b32.xlu0 %v8300_v6, %s8912_s27  ;;  %v6373_v17 = vrot.slane %v6372_v41, 4  ;;  %v3147_v39 = vshll.u32 %v7820_v10, 16  ;;  %v3153_v20 = vshrl.u32 %v7821_v40, 16  ;;  %v6381_v53 = vor.u32 %v6380_v3, %v6377_v7  ;;  %v7931_v5 = vld [vmem:[%s8997_s30 + $0x68] sm:$0x1] }
 0x1a3   : > { %3455 = vrot.lane.b32.xlu1 %v7853_v18, %s8905_s10  ;;  %v3146_v11 = vrot.slane %v3144_v30, 5  ;;  %v3156_v22 = vshll.u32 %v7821_v40, 16  ;;  %v3163_v23 = vshrl.u32 %v7822_v55, 16  ;;  %v6391_v34 = vor.u32 %v6390_v58, %v6387_v16  ;;  %v7932_v41 = vld [vmem:[%s8997_s30 + $0x6c] sm:$0xf] }
 0x1a4   : > { %v3628_v24 = vpop.permute.xlu0 %3627  ;;  %v3149_v60 = vrot.slane %v3147_v39, 6  ;;  %v3155_v46 = vrot.slane %v3153_v20, 5  ;;  %v3166_v12 = vshll.u32 %v7822_v55, 16  ;;  %v6382_v29 = vsel %vm9272_vm8, %v6373_v17, %v6381_v53  ;;  %v7933_v30 = vld [vmem:[%s8997_s30 + $0x70] sm:$0xf] }
 0x1a5   : > { %3673 = vst.msk [vmem:[#allocation2 + $0x18] sm:$0xff] %vm3669_vm1, %v3628_v24  ;;  %v6383_v33 = vrot.slane %v6381_v53, 4  ;;  %v3158_v44 = vrot.slane %v3156_v22, 6  ;;  %v3165_v45 = vrot.slane %v3163_v23, 5  ;;  %v6394_v35 = vshrl.u32 %v8326_v49, 16  ;;  %v8754_v53 = vld [vmem:[%s8997_s30 + $0x6c] sm:$0xff]  }
 0x1a6   : > { %v4171_v37 = vpop.permute.xlu1 %4170  ;;  %v3150_v50 = vor.u32 %v3149_v60, %v3146_v11  ;;  %v3168_v42 = vrot.slane %v3166_v12, 6  ;;  %v6397_v47 = vshll.u32 %v8326_v49, 16  ;;  %v6403_v62 = vshrl.u32 %v8327_v56, 16  ;;  %v7934_v49 = vld [vmem:[%s8997_s30 + $0x74] sm:$0x1] }
 0x1a7   : > { %4217 = vst.msk [vmem:[#allocation2 + $0x10] sm:$0xff] %vm4214_vm3, %v4171_v37  ;;  %v6392_v52 = vsel %vm9272_vm8, %v6383_v33, %v6391_v34  ;;  %v3159_v59 = vor.u32 %v3158_v44, %v3155_v46  ;;  %v6396_v36 = vrot.slane %v6394_v35, 5  ;;  %v6406_v21 = vshll.u32 %v8327_v56, 16  ;;  %v7993_v12 = vld [vmem:[%s8997_s30 + $0x60] sm:$0xe] }
 0x1a8   : > { %v8363_v13 = vcombine.low %v6382_v29, %v6392_v52  ;;  %v3151_v31 = vrot.slane %v3150_v50, 4  ;;  %v3169_v28 = vor.u32 %v3168_v42, %v3165_v45  ;;  %v6399_v27 = vrot.slane %v6397_v47, 6  ;;  %v7994_v45 = vld [vmem:[%s8997_s30 + $0x64] sm:$0xf] }
 0x1a9   : > { %v4173_v8 = vpop.permute.xlu0 %4172  ;;  %v3161_v32 = vrot.slane %v3159_v59, 4  ;;  %v6405_v43 = vrot.slane %v6403_v62, 5  ;;  %v6413_v40 = vshrl.u32 %v8328_v54, 16  ;;  %v6416_v2 = vshll.u32 %v8328_v54, 16 }
 0x1aa   : > { %4218 = vst.msk [vmem:[#allocation2 + $0x18] sm:$0xff] %vm4214_vm3, %v4173_v8  ;;  %v4492_v10 = vpop.permute.xlu1 %4491  ;;  %6757 = vrot.lane.b32.xlu1 %v8363_v13, %s8913_s28  ;;  %v3160_v4 = vsel %vm9272_vm8, %v3151_v31, %v3159_v59  ;;  %v3879_v14 = vshrl.u32 %v7929_v61, 16  ;;  %v6400_v19 = vor.u32 %v6399_v27, %v6396_v36  ;;  %v6408_v25 = vrot.slane %v6406_v21, 6  ;;  %v7995_v59 = vld [vmem:[%s8997_s30 + $0x68] sm:$0x1] }
 0x1ab   : > { %4538 = vst.msk [vmem:[#allocation2 + $0x10] sm:$0xff] %vm4535_vm4, %v4492_v10  ;;  %v3170_v7 = vsel %vm9272_vm8, %v3161_v32, %v3169_v28  ;;  %v3882_v6 = vshll.u32 %v7929_v61, 16  ;;  %v6415_v18 = vrot.slane %v6413_v40, 5  ;;  %v6418_v3 = vrot.slane %v6416_v2, 6  ;;  %v7996_v13 = vld [vmem:[%s8997_s30 + $0x6c] sm:$0xe] }
 0x1ac   : > { %v7854_v55 = vcombine.low %v3160_v4, %v3170_v7  ;;  %v3881_v16 = vrot.slane %v3879_v14, 4  ;;  %v6401_v17 = vrot.slane %v6400_v19, 4  ;;  %v6409_v58 = vor.u32 %v6408_v25, %v6405_v43  ;;  %v7997_v31 = vld [vmem:[%s8997_s30 + $0x70] sm:$0xf]  ;;  %v7998_v10 = vld [vmem:[%s8997_s30 + $0x74] sm:$0x1] }
 0x1ad   : > { %v4494_v1 = vpop.permute.xlu0 %4493  ;;  %v3884_v39 = vrot.slane %v3882_v6, 5  ;;  %v3888_v20 = vshll.u32 %v7930_v38, 16  ;;  %v6419_v24 = vor.u32 %v6418_v3, %v6415_v18  ;;  %v3892_v11 = vshrl.u32 %v7930_v38, 16  ;;  %v8073_v4 = vld [vmem:[%s8997_s30 + $0x60] sm:$0xe] }
 0x1ae   : > { %4539 = vst.msk [vmem:[#allocation2 + $0x18] sm:$0xff] %vm4535_vm4, %v4494_v1  ;;  %3457 = vrot.lane.b32.xlu0 %v7854_v55, %s8905_s10  ;;  %3633 = vrot.lane.b32.xlu1 %v8752_v48, %s8906_s11  ;;  %v3898_v22 = vshll.u32 %v7931_v5, 16  ;;  %v3903_v23 = vshrl.u32 %v7932_v41, 16  ;;  %v6410_v56 = vsel %vm9272_vm8, %v6401_v17, %v6409_v58  ;;  %v6411_v34 = vrot.slane %v6409_v58, 4  ;;  %v8075_v3 = vld [vmem:[%s8997_s30 + $0x68] sm:$0x3] }
 0x1af   : > { %v3885_v60 = vor.u32 %v3884_v39, %v3881_v16  ;;  %v3890_v46 = vrot.slane %v3888_v20, 5  ;;  %v3894_v37 = vrot.slane %v3892_v11, 4  ;;  %v3906_v44 = vshll.u32 %v7932_v41, 16  ;;  %v8074_v41 = vld [vmem:[%s8997_s30 + $0x64] sm:$0xf] }
 0x1b0   : > { %v3900_v29 = vrot.slane %v3898_v22, 5  ;;  %v3905_v33 = vrot.slane %v3903_v23, 4  ;;  %v6420_v50 = vsel %vm9272_vm8, %v6411_v34, %v6419_v24  ;;  %v3912_v35 = vshll.u32 %v7933_v30, 16  ;;  %v8076_v11 = vld [vmem:[%s8997_s30 + $0x6c] sm:$0xe] }
 0x1b1   : > { %v3886_v42 = vrot.slane %v3885_v60, 4  ;;  %v3916_v52 = vshrl.u32 %v7933_v30, 16  ;;  %v8364_v47 = vcombine.low %v6410_v56, %v6420_v50  ;;  %v3895_v62 = vor.u32 %v3894_v37, %v3890_v46 }
 0x1b2   : > { %3635 = vrot.lane.b32.xlu1 %v8754_v53, %s8906_s11  ;;  %v3908_v61 = vrot.slane %v3906_v44, 5  ;;  %v3922_v8 = vshll.u32 %v7934_v49, 16  ;;  %v3914_v36 = vrot.slane %v3912_v35, 5  ;;  %vm6188_vm10 = vcmask 982912  }
 0x1b3   : > { %v5101_v54 = vpop.permute.xlu1 %5100  ;;  %v3891_v28 = vsel %vm9009_vm2, %v3886_v42, %v3890_v46  ;;  %v3918_v38 = vrot.slane %v3916_v52, 4  ;;  %6759 = vrot.lane.b32.xlu0 %v8364_v47, %s8913_s28  ;;  %v3896_v32 = vrot.slane %v3895_v62, 4  ;;  %6189 = vst.msk [vmem:[#allocation2] sm:$0xff] %vm6188_vm10, %v10191_v15  ;;  %v8029_v21 = vrot.slane %v7993_v12, 9  ;;  %6190 = vst.msk [vmem:[#allocation2 + $0x8] sm:$0xff] %vm6188_vm10, %v10215_v51 }
 0x1b4   : > { %5147 = vst.msk [vmem:[#allocation2 + $0x10] sm:$0xff] %vm5144_vm6, %v5101_v54  ;;  %v3909_v27 = vor.u32 %v3908_v61, %v3905_v33  ;;  %v3924_v43 = vrot.slane %v3922_v8, 5  ;;  %v4371_v2 = vrot.slane %v7994_v45, 5  ;;  %v4374_v14 = vrot.slane %v7995_v59, 5  ;;  %v8077_v46 = vld [vmem:[%s8997_s30 + $0x70] sm:$0xf] }
 0x1b5   : > { %v3919_v40 = vor.u32 %v3918_v38, %v3914_v36  ;;  %v8030_v7 = vrot.slane %v7996_v13, 9  ;;  %v3901_v25 = vsel %vm9009_vm2, %v3896_v32, %v3900_v29  ;;  %v4378_v6 = vrot.slane %v7997_v31, 5  ;;  %v8078_v59 = vld [vmem:[%s8997_s30 + $0x74] sm:$0x3]  ;;  %v7679_v31 = vld [vmem:[%s8997_s30 + $0x6c] sm:$0xf] }
 0x1b6   : > { %v3910_v5 = vrot.slane %v3909_v27, 4  ;;  %v4381_v15 = vrot.slane %v7998_v10, 5  ;;  %v7965_v51 = vcombine.low %v3891_v28, %v3901_v25  ;;  %v4372_v55 = vsel %vm9129_vm5, %v8029_v21, %v4371_v2 }
 0x1b7   : > { %v5103_v48 = vpop.permute.xlu0 %5102  ;;  %v5279_v19 = vpop.permute.xlu1 %5278  ;;  %v3920_v1 = vrot.slane %v3919_v40, 4  ;;  %v4373_v18 = vrot.slane %v4371_v2, 4  ;;  %v4379_v30 = vsel %vm9129_vm5, %v8030_v7, %v4378_v6  ;;  %v4380_v17 = vrot.slane %v4378_v6, 4 }
 0x1b8   : > { %5148 = vst.msk [vmem:[#allocation2 + $0x18] sm:$0xff] %vm5144_vm6, %v5103_v48  ;;  %v3915_v16 = vsel %vm9009_vm2, %v3910_v5, %v3914_v36  ;;  %v4769_v58 = vshrl.u32 %v8073_v4, 16  ;;  %4178 = vrot.lane.b32.xlu0 %v7965_v51, %s8907_s18  ;;  %v4772_v24 = vshll.u32 %v8073_v4, 16  ;;  %v4778_v53 = vshrl.u32 %v8074_v41, 16  ;;  %v7680_v4 = vld [vmem:[%s8997_s30 + $0x70] sm:$0xf] }
 0x1b9   : > { %5325 = vst.msk [vmem:[#allocation2 + $0x10] sm:$0xff] %vm5322_vm7, %v5279_v19  ;;  %v3925_v20 = vsel %vm9009_vm2, %v3920_v1, %v3924_v43  ;;  %v4375_v49 = vsel %vm9129_vm5, %v4373_v18, %v4374_v14  ;;  %v4382_v34 = vsel %vm9129_vm5, %v4380_v17, %v4381_v15  ;;  %v4781_v33 = vshll.u32 %v8074_v41, 16  ;;  %v7681_v5 = vld [vmem:[%s8997_s30 + $0x74] sm:$0x1]  ;;  %v8760_v1 = vld [vmem:[%s8997_s30 + $0x6c] sm:$0xff]  }
 0x1ba   : > { %v7966_v23 = vcombine.low %v3915_v16, %v3925_v20  ;;  %v8045_v56 = vcombine.low %v4372_v55, %v4375_v49  ;;  %v4771_v60 = vrot.slane %v4769_v58, 5  ;;  %v8046_v12 = vcombine.low %v4379_v30, %v4382_v34  ;;  %v8186_v49 = vld [vmem:[%s8997_s30 + $0x70] sm:$0xf] }
 0x1bb   : > { %v1979_v39 = vpop.permute.xlu0 %1978  ;;  %v2522_v22 = vpop.permute.xlu1 %2521  ;;  %v4774_v37 = vrot.slane %v4772_v24, 6  ;;  %v4780_v29 = vrot.slane %v4778_v53, 5  ;;  %v4788_v44 = vshrl.u32 %v8075_v3, 16  ;;  %v4791_v45 = vshll.u32 %v8075_v3, 16  ;;  %v8185_v3 = vld [vmem:[%s8997_s30 + $0x6c] sm:$0xf] }
 0x1bc   : > { %2022 = vst.msk [vmem:[#allocation2 + $0x28] sm:$0xff] %vm2016_vm13, %v1979_v39  ;;  %4180 = vrot.lane.b32.xlu1 %v7966_v23, %s8907_s18  ;;  %vm6797_vm11 = vcmask 1048512   ;;  %v4797_v50 = vshrl.u32 %v8076_v11, 16  ;;  %4499 = vrot.lane.b32.xlu0 %v8045_v56, %s8908_s19  ;;  %v4783_v52 = vrot.slane %v4781_v33, 6  ;;  %v4800_v54 = vshll.u32 %v8076_v11, 16 }
 0x1bd   : > { %2566 = vst.msk [vmem:[#allocation2 + $0x20] sm:$0xff] %vm2561_vm14, %v2522_v22  ;;  %v4775_v35 = vor.u32 %v4774_v37, %v4771_v60  ;;  %v4806_v47 = vshrl.u32 %v8077_v46, 16  ;;  %v4790_v62 = vrot.slane %v4788_v44, 5  ;;  %v4793_v61 = vrot.slane %v4791_v45, 6  ;;  %v8187_v60 = vld [vmem:[%s8997_s30 + $0x74] sm:$0x1] }
 0x1be   : > { %6798 = vst.msk [vmem:[#allocation2] sm:$0xff] %vm6797_vm11, %v10253_v9  ;;  %6799 = vst.msk [vmem:[#allocation2 + $0x8] sm:$0xff] %vm6797_vm11, %v10269_v57  ;;  %v4799_v8 = vrot.slane %v4797_v50, 5  ;;  %v4809_v13 = vshll.u32 %v8077_v46, 16  ;;  %v4784_v38 = vor.u32 %v4783_v52, %v4780_v29  ;;  %v4802_v10 = vrot.slane %v4800_v54, 6  ;;  %v8758_v57 = vld [vmem:[%s8997_s30 + $0x6c] sm:$0xff]  }
 0x1bf   : > { %v5281_v42 = vpop.permute.xlu0 %5280  ;;  %v4776_v36 = vrot.slane %v4775_v35, 4  ;;  %v4808_v9 = vrot.slane %v4806_v47, 5  ;;  %v4794_v32 = vor.u32 %v4793_v61, %v4790_v62  ;;  %v4816_v43 = vshrl.u32 %v8078_v59, 16  ;;  %v7682_v37 = vld [vmem:[%s8997_s30 + $0x78] sm:$0xf] }
 0x1c0   : > { %5326 = vst.msk [vmem:[#allocation2 + $0x18] sm:$0xff] %vm5322_vm7, %v5281_v42  ;;  %v5824_v28 = vpop.permute.xlu1 %5823  ;;  %4501 = vrot.lane.b32.xlu1 %v8046_v12, %s8908_s19  ;;  %v4811_v27 = vrot.slane %v4809_v13, 6  ;;  %v4819_v21 = vshll.u32 %v8078_v59, 16  ;;  %v4786_v40 = vrot.slane %v4784_v38, 4  ;;  %v4803_v2 = vor.u32 %v4802_v10, %v4799_v8  ;;  %v7683_v54 = vld [vmem:[%s8997_s30 + $0x7c] sm:$0xf] }
 0x1c1   : > { %5870 = vst.msk [vmem:[#allocation2 + $0x10] sm:$0xff] %vm5867_vm9, %v5824_v28  ;;  %v4785_v48 = vsel %vm9272_vm8, %v4776_v36, %v4784_v38  ;;  %v2274_v14 = vshrl.u32 %v7679_v31, 16  ;;  %v4818_v19 = vrot.slane %v4816_v43, 5  ;;  %v2277_v6 = vshll.u32 %v7679_v31, 16  ;;  %v8762_v62 = vld [vmem:[%s8997_s30 + $0x78] sm:$0xff]  }
 0x1c2   : > { %v4812_v7 = vor.u32 %v4811_v27, %v4808_v9  ;;  %v4821_v25 = vrot.slane %v4819_v21, 6  ;;  %v4795_v41 = vsel %vm9272_vm8, %v4786_v40, %v4794_v32  ;;  %v4804_v51 = vrot.slane %v4803_v2, 4  ;;  %v7684_v10 = vld [vmem:[%s8997_s30 + $0x80] sm:$0x1]  ;;  %v7743_v32 = vld [vmem:[%s8997_s30 + $0x6c] sm:$0xe] }
 0x1c3   : > { %v2276_v55 = vrot.slane %v2274_v14, 4  ;;  %v2283_v18 = vshll.u32 %v7680_v4, 16  ;;  %v8109_v30 = vcombine.low %v4785_v48, %v4795_v41  ;;  %v2279_v39 = vrot.slane %v2277_v6, 5  ;;  %v8188_v41 = vld [vmem:[%s8997_s30 + $0x78] sm:$0xf] }
 0x1c4   : > { %v2843_v15 = vpop.permute.xlu1 %2842  ;;  %1984 = vrot.lane.b32.xlu1 %v8758_v57, %s8902_s7  ;;  %v4814_v17 = vrot.slane %v4812_v7, 4  ;;  %v4822_v58 = vor.u32 %v4821_v25, %v4818_v19  ;;  %v4813_v53 = vsel %vm9272_vm8, %v4804_v51, %v4812_v7  ;;  %v2287_v22 = vshrl.u32 %v7680_v4, 16  ;;  %v7744_v4 = vld [vmem:[%s8997_s30 + $0x70] sm:$0xf]  ;;  %v7745_v7 = vld [vmem:[%s8997_s30 + $0x74] sm:$0x1] }
 0x1c5   : > { %v2524_v16 = vpop.permute.xlu0 %2523  ;;  %2887 = vst.msk [vmem:[#allocation2 + $0x20] sm:$0xff] %vm2882_vm15, %v2843_v15  ;;  %v6814_v20 = vld [vmem:[#allocation2] sm:$0xff]  ;;  %v6815_v24 = vld [vmem:[#allocation2 + $0x8] sm:$0xff]  ;;  %v2285_v11 = vrot.slane %v2283_v18, 5  ;;  %v2293_v23 = vshll.u32 %v7681_v5, 16  ;;  %5108 = vrot.lane.b32.xlu0 %v8109_v30, %s8909_s21  ;;  %v2280_v34 = vor.u32 %v2279_v39, %v2276_v55  ;;  %v5532_v46 = vshrl.u32 %v8185_v3, 16 }
 0x1c6   : > { %2567 = vst.msk [vmem:[#allocation2 + $0x28] sm:$0xff] %vm2561_vm14, %v2524_v16  ;;  %8590 = vmatprep.mubr.bf16.mxu0 %v6814_v20  ;;  %v4823_v56 = vsel %vm9272_vm8, %v4814_v17, %v4822_v58  ;;  %v5535_v12 = vshll.u32 %v8185_v3, 16  ;;  %v2289_v33 = vrot.slane %v2287_v22, 4  ;;  %v5541_v45 = vshll.u32 %v8186_v49, 16  ;;  %v8189_v39 = vld [vmem:[%s8997_s30 + $0x7c] sm:$0xf] }
 0x1c7   : > { %8591 = vmatmul.mubr.bf16.vlgmr.msra.gmra.mrb[0].mxu0 %v6815_v24  ;;  %v8110_v29 = vcombine.low %v4813_v53, %v4823_v56  ;;  %v2295_v44 = vrot.slane %v2293_v23, 5  ;;  %v2281_v42 = vrot.slane %v2280_v34, 4  ;;  %v5534_v35 = vrot.slane %v5532_v46, 4  ;;  %v8190_v24 = vld [vmem:[%s8997_s30 + $0x80] sm:$0x1] }
 0x1c8   : > { %5286 = vrot.lane.b32.xlu1 %v8760_v1, %s8910_s23  ;;  %v5537_v52 = vrot.slane %v5535_v12, 5  ;;  %v5545_v59 = vshrl.u32 %v8186_v49, 16  ;;  %v2290_v61 = vor.u32 %v2289_v33, %v2285_v11  ;;  %v5543_v8 = vrot.slane %v5541_v45, 5  ;;  %v8764_v1 = vld [vmem:[%s8997_s30 + $0x78] sm:$0xff]   ;;  %v8249_v46 = vld [vmem:[%s8997_s30 + $0x6c] sm:$0xe] }
 0x1c9   : > { %v6145_v50 = vpop.permute.xlu1 %6144  ;;  %v5551_v13 = vshll.u32 %v8187_v60, 16  ;;  %v2298_v31 = vshrl.u32 %v7682_v37, 16  ;;  %5110 = vrot.lane.b32.xlu0 %v8110_v29, %s8909_s21  ;;  %v2286_v28 = vsel %vm9009_vm2, %v2281_v42, %v2285_v11  ;;  %v2301_v9 = vshll.u32 %v7682_v37, 16  ;;  %v8250_v12 = vld [vmem:[%s8997_s30 + $0x70] sm:$0xf] }
 0x1ca   : > { %v5826_v47 = vpop.permute.xlu0 %5825  ;;  %6191 = vst.msk [vmem:[#allocation2 + $0x10] sm:$0xff] %vm6188_vm10, %v6145_v50  ;;  %v5538_v36 = vor.u32 %v5537_v52, %v5534_v35  ;;  %v5547_v38 = vrot.slane %v5545_v59, 4  ;;  %v2291_v57 = vrot.slane %v2290_v61, 4  ;;  %v2307_v21 = vshll.u32 %v7683_v54, 16  ;;  %v8251_v50 = vld [vmem:[%s8997_s30 + $0x74] sm:$0x1] }
 0x1cb   : > { %5871 = vst.msk [vmem:[#allocation2 + $0x18] sm:$0xff] %vm5867_vm9, %v5826_v47  ;;  %v5553_v27 = vrot.slane %v5551_v13, 5  ;;  %v2300_v43 = vrot.slane %v2298_v31, 4  ;;  %v2303_v2 = vrot.slane %v2301_v9, 5  ;;  %v2311_v14 = vshrl.u32 %v7683_v54, 16 }
 0x1cc   : > { %v5539_v48 = vrot.slane %v5538_v36, 4  ;;  %v5548_v40 = vor.u32 %v5547_v38, %v5543_v8  ;;  %v2296_v25 = vsel %vm9009_vm2, %v2291_v57, %v2295_v44  ;;  %v2309_v5 = vrot.slane %v2307_v21, 5  ;;  %v7746_v54 = vld [vmem:[%s8997_s30 + $0x78] sm:$0xe]  ;;  %v7747_v13 = vld [vmem:[%s8997_s30 + $0x7c] sm:$0xf] }
 0x1cd   : > { %v2317_v6 = vshll.u32 %v7684_v10, 16  ;;  %v7775_v15 = vrot.slane %v7743_v32, 9  ;;  %1986 = vrot.lane.b32.xlu0 %v8762_v62, %s8902_s7  ;;  %v7711_v51 = vcombine.low %v2286_v28, %v2296_v25  ;;  %v2304_v3 = vor.u32 %v2303_v2, %v2300_v43  ;;  %v7748_v31 = vld [vmem:[%s8997_s30 + $0x80] sm:$0x1]  ;;  %v7823_v9 = vld [vmem:[%s8997_s30 + $0x6c] sm:$0xe] }
 0x1ce   : > { %v2845_v19 = vpop.permute.xlu0 %2844  ;;  %v5544_v55 = vsel %vm9009_vm2, %v5539_v48, %v5543_v8  ;;  %v5549_v18 = vrot.slane %v5548_v40, 4  ;;  %v2313_v16 = vrot.slane %v2311_v14, 4  ;;  %v2732_v17 = vrot.slane %v7744_v4, 5  ;;  %v7824_v2 = vld [vmem:[%s8997_s30 + $0x70] sm:$0xf] }
 0x1cf   : > { %2888 = vst.msk [vmem:[#allocation2 + $0x28] sm:$0xff] %vm2882_vm15, %v2845_v19  ;;  %v2319_v30 = vrot.slane %v2317_v6, 5  ;;  %v2735_v58 = vrot.slane %v7745_v7, 5  ;;  %2529 = vrot.lane.b32.xlu1 %v7711_v51, %s8903_s8  ;;  %v2305_v49 = vrot.slane %v2304_v3, 4  ;;  %v5556_v53 = vshrl.u32 %v8188_v41, 16 }
 0x1d0   : > { %v5554_v20 = vsel %vm9009_vm2, %v5549_v18, %v5553_v27  ;;  %v5559_v11 = vshll.u32 %v8188_v41, 16  ;;  %v2314_v56 = vor.u32 %v2313_v16, %v2309_v5  ;;  %v2733_v34 = vsel %vm9129_vm5, %v7775_v15, %v2732_v17  ;;  %v7825_v25 = vld [vmem:[%s8997_s30 + $0x74] sm:$0x3] }
 0x1d1   : > { %v8221_v23 = vcombine.low %v5544_v55, %v5554_v20  ;;  %v2734_v60 = vrot.slane %v2732_v17, 4  ;;  %5288 = vrot.lane.b32.xlu0 %v8764_v1, %s8910_s23  ;;  %v2310_v29 = vsel %vm9009_vm2, %v2305_v49, %v2309_v5  ;;  %v5558_v33 = vrot.slane %v5556_v53, 4  ;;  %v8253_v55 = vld [vmem:[%s8997_s30 + $0x7c] sm:$0xf]  ;;  %v8252_v17 = vld [vmem:[%s8997_s30 + $0x78] sm:$0xe] }
 0x1d2   : > { %v6147_v22 = vpop.permute.xlu0 %6146  ;;  %v5561_v44 = vrot.slane %v5559_v11, 5  ;;  %v5565_v45 = vshll.u32 %v8189_v39, 16  ;;  %v2315_v42 = vrot.slane %v2314_v56, 4  ;;  %v5569_v52 = vshrl.u32 %v8189_v39, 16  ;;  %v8329_v53 = vld [vmem:[%s8997_s30 + $0x6c] sm:$0xe] }
 0x1d3   : > { %v3452_v37 = vpop.permute.xlu1 %3451  ;;  %6192 = vst.msk [vmem:[#allocation2 + $0x18] sm:$0xff] %vm6188_vm10, %v6147_v22  ;;  %v2736_v35 = vsel %vm9129_vm5, %v2734_v60, %v2735_v58  ;;  %v5575_v59 = vshll.u32 %v8190_v24, 16  ;;  %5831 = vrot.lane.b32.xlu1 %v8221_v23, %s8911_s26  ;;  %v8285_v8 = vrot.slane %v8249_v46, 9  ;;  %v6024_v10 = vrot.slane %v8250_v12, 5  ;;  %v8254_v24 = vld [vmem:[%s8997_s30 + $0x80] sm:$0x1] }
 0x1d4   : > { %3496 = vst.msk [vmem:[#allocation2 + $0x20] sm:$0xff] %vm3491_vm0, %v3452_v37  ;;  %v7791_v47 = vcombine.low %v2733_v34, %v2736_v35  ;;  %v5562_v62 = vor.u32 %v5561_v44, %v5558_v33  ;;  %v5567_v61 = vrot.slane %v5565_v45, 5  ;;  %v2320_v28 = vsel %vm9009_vm2, %v2315_v42, %v2319_v30  ;;  %v8330_v60 = vld [vmem:[%s8997_s30 + $0x70] sm:$0xf] }
 0x1d5   : > { %v5571_v36 = vrot.slane %v5569_v52, 4  ;;  %v5577_v38 = vrot.slane %v5575_v59, 5  ;;  %v7712_v32 = vcombine.low %v2310_v29, %v2320_v28  ;;  %v6027_v27 = vrot.slane %v8251_v50, 5  ;;  %v8331_v59 = vld [vmem:[%s8997_s30 + $0x74] sm:$0x3] }
 0x1d6   : > { %v5563_v57 = vrot.slane %v5562_v62, 4  ;;  %v7776_v43 = vrot.slane %v7746_v54, 9  ;;  %v6025_v4 = vsel %vm9129_vm5, %v8285_v8, %v6024_v10  ;;  %v6026_v48 = vrot.slane %v6024_v10, 4 }
 0x1d7   : > { %v5572_v21 = vor.u32 %v5571_v36, %v5567_v61  ;;  %v2739_v40 = vrot.slane %v7747_v13, 5  ;;  %2531 = vrot.lane.b32.xlu0 %v7712_v32, %s8903_s8  ;;  %2850 = vrot.lane.b32.xlu1 %v7791_v47, %s8904_s9  ;;  %v2742_v19 = vrot.slane %v7748_v31, 5  ;;  %v3172_v5 = vshrl.u32 %v7823_v9, 16  ;;  %v7826_v32 = vld [vmem:[%s8997_s30 + $0x78] sm:$0xe] }
 0x1d8   : > { %v5568_v7 = vsel %vm9009_vm2, %v5563_v57, %v5567_v61  ;;  %v3175_v6 = vshll.u32 %v7823_v9, 16  ;;  %v6028_v41 = vsel %vm9129_vm5, %v6026_v48, %v6027_v27  ;;  %v3181_v30 = vshrl.u32 %v7824_v2, 16  ;;  %v7827_v48 = vld [vmem:[%s8997_s30 + $0x7c] sm:$0xf] }
 0x1d9   : > { %v6754_v14 = vpop.permute.xlu1 %6753  ;;  %v5573_v15 = vrot.slane %v5572_v21, 4  ;;  %v2740_v51 = vsel %vm9129_vm5, %v7776_v43, %v2739_v40  ;;  %v2741_v1 = vrot.slane %v2739_v40, 4  ;;  %v8301_v18 = vcombine.low %v6025_v4, %v6028_v41 }
 0x1da   : > { %6800 = vst.msk [vmem:[#allocation2 + $0x10] sm:$0xff] %vm6797_vm11, %v6754_v14  ;;  %v3174_v3 = vrot.slane %v3172_v5, 5  ;;  %v3177_v16 = vrot.slane %v3175_v6, 6  ;;  %v3184_v20 = vshll.u32 %v7824_v2, 16  ;;  %v3191_v49 = vshrl.u32 %v7825_v25, 16 }
 0x1db   : > { %v5578_v58 = vsel %vm9009_vm2, %v5573_v15, %v5577_v38  ;;  %v2743_v39 = vsel %vm9129_vm5, %v2741_v1, %v2742_v19  ;;  %6152 = vrot.lane.b32.xlu1 %v8301_v18, %s8912_s27  ;;  %v3183_v34 = vrot.slane %v3181_v30, 5  ;;  %v3194_v29 = vshll.u32 %v7825_v25, 16  ;;  %v7828_v19 = vld [vmem:[%s8997_s30 + $0x80] sm:$0x3]  ;;  %v8332_v18 = vld [vmem:[%s8997_s30 + $0x78] sm:$0xe] }
 0x1dc   : > { %v8222_v22 = vcombine.low %v5568_v7, %v5578_v58  ;;  %v7792_v23 = vcombine.low %v2740_v51, %v2743_v39  ;;  %v3178_v56 = vor.u32 %v3177_v16, %v3174_v3  ;;  %v3186_v12 = vrot.slane %v3184_v20, 6  ;;  %v8333_v58 = vld [vmem:[%s8997_s30 + $0x7c] sm:$0xf] }
 0x1dd   : > { %v3630_v11 = vpop.permute.xlu1 %3629  ;;  %v3193_v37 = vrot.slane %v3191_v49, 5  ;;  %v8286_v33 = vrot.slane %v8252_v17, 9  ;;  %v6031_v45 = vrot.slane %v8253_v55, 5  ;;  %v6034_v50 = vrot.slane %v8254_v24, 5 }
 0x1de   : > { %v3454_v46 = vpop.permute.xlu0 %3453  ;;  %3674 = vst.msk [vmem:[#allocation2 + $0x20] sm:$0xff] %vm3669_vm1, %v3630_v11  ;;  %5833 = vrot.lane.b32.xlu0 %v8222_v22, %s8911_s26  ;;  %v3179_v44 = vrot.slane %v3178_v56, 4  ;;  %v6422_v42 = vshrl.u32 %v8329_v53, 16  ;;  %v3187_v35 = vor.u32 %v3186_v12, %v3183_v34  ;;  %v3196_v52 = vrot.slane %v3194_v29, 6 }
 0x1df   : > { %3497 = vst.msk [vmem:[#allocation2 + $0x28] sm:$0xff] %vm3491_vm0, %v3454_v46  ;;  %v6425_v54 = vshll.u32 %v8329_v53, 16  ;;  %v6431_v47 = vshrl.u32 %v8330_v60, 16  ;;  %v6032_v8 = vsel %vm9129_vm5, %v8286_v33, %v6031_v45  ;;  %v6033_v13 = vrot.slane %v6031_v45, 4  ;;  %v8334_v46 = vld [vmem:[%s8997_s30 + $0x80] sm:$0x3] }
 0x1e0   : > { %v6424_v31 = vrot.slane %v6422_v42, 5  ;;  %v6434_v28 = vshll.u32 %v8330_v60, 16  ;;  %v3188_v36 = vsel %vm9272_vm8, %v3179_v44, %v3187_v35  ;;  %v3189_v38 = vrot.slane %v3187_v35, 4  ;;  %v7935_v42 = vld [vmem:[%s8997_s30 + $0x78] sm:$0xf] }
 0x1e1   : > { %v3632_v62 = vpop.permute.xlu1 %3631  ;;  %v6816_v61 = vld [vmem:[#allocation2 + $0x10] sm:$0xff]  ;;  %v3197_v10 = vor.u32 %v3196_v52, %v3193_v37  ;;  %v6427_v9 = vrot.slane %v6425_v54, 6  ;;  %v6035_v27 = vsel %vm9129_vm5, %v6033_v13, %v6034_v50  ;;  %v6433_v43 = vrot.slane %v6431_v47, 5  ;;  %v8765_v13 = vld [vmem:[%s8997_s30 + $0x78] sm:$0xff]  }
 0x1e2   : > { %3675 = vst.msk [vmem:[#allocation2 + $0x28] sm:$0xff] %vm3669_vm1, %v3632_v62  ;;  %8594 = vmatprep.mubr.bf16.mxu0 %v6816_v61  ;;  %2852 = vrot.lane.b32.xlu0 %v7792_v23, %s8904_s9  ;;  %v6436_v21 = vrot.slane %v6434_v28, 6  ;;  %v6441_v4 = vshrl.u32 %v8331_v59, 16  ;;  %v8302_v2 = vcombine.low %v6032_v8, %v6035_v27  ;;  %v6444_v7 = vshll.u32 %v8331_v59, 16 }
 0x1e3   : > { %v6756_v57 = vpop.permute.xlu0 %6755  ;;  %v3198_v40 = vsel %vm9272_vm8, %v3189_v38, %v3197_v10  ;;  %v6428_v14 = vor.u32 %v6427_v9, %v6424_v31  ;;  %v3200_v15 = vshrl.u32 %v7826_v32, 16  ;;  %v3203_v1 = vshll.u32 %v7826_v32, 16  ;;  %v7936_v9 = vld [vmem:[%s8997_s30 + $0x7c] sm:$0xf] }
 0x1e4   : > { %6801 = vst.msk [vmem:[#allocation2 + $0x18] sm:$0xff] %vm6797_vm11, %v6756_v57  ;;  %v7855_v25 = vcombine.low %v3188_v36, %v3198_v40  ;;  %v6437_v5 = vor.u32 %v6436_v21, %v6433_v43  ;;  %v6443_v6 = vrot.slane %v6441_v4, 5  ;;  %v6446_v51 = vrot.slane %v6444_v7, 6  ;;  %v7938_v57 = vld [vmem:[%s8997_s30 + $0x84] sm:$0xf] }
 0x1e5   : > { %v6429_v41 = vrot.slane %v6428_v14, 4  ;;  %v3209_v55 = vshrl.u32 %v7827_v48, 16  ;;  %v3202_v16 = vrot.slane %v3200_v15, 5  ;;  %v3212_v30 = vshll.u32 %v7827_v48, 16  ;;  %v7937_v4 = vld [vmem:[%s8997_s30 + $0x80] sm:$0x1] }
 0x1e6   : > { %3459 = vrot.lane.b32.xlu1 %v7855_v25, %s8905_s10  ;;  %6154 = vrot.lane.b32.xlu0 %v8302_v2, %s8912_s27  ;;  %v6439_v3 = vrot.slane %v6437_v5, 4  ;;  %v3219_v17 = vshrl.u32 %v7828_v19, 16  ;;  %v6447_v49 = vor.u32 %v6446_v51, %v6443_v6  ;;  %v3205_v24 = vrot.slane %v3203_v1, 6  ;;  %v7939_v51 = vld [vmem:[%s8997_s30 + $0x88] sm:$0xf] }
 0x1e7   : > { %v6438_v20 = vsel %vm9272_vm8, %v6429_v41, %v6437_v5  ;;  %v3211_v53 = vrot.slane %v3209_v55, 5  ;;  %v3214_v11 = vrot.slane %v3212_v30, 6  ;;  %v3222_v23 = vshll.u32 %v7828_v19, 16  ;;  %v8766_v5 = vld [vmem:[%s8997_s30 + $0x84] sm:$0xff]  }
 0x1e8   : > { %v4175_v39 = vpop.permute.xlu0 %4174  ;;  %v3221_v22 = vrot.slane %v3219_v17, 5  ;;  %v6450_v56 = vshrl.u32 %v8332_v18, 16  ;;  %v6448_v34 = vsel %vm9272_vm8, %v6439_v3, %v6447_v49  ;;  %v3206_v60 = vor.u32 %v3205_v24, %v3202_v16  ;;  %v7940_v3 = vld [vmem:[%s8997_s30 + $0x8c] sm:$0x1] }
 0x1e9   : > { %4219 = vst.msk [vmem:[#allocation2 + $0x20] sm:$0xff] %vm4214_vm3, %v4175_v39  ;;  %v6453_v12 = vshll.u32 %v8332_v18, 16  ;;  %v6459_v37 = vshrl.u32 %v8333_v58, 16  ;;  %v8365_v33 = vcombine.low %v6438_v20, %v6448_v34  ;;  %v3215_v44 = vor.u32 %v3214_v11, %v3211_v53  ;;  %v7999_v20 = vld [vmem:[%s8997_s30 + $0x78] sm:$0xe] }
 0x1ea   : > { %v3224_v45 = vrot.slane %v3222_v23, 6  ;;  %v6452_v50 = vrot.slane %v6450_v56, 5  ;;  %v3207_v52 = vrot.slane %v3206_v60, 4  ;;  %v6462_v47 = vshll.u32 %v8333_v58, 16 }
 0x1eb   : > { %v6817_v29 = vld [vmem:[#allocation2 + $0x18] sm:$0xff]  ;;  %v6455_v59 = vrot.slane %v6453_v12, 6  ;;  %v6461_v54 = vrot.slane %v6459_v37, 5  ;;  %6761 = vrot.lane.b32.xlu1 %v8365_v33, %s8913_s28  ;;  %v3217_v61 = vrot.slane %v3215_v44, 4  ;;  %v6469_v31 = vshrl.u32 %v8334_v46, 16 }
 0x1ec   : > { %v4496_v35 = vpop.permute.xlu0 %4495  ;;  %8595 = vmatmul.mubr.bf16.gmra.mrb[4].mxu0 %v6817_v29  ;;  %v3225_v8 = vor.u32 %v3224_v45, %v3221_v22  ;;  %v6472_v28 = vshll.u32 %v8334_v46, 16  ;;  %v3216_v36 = vsel %vm9272_vm8, %v3207_v52, %v3215_v44  ;;  %v6464_v10 = vrot.slane %v6462_v47, 6  ;;  %v8000_v22 = vld [vmem:[%s8997_s30 + $0x7c] sm:$0xf]  ;;  %v8001_v37 = vld [vmem:[%s8997_s30 + $0x80] sm:$0x1] }
 0x1ed   : > { %v4177_v62 = vpop.permute.xlu1 %4176  ;;  %4540 = vst.msk [vmem:[#allocation2 + $0x20] sm:$0xff] %vm4535_vm4, %v4496_v35  ;;  %v6456_v38 = vor.u32 %v6455_v59, %v6452_v50  ;;  %v3927_v32 = vshrl.u32 %v7935_v42, 16  ;;  %v6471_v43 = vrot.slane %v6469_v31, 5  ;;  %v3930_v48 = vshll.u32 %v7935_v42, 16  ;;  %v8002_v29 = vld [vmem:[%s8997_s30 + $0x84] sm:$0xe] }
 0x1ee   : > { %4220 = vst.msk [vmem:[#allocation2 + $0x28] sm:$0xff] %vm4214_vm3, %v4177_v62  ;;  %v3226_v27 = vsel %vm9272_vm8, %v3217_v61, %v3225_v8  ;;  %v6474_v21 = vrot.slane %v6472_v28, 6  ;;  %v6465_v14 = vor.u32 %v6464_v10, %v6461_v54  ;;  %v3936_v15 = vshll.u32 %v7936_v9, 16  ;;  %v8003_v54 = vld [vmem:[%s8997_s30 + $0x88] sm:$0xf] }
 0x1ef   : > { %v7856_v40 = vcombine.low %v3216_v36, %v3226_v27  ;;  %v6457_v2 = vrot.slane %v6456_v38, 4  ;;  %v3929_v7 = vrot.slane %v3927_v32, 4  ;;  %3637 = vrot.lane.b32.xlu1 %v8765_v13, %s8906_s11  ;;  %v3932_v6 = vrot.slane %v3930_v48, 5  ;;  %v8004_v47 = vld [vmem:[%s8997_s30 + $0x8c] sm:$0x1] }
 0x1f0   : > { %v6475_v25 = vor.u32 %v6474_v21, %v6471_v43  ;;  %v3940_v41 = vshrl.u32 %v7936_v9, 16  ;;  %v6467_v55 = vrot.slane %v6465_v14, 4  ;;  %v3946_v18 = vshll.u32 %v7937_v4, 16  ;;  %v8079_v31 = vld [vmem:[%s8997_s30 + $0x78] sm:$0xe] }
 0x1f1   : > { %v4498_v19 = vpop.permute.xlu1 %4497  ;;  %3461 = vrot.lane.b32.xlu0 %v7856_v40, %s8905_s10  ;;  %v6466_v1 = vsel %vm9272_vm8, %v6457_v2, %v6465_v14  ;;  %v3951_v16 = vshrl.u32 %v7938_v57, 16  ;;  %v3933_v30 = vor.u32 %v3932_v6, %v3929_v7  ;;  %v3938_v17 = vrot.slane %v3936_v15, 5  ;;  %v8080_v4 = vld [vmem:[%s8997_s30 + $0x7c] sm:$0xf]  ;;  %v8081_v2 = vld [vmem:[%s8997_s30 + $0x80] sm:$0x3] }
 0x1f2   : > { %4541 = vst.msk [vmem:[#allocation2 + $0x28] sm:$0xff] %vm4535_vm4, %v4498_v19  ;;  %v3942_v58 = vrot.slane %v3940_v41, 4  ;;  %v3954_v39 = vshll.u32 %v7938_v57, 16  ;;  %v6476_v49 = vsel %vm9272_vm8, %v6467_v55, %v6475_v25  ;;  %v3948_v24 = vrot.slane %v3946_v18, 5  ;;  %v8082_v18 = vld [vmem:[%s8997_s30 + $0x84] sm:$0xe] }
 0x1f3   : > { %v3953_v53 = vrot.slane %v3951_v16, 4  ;;  %v3960_v11 = vshll.u32 %v7939_v51, 16  ;;  %v8366_v34 = vcombine.low %v6466_v1, %v6476_v49  ;;  %3639 = vrot.lane.b32.xlu1 %v8766_v5, %s8906_s11  ;;  %v3934_v60 = vrot.slane %v3933_v30, 4 }
 0x1f4   : > { %v5105_v23 = vpop.permute.xlu0 %5104  ;;  %v3943_v46 = vor.u32 %v3942_v58, %v3938_v17  ;;  %v3956_v12 = vrot.slane %v3954_v39, 5  ;;  %v3964_v44 = vshrl.u32 %v7939_v51, 16  ;;  %v3970_v45 = vshll.u32 %v7940_v3, 16  ;;  %v8083_v58 = vld [vmem:[%s8997_s30 + $0x88] sm:$0xf] }
 0x1f5   : > { %v1981_v56 = vpop.permute.xlu1 %1980  ;;  %5149 = vst.msk [vmem:[#allocation2 + $0x20] sm:$0xff] %vm5144_vm6, %v5105_v23  ;;  %v3962_v33 = vrot.slane %v3960_v11, 5  ;;  %v8031_v50 = vrot.slane %v7999_v20, 9  ;;  %6763 = vrot.lane.b32.xlu0 %v8366_v34, %s8913_s28  ;;  %v3939_v42 = vsel %vm9009_vm2, %v3934_v60, %v3938_v17  ;;  %v4385_v59 = vrot.slane %v8000_v22, 5  ;;  %v8084_v11 = vld [vmem:[%s8997_s30 + $0x8c] sm:$0x3] }
 0x1f6   : > { %2023 = vst.msk [vmem:[#allocation2 + $0x30] sm:$0xff] %vm2016_vm13, %v1981_v56  ;;  %v3944_v35 = vrot.slane %v3943_v46, 4  ;;  %v3957_v52 = vor.u32 %v3956_v12, %v3953_v53  ;;  %v3966_v62 = vrot.slane %v3964_v44, 4  ;;  %v3972_v61 = vrot.slane %v3970_v45, 5 }
 0x1f7   : > { %v4388_v8 = vrot.slane %v8001_v37, 5  ;;  %v8032_v13 = vrot.slane %v8002_v29, 9  ;;  %v4386_v9 = vsel %vm9129_vm5, %v8031_v50, %v4385_v59  ;;  %v4387_v32 = vrot.slane %v4385_v59, 4 }
 0x1f8   : > { %v3949_v38 = vsel %vm9009_vm2, %v3944_v35, %v3948_v24  ;;  %v3958_v10 = vrot.slane %v3957_v52, 4  ;;  %v3967_v27 = vor.u32 %v3966_v62, %v3962_v33  ;;  %v4392_v43 = vrot.slane %v8003_v54, 5  ;;  %v7686_v62 = vld [vmem:[%s8997_s30 + $0x88] sm:$0xf] }
 0x1f9   : > { %v5107_v28 = vpop.permute.xlu0 %5106  ;;  %v5283_v36 = vpop.permute.xlu1 %5282  ;;  %v7967_v57 = vcombine.low %v3939_v42, %v3949_v38  ;;  %v4395_v21 = vrot.slane %v8004_v47, 5  ;;  %v4389_v40 = vsel %vm9129_vm5, %v4387_v32, %v4388_v8  ;;  %v4825_v14 = vshrl.u32 %v8079_v31, 16 }
 0x1fa   : > { %5150 = vst.msk [vmem:[#allocation2 + $0x28] sm:$0xff] %vm5144_vm6, %v5107_v28  ;;  %v3963_v48 = vsel %vm9009_vm2, %v3958_v10, %v3962_v33  ;;  %v4828_v7 = vshll.u32 %v8079_v31, 16  ;;  %v3968_v19 = vrot.slane %v3967_v27, 4  ;;  %v8047_v25 = vcombine.low %v4386_v9, %v4389_v40  ;;  %v7685_v33 = vld [vmem:[%s8997_s30 + $0x84] sm:$0xf] }
 0x1fb   : > { %5327 = vst.msk [vmem:[#allocation2 + $0x20] sm:$0xff] %vm5322_vm7, %v5283_v36  ;;  %4182 = vrot.lane.b32.xlu0 %v7967_v57, %s8907_s18  ;;  %v4393_v5 = vsel %vm9129_vm5, %v8032_v13, %v4392_v43  ;;  %v4394_v6 = vrot.slane %v4392_v43, 4  ;;  %v4827_v41 = vrot.slane %v4825_v14, 5  ;;  %v4834_v1 = vshrl.u32 %v8080_v4, 16  ;;  %v8767_v28 = vld [vmem:[%s8997_s30 + $0x84] sm:$0xff]  }
 0x1fc   : > { %v4830_v51 = vrot.slane %v4828_v7, 6  ;;  %v4837_v55 = vshll.u32 %v8080_v4, 16  ;;  %v3973_v3 = vsel %vm9009_vm2, %v3968_v19, %v3972_v61  ;;  %v4844_v30 = vshrl.u32 %v8081_v2, 16  ;;  %v7687_v9 = vld [vmem:[%s8997_s30 + $0x8c] sm:$0x1]  ;;  %v8768_v19 = vld [vmem:[%s8997_s30 + $0x84] sm:$0xff]  }
 0x1fd   : > { %v1983_v15 = vpop.permute.xlu0 %1982  ;;  %v4396_v16 = vsel %vm9129_vm5, %v4394_v6, %v4395_v21  ;;  %v4847_v17 = vshll.u32 %v8081_v2, 16  ;;  %v7968_v20 = vcombine.low %v3963_v48, %v3973_v3  ;;  %v4836_v53 = vrot.slane %v4834_v1, 5  ;;  %v8191_v4 = vld [vmem:[%s8997_s30 + $0x84] sm:$0xf] }
 0x1fe   : > { %2024 = vst.msk [vmem:[#allocation2 + $0x38] sm:$0xff] %vm2016_vm13, %v1983_v15  ;;  %v2526_v39 = vpop.permute.xlu1 %2525  ;;  %v8048_v49 = vcombine.low %v4393_v5, %v4396_v16  ;;  %v4831_v24 = vor.u32 %v4830_v51, %v4827_v41  ;;  %v4839_v22 = vrot.slane %v4837_v55, 6  ;;  %v4846_v23 = vrot.slane %v4844_v30, 5  ;;  %v8192_v51 = vld [vmem:[%s8997_s30 + $0x88] sm:$0xf] }
 0x1ff   : > { %2568 = vst.msk [vmem:[#allocation2 + $0x30] sm:$0xff] %vm2561_vm14, %v2526_v39  ;;  %4503 = vrot.lane.b32.xlu0 %v8047_v25, %s8908_s19  ;;  %v4849_v56 = vrot.slane %v4847_v17, 6  ;;  %v4853_v34 = vshrl.u32 %v8082_v18, 16  ;;  %4184 = vrot.lane.b32.xlu1 %v7968_v20, %s8907_s18  ;;  %v4856_v12 = vshll.u32 %v8082_v18, 16  ;;  %v4862_v37 = vshrl.u32 %v8083_v58, 16 }
 0x200   : > { %v4832_v46 = vrot.slane %v4831_v24, 4  ;;  %v4865_v29 = vshll.u32 %v8083_v58, 16  ;;  %v4840_v44 = vor.u32 %v4839_v22, %v4836_v53  ;;  %v4872_v42 = vshrl.u32 %v8084_v11, 16  ;;  %v8193_v18 = vld [vmem:[%s8997_s30 + $0x8c] sm:$0x1] }
 0x201   : > { %v5285_v60 = vpop.permute.xlu0 %5284  ;;  %v4850_v45 = vor.u32 %v4849_v56, %v4846_v23  ;;  %v4855_v50 = vrot.slane %v4853_v34, 5  ;;  %v4858_v52 = vrot.slane %v4856_v12, 6  ;;  %v4864_v59 = vrot.slane %v4862_v37, 5  ;;  %v7688_v30 = vld [vmem:[%s8997_s30 + $0x90] sm:$0xf] }
 0x202   : > { %5328 = vst.msk [vmem:[#allocation2 + $0x28] sm:$0xff] %vm5322_vm7, %v5285_v60  ;;  %v5828_v35 = vpop.permute.xlu1 %5827  ;;  %v4867_v54 = vrot.slane %v4865_v29, 6  ;;  %v4875_v47 = vshll.u32 %v8084_v11, 16  ;;  %v4841_v61 = vsel %vm9272_vm8, %v4832_v46, %v4840_v44  ;;  %v4842_v8 = vrot.slane %v4840_v44, 4  ;;  %v7689_v22 = vld [vmem:[%s8997_s30 + $0x94] sm:$0xf] }
 0x203   : > { %5872 = vst.msk [vmem:[#allocation2 + $0x20] sm:$0xff] %vm5867_vm9, %v5828_v35  ;;  %v4874_v13 = vrot.slane %v4872_v42, 5  ;;  %v2322_v31 = vshrl.u32 %v7685_v33, 16  ;;  %4505 = vrot.lane.b32.xlu1 %v8048_v49, %s8908_s19  ;;  %v4859_v36 = vor.u32 %v4858_v52, %v4855_v50  ;;  %v2325_v32 = vshll.u32 %v7685_v33, 16  ;;  %v7690_v60 = vld [vmem:[%s8997_s30 + $0x98] sm:$0x1] }
 0x204   : > { %v4868_v38 = vor.u32 %v4867_v54, %v4864_v59  ;;  %v4877_v10 = vrot.slane %v4875_v47, 6  ;;  %v4851_v57 = vsel %vm9272_vm8, %v4842_v8, %v4850_v45  ;;  %v2331_v43 = vshll.u32 %v7686_v62, 16  ;;  %v8769_v37 = vld [vmem:[%s8997_s30 + $0x90] sm:$0xff]   ;;  %v7749_v50 = vld [vmem:[%s8997_s30 + $0x84] sm:$0xe] }
 0x205   : > { %v2324_v27 = vrot.slane %v2322_v31, 4  ;;  %v2335_v21 = vshrl.u32 %v7686_v62, 16  ;;  %v8111_v40 = vcombine.low %v4841_v61, %v4851_v57  ;;  %v4860_v2 = vrot.slane %v4859_v36, 4  ;;  %v7750_v47 = vld [vmem:[%s8997_s30 + $0x88] sm:$0xf] }
 0x206   : > { %v2847_v48 = vpop.permute.xlu1 %2846  ;;  %v4870_v14 = vrot.slane %v4868_v38, 4  ;;  %v4878_v7 = vor.u32 %v4877_v10, %v4874_v13  ;;  %v2528_v25 = vpop.permute.xlu0 %2527  ;;  %v2327_v5 = vrot.slane %v2325_v32, 5  ;;  %v2333_v6 = vrot.slane %v2331_v43, 5  ;;  %v7751_v31 = vld [vmem:[%s8997_s30 + $0x8c] sm:$0x1] }
 0x207   : > { %2889 = vst.msk [vmem:[#allocation2 + $0x30] sm:$0xff] %vm2882_vm15, %v2847_v48  ;;  %v2337_v15 = vrot.slane %v2335_v21, 4  ;;  %v2341_v41 = vshll.u32 %v7687_v9, 16  ;;  %5112 = vrot.lane.b32.xlu0 %v8111_v40, %s8909_s21  ;;  %1988 = vrot.lane.b32.xlu1 %v8767_v28, %s8902_s7  ;;  %v4869_v1 = vsel %vm9272_vm8, %v4860_v2, %v4868_v38  ;;  %v5580_v3 = vshrl.u32 %v8191_v4, 16  ;;  %v8770_v9 = vld [vmem:[%s8997_s30 + $0x90] sm:$0xff]  }
 0x208   : > { %2569 = vst.msk [vmem:[#allocation2 + $0x38] sm:$0xff] %vm2561_vm14, %v2528_v25  ;;  %v4879_v55 = vsel %vm9272_vm8, %v4870_v14, %v4878_v7  ;;  %v5583_v16 = vshll.u32 %v8191_v4, 16  ;;  %v2328_v58 = vor.u32 %v2327_v5, %v2324_v27  ;;  %v5589_v53 = vshll.u32 %v8192_v51, 16  ;;  %v8194_v21 = vld [vmem:[%s8997_s30 + $0x90] sm:$0xf] }
 0x209   : > { %v8112_v17 = vcombine.low %v4869_v1, %v4879_v55  ;;  %v2338_v39 = vor.u32 %v2337_v15, %v2333_v6  ;;  %v2343_v20 = vrot.slane %v2341_v41, 5  ;;  %v5582_v49 = vrot.slane %v5580_v3, 4  ;;  %v8195_v7 = vld [vmem:[%s8997_s30 + $0x94] sm:$0xf] }
 0x20a   : > { %v5585_v24 = vrot.slane %v5583_v16, 5  ;;  %v5593_v11 = vshrl.u32 %v8192_v51, 16  ;;  %v2329_v23 = vrot.slane %v2328_v58, 4  ;;  %v5599_v34 = vshll.u32 %v8193_v18, 16  ;;  %v8196_v51 = vld [vmem:[%s8997_s30 + $0x98] sm:$0x1] }
 0x20b   : > { %v2339_v56 = vrot.slane %v2338_v39, 4  ;;  %v2346_v46 = vshrl.u32 %v7688_v30, 16  ;;  %5114 = vrot.lane.b32.xlu0 %v8112_v17, %s8909_s21  ;;  %5290 = vrot.lane.b32.xlu1 %v8768_v19, %s8910_s23  ;;  %v5591_v33 = vrot.slane %v5589_v53, 5  ;;  %v2349_v45 = vshll.u32 %v7688_v30, 16  ;;  %v8255_v18 = vld [vmem:[%s8997_s30 + $0x84] sm:$0xe] }
 0x20c   : > { %v6149_v12 = vpop.permute.xlu1 %6148  ;;  %v5586_v29 = vor.u32 %v5585_v24, %v5582_v49  ;;  %v5595_v44 = vrot.slane %v5593_v11, 4  ;;  %v5830_v42 = vpop.permute.xlu0 %5829  ;;  %v2334_v35 = vsel %vm9009_vm2, %v2329_v23, %v2333_v6  ;;  %v5601_v59 = vrot.slane %v5599_v34, 5  ;;  %v8256_v58 = vld [vmem:[%s8997_s30 + $0x88] sm:$0xf]  ;;  %v8257_v39 = vld [vmem:[%s8997_s30 + $0x8c] sm:$0x1] }
 0x20d   : > { %6193 = vst.msk [vmem:[#allocation2 + $0x20] sm:$0xff] %vm6188_vm10, %v6149_v12  ;;  %v2344_v52 = vsel %vm9009_vm2, %v2339_v56, %v2343_v20  ;;  %v2348_v54 = vrot.slane %v2346_v46, 4  ;;  %v2351_v13 = vrot.slane %v2349_v45, 5  ;;  %v2355_v28 = vshll.u32 %v7689_v22, 16  ;;  %v7753_v12 = vld [vmem:[%s8997_s30 + $0x94] sm:$0xf] }
 0x20e   : > { %5873 = vst.msk [vmem:[#allocation2 + $0x28] sm:$0xff] %vm5867_vm9, %v5830_v42  ;;  %v7713_v62 = vcombine.low %v2334_v35, %v2344_v52  ;;  %v5587_v61 = vrot.slane %v5586_v29, 4  ;;  %v5596_v8 = vor.u32 %v5595_v44, %v5591_v33  ;;  %v2359_v36 = vshrl.u32 %v7689_v22, 16  ;;  %v7752_v22 = vld [vmem:[%s8997_s30 + $0x90] sm:$0xe] }
 0x20f   : > { %v2365_v38 = vshll.u32 %v7690_v60, 16  ;;  %v7777_v10 = vrot.slane %v7749_v50, 9  ;;  %1990 = vrot.lane.b32.xlu0 %v8769_v37, %s8902_s7  ;;  %v2352_v27 = vor.u32 %v2351_v13, %v2348_v54  ;;  %v2746_v43 = vrot.slane %v7750_v47, 5  ;;  %v7754_v45 = vld [vmem:[%s8997_s30 + $0x98] sm:$0x1] }
 0x210   : > { %2533 = vrot.lane.b32.xlu1 %v7713_v62, %s8903_s8  ;;  %v5592_v32 = vsel %vm9009_vm2, %v5587_v61, %v5591_v33  ;;  %v5597_v57 = vrot.slane %v5596_v8, 4  ;;  %v2849_v4 = vpop.permute.xlu0 %2848  ;;  %v2357_v48 = vrot.slane %v2355_v28, 5  ;;  %v2361_v40 = vrot.slane %v2359_v36, 4  ;;  %v7829_v50 = vld [vmem:[%s8997_s30 + $0x84] sm:$0xe] }
 0x211   : > { %v2367_v2 = vrot.slane %v2365_v38, 5  ;;  %v2749_v14 = vrot.slane %v7751_v31, 5  ;;  %2890 = vst.msk [vmem:[#allocation2 + $0x38] sm:$0xff] %vm2882_vm15, %v2849_v4  ;;  %v2353_v25 = vrot.slane %v2352_v27, 4  ;;  %v2747_v5 = vsel %vm9129_vm5, %v7777_v10, %v2746_v43  ;;  %v7830_v31 = vld [vmem:[%s8997_s30 + $0x88] sm:$0xf] }
 0x212   : > { %v5602_v19 = vsel %vm9009_vm2, %v5597_v57, %v5601_v59  ;;  %v2748_v6 = vrot.slane %v2746_v43, 4  ;;  %v2362_v41 = vor.u32 %v2361_v40, %v2357_v48  ;;  %v5604_v1 = vshrl.u32 %v8194_v21, 16  ;;  %v7831_v57 = vld [vmem:[%s8997_s30 + $0x8c] sm:$0x3]  ;;  %v8259_v40 = vld [vmem:[%s8997_s30 + $0x94] sm:$0xf] }
 0x213   : > { %v8223_v15 = vcombine.low %v5592_v32, %v5602_v19  ;;  %v5607_v55 = vshll.u32 %v8194_v21, 16  ;;  %5292 = vrot.lane.b32.xlu0 %v8770_v9, %s8910_s23  ;;  %v2358_v3 = vsel %vm9009_vm2, %v2353_v25, %v2357_v48  ;;  %v5613_v30 = vshll.u32 %v8195_v7, 16  ;;  %v8258_v48 = vld [vmem:[%s8997_s30 + $0x90] sm:$0xe] }
 0x214   : > { %v2750_v16 = vsel %vm9129_vm5, %v2748_v6, %v2749_v14  ;;  %v5617_v17 = vshrl.u32 %v8195_v7, 16  ;;  %v6151_v20 = vpop.permute.xlu0 %6150  ;;  %v2363_v49 = vrot.slane %v2362_v41, 4  ;;  %v5606_v53 = vrot.slane %v5604_v1, 4  ;;  %v8335_v1 = vld [vmem:[%s8997_s30 + $0x84] sm:$0xe] }
 0x215   : > { %5835 = vrot.lane.b32.xlu1 %v8223_v15, %s8911_s26  ;;  %v7793_v24 = vcombine.low %v2747_v5, %v2750_v16  ;;  %v5609_v11 = vrot.slane %v5607_v55, 5  ;;  %v3456_v23 = vpop.permute.xlu1 %3455  ;;  %6194 = vst.msk [vmem:[#allocation2 + $0x28] sm:$0xff] %vm6188_vm10, %v6151_v20  ;;  %v5615_v56 = vrot.slane %v5613_v30, 5  ;;  %v5623_v60 = vshll.u32 %v8196_v51, 16  ;;  %v8260_v5 = vld [vmem:[%s8997_s30 + $0x98] sm:$0x1] }
 0x216   : > { %v5619_v34 = vrot.slane %v5617_v17, 4  ;;  %v8287_v46 = vrot.slane %v8255_v18, 9  ;;  %3498 = vst.msk [vmem:[#allocation2 + $0x30] sm:$0xff] %vm3491_vm0, %v3456_v23  ;;  %v2368_v37 = vsel %vm9009_vm2, %v2363_v49, %v2367_v2  ;;  %v6038_v33 = vrot.slane %v8256_v58, 5  ;;  %v8336_v30 = vld [vmem:[%s8997_s30 + $0x88] sm:$0xf] }
 0x217   : > { %v5610_v29 = vor.u32 %v5609_v11, %v5606_v53  ;;  %v6041_v44 = vrot.slane %v8257_v39, 5  ;;  %v7714_v42 = vcombine.low %v2358_v3, %v2368_v37  ;;  %v5625_v52 = vrot.slane %v5623_v60, 5  ;;  %v8337_v23 = vld [vmem:[%s8997_s30 + $0x8c] sm:$0x3]  ;;  %v7832_v37 = vld [vmem:[%s8997_s30 + $0x90] sm:$0xe] }
 0x218   : > { %v5620_v35 = vor.u32 %v5619_v34, %v5615_v56  ;;  %v7778_v59 = vrot.slane %v7752_v22, 9  ;;  %v6039_v47 = vsel %vm9129_vm5, %v8287_v46, %v6038_v33  ;;  %v6040_v62 = vrot.slane %v6038_v33, 4 }
 0x219   : > { %2854 = vrot.lane.b32.xlu1 %v7793_v24, %s8904_s9  ;;  %v5611_v54 = vrot.slane %v5610_v29, 4  ;;  %v2753_v61 = vrot.slane %v7753_v12, 5  ;;  %2535 = vrot.lane.b32.xlu0 %v7714_v42, %s8903_s8  ;;  %v2756_v13 = vrot.slane %v7754_v45, 5  ;;  %v3228_v28 = vshrl.u32 %v7829_v50, 16 }
 0x21a   : > { %v5621_v8 = vrot.slane %v5620_v35, 4  ;;  %v3231_v36 = vshll.u32 %v7829_v50, 16  ;;  %v6042_v10 = vsel %vm9129_vm5, %v6040_v62, %v6041_v44  ;;  %v3237_v19 = vshrl.u32 %v7830_v31, 16 }
 0x21b   : > { %v5616_v38 = vsel %vm9009_vm2, %v5611_v54, %v5615_v56  ;;  %v2754_v9 = vsel %vm9129_vm5, %v7778_v59, %v2753_v61  ;;  %v2755_v32 = vrot.slane %v2753_v61, 4  ;;  %v8303_v43 = vcombine.low %v6039_v47, %v6042_v10  ;;  %v7833_v59 = vld [vmem:[%s8997_s30 + $0x94] sm:$0xf] }
 0x21c   : > { %v5626_v27 = vsel %vm9009_vm2, %v5621_v8, %v5625_v52  ;;  %v3230_v21 = vrot.slane %v3228_v28, 5  ;;  %v3233_v4 = vrot.slane %v3231_v36, 6  ;;  %v6758_v2 = vpop.permute.xlu1 %6757  ;;  %v3240_v25 = vshll.u32 %v7830_v31, 16 }
 0x21d   : > { %v8224_v14 = vcombine.low %v5616_v38, %v5626_v27  ;;  %v2757_v7 = vsel %vm9129_vm5, %v2755_v32, %v2756_v13  ;;  %6802 = vst.msk [vmem:[#allocation2 + $0x20] sm:$0xff] %vm6797_vm11, %v6758_v2  ;;  %6156 = vrot.lane.b32.xlu1 %v8303_v43, %s8912_s27  ;;  %v3247_v41 = vshrl.u32 %v7831_v57, 16  ;;  %v3250_v51 = vshll.u32 %v7831_v57, 16  ;;  %v7834_v38 = vld [vmem:[%s8997_s30 + $0x98] sm:$0x3] }
 0x21e   : > { %v7794_v6 = vcombine.low %v2754_v9, %v2757_v7  ;;  %v3234_v15 = vor.u32 %v3233_v4, %v3230_v21  ;;  %v3239_v55 = vrot.slane %v3237_v19, 5  ;;  %v3242_v18 = vrot.slane %v3240_v25, 6  ;;  %v8338_v21 = vld [vmem:[%s8997_s30 + $0x90] sm:$0xe] }
 0x21f   : > { %5837 = vrot.lane.b32.xlu0 %v8224_v14, %s8911_s26  ;;  %v8288_v3 = vrot.slane %v8258_v48, 9  ;;  %v6045_v16 = vrot.slane %v8259_v40, 5  ;;  %v3249_v58 = vrot.slane %v3247_v41, 5  ;;  %v3252_v39 = vrot.slane %v3250_v51, 6  ;;  %v8339_v41 = vld [vmem:[%s8997_s30 + $0x94] sm:$0xf] }
 0x220   : > { %v3235_v17 = vrot.slane %v3234_v15, 4  ;;  %v6048_v20 = vrot.slane %v8260_v5, 5  ;;  %v3458_v49 = vpop.permute.xlu0 %3457  ;;  %v3634_v24 = vpop.permute.xlu1 %3633  ;;  %v3243_v53 = vor.u32 %v3242_v18, %v3239_v55  ;;  %v6478_v56 = vshrl.u32 %v8335_v1, 16 }
 0x221   : > { %v6046_v11 = vsel %vm9129_vm5, %v8288_v3, %v6045_v16  ;;  %v6047_v22 = vrot.slane %v6045_v16, 4  ;;  %3499 = vst.msk [vmem:[#allocation2 + $0x38] sm:$0xff] %vm3491_vm0, %v3458_v49  ;;  %v3253_v34 = vor.u32 %v3252_v39, %v3249_v58  ;;  %v6481_v60 = vshll.u32 %v8335_v1, 16  ;;  %v8340_v3 = vld [vmem:[%s8997_s30 + $0x98] sm:$0x3] }
 0x222   : > { %3676 = vst.msk [vmem:[#allocation2 + $0x30] sm:$0xff] %vm3669_vm1, %v3634_v24  ;;  %v6487_v46 = vshrl.u32 %v8336_v30, 16  ;;  %v6490_v12 = vshll.u32 %v8336_v30, 16  ;;  %v3244_v29 = vsel %vm9272_vm8, %v3235_v17, %v3243_v53  ;;  %v3245_v33 = vrot.slane %v3243_v53, 4  ;;  %v7941_v49 = vld [vmem:[%s8997_s30 + $0x90] sm:$0xf] }
 0x223   : > { %2856 = vrot.lane.b32.xlu0 %v7794_v6, %s8904_s9  ;;  %v6049_v44 = vsel %vm9129_vm5, %v6047_v22, %v6048_v20  ;;  %v6480_v45 = vrot.slane %v6478_v56, 5  ;;  %v6483_v42 = vrot.slane %v6481_v60, 6  ;;  %v6497_v61 = vshrl.u32 %v8337_v23, 16  ;;  %v8771_v60 = vld [vmem:[%s8997_s30 + $0x90] sm:$0xff]  }
 0x224   : > { %v8304_v50 = vcombine.low %v6046_v11, %v6049_v44  ;;  %v6489_v35 = vrot.slane %v6487_v46, 5  ;;  %v6492_v52 = vrot.slane %v6490_v12, 6  ;;  %v3636_v54 = vpop.permute.xlu1 %3635  ;;  %v6818_v47 = vld [vmem:[#allocation2 + $0x20] sm:$0xff]  ;;  %v3254_v62 = vsel %vm9272_vm8, %v3245_v33, %v3253_v34 }
 0x225   : > { %v6500_v8 = vshll.u32 %v8337_v23, 16  ;;  %v3256_v13 = vshrl.u32 %v7832_v37, 16  ;;  %3677 = vst.msk [vmem:[#allocation2 + $0x38] sm:$0xff] %vm3669_vm1, %v3636_v54  ;;  %8598 = vmatprep.mubr.bf16.mxu0 %v6818_v47  ;;  %v7857_v31 = vcombine.low %v3244_v29, %v3254_v62  ;;  %v6484_v28 = vor.u32 %v6483_v42, %v6480_v45  ;;  %v6760_v9 = vpop.permute.xlu0 %6759  ;;  %v7942_v23 = vld [vmem:[%s8997_s30 + $0x94] sm:$0xf] }
 0x226   : > { %v6493_v36 = vor.u32 %v6492_v52, %v6489_v35  ;;  %v3259_v10 = vshll.u32 %v7832_v37, 16  ;;  %v6499_v32 = vrot.slane %v6497_v61, 5  ;;  %v3265_v43 = vshrl.u32 %v7833_v59, 16  ;;  %6803 = vst.msk [vmem:[#allocation2 + $0x28] sm:$0xff] %vm6797_vm11, %v6760_v9  ;;  %v7944_v42 = vld [vmem:[%s8997_s30 + $0x9c] sm:$0xf] }
 0x227   : > { %6158 = vrot.lane.b32.xlu0 %v8304_v50, %s8912_s27  ;;  %v6502_v57 = vrot.slane %v6500_v8, 6  ;;  %v3258_v27 = vrot.slane %v3256_v13, 5  ;;  %3463 = vrot.lane.b32.xlu1 %v7857_v31, %s8905_s10  ;;  %v6485_v4 = vrot.slane %v6484_v28, 4  ;;  %v3268_v2 = vshll.u32 %v7833_v59, 16  ;;  %v7943_v47 = vld [vmem:[%s8997_s30 + $0x98] sm:$0x1] }
 0x228   : > { %v6495_v48 = vrot.slane %v6493_v36, 4  ;;  %v3261_v40 = vrot.slane %v3259_v10, 6  ;;  %v3267_v7 = vrot.slane %v3265_v43, 5  ;;  %v3275_v19 = vshrl.u32 %v7834_v38, 16 }
 0x229   : > { %v6503_v14 = vor.u32 %v6502_v57, %v6499_v32  ;;  %v3278_v25 = vshll.u32 %v7834_v38, 16  ;;  %v6494_v5 = vsel %vm9272_vm8, %v6485_v4, %v6493_v36  ;;  %v3270_v15 = vrot.slane %v3268_v2, 6  ;;  %v8772_v36 = vld [vmem:[%s8997_s30 + $0x9c] sm:$0xff]   ;;  %v7946_v4 = vld [vmem:[%s8997_s30 + $0xa4] sm:$0x1] }
 0x22a   : > { %v3262_v6 = vor.u32 %v3261_v40, %v3258_v27  ;;  %v6506_v51 = vshrl.u32 %v8338_v21, 16  ;;  %v3277_v55 = vrot.slane %v3275_v19, 5  ;;  %v6509_v16 = vshll.u32 %v8338_v21, 16  ;;  %v4179_v30 = vpop.permute.xlu0 %4178  ;;  %v7945_v32 = vld [vmem:[%s8997_s30 + $0xa0] sm:$0xf] }
 0x22b   : > { %v6504_v1 = vsel %vm9272_vm8, %v6495_v48, %v6503_v14  ;;  %v3280_v18 = vrot.slane %v3278_v25, 6  ;;  %v3271_v39 = vor.u32 %v3270_v15, %v3267_v7  ;;  %4221 = vst.msk [vmem:[#allocation2 + $0x30] sm:$0xff] %vm4214_vm3, %v4179_v30  ;;  %v6515_v11 = vshrl.u32 %v8339_v41, 16  ;;  %v8005_v19 = vld [vmem:[%s8997_s30 + $0x90] sm:$0xe] }
 0x22c   : > { %v8367_v17 = vcombine.low %v6494_v5, %v6504_v1  ;;  %v3263_v58 = vrot.slane %v3262_v6, 4  ;;  %v6508_v20 = vrot.slane %v6506_v51, 5  ;;  %v6511_v53 = vrot.slane %v6509_v16, 6  ;;  %v8008_v16 = vld [vmem:[%s8997_s30 + $0x9c] sm:$0xe] }
 0x22d   : > { %v3281_v24 = vor.u32 %v3280_v18, %v3277_v55  ;;  %v6518_v22 = vshll.u32 %v8339_v41, 16  ;;  %v3273_v34 = vrot.slane %v3271_v39, 4  ;;  %v6525_v46 = vshrl.u32 %v8340_v3, 16  ;;  %v6819_v29 = vld [vmem:[#allocation2 + $0x28] sm:$0xff]  ;;  %v8006_v41 = vld [vmem:[%s8997_s30 + $0x94] sm:$0xf] }
 0x22e   : > { %6765 = vrot.lane.b32.xlu1 %v8367_v17, %s8913_s28  ;;  %v3272_v56 = vsel %vm9272_vm8, %v3263_v58, %v3271_v39  ;;  %v6528_v12 = vshll.u32 %v8340_v3, 16  ;;  %v4181_v37 = vpop.permute.xlu1 %4180  ;;  %v6512_v33 = vor.u32 %v6511_v53, %v6508_v20  ;;  %v6517_v44 = vrot.slane %v6515_v11, 5  ;;  %v4500_v35 = vpop.permute.xlu0 %4499  ;;  %8599 = vmatmul.mubr.bf16.gmra.mrb[8].mxu0 %v6819_v29  ;;  %v8007_v3 = vld [vmem:[%s8997_s30 + $0x98] sm:$0x1] }
 0x22f   : > { %v6520_v45 = vrot.slane %v6518_v22, 6  ;;  %v3975_v50 = vshrl.u32 %v7941_v49, 16  ;;  %4222 = vst.msk [vmem:[#allocation2 + $0x38] sm:$0xff] %vm4214_vm3, %v4181_v37  ;;  %v3282_v52 = vsel %vm9272_vm8, %v3273_v34, %v3281_v24  ;;  %v6527_v59 = vrot.slane %v6525_v46, 5  ;;  %v8009_v22 = vld [vmem:[%s8997_s30 + $0xa0] sm:$0xf] }
 0x230   : > { %v6530_v54 = vrot.slane %v6528_v12, 6  ;;  %v3978_v62 = vshll.u32 %v7941_v49, 16  ;;  %4542 = vst.msk [vmem:[#allocation2 + $0x30] sm:$0xff] %vm4535_vm4, %v4500_v35  ;;  %v7858_v61 = vcombine.low %v3272_v56, %v3282_v52  ;;  %v6513_v8 = vrot.slane %v6512_v33, 4  ;;  %v8085_v37 = vld [vmem:[%s8997_s30 + $0x90] sm:$0xe] }
 0x231   : > { %v6521_v13 = vor.u32 %v6520_v45, %v6517_v44  ;;  %v3977_v31 = vrot.slane %v3975_v50, 4  ;;  %v3984_v10 = vshll.u32 %v7942_v23, 16  ;;  %v3988_v9 = vshrl.u32 %v7942_v23, 16  ;;  %v8010_v23 = vld [vmem:[%s8997_s30 + $0xa4] sm:$0x1] }
 0x232   : > { %3641 = vrot.lane.b32.xlu1 %v8771_v60, %s8906_s11  ;;  %v6531_v28 = vor.u32 %v6530_v54, %v6527_v59  ;;  %v3980_v38 = vrot.slane %v3978_v62, 5  ;;  %v4502_v57 = vpop.permute.xlu1 %4501  ;;  %3465 = vrot.lane.b32.xlu0 %v7858_v61, %s8905_s10  ;;  %v3994_v21 = vshll.u32 %v7943_v47, 16  ;;  %v3999_v48 = vshrl.u32 %v7944_v42, 16  ;;  %v8086_v54 = vld [vmem:[%s8997_s30 + $0x94] sm:$0xf] }
 0x233   : > { %v6522_v27 = vsel %vm9272_vm8, %v6513_v8, %v6521_v13  ;;  %v6523_v43 = vrot.slane %v6521_v13, 4  ;;  %4543 = vst.msk [vmem:[#allocation2 + $0x38] sm:$0xff] %vm4535_vm4, %v4502_v57  ;;  %v3986_v2 = vrot.slane %v3984_v10, 5  ;;  %v3990_v14 = vrot.slane %v3988_v9, 4  ;;  %v8087_v61 = vld [vmem:[%s8997_s30 + $0x98] sm:$0x3] }
 0x234   : > { %v3981_v40 = vor.u32 %v3980_v38, %v3977_v31  ;;  %v4002_v7 = vshll.u32 %v7944_v42, 16  ;;  %v3996_v5 = vrot.slane %v3994_v21, 5  ;;  %v4001_v6 = vrot.slane %v3999_v48, 4 }
 0x235   : > { %v6532_v25 = vsel %vm9272_vm8, %v6523_v43, %v6531_v28  ;;  %v4008_v15 = vshll.u32 %v7945_v32, 16  ;;  %v3991_v55 = vor.u32 %v3990_v14, %v3986_v2  ;;  %v4012_v58 = vshrl.u32 %v7945_v32, 16  ;;  %v8088_v43 = vld [vmem:[%s8997_s30 + $0x9c] sm:$0xe] }
 0x236   : > { %v8368_v51 = vcombine.low %v6522_v27, %v6532_v25  ;;  %3643 = vrot.lane.b32.xlu1 %v8772_v36, %s8906_s11  ;;  %v3982_v1 = vrot.slane %v3981_v40, 4  ;;  %v4004_v18 = vrot.slane %v4002_v7, 5  ;;  %v1985_v30 = vpop.permute.xlu1 %1984  ;;  %v4018_v39 = vshll.u32 %v7946_v4, 16 }
 0x237   : > { %v4010_v17 = vrot.slane %v4008_v15, 5  ;;  %v8033_v20 = vrot.slane %v8005_v19, 9  ;;  %2025 = vst.msk [vmem:[#allocation2 + $0x40] sm:$0xff] %vm2016_vm13, %v1985_v30  ;;  %v3992_v24 = vrot.slane %v3991_v55, 4  ;;  %v4399_v11 = vrot.slane %v8006_v41, 5  ;;  %v5109_v56 = vpop.permute.xlu0 %5108 }
 0x238   : > { %6767 = vrot.lane.b32.xlu0 %v8368_v51, %s8913_s28  ;;  %v3987_v49 = vsel %vm9009_vm2, %v3982_v1, %v3986_v2  ;;  %v4005_v53 = vor.u32 %v4004_v18, %v4001_v6  ;;  %v4014_v34 = vrot.slane %v4012_v58, 4  ;;  %v4020_v60 = vrot.slane %v4018_v39, 5  ;;  %5151 = vst.msk [vmem:[#allocation2 + $0x30] sm:$0xff] %vm5144_vm6, %v5109_v56  ;;  %v8089_v2 = vld [vmem:[%s8997_s30 + $0xa0] sm:$0xf] }
 0x239   : > { %v4402_v46 = vrot.slane %v8007_v3, 5  ;;  %v8034_v12 = vrot.slane %v8008_v16, 9  ;;  %v3997_v29 = vsel %vm9009_vm2, %v3992_v24, %v3996_v5  ;;  %v4400_v44 = vsel %vm9129_vm5, %v8033_v20, %v4399_v11  ;;  %v8090_v5 = vld [vmem:[%s8997_s30 + $0xa4] sm:$0x3]  ;;  %v7691_v30 = vld [vmem:[%s8997_s30 + $0x9c] sm:$0xf] }
 0x23a   : > { %v4006_v33 = vrot.slane %v4005_v53, 4  ;;  %v4401_v45 = vrot.slane %v4399_v11, 4  ;;  %v5287_v50 = vpop.permute.xlu1 %5286  ;;  %v7969_v42 = vcombine.low %v3987_v49, %v3997_v29  ;;  %v4015_v35 = vor.u32 %v4014_v34, %v4010_v17 }
 0x23b   : > { %v4406_v52 = vrot.slane %v8009_v22, 5  ;;  %v4409_v59 = vrot.slane %v8010_v23, 5  ;;  %5329 = vst.msk [vmem:[#allocation2 + $0x30] sm:$0xff] %vm5322_vm7, %v5287_v50  ;;  %v4881_v8 = vshrl.u32 %v8085_v37, 16  ;;  %v4884_v13 = vshll.u32 %v8085_v37, 16  ;;  %v5111_v31 = vpop.permute.xlu0 %5110  ;;  %v8773_v37 = vld [vmem:[%s8997_s30 + $0x9c] sm:$0xff]  }
 0x23c   : > { %v4011_v47 = vsel %vm9009_vm2, %v4006_v33, %v4010_v17  ;;  %v4403_v62 = vsel %vm9129_vm5, %v4401_v45, %v4402_v46  ;;  %4186 = vrot.lane.b32.xlu0 %v7969_v42, %s8907_s18  ;;  %v4016_v28 = vrot.slane %v4015_v35, 4  ;;  %5152 = vst.msk [vmem:[#allocation2 + $0x38] sm:$0xff] %vm5144_vm6, %v5111_v31  ;;  %v4890_v57 = vshrl.u32 %v8086_v54, 16  ;;  %v7692_v23 = vld [vmem:[%s8997_s30 + $0xa0] sm:$0xf] }
 0x23d   : > { %v8049_v36 = vcombine.low %v4400_v44, %v4403_v62  ;;  %v4407_v38 = vsel %vm9129_vm5, %v8034_v12, %v4406_v52  ;;  %v4408_v10 = vrot.slane %v4406_v52, 4  ;;  %v4883_v9 = vrot.slane %v4881_v8, 5  ;;  %v7693_v45 = vld [vmem:[%s8997_s30 + $0xa4] sm:$0x1]  ;;  %v8774_v31 = vld [vmem:[%s8997_s30 + $0x9c] sm:$0xff]  }
 0x23e   : > { %v4886_v32 = vrot.slane %v4884_v13, 6  ;;  %v4893_v27 = vshll.u32 %v8086_v54, 16  ;;  %v4021_v21 = vsel %vm9009_vm2, %v4016_v28, %v4020_v60  ;;  %v4900_v48 = vshrl.u32 %v8087_v61, 16 }
 0x23f   : > { %v4410_v4 = vsel %vm9129_vm5, %v4408_v10, %v4409_v59  ;;  %v4903_v40 = vshll.u32 %v8087_v61, 16  ;;  %v7970_v14 = vcombine.low %v4011_v47, %v4021_v21  ;;  %v4892_v25 = vrot.slane %v4890_v57, 5  ;;  %v1987_v6 = vpop.permute.xlu0 %1986  ;;  %v8197_v47 = vld [vmem:[%s8997_s30 + $0x9c] sm:$0xf] }
 0x240   : > { %v8050_v7 = vcombine.low %v4407_v38, %v4410_v4  ;;  %v4887_v19 = vor.u32 %v4886_v32, %v4883_v9  ;;  %4507 = vrot.lane.b32.xlu0 %v8049_v36, %s8908_s19  ;;  %v4895_v15 = vrot.slane %v4893_v27, 6  ;;  %v4902_v41 = vrot.slane %v4900_v48, 5  ;;  %2026 = vst.msk [vmem:[#allocation2 + $0x48] sm:$0xff] %vm2016_vm13, %v1987_v6  ;;  %v8198_v9 = vld [vmem:[%s8997_s30 + $0xa0] sm:$0xf] }
 0x241   : > { %v4905_v51 = vrot.slane %v4903_v40, 6  ;;  %v4909_v1 = vshrl.u32 %v8088_v43, 16  ;;  %4188 = vrot.lane.b32.xlu1 %v7970_v14, %s8907_s18  ;;  %v4912_v18 = vshll.u32 %v8088_v43, 16  ;;  %v4918_v3 = vshrl.u32 %v8089_v2, 16  ;;  %v2530_v17 = vpop.permute.xlu1 %2529  ;;  %v8199_v27 = vld [vmem:[%s8997_s30 + $0xa4] sm:$0x1] }
 0x242   : > { %v4888_v55 = vrot.slane %v4887_v19, 4  ;;  %v4921_v16 = vshll.u32 %v8089_v2, 16  ;;  %v4896_v58 = vor.u32 %v4895_v15, %v4892_v25  ;;  %v4928_v49 = vshrl.u32 %v8090_v5, 16  ;;  %2570 = vst.msk [vmem:[#allocation2 + $0x40] sm:$0xff] %vm2561_vm14, %v2530_v17  ;;  %v7694_v4 = vld [vmem:[%s8997_s30 + $0xa8] sm:$0xf] }
 0x243   : > { %v4906_v39 = vor.u32 %v4905_v51, %v4902_v41  ;;  %v4911_v20 = vrot.slane %v4909_v1, 5  ;;  %v4914_v24 = vrot.slane %v4912_v18, 6  ;;  %v4920_v53 = vrot.slane %v4918_v3, 5  ;;  %v5289_v56 = vpop.permute.xlu0 %5288  ;;  %v7695_v41 = vld [vmem:[%s8997_s30 + $0xac] sm:$0xf] }
 0x244   : > { %v4923_v11 = vrot.slane %v4921_v16, 6  ;;  %v4931_v22 = vshll.u32 %v8090_v5, 16  ;;  %v4897_v34 = vsel %vm9272_vm8, %v4888_v55, %v4896_v58  ;;  %v4898_v60 = vrot.slane %v4896_v58, 4  ;;  %5330 = vst.msk [vmem:[#allocation2 + $0x38] sm:$0xff] %vm5322_vm7, %v5289_v56  ;;  %v7696_v18 = vld [vmem:[%s8997_s30 + $0xb0] sm:$0x1] }
 0x245   : > { %v4930_v46 = vrot.slane %v4928_v49, 5  ;;  %v2370_v12 = vshrl.u32 %v7691_v30, 16  ;;  %4509 = vrot.lane.b32.xlu1 %v8050_v7, %s8908_s19  ;;  %v4915_v29 = vor.u32 %v4914_v24, %v4911_v20  ;;  %v2373_v50 = vshll.u32 %v7691_v30, 16  ;;  %v5832_v42 = vpop.permute.xlu1 %5831  ;;  %v8775_v16 = vld [vmem:[%s8997_s30 + $0xa8] sm:$0xff]   ;;  %v7755_v20 = vld [vmem:[%s8997_s30 + $0x9c] sm:$0xe] }
 0x246   : > { %v4924_v33 = vor.u32 %v4923_v11, %v4920_v53  ;;  %v4933_v44 = vrot.slane %v4931_v22, 6  ;;  %v4907_v35 = vsel %vm9272_vm8, %v4898_v60, %v4906_v39  ;;  %v2379_v59 = vshll.u32 %v7692_v23, 16  ;;  %5874 = vst.msk [vmem:[#allocation2 + $0x30] sm:$0xff] %vm5867_vm9, %v5832_v42 }
 0x247   : > { %v2372_v52 = vrot.slane %v2370_v12, 4  ;;  %v2383_v54 = vshrl.u32 %v7692_v23, 16  ;;  %v8113_v62 = vcombine.low %v4897_v34, %v4907_v35  ;;  %v4916_v61 = vrot.slane %v4915_v29, 4  ;;  %v7756_v23 = vld [vmem:[%s8997_s30 + $0xa0] sm:$0xf] }
 0x248   : > { %v4926_v8 = vrot.slane %v4924_v33, 4  ;;  %v4934_v13 = vor.u32 %v4933_v44, %v4930_v46  ;;  %v2375_v28 = vrot.slane %v2373_v50, 5  ;;  %v2381_v36 = vrot.slane %v2379_v59, 5  ;;  %v7757_v12 = vld [vmem:[%s8997_s30 + $0xa4] sm:$0x1]  ;;  %v8776_v50 = vld [vmem:[%s8997_s30 + $0xa8] sm:$0xff]  }
 0x249   : > { %v2385_v38 = vrot.slane %v2383_v54, 4  ;;  %v2389_v10 = vshll.u32 %v7693_v45, 16  ;;  %5116 = vrot.lane.b32.xlu0 %v8113_v62, %s8909_s21  ;;  %1992 = vrot.lane.b32.xlu1 %v8773_v37, %s8902_s7  ;;  %v4925_v32 = vsel %vm9272_vm8, %v4916_v61, %v4924_v33  ;;  %v5628_v43 = vshrl.u32 %v8197_v47, 16  ;;  %v2532_v48 = vpop.permute.xlu0 %2531  ;;  %v2851_v40 = vpop.permute.xlu1 %2850  ;;  %v8200_v54 = vld [vmem:[%s8997_s30 + $0xa8] sm:$0xf] }
 0x24a   : > { %v4935_v57 = vsel %vm9272_vm8, %v4926_v8, %v4934_v13  ;;  %v5631_v21 = vshll.u32 %v8197_v47, 16  ;;  %v2376_v14 = vor.u32 %v2375_v28, %v2372_v52  ;;  %2571 = vst.msk [vmem:[#allocation2 + $0x48] sm:$0xff] %vm2561_vm14, %v2532_v48  ;;  %v5637_v6 = vshll.u32 %v8198_v9, 16  ;;  %v8201_v13 = vld [vmem:[%s8997_s30 + $0xac] sm:$0xf] }
 0x24b   : > { %v8114_v2 = vcombine.low %v4925_v32, %v4935_v57  ;;  %v2386_v7 = vor.u32 %v2385_v38, %v2381_v36  ;;  %v2391_v19 = vrot.slane %v2389_v10, 5  ;;  %2891 = vst.msk [vmem:[#allocation2 + $0x40] sm:$0xff] %vm2882_vm15, %v2851_v40  ;;  %v5630_v25 = vrot.slane %v5628_v43, 4  ;;  %v8202_v57 = vld [vmem:[%s8997_s30 + $0xb0] sm:$0x1] }
 0x24c   : > { %v5633_v5 = vrot.slane %v5631_v21, 5  ;;  %v5641_v15 = vshrl.u32 %v8198_v9, 16  ;;  %v2377_v51 = vrot.slane %v2376_v14, 4  ;;  %v5647_v55 = vshll.u32 %v8199_v27, 16  ;;  %v8261_v21 = vld [vmem:[%s8997_s30 + $0x9c] sm:$0xe] }
 0x24d   : > { %v2387_v1 = vrot.slane %v2386_v7, 4  ;;  %v2394_v3 = vshrl.u32 %v7694_v4, 16  ;;  %5118 = vrot.lane.b32.xlu0 %v8114_v2, %s8909_s21  ;;  %5294 = vrot.lane.b32.xlu1 %v8774_v31, %s8910_s23  ;;  %v5639_v17 = vrot.slane %v5637_v6, 5  ;;  %v2397_v39 = vshll.u32 %v7694_v4, 16  ;;  %v6153_v49 = vpop.permute.xlu1 %6152  ;;  %v8262_v14 = vld [vmem:[%s8997_s30 + $0xa0] sm:$0xf] }
 0x24e   : > { %v5634_v30 = vor.u32 %v5633_v5, %v5630_v25  ;;  %v5643_v58 = vrot.slane %v5641_v15, 4  ;;  %v2382_v24 = vsel %vm9009_vm2, %v2377_v51, %v2381_v36  ;;  %v5649_v11 = vrot.slane %v5647_v55, 5  ;;  %6195 = vst.msk [vmem:[#allocation2 + $0x30] sm:$0xff] %vm6188_vm10, %v6153_v49  ;;  %v8263_v7 = vld [vmem:[%s8997_s30 + $0xa4] sm:$0x1] }
 0x24f   : > { %v2392_v53 = vsel %vm9009_vm2, %v2387_v1, %v2391_v19  ;;  %v2396_v22 = vrot.slane %v2394_v3, 4  ;;  %v2399_v46 = vrot.slane %v2397_v39, 5  ;;  %v2403_v29 = vshll.u32 %v7695_v41, 16  ;;  %v7758_v15 = vld [vmem:[%s8997_s30 + $0xa8] sm:$0xe] }
 0x250   : > { %v7715_v56 = vcombine.low %v2382_v24, %v2392_v53  ;;  %v5635_v34 = vrot.slane %v5634_v30, 4  ;;  %v5644_v60 = vor.u32 %v5643_v58, %v5639_v17  ;;  %v5834_v37 = vpop.permute.xlu0 %5833  ;;  %v2407_v33 = vshrl.u32 %v7695_v41, 16  ;;  %v7835_v49 = vld [vmem:[%s8997_s30 + $0x9c] sm:$0xe] }
 0x251   : > { %v2413_v44 = vshll.u32 %v7696_v18, 16  ;;  %v7779_v45 = vrot.slane %v7755_v20, 9  ;;  %5875 = vst.msk [vmem:[#allocation2 + $0x38] sm:$0xff] %vm5867_vm9, %v5834_v37  ;;  %1994 = vrot.lane.b32.xlu0 %v8775_v16, %s8902_s7  ;;  %v2400_v52 = vor.u32 %v2399_v46, %v2396_v22  ;;  %v2760_v59 = vrot.slane %v7756_v23, 5  ;;  %v7759_v18 = vld [vmem:[%s8997_s30 + $0xac] sm:$0xf] }
 0x252   : > { %2537 = vrot.lane.b32.xlu1 %v7715_v56, %s8903_s8  ;;  %v5640_v42 = vsel %vm9009_vm2, %v5635_v34, %v5639_v17  ;;  %v5645_v35 = vrot.slane %v5644_v60, 4  ;;  %v2405_v47 = vrot.slane %v2403_v29, 5  ;;  %v2409_v62 = vrot.slane %v2407_v33, 4  ;;  %v7760_v20 = vld [vmem:[%s8997_s30 + $0xb0] sm:$0x1] }
 0x253   : > { %v2415_v61 = vrot.slane %v2413_v44, 5  ;;  %v2763_v8 = vrot.slane %v7757_v12, 5  ;;  %v2401_v28 = vrot.slane %v2400_v52, 4  ;;  %v2761_v36 = vsel %vm9129_vm5, %v7779_v45, %v2760_v59  ;;  %v7836_v37 = vld [vmem:[%s8997_s30 + $0xa0] sm:$0xf] }
 0x254   : > { %v5650_v31 = vsel %vm9009_vm2, %v5645_v35, %v5649_v11  ;;  %v2762_v38 = vrot.slane %v2760_v59, 4  ;;  %v2853_v10 = vpop.permute.xlu0 %2852  ;;  %v2410_v32 = vor.u32 %v2409_v62, %v2405_v47  ;;  %v5652_v27 = vshrl.u32 %v8200_v54, 16  ;;  %v7837_v35 = vld [vmem:[%s8997_s30 + $0xa4] sm:$0x3]  ;;  %v8264_v62 = vld [vmem:[%s8997_s30 + $0xa8] sm:$0xe] }
 0x255   : > { %v8225_v9 = vcombine.low %v5640_v42, %v5650_v31  ;;  %v5655_v43 = vshll.u32 %v8200_v54, 16  ;;  %2892 = vst.msk [vmem:[#allocation2 + $0x48] sm:$0xff] %vm2882_vm15, %v2853_v10  ;;  %5296 = vrot.lane.b32.xlu0 %v8776_v50, %s8910_s23  ;;  %v2406_v4 = vsel %vm9009_vm2, %v2401_v28, %v2405_v47  ;;  %v5661_v40 = vshll.u32 %v8201_v13, 16 }
 0x256   : > { %v2764_v48 = vsel %vm9129_vm5, %v2762_v38, %v2763_v8  ;;  %v5665_v2 = vshrl.u32 %v8201_v13, 16  ;;  %v2411_v19 = vrot.slane %v2410_v32, 4  ;;  %v5654_v5 = vrot.slane %v5652_v27, 4  ;;  %v8266_v38 = vld [vmem:[%s8997_s30 + $0xb0] sm:$0x1] }
 0x257   : > { %5839 = vrot.lane.b32.xlu1 %v8225_v9, %s8911_s26  ;;  %v7795_v25 = vcombine.low %v2761_v36, %v2764_v48  ;;  %v5657_v6 = vrot.slane %v5655_v43, 5  ;;  %v5663_v41 = vrot.slane %v5661_v40, 5  ;;  %v5671_v1 = vshll.u32 %v8202_v57, 16  ;;  %v8341_v27 = vld [vmem:[%s8997_s30 + $0x9c] sm:$0xe] }
 0x258   : > { %v5667_v51 = vrot.slane %v5665_v2, 4  ;;  %v8289_v55 = vrot.slane %v8261_v21, 9  ;;  %v3460_v3 = vpop.permute.xlu1 %3459  ;;  %v6155_v16 = vpop.permute.xlu0 %6154  ;;  %v2416_v30 = vsel %vm9009_vm2, %v2411_v19, %v2415_v61  ;;  %v6052_v58 = vrot.slane %v8262_v14, 5  ;;  %v8265_v61 = vld [vmem:[%s8997_s30 + $0xac] sm:$0xf] }
 0x259   : > { %v5658_v17 = vor.u32 %v5657_v6, %v5654_v5  ;;  %v6055_v39 = vrot.slane %v8263_v7, 5  ;;  %3500 = vst.msk [vmem:[#allocation2 + $0x40] sm:$0xff] %vm3491_vm0, %v3460_v3  ;;  %v7716_v24 = vcombine.low %v2406_v4, %v2416_v30  ;;  %v5673_v11 = vrot.slane %v5671_v1, 5  ;;  %v8342_v40 = vld [vmem:[%s8997_s30 + $0xa0] sm:$0xf] }
 0x25a   : > { %6196 = vst.msk [vmem:[#allocation2 + $0x38] sm:$0xff] %vm6188_vm10, %v6155_v16  ;;  %v5668_v53 = vor.u32 %v5667_v51, %v5663_v41  ;;  %v7780_v22 = vrot.slane %v7758_v15, 9  ;;  %v6053_v56 = vsel %vm9129_vm5, %v8289_v55, %v6052_v58  ;;  %v6054_v34 = vrot.slane %v6052_v58, 4  ;;  %v7838_v30 = vld [vmem:[%s8997_s30 + $0xa8] sm:$0xe] }
 0x25b   : > { %2858 = vrot.lane.b32.xlu1 %v7795_v25, %s8904_s9  ;;  %v5659_v23 = vrot.slane %v5658_v17, 4  ;;  %v2767_v60 = vrot.slane %v7759_v18, 5  ;;  %2539 = vrot.lane.b32.xlu0 %v7716_v24, %s8903_s8  ;;  %v2770_v12 = vrot.slane %v7760_v20, 5  ;;  %v3284_v29 = vshrl.u32 %v7835_v49, 16 }
 0x25c   : > { %v5669_v46 = vrot.slane %v5668_v53, 4  ;;  %v3287_v33 = vshll.u32 %v7835_v49, 16  ;;  %v6056_v45 = vsel %vm9129_vm5, %v6054_v34, %v6055_v39  ;;  %v3293_v28 = vshrl.u32 %v7836_v37, 16 }
 0x25d   : > { %v5664_v44 = vsel %vm9009_vm2, %v5659_v23, %v5663_v41  ;;  %v2768_v50 = vsel %vm9129_vm5, %v7780_v22, %v2767_v60  ;;  %v2769_v42 = vrot.slane %v2767_v60, 4  ;;  %v8305_v59 = vcombine.low %v6053_v56, %v6056_v45  ;;  %v6762_v8 = vpop.permute.xlu1 %6761  ;;  %v8343_v41 = vld [vmem:[%s8997_s30 + $0xa4] sm:$0x3]  ;;  %v7839_v22 = vld [vmem:[%s8997_s30 + $0xac] sm:$0xf] }
 0x25e   : > { %v5674_v52 = vsel %vm9009_vm2, %v5669_v46, %v5673_v11  ;;  %v3286_v54 = vrot.slane %v3284_v29, 5  ;;  %v3289_v47 = vrot.slane %v3287_v33, 6  ;;  %v3296_v36 = vshll.u32 %v7836_v37, 16  ;;  %6804 = vst.msk [vmem:[#allocation2 + $0x30] sm:$0xff] %vm6797_vm11, %v6762_v8 }
 0x25f   : > { %v8226_v13 = vcombine.low %v5664_v44, %v5674_v52  ;;  %v2771_v31 = vsel %vm9129_vm5, %v2769_v42, %v2770_v12  ;;  %6160 = vrot.lane.b32.xlu1 %v8305_v59, %s8912_s27  ;;  %v3303_v32 = vshrl.u32 %v7837_v35, 16  ;;  %v3306_v57 = vshll.u32 %v7837_v35, 16  ;;  %v7840_v44 = vld [vmem:[%s8997_s30 + $0xb0] sm:$0x3] }
 0x260   : > { %v7796_v10 = vcombine.low %v2768_v50, %v2771_v31  ;;  %v3290_v9 = vor.u32 %v3289_v47, %v3286_v54  ;;  %v3295_v43 = vrot.slane %v3293_v28, 5  ;;  %v3298_v21 = vrot.slane %v3296_v36, 6  ;;  %v8344_v54 = vld [vmem:[%s8997_s30 + $0xa8] sm:$0xe] }
 0x261   : > { %5841 = vrot.lane.b32.xlu0 %v8226_v13, %s8911_s26  ;;  %v8290_v4 = vrot.slane %v8264_v62, 9  ;;  %v6059_v48 = vrot.slane %v8265_v61, 5  ;;  %v3305_v14 = vrot.slane %v3303_v32, 5  ;;  %v3308_v7 = vrot.slane %v3306_v57, 6  ;;  %v3638_v25 = vpop.permute.xlu1 %3637  ;;  %v8345_v32 = vld [vmem:[%s8997_s30 + $0xac] sm:$0xf] }
 0x262   : > { %v3291_v2 = vrot.slane %v3290_v9, 4  ;;  %v6062_v19 = vrot.slane %v8266_v38, 5  ;;  %v3299_v5 = vor.u32 %v3298_v21, %v3295_v43  ;;  %v6534_v51 = vshrl.u32 %v8341_v27, 16  ;;  %3678 = vst.msk [vmem:[#allocation2 + $0x40] sm:$0xff] %vm3669_vm1, %v3638_v25  ;;  %v7947_v25 = vld [vmem:[%s8997_s30 + $0xa8] sm:$0xf] }
 0x263   : > { %v6060_v6 = vsel %vm9129_vm5, %v8290_v4, %v6059_v48  ;;  %v6061_v15 = vrot.slane %v6059_v48, 4  ;;  %v3462_v1 = vpop.permute.xlu0 %3461  ;;  %v3309_v55 = vor.u32 %v3308_v7, %v3305_v14  ;;  %v6537_v18 = vshll.u32 %v8341_v27, 16  ;;  %v8346_v4 = vld [vmem:[%s8997_s30 + $0xb0] sm:$0x3] }
 0x264   : > { %v6543_v3 = vshrl.u32 %v8342_v40, 16  ;;  %v6546_v16 = vshll.u32 %v8342_v40, 16  ;;  %3501 = vst.msk [vmem:[#allocation2 + $0x48] sm:$0xff] %vm3491_vm0, %v3462_v1  ;;  %v3300_v17 = vsel %vm9272_vm8, %v3291_v2, %v3299_v5  ;;  %v3301_v58 = vrot.slane %v3299_v5, 4 }
 0x265   : > { %2860 = vrot.lane.b32.xlu0 %v7796_v10, %s8904_s9  ;;  %v6063_v39 = vsel %vm9129_vm5, %v6061_v15, %v6062_v19  ;;  %v6536_v20 = vrot.slane %v6534_v51, 5  ;;  %v6539_v24 = vrot.slane %v6537_v18, 6  ;;  %v3640_v23 = vpop.permute.xlu1 %3639  ;;  %v6820_v56 = vld [vmem:[#allocation2 + $0x30] sm:$0xff]  ;;  %v6553_v60 = vshrl.u32 %v8343_v41, 16  ;;  %v7948_v51 = vld [vmem:[%s8997_s30 + $0xac] sm:$0xf] }
 0x266   : > { %v8306_v49 = vcombine.low %v6060_v6, %v6063_v39  ;;  %v6545_v53 = vrot.slane %v6543_v3, 5  ;;  %v6548_v11 = vrot.slane %v6546_v16, 6  ;;  %v3310_v34 = vsel %vm9272_vm8, %v3301_v58, %v3309_v55  ;;  %3679 = vst.msk [vmem:[#allocation2 + $0x48] sm:$0xff] %vm3669_vm1, %v3640_v23  ;;  %8602 = vmatprep.mubr.bf16.mxu0 %v6820_v56  ;;  %v8777_v18 = vld [vmem:[%s8997_s30 + $0xa8] sm:$0xff]   ;;  %v7949_v23 = vld [vmem:[%s8997_s30 + $0xb0] sm:$0x1] }
 0x267   : > { %v6556_v46 = vshll.u32 %v8343_v41, 16  ;;  %v3312_v12 = vshrl.u32 %v7838_v30, 16  ;;  %v7859_v37 = vcombine.low %v3300_v17, %v3310_v34  ;;  %v6540_v29 = vor.u32 %v6539_v24, %v6536_v20  ;;  %v6764_v50 = vpop.permute.xlu0 %6763 }
 0x268   : > { %v6549_v33 = vor.u32 %v6548_v11, %v6545_v53  ;;  %v3315_v45 = vshll.u32 %v7838_v30, 16  ;;  %v6555_v42 = vrot.slane %v6553_v60, 5  ;;  %v3321_v59 = vshrl.u32 %v7839_v22, 16  ;;  %6805 = vst.msk [vmem:[#allocation2 + $0x38] sm:$0xff] %vm6797_vm11, %v6764_v50 }
 0x269   : > { %6162 = vrot.lane.b32.xlu0 %v8306_v49, %s8912_s27  ;;  %v6558_v35 = vrot.slane %v6556_v46, 6  ;;  %v3314_v52 = vrot.slane %v3312_v12, 5  ;;  %3467 = vrot.lane.b32.xlu1 %v7859_v37, %s8905_s10  ;;  %v6541_v47 = vrot.slane %v6540_v29, 4  ;;  %v3324_v8 = vshll.u32 %v7839_v22, 16  ;;  %v7950_v49 = vld [vmem:[%s8997_s30 + $0xb4] sm:$0xf] }
 0x26a   : > { %v6551_v62 = vrot.slane %v6549_v33, 4  ;;  %v3317_v61 = vrot.slane %v3315_v45, 6  ;;  %v3323_v31 = vrot.slane %v3321_v59, 5  ;;  %v3331_v28 = vshrl.u32 %v7840_v44, 16 }
 0x26b   : > { %v6559_v13 = vor.u32 %v6558_v35, %v6555_v42  ;;  %v3334_v36 = vshll.u32 %v7840_v44, 16  ;;  %v6550_v38 = vsel %vm9272_vm8, %v6541_v47, %v6549_v33  ;;  %v3326_v9 = vrot.slane %v3324_v8, 6  ;;  %v8778_v33 = vld [vmem:[%s8997_s30 + $0xb4] sm:$0xff]  }
 0x26c   : > { %v3318_v10 = vor.u32 %v3317_v61, %v3314_v52  ;;  %v6562_v57 = vshrl.u32 %v8344_v54, 16  ;;  %v3333_v43 = vrot.slane %v3331_v28, 5  ;;  %v6565_v48 = vshll.u32 %v8344_v54, 16  ;;  %v7951_v42 = vld [vmem:[%s8997_s30 + $0xb8] sm:$0xf] }
 0x26d   : > { %v6560_v27 = vsel %vm9272_vm8, %v6551_v62, %v6559_v13  ;;  %v3336_v21 = vrot.slane %v3334_v36, 6  ;;  %v4183_v40 = vpop.permute.xlu0 %4182  ;;  %v3327_v7 = vor.u32 %v3326_v9, %v3323_v31  ;;  %v6571_v15 = vshrl.u32 %v8345_v32, 16  ;;  %v7952_v54 = vld [vmem:[%s8997_s30 + $0xbc] sm:$0x1]  ;;  %v8011_v31 = vld [vmem:[%s8997_s30 + $0xa8] sm:$0xe] }
 0x26e   : > { %v8369_v2 = vcombine.low %v6550_v38, %v6560_v27  ;;  %v3319_v14 = vrot.slane %v3318_v10, 4  ;;  %v6564_v19 = vrot.slane %v6562_v57, 5  ;;  %4223 = vst.msk [vmem:[#allocation2 + $0x40] sm:$0xff] %vm4214_vm3, %v4183_v40  ;;  %v6567_v6 = vrot.slane %v6565_v48, 6  ;;  %v8014_v48 = vld [vmem:[%s8997_s30 + $0xb4] sm:$0xe] }
 0x26f   : > { %v3337_v5 = vor.u32 %v3336_v21, %v3333_v43  ;;  %v6574_v41 = vshll.u32 %v8345_v32, 16  ;;  %v3329_v55 = vrot.slane %v3327_v7, 4  ;;  %v6581_v3 = vshrl.u32 %v8346_v4, 16  ;;  %v6821_v30 = vld [vmem:[#allocation2 + $0x38] sm:$0xff]  ;;  %v8012_v32 = vld [vmem:[%s8997_s30 + $0xac] sm:$0xf] }
 0x270   : > { %6769 = vrot.lane.b32.xlu1 %v8369_v2, %s8913_s28  ;;  %v3328_v1 = vsel %vm9272_vm8, %v3319_v14, %v3327_v7  ;;  %v6584_v16 = vshll.u32 %v8346_v4, 16  ;;  %v6568_v17 = vor.u32 %v6567_v6, %v6564_v19  ;;  %v6573_v58 = vrot.slane %v6571_v15, 5  ;;  %8603 = vmatmul.mubr.bf16.gmra.mrb[12].mxu0 %v6821_v30  ;;  %v8013_v4 = vld [vmem:[%s8997_s30 + $0xb0] sm:$0x1]  ;;  %v8015_v15 = vld [vmem:[%s8997_s30 + $0xb8] sm:$0xf] }
 0x271   : > { %v6576_v39 = vrot.slane %v6574_v41, 6  ;;  %v4023_v20 = vshrl.u32 %v7947_v25, 16  ;;  %v4504_v24 = vpop.permute.xlu0 %4503  ;;  %v3338_v53 = vsel %vm9272_vm8, %v3329_v55, %v3337_v5  ;;  %v6583_v11 = vrot.slane %v6581_v3, 5  ;;  %v4185_v34 = vpop.permute.xlu1 %4184  ;;  %v8016_v41 = vld [vmem:[%s8997_s30 + $0xbc] sm:$0x1] }
 0x272   : > { %v6586_v22 = vrot.slane %v6584_v16, 6  ;;  %v4026_v56 = vshll.u32 %v7947_v25, 16  ;;  %4544 = vst.msk [vmem:[#allocation2 + $0x40] sm:$0xff] %vm4535_vm4, %v4504_v24  ;;  %v7860_v60 = vcombine.low %v3328_v1, %v3338_v53  ;;  %v6569_v46 = vrot.slane %v6568_v17, 4  ;;  %v8091_v30 = vld [vmem:[%s8997_s30 + $0xa8] sm:$0xe] }
 0x273   : > { %v6577_v12 = vor.u32 %v6576_v39, %v6573_v58  ;;  %v4025_v37 = vrot.slane %v4023_v20, 4  ;;  %4224 = vst.msk [vmem:[#allocation2 + $0x48] sm:$0xff] %vm4214_vm3, %v4185_v34  ;;  %v4032_v45 = vshll.u32 %v7948_v51, 16  ;;  %v4036_v50 = vshrl.u32 %v7948_v51, 16  ;;  %v8093_v34 = vld [vmem:[%s8997_s30 + $0xb0] sm:$0x3] }
 0x274   : > { %3645 = vrot.lane.b32.xlu1 %v8777_v18, %s8906_s11  ;;  %v6587_v29 = vor.u32 %v6586_v22, %v6583_v11  ;;  %v4028_v44 = vrot.slane %v4026_v56, 5  ;;  %3469 = vrot.lane.b32.xlu0 %v7860_v60, %s8905_s10  ;;  %v4042_v59 = vshll.u32 %v7949_v23, 16  ;;  %v4047_v47 = vshrl.u32 %v7950_v49, 16  ;;  %v8092_v22 = vld [vmem:[%s8997_s30 + $0xac] sm:$0xf] }
 0x275   : > { %v6578_v35 = vsel %vm9272_vm8, %v6569_v46, %v6577_v12  ;;  %v6579_v52 = vrot.slane %v6577_v12, 4  ;;  %v4034_v61 = vrot.slane %v4032_v45, 5  ;;  %v4038_v8 = vrot.slane %v4036_v50, 4  ;;  %v4506_v28 = vpop.permute.xlu1 %4505 }
 0x276   : > { %v4029_v62 = vor.u32 %v4028_v44, %v4025_v37  ;;  %v4050_v13 = vshll.u32 %v7950_v49, 16  ;;  %v4044_v38 = vrot.slane %v4042_v59, 5  ;;  %v4049_v10 = vrot.slane %v4047_v47, 4  ;;  %4545 = vst.msk [vmem:[#allocation2 + $0x48] sm:$0xff] %vm4535_vm4, %v4506_v28  ;;  %v8094_v59 = vld [vmem:[%s8997_s30 + $0xb4] sm:$0xe] }
 0x277   : > { %v6588_v36 = vsel %vm9272_vm8, %v6579_v52, %v6587_v29  ;;  %v4056_v9 = vshll.u32 %v7951_v42, 16  ;;  %v4039_v43 = vor.u32 %v4038_v8, %v4034_v61  ;;  %v4060_v2 = vshrl.u32 %v7951_v42, 16  ;;  %v8095_v8 = vld [vmem:[%s8997_s30 + $0xb8] sm:$0xf] }
 0x278   : > { %v8370_v57 = vcombine.low %v6578_v35, %v6588_v36  ;;  %3647 = vrot.lane.b32.xlu1 %v8778_v33, %s8906_s11  ;;  %v4030_v27 = vrot.slane %v4029_v62, 4  ;;  %v4052_v21 = vrot.slane %v4050_v13, 5  ;;  %v4066_v14 = vshll.u32 %v7952_v54, 16 }
 0x279   : > { %v4058_v40 = vrot.slane %v4056_v9, 5  ;;  %v8035_v7 = vrot.slane %v8011_v31, 9  ;;  %v4040_v25 = vrot.slane %v4039_v43, 4  ;;  %v4413_v6 = vrot.slane %v8012_v32, 5  ;;  %v5113_v51 = vpop.permute.xlu0 %5112  ;;  %v1989_v1 = vpop.permute.xlu1 %1988 }
 0x27a   : > { %6771 = vrot.lane.b32.xlu0 %v8370_v57, %s8913_s28  ;;  %v4035_v19 = vsel %vm9009_vm2, %v4030_v27, %v4034_v61  ;;  %v4053_v5 = vor.u32 %v4052_v21, %v4049_v10  ;;  %v4062_v55 = vrot.slane %v4060_v2, 4  ;;  %v4068_v18 = vrot.slane %v4066_v14, 5  ;;  %5153 = vst.msk [vmem:[#allocation2 + $0x40] sm:$0xff] %vm5144_vm6, %v5113_v51  ;;  %v7697_v2 = vld [vmem:[%s8997_s30 + $0xb4] sm:$0xf] }
 0x27b   : > { %v4416_v3 = vrot.slane %v8013_v4, 5  ;;  %v8036_v16 = vrot.slane %v8014_v48, 9  ;;  %2027 = vst.msk [vmem:[#allocation2 + $0x50] sm:$0xff] %vm2016_vm13, %v1989_v1  ;;  %v4045_v17 = vsel %vm9009_vm2, %v4040_v25, %v4044_v38  ;;  %v4414_v39 = vsel %vm9129_vm5, %v8035_v7, %v4413_v6  ;;  %v8096_v38 = vld [vmem:[%s8997_s30 + $0xbc] sm:$0x3] }
 0x27c   : > { %v4054_v58 = vrot.slane %v4053_v5, 4  ;;  %v4415_v20 = vrot.slane %v4413_v6, 4  ;;  %v7971_v49 = vcombine.low %v4035_v19, %v4045_v17  ;;  %v4063_v24 = vor.u32 %v4062_v55, %v4058_v40  ;;  %v7698_v51 = vld [vmem:[%s8997_s30 + $0xb8] sm:$0xf] }
 0x27d   : > { %v4420_v53 = vrot.slane %v8015_v15, 5  ;;  %v4423_v11 = vrot.slane %v8016_v41, 5  ;;  %v4937_v60 = vshrl.u32 %v8091_v30, 16  ;;  %v4940_v46 = vshll.u32 %v8091_v30, 16  ;;  %v5115_v12 = vpop.permute.xlu0 %5114  ;;  %v5291_v37 = vpop.permute.xlu1 %5290  ;;  %v8779_v17 = vld [vmem:[%s8997_s30 + $0xb4] sm:$0xff]  }
 0x27e   : > { %v4059_v23 = vsel %vm9009_vm2, %v4054_v58, %v4058_v40  ;;  %v4417_v56 = vsel %vm9129_vm5, %v4415_v20, %v4416_v3  ;;  %4190 = vrot.lane.b32.xlu0 %v7971_v49, %s8907_s18  ;;  %v4064_v29 = vrot.slane %v4063_v24, 4  ;;  %5154 = vst.msk [vmem:[#allocation2 + $0x48] sm:$0xff] %vm5144_vm6, %v5115_v12  ;;  %v4946_v35 = vshrl.u32 %v8092_v22, 16  ;;  %v7699_v49 = vld [vmem:[%s8997_s30 + $0xbc] sm:$0x1] }
 0x27f   : > { %v8051_v33 = vcombine.low %v4414_v39, %v4417_v56  ;;  %v4421_v44 = vsel %vm9129_vm5, %v8036_v16, %v4420_v53  ;;  %v4422_v45 = vrot.slane %v4420_v53, 4  ;;  %5331 = vst.msk [vmem:[#allocation2 + $0x40] sm:$0xff] %vm5322_vm7, %v5291_v37  ;;  %v4939_v50 = vrot.slane %v4937_v60, 5  ;;  %v8203_v56 = vld [vmem:[%s8997_s30 + $0xb4] sm:$0xf] }
 0x280   : > { %v4942_v42 = vrot.slane %v4940_v46, 6  ;;  %v4949_v52 = vshll.u32 %v8092_v22, 16  ;;  %v4069_v54 = vsel %vm9009_vm2, %v4064_v29, %v4068_v18  ;;  %v4956_v62 = vshrl.u32 %v8093_v34, 16  ;;  %v8204_v37 = vld [vmem:[%s8997_s30 + $0xb8] sm:$0xf] }
 0x281   : > { %v4424_v47 = vsel %vm9129_vm5, %v4422_v45, %v4423_v11  ;;  %v4959_v61 = vshll.u32 %v8093_v34, 16  ;;  %v7972_v13 = vcombine.low %v4059_v23, %v4069_v54  ;;  %v4948_v36 = vrot.slane %v4946_v35, 5  ;;  %v1991_v10 = vpop.permute.xlu0 %1990  ;;  %v8780_v29 = vld [vmem:[%s8997_s30 + $0xb4] sm:$0xff]  }
 0x282   : > { %v8052_v31 = vcombine.low %v4421_v44, %v4424_v47  ;;  %v4943_v28 = vor.u32 %v4942_v42, %v4939_v50  ;;  %v2534_v9 = vpop.permute.xlu1 %2533  ;;  %4511 = vrot.lane.b32.xlu0 %v8051_v33, %s8908_s19  ;;  %v4951_v32 = vrot.slane %v4949_v52, 6  ;;  %v4958_v57 = vrot.slane %v4956_v62, 5  ;;  %2028 = vst.msk [vmem:[#allocation2 + $0x58] sm:$0xff] %vm2016_vm13, %v1991_v10  ;;  %v7700_v62 = vld [vmem:[%s8997_s30 + $0xc0] sm:$0xf] }
 0x283   : > { %v4961_v27 = vrot.slane %v4959_v61, 6  ;;  %v4965_v43 = vshrl.u32 %v8094_v59, 16  ;;  %2572 = vst.msk [vmem:[#allocation2 + $0x50] sm:$0xff] %vm2561_vm14, %v2534_v9  ;;  %4192 = vrot.lane.b32.xlu1 %v7972_v13, %s8907_s18  ;;  %v4968_v4 = vshll.u32 %v8094_v59, 16  ;;  %v4974_v48 = vshrl.u32 %v8095_v8, 16 }
 0x284   : > { %v4944_v21 = vrot.slane %v4943_v28, 4  ;;  %v4977_v40 = vshll.u32 %v8095_v8, 16  ;;  %v4952_v14 = vor.u32 %v4951_v32, %v4948_v36  ;;  %v4984_v25 = vshrl.u32 %v8096_v38, 16  ;;  %v8205_v59 = vld [vmem:[%s8997_s30 + $0xbc] sm:$0x1] }
 0x285   : > { %v4962_v7 = vor.u32 %v4961_v27, %v4958_v57  ;;  %v4967_v19 = vrot.slane %v4965_v43, 5  ;;  %v4970_v5 = vrot.slane %v4968_v4, 6  ;;  %v4976_v6 = vrot.slane %v4974_v48, 5  ;;  %v5293_v1 = vpop.permute.xlu0 %5292  ;;  %v7701_v32 = vld [vmem:[%s8997_s30 + $0xc4] sm:$0xf] }
 0x286   : > { %v4979_v15 = vrot.slane %v4977_v40, 6  ;;  %v4987_v41 = vshll.u32 %v8096_v38, 16  ;;  %v4953_v55 = vsel %vm9272_vm8, %v4944_v21, %v4952_v14  ;;  %v4954_v18 = vrot.slane %v4952_v14, 4  ;;  %5332 = vst.msk [vmem:[#allocation2 + $0x48] sm:$0xff] %vm5322_vm7, %v5293_v1  ;;  %v7702_v21 = vld [vmem:[%s8997_s30 + $0xc8] sm:$0x1] }
 0x287   : > { %v4986_v3 = vrot.slane %v4984_v25, 5  ;;  %v2418_v16 = vshrl.u32 %v7697_v2, 16  ;;  %v5836_v30 = vpop.permute.xlu1 %5835  ;;  %4513 = vrot.lane.b32.xlu1 %v8052_v31, %s8908_s19  ;;  %v4971_v58 = vor.u32 %v4970_v5, %v4967_v19  ;;  %v2421_v24 = vshll.u32 %v7697_v2, 16  ;;  %v8781_v48 = vld [vmem:[%s8997_s30 + $0xc0] sm:$0xff]   ;;  %v7761_v19 = vld [vmem:[%s8997_s30 + $0xb4] sm:$0xe] }
 0x288   : > { %v4980_v39 = vor.u32 %v4979_v15, %v4976_v6  ;;  %v4989_v20 = vrot.slane %v4987_v41, 6  ;;  %5876 = vst.msk [vmem:[#allocation2 + $0x40] sm:$0xff] %vm5867_vm9, %v5836_v30  ;;  %v4963_v53 = vsel %vm9272_vm8, %v4954_v18, %v4962_v7  ;;  %v2427_v22 = vshll.u32 %v7698_v51, 16  ;;  %v7763_v30 = vld [vmem:[%s8997_s30 + $0xbc] sm:$0x1] }
 0x289   : > { %v2420_v11 = vrot.slane %v2418_v16, 4  ;;  %v2431_v23 = vshrl.u32 %v7698_v51, 16  ;;  %v8115_v34 = vcombine.low %v4953_v55, %v4963_v53  ;;  %v4972_v60 = vrot.slane %v4971_v58, 4  ;;  %v7762_v51 = vld [vmem:[%s8997_s30 + $0xb8] sm:$0xf] }
 0x28a   : > { %v4982_v46 = vrot.slane %v4980_v39, 4  ;;  %v4990_v12 = vor.u32 %v4989_v20, %v4986_v3  ;;  %v2423_v33 = vrot.slane %v2421_v24, 5  ;;  %v2429_v44 = vrot.slane %v2427_v22, 5 }
 0x28b   : > { %v2433_v45 = vrot.slane %v2431_v23, 4  ;;  %v2437_v50 = vshll.u32 %v7699_v49, 16  ;;  %v2855_v42 = vpop.permute.xlu1 %2854  ;;  %5120 = vrot.lane.b32.xlu0 %v8115_v34, %s8909_s21  ;;  %1996 = vrot.lane.b32.xlu1 %v8779_v17, %s8902_s7  ;;  %v4981_v35 = vsel %vm9272_vm8, %v4972_v60, %v4980_v39  ;;  %v5676_v54 = vshrl.u32 %v8203_v56, 16  ;;  %v2536_v61 = vpop.permute.xlu0 %2535  ;;  %v8782_v49 = vld [vmem:[%s8997_s30 + $0xc0] sm:$0xff]  }
 0x28c   : > { %v4991_v52 = vsel %vm9272_vm8, %v4982_v46, %v4990_v12  ;;  %v5679_v47 = vshll.u32 %v8203_v56, 16  ;;  %2893 = vst.msk [vmem:[#allocation2 + $0x50] sm:$0xff] %vm2882_vm15, %v2855_v42  ;;  %v2424_v13 = vor.u32 %v2423_v33, %v2420_v11  ;;  %v5685_v10 = vshll.u32 %v8204_v37, 16  ;;  %v8206_v23 = vld [vmem:[%s8997_s30 + $0xc0] sm:$0xf] }
 0x28d   : > { %v8116_v8 = vcombine.low %v4981_v35, %v4991_v52  ;;  %v2434_v31 = vor.u32 %v2433_v45, %v2429_v44  ;;  %v2439_v28 = vrot.slane %v2437_v50, 5  ;;  %2573 = vst.msk [vmem:[#allocation2 + $0x58] sm:$0xff] %vm2561_vm14, %v2536_v61  ;;  %v5678_v36 = vrot.slane %v5676_v54, 4  ;;  %v8207_v12 = vld [vmem:[%s8997_s30 + $0xc4] sm:$0xf] }
 0x28e   : > { %v5681_v38 = vrot.slane %v5679_v47, 5  ;;  %v5689_v9 = vshrl.u32 %v8204_v37, 16  ;;  %v2425_v57 = vrot.slane %v2424_v13, 4  ;;  %v5695_v43 = vshll.u32 %v8205_v59, 16  ;;  %v8208_v50 = vld [vmem:[%s8997_s30 + $0xc8] sm:$0x1] }
 0x28f   : > { %v2435_v27 = vrot.slane %v2434_v31, 4  ;;  %v2442_v4 = vshrl.u32 %v7700_v62, 16  ;;  %5122 = vrot.lane.b32.xlu0 %v8116_v8, %s8909_s21  ;;  %5298 = vrot.lane.b32.xlu1 %v8780_v29, %s8910_s23  ;;  %v5687_v2 = vrot.slane %v5685_v10, 5  ;;  %v2445_v7 = vshll.u32 %v7700_v62, 16  ;;  %v6157_v25 = vpop.permute.xlu1 %6156  ;;  %v8267_v54 = vld [vmem:[%s8997_s30 + $0xb4] sm:$0xe] }
 0x290   : > { %v5682_v40 = vor.u32 %v5681_v38, %v5678_v36  ;;  %v5691_v14 = vrot.slane %v5689_v9, 4  ;;  %v2430_v5 = vsel %vm9009_vm2, %v2425_v57, %v2429_v44  ;;  %v5697_v15 = vrot.slane %v5695_v43, 5  ;;  %6197 = vst.msk [vmem:[#allocation2 + $0x40] sm:$0xff] %vm6188_vm10, %v6157_v25  ;;  %v8268_v47 = vld [vmem:[%s8997_s30 + $0xb8] sm:$0xf] }
 0x291   : > { %v2440_v6 = vsel %vm9009_vm2, %v2435_v27, %v2439_v28  ;;  %v2444_v41 = vrot.slane %v2442_v4, 4  ;;  %v5838_v1 = vpop.permute.xlu0 %5837  ;;  %v2447_v16 = vrot.slane %v2445_v7, 5  ;;  %v2451_v17 = vshll.u32 %v7701_v32, 16  ;;  %v8269_v31 = vld [vmem:[%s8997_s30 + $0xbc] sm:$0x1] }
 0x292   : > { %v7717_v55 = vcombine.low %v2430_v5, %v2440_v6  ;;  %v5683_v18 = vrot.slane %v5682_v40, 4  ;;  %v5692_v3 = vor.u32 %v5691_v14, %v5687_v2  ;;  %5877 = vst.msk [vmem:[#allocation2 + $0x48] sm:$0xff] %vm5867_vm9, %v5838_v1  ;;  %v2455_v58 = vshrl.u32 %v7701_v32, 16  ;;  %v7765_v28 = vld [vmem:[%s8997_s30 + $0xc4] sm:$0xf] }
 0x293   : > { %v2461_v39 = vshll.u32 %v7702_v21, 16  ;;  %v7781_v20 = vrot.slane %v7761_v19, 9  ;;  %1998 = vrot.lane.b32.xlu0 %v8781_v48, %s8902_s7  ;;  %v2448_v11 = vor.u32 %v2447_v16, %v2444_v41  ;;  %v2774_v22 = vrot.slane %v7762_v51, 5  ;;  %v7764_v32 = vld [vmem:[%s8997_s30 + $0xc0] sm:$0xe]  ;;  %s11148_s7 = sand.u32 1, %s8881_s13  }
 0x294   : > { %2541 = vrot.lane.b32.xlu1 %v7717_v55, %s8903_s8  ;;  %v5688_v24 = vsel %vm9009_vm2, %v5683_v18, %v5687_v2  ;;  %v5693_v53 = vrot.slane %v5692_v3, 4  ;;  %v2453_v56 = vrot.slane %v2451_v17, 5  ;;  %v2457_v34 = vrot.slane %v2455_v58, 4  ;;  %v7841_v57 = vld [vmem:[%s8997_s30 + $0xb4] sm:$0xe] }
 0x295   : > { %v2463_v60 = vrot.slane %v2461_v39, 5  ;;  %v2777_v46 = vrot.slane %v7763_v30, 5  ;;  %v2857_v37 = vpop.permute.xlu0 %2856  ;;  %v2449_v33 = vrot.slane %v2448_v11, 4  ;;  %v2775_v44 = vsel %vm9129_vm5, %v7781_v20, %v2774_v22  ;;  %v7766_v6 = vld [vmem:[%s8997_s30 + $0xc8] sm:$0x1] }
 0x296   : > { %v5698_v29 = vsel %vm9009_vm2, %v5693_v53, %v5697_v15  ;;  %v2776_v45 = vrot.slane %v2774_v22, 4  ;;  %2894 = vst.msk [vmem:[#allocation2 + $0x58] sm:$0xff] %vm2882_vm15, %v2857_v37  ;;  %v2458_v35 = vor.u32 %v2457_v34, %v2453_v56  ;;  %v5700_v52 = vshrl.u32 %v8206_v23, 16  ;;  %v7842_v20 = vld [vmem:[%s8997_s30 + $0xb8] sm:$0xf] }
 0x297   : > { %v8227_v42 = vcombine.low %v5688_v24, %v5698_v29  ;;  %v5703_v59 = vshll.u32 %v8206_v23, 16  ;;  %5300 = vrot.lane.b32.xlu0 %v8782_v49, %s8910_s23  ;;  %v2454_v62 = vsel %vm9009_vm2, %v2449_v33, %v2453_v56  ;;  %v5709_v8 = vshll.u32 %v8207_v12, 16  ;;  %v7843_v56 = vld [vmem:[%s8997_s30 + $0xbc] sm:$0x3]  ;;  %v8270_v37 = vld [vmem:[%s8997_s30 + $0xc0] sm:$0xe] }
 0x298   : > { %v2778_v61 = vsel %vm9129_vm5, %v2776_v45, %v2777_v46  ;;  %v5713_v13 = vshrl.u32 %v8207_v12, 16  ;;  %v2459_v36 = vrot.slane %v2458_v35, 4  ;;  %v5702_v10 = vrot.slane %v5700_v52, 4  ;;  %v8271_v29 = vld [vmem:[%s8997_s30 + $0xc4] sm:$0xf] }
 0x299   : > { %5843 = vrot.lane.b32.xlu1 %v8227_v42, %s8911_s26  ;;  %v7797_v38 = vcombine.low %v2775_v44, %v2778_v61  ;;  %v5705_v9 = vrot.slane %v5703_v59, 5  ;;  %v6159_v27 = vpop.permute.xlu0 %6158  ;;  %v5711_v21 = vrot.slane %v5709_v8, 5  ;;  %v5719_v48 = vshll.u32 %v8208_v50, 16  ;;  %v3464_v2 = vpop.permute.xlu1 %3463  ;;  %v8272_v35 = vld [vmem:[%s8997_s30 + $0xc8] sm:$0x1] }
 0x29a   : > { %v10961_v43 = vpop.f32.mrb[0].mxu0  ;;  %v5715_v4 = vrot.slane %v5713_v13, 4  ;;  %v8291_v40 = vrot.slane %v8267_v54, 9  ;;  %6198 = vst.msk [vmem:[#allocation2 + $0x48] sm:$0xff] %vm6188_vm10, %v6159_v27  ;;  %v2464_v7 = vsel %vm9009_vm2, %v2459_v36, %v2463_v60  ;;  %v6066_v25 = vrot.slane %v8268_v47, 5 }
 0x29b   : > { %v10964_v14 = vpop.f32.mrb[1].mxu0  ;;  %v5706_v19 = vor.u32 %v5705_v9, %v5702_v10  ;;  %v6069_v5 = vrot.slane %v8269_v31, 5  ;;  %3502 = vst.msk [vmem:[#allocation2 + $0x50] sm:$0xff] %vm3491_vm0, %v3464_v2  ;;  %v7718_v41 = vcombine.low %v2454_v62, %v2464_v7  ;;  %v5721_v1 = vrot.slane %v5719_v48, 5  ;;  %v8347_v62 = vld [vmem:[%s8997_s30 + $0xb4] sm:$0xe] }
 0x29c   : > { %v10970_v15 = vpop.f32.mrb[2].mxu0  ;;  %v5716_v51 = vor.u32 %v5715_v4, %v5711_v21  ;;  %v7782_v55 = vrot.slane %v7764_v32, 9  ;;  %v6067_v16 = vsel %vm9129_vm5, %v8291_v40, %v6066_v25  ;;  %v6068_v30 = vrot.slane %v6066_v25, 4  ;;  %v8349_v4 = vld [vmem:[%s8997_s30 + $0xbc] sm:$0x3] }
 0x29d   : > { %v10972_v18 = vpop.f32.mrb[3].mxu0  ;;  %2862 = vrot.lane.b32.xlu1 %v7797_v38, %s8904_s9  ;;  %v5707_v3 = vrot.slane %v5706_v19, 4  ;;  %v2781_v17 = vrot.slane %v7765_v28, 5  ;;  %2543 = vrot.lane.b32.xlu0 %v7718_v41, %s8903_s8  ;;  %v2784_v39 = vrot.slane %v7766_v6, 5  ;;  %v3340_v49 = vshrl.u32 %v7841_v57, 16  ;;  %s7524_s8 = sshll.u32 %s11148_s7, 7 }
 0x29e   : > { %v5717_v58 = vrot.slane %v5716_v51, 4  ;;  %v3343_v24 = vshll.u32 %v7841_v57, 16  ;;  %v6070_v11 = vsel %vm9129_vm5, %v6068_v30, %v6069_v5  ;;  %v3349_v50 = vshrl.u32 %v7842_v20, 16  ;;  %v8348_v28 = vld [vmem:[%s8997_s30 + $0xb8] sm:$0xf] }
 0x29f   : > { %v5712_v53 = vsel %vm9009_vm2, %v5707_v3, %v5711_v21  ;;  %v2782_v22 = vsel %vm9129_vm5, %v7782_v55, %v2781_v17  ;;  %v2783_v23 = vrot.slane %v2781_v17, 4  ;;  %v8307_v60 = vcombine.low %v6067_v16, %v6070_v11  ;;  %v7844_v5 = vld [vmem:[%s8997_s30 + $0xc0] sm:$0xe]  ;;  %v7845_v17 = vld [vmem:[%s8997_s30 + $0xc4] sm:$0xf] }
 0x2a0   : > { %v5722_v34 = vsel %vm9009_vm2, %v5717_v58, %v5721_v1  ;;  %v3342_v46 = vrot.slane %v3340_v49, 5  ;;  %v3345_v12 = vrot.slane %v3343_v24, 6  ;;  %v6766_v33 = vpop.permute.xlu1 %6765  ;;  %v3352_v42 = vshll.u32 %v7842_v20, 16 }
 0x2a1   : > { %v8228_v44 = vcombine.low %v5712_v53, %v5722_v34  ;;  %v2785_v45 = vsel %vm9129_vm5, %v2783_v23, %v2784_v39  ;;  %6806 = vst.msk [vmem:[#allocation2 + $0x40] sm:$0xff] %vm6797_vm11, %v6766_v33  ;;  %6164 = vrot.lane.b32.xlu1 %v8307_v60, %s8912_s27  ;;  %v3359_v54 = vshrl.u32 %v7843_v56, 16  ;;  %v3362_v47 = vshll.u32 %v7843_v56, 16  ;;  %v7846_v56 = vld [vmem:[%s8997_s30 + $0xc8] sm:$0x3] }
 0x2a2   : > { %v7798_v52 = vcombine.low %v2782_v22, %v2785_v45  ;;  %v3346_v59 = vor.u32 %v3345_v12, %v3342_v46  ;;  %v3351_v61 = vrot.slane %v3349_v50, 5  ;;  %v3354_v8 = vrot.slane %v3352_v42, 6  ;;  %v8350_v33 = vld [vmem:[%s8997_s30 + $0xc0] sm:$0xe] }
 0x2a3   : > { %5845 = vrot.lane.b32.xlu0 %v8228_v44, %s8911_s26  ;;  %v8292_v13 = vrot.slane %v8270_v37, 9  ;;  %v6073_v31 = vrot.slane %v8271_v29, 5  ;;  %v3361_v38 = vrot.slane %v3359_v54, 5  ;;  %v3364_v10 = vrot.slane %v3362_v47, 6 }
 0x2a4   : > { %v3347_v36 = vrot.slane %v3346_v59, 4  ;;  %v6076_v9 = vrot.slane %v8272_v35, 5  ;;  %v3642_v32 = vpop.permute.xlu1 %3641  ;;  %v3355_v57 = vor.u32 %v3354_v8, %v3351_v61  ;;  %v6590_v48 = vshrl.u32 %v8347_v62, 16  ;;  %v3466_v40 = vpop.permute.xlu0 %3465  ;;  %v8351_v8 = vld [vmem:[%s8997_s30 + $0xc4] sm:$0xf] }
 0x2a5   : > { %v6074_v27 = vsel %vm9129_vm5, %v8292_v13, %v6073_v31  ;;  %v6075_v21 = vrot.slane %v6073_v31, 4  ;;  %3680 = vst.msk [vmem:[#allocation2 + $0x50] sm:$0xff] %vm3669_vm1, %v3642_v32  ;;  %v3365_v2 = vor.u32 %v3364_v10, %v3361_v38  ;;  %v6593_v7 = vshll.u32 %v8347_v62, 16  ;;  %v8352_v38 = vld [vmem:[%s8997_s30 + $0xc8] sm:$0x3] }
 0x2a6   : > { %v6599_v19 = vshrl.u32 %v8348_v28, 16  ;;  %v6602_v25 = vshll.u32 %v8348_v28, 16  ;;  %3503 = vst.msk [vmem:[#allocation2 + $0x58] sm:$0xff] %vm3491_vm0, %v3466_v40  ;;  %v3356_v6 = vsel %vm9272_vm8, %v3347_v36, %v3355_v57  ;;  %v3357_v41 = vrot.slane %v3355_v57, 4 }
 0x2a7   : > { %2864 = vrot.lane.b32.xlu0 %v7798_v52, %s8904_s9  ;;  %v6077_v51 = vsel %vm9129_vm5, %v6075_v21, %v6076_v9  ;;  %v6592_v1 = vrot.slane %v6590_v48, 5  ;;  %v6595_v3 = vrot.slane %v6593_v7, 6  ;;  %v6609_v49 = vshrl.u32 %v8349_v4, 16  ;;  %s8454_s9 = sshll.u32 %s8889_s15, 11 }
 0x2a8   : > { %v8308_v55 = vcombine.low %v6074_v27, %v6077_v51  ;;  %v6601_v16 = vrot.slane %v6599_v19, 5  ;;  %v6604_v30 = vrot.slane %v6602_v25, 6  ;;  %v3644_v58 = vpop.permute.xlu1 %3643  ;;  %v6822_v39 = vld [vmem:[#allocation2 + $0x40] sm:$0xff]  ;;  %v3366_v20 = vsel %vm9272_vm8, %v3357_v41, %v3365_v2 }
 0x2a9   : > { %v6612_v24 = vshll.u32 %v8349_v4, 16  ;;  %v3368_v53 = vshrl.u32 %v7844_v5, 16  ;;  %3681 = vst.msk [vmem:[#allocation2 + $0x58] sm:$0xff] %vm3669_vm1, %v3644_v58  ;;  %8606 = vmatprep.mubr.bf16.mxu1 %v6822_v39  ;;  %v7861_v11 = vcombine.low %v3356_v6, %v3366_v20  ;;  %v6596_v22 = vor.u32 %v6595_v3, %v6592_v1  ;;  %v7953_v4 = vld [vmem:[%s8997_s30 + $0xc0] sm:$0xf] }
 0x2aa   : > { %v6605_v23 = vor.u32 %v6604_v30, %v6601_v16  ;;  %v3371_v34 = vshll.u32 %v7844_v5, 16  ;;  %v6768_v60 = vpop.permute.xlu0 %6767  ;;  %v6611_v46 = vrot.slane %v6609_v49, 5  ;;  %v3377_v29 = vshrl.u32 %v7845_v17, 16  ;;  %v7954_v19 = vld [vmem:[%s8997_s30 + $0xc4] sm:$0xf] }
 0x2ab   : > { %6166 = vrot.lane.b32.xlu0 %v8308_v55, %s8912_s27  ;;  %v6614_v12 = vrot.slane %v6612_v24, 6  ;;  %v3370_v37 = vrot.slane %v3368_v53, 5  ;;  %6807 = vst.msk [vmem:[#allocation2 + $0x48] sm:$0xff] %vm6797_vm11, %v6768_v60  ;;  %3471 = vrot.lane.b32.xlu1 %v7861_v11, %s8905_s10  ;;  %v6597_v44 = vrot.slane %v6596_v22, 4  ;;  %v3380_v42 = vshll.u32 %v7845_v17, 16  ;;  %v8783_v6 = vld [vmem:[%s8997_s30 + $0xc0] sm:$0xff]  }
 0x2ac   : > { %v6607_v45 = vrot.slane %v6605_v23, 4  ;;  %v3373_v50 = vrot.slane %v3371_v34, 6  ;;  %v3379_v52 = vrot.slane %v3377_v29, 5  ;;  %v3387_v59 = vshrl.u32 %v7846_v56, 16  ;;  %v7956_v17 = vld [vmem:[%s8997_s30 + $0xcc] sm:$0xf] }
 0x2ad   : > { %v6615_v35 = vor.u32 %v6614_v12, %v6611_v46  ;;  %v3390_v54 = vshll.u32 %v7846_v56, 16  ;;  %v6606_v47 = vsel %vm9272_vm8, %v6597_v44, %v6605_v23  ;;  %v3382_v61 = vrot.slane %v3380_v42, 6  ;;  %v7955_v24 = vld [vmem:[%s8997_s30 + $0xc8] sm:$0x1]  ;;  %v8784_v46 = vld [vmem:[%s8997_s30 + $0xcc] sm:$0xff]  }
 0x2ae   : > { %v3374_v62 = vor.u32 %v3373_v50, %v3370_v37  ;;  %v6618_v13 = vshrl.u32 %v8350_v33, 16  ;;  %v3389_v28 = vrot.slane %v3387_v59, 5  ;;  %v6621_v10 = vshll.u32 %v8350_v33, 16  ;;  %v4187_v9 = vpop.permute.xlu0 %4186  ;;  %v7957_v33 = vld [vmem:[%s8997_s30 + $0xd0] sm:$0xf] }
 0x2af   : > { %v6616_v31 = vsel %vm9272_vm8, %v6607_v45, %v6615_v35  ;;  %v3392_v36 = vrot.slane %v3390_v54, 6  ;;  %v3383_v27 = vor.u32 %v3382_v61, %v3379_v52  ;;  %4225 = vst.msk [vmem:[#allocation2 + $0x50] sm:$0xff] %vm4214_vm3, %v4187_v9  ;;  %v6627_v2 = vshrl.u32 %v8351_v8, 16  ;;  %v7958_v42 = vld [vmem:[%s8997_s30 + $0xd4] sm:$0x1] }
 0x2b0   : > { %v8371_v32 = vcombine.low %v6606_v47, %v6616_v31  ;;  %v3375_v57 = vrot.slane %v3374_v62, 4  ;;  %v6620_v21 = vrot.slane %v6618_v13, 5  ;;  %v6623_v40 = vrot.slane %v6621_v10, 6  ;;  %v8017_v62 = vld [vmem:[%s8997_s30 + $0xc0] sm:$0xe] }
 0x2b1   : > { %v3393_v48 = vor.u32 %v3392_v36, %v3389_v28  ;;  %v6630_v7 = vshll.u32 %v8351_v8, 16  ;;  %v3385_v5 = vrot.slane %v3383_v27, 4  ;;  %v6637_v41 = vshrl.u32 %v8352_v38, 16  ;;  %v8018_v36 = vld [vmem:[%s8997_s30 + $0xc4] sm:$0xf] }
 0x2b2   : > { %6773 = vrot.lane.b32.xlu1 %v8371_v32, %s8913_s28  ;;  %v3384_v25 = vsel %vm9272_vm8, %v3375_v57, %v3383_v27  ;;  %v6640_v51 = vshll.u32 %v8352_v38, 16  ;;  %v6823_v1 = vld [vmem:[#allocation2 + $0x48] sm:$0xff]  ;;  %v6624_v55 = vor.u32 %v6623_v40, %v6620_v21  ;;  %v6629_v3 = vrot.slane %v6627_v2, 5  ;;  %v4508_v58 = vpop.permute.xlu0 %4507  ;;  %v8021_v2 = vld [vmem:[%s8997_s30 + $0xd0] sm:$0xf] }
 0x2b3   : > { %v6632_v16 = vrot.slane %v6630_v7, 6  ;;  %v4071_v30 = vshrl.u32 %v7953_v4, 16  ;;  %8607 = vmatmul.mubr.bf16.vlgmr.msra.gmra.mrb[0].mxu1 %v6823_v1  ;;  %v3394_v39 = vsel %vm9272_vm8, %v3385_v5, %v3393_v48  ;;  %v6639_v20 = vrot.slane %v6637_v41, 5  ;;  %v4189_v11 = vpop.permute.xlu1 %4188  ;;  %4546 = vst.msk [vmem:[#allocation2 + $0x50] sm:$0xff] %vm4535_vm4, %v4508_v58  ;;  %v8019_v57 = vld [vmem:[%s8997_s30 + $0xc8] sm:$0x1] }
 0x2b4   : > { %v6642_v49 = vrot.slane %v6640_v51, 6  ;;  %v4074_v53 = vshll.u32 %v7953_v4, 16  ;;  %v7862_v22 = vcombine.low %v3384_v25, %v3394_v39  ;;  %v6625_v23 = vrot.slane %v6624_v55, 4  ;;  %4226 = vst.msk [vmem:[#allocation2 + $0x58] sm:$0xff] %vm4214_vm3, %v4189_v11  ;;  %v8020_v27 = vld [vmem:[%s8997_s30 + $0xcc] sm:$0xe] }
 0x2b5   : > { %v6633_v56 = vor.u32 %v6632_v16, %v6629_v3  ;;  %v4073_v34 = vrot.slane %v4071_v30, 4  ;;  %v4080_v37 = vshll.u32 %v7954_v19, 16  ;;  %v4084_v29 = vshrl.u32 %v7954_v19, 16  ;;  %v8097_v41 = vld [vmem:[%s8997_s30 + $0xc0] sm:$0xe] }
 0x2b6   : > { %3649 = vrot.lane.b32.xlu1 %v8783_v6, %s8906_s11  ;;  %v6643_v60 = vor.u32 %v6642_v49, %v6639_v20  ;;  %v4076_v12 = vrot.slane %v4074_v53, 5  ;;  %3473 = vrot.lane.b32.xlu0 %v7862_v22, %s8905_s10  ;;  %v4090_v50 = vshll.u32 %v7955_v24, 16  ;;  %v4095_v35 = vshrl.u32 %v7956_v17, 16  ;;  %v8022_v6 = vld [vmem:[%s8997_s30 + $0xd4] sm:$0x1] }
 0x2b7   : > { %v6634_v44 = vsel %vm9272_vm8, %v6625_v23, %v6633_v56  ;;  %v6635_v45 = vrot.slane %v6633_v56, 4  ;;  %v4082_v59 = vrot.slane %v4080_v37, 5  ;;  %v4086_v54 = vrot.slane %v4084_v29, 4  ;;  %v4510_v61 = vpop.permute.xlu1 %4509  ;;  %v8098_v56 = vld [vmem:[%s8997_s30 + $0xc4] sm:$0xf] }
 0x2b8   : > { %v4077_v52 = vor.u32 %v4076_v12, %v4073_v34  ;;  %v4098_v47 = vshll.u32 %v7956_v17, 16  ;;  %v4092_v13 = vrot.slane %v4090_v50, 5  ;;  %v4097_v31 = vrot.slane %v4095_v35, 4  ;;  %4547 = vst.msk [vmem:[#allocation2 + $0x58] sm:$0xff] %vm4535_vm4, %v4510_v61  ;;  %v8099_v12 = vld [vmem:[%s8997_s30 + $0xc8] sm:$0x3] }
 0x2b9   : > { %v6644_v8 = vsel %vm9272_vm8, %v6635_v45, %v6643_v60  ;;  %v4104_v28 = vshll.u32 %v7957_v33, 16  ;;  %v4087_v9 = vor.u32 %v4086_v54, %v4082_v59  ;;  %v4108_v4 = vshrl.u32 %v7957_v33, 16  ;;  %v8100_v61 = vld [vmem:[%s8997_s30 + $0xcc] sm:$0xe] }
 0x2ba   : > { %v8372_v38 = vcombine.low %v6634_v44, %v6644_v8  ;;  %3651 = vrot.lane.b32.xlu1 %v8784_v46, %s8906_s11  ;;  %v4078_v10 = vrot.slane %v4077_v52, 4  ;;  %v4100_v32 = vrot.slane %v4098_v47, 5  ;;  %v4114_v48 = vshll.u32 %v7958_v42, 16 }
 0x2bb   : > { %v4106_v21 = vrot.slane %v4104_v28, 5  ;;  %v8037_v40 = vrot.slane %v8017_v62, 9  ;;  %v4088_v19 = vrot.slane %v4087_v9, 4  ;;  %v4427_v5 = vrot.slane %v8018_v36, 5  ;;  %v5117_v51 = vpop.permute.xlu0 %5116  ;;  %v1993_v1 = vpop.permute.xlu1 %1992  ;;  %v8101_v36 = vld [vmem:[%s8997_s30 + $0xd0] sm:$0xf] }
 0x2bc   : > { %6775 = vrot.lane.b32.xlu0 %v8372_v38, %s8913_s28  ;;  %v4083_v7 = vsel %vm9009_vm2, %v4078_v10, %v4082_v59  ;;  %v4101_v25 = vor.u32 %v4100_v32, %v4097_v31  ;;  %v4110_v55 = vrot.slane %v4108_v4, 4  ;;  %v4116_v3 = vrot.slane %v4114_v48, 5  ;;  %5155 = vst.msk [vmem:[#allocation2 + $0x50] sm:$0xff] %vm5144_vm6, %v5117_v51 }
 0x2bd   : > { %v4430_v16 = vrot.slane %v8019_v57, 5  ;;  %v8038_v30 = vrot.slane %v8020_v27, 9  ;;  %2029 = vst.msk [vmem:[#allocation2 + $0x60] sm:$0xff] %vm2016_vm13, %v1993_v1  ;;  %v4093_v58 = vsel %vm9009_vm2, %v4088_v19, %v4092_v13  ;;  %v4428_v20 = vsel %vm9129_vm5, %v8037_v40, %v4427_v5  ;;  %v8102_v57 = vld [vmem:[%s8997_s30 + $0xd4] sm:$0x3] }
 0x2be   : > { %v4102_v39 = vrot.slane %v4101_v25, 4  ;;  %v4429_v49 = vrot.slane %v4427_v5, 4  ;;  %v7973_v53 = vcombine.low %v4083_v7, %v4093_v58  ;;  %v4111_v11 = vor.u32 %v4110_v55, %v4106_v21 }
 0x2bf   : > { %v11060_v17 = vpop.f32.mrb[4].mxu0  ;;  %v4434_v22 = vrot.slane %v8021_v2, 5  ;;  %v4437_v23 = vrot.slane %v8022_v6, 5  ;;  %v4993_v37 = vshrl.u32 %v8097_v41, 16  ;;  %v4996_v29 = vshll.u32 %v8097_v41, 16  ;;  %v5119_v33 = vpop.permute.xlu0 %5118 }
 0x2c0   : > { %v11066_v24 = vpop.f32.mrb[5].mxu0  ;;  %v4107_v60 = vsel %vm9009_vm2, %v4102_v39, %v4106_v21  ;;  %v4431_v46 = vsel %vm9129_vm5, %v4429_v49, %v4430_v16  ;;  %v5295_v44 = vpop.permute.xlu1 %5294  ;;  %4194 = vrot.lane.b32.xlu0 %v7973_v53, %s8907_s18  ;;  %v4112_v45 = vrot.slane %v4111_v11, 4  ;;  %5156 = vst.msk [vmem:[#allocation2 + $0x58] sm:$0xff] %vm5144_vm6, %v5119_v33  ;;  %v5002_v47 = vshrl.u32 %v8098_v56, 16  ;;  %v8209_v6 = vld [vmem:[%s8997_s30 + $0xcc] sm:$0xf] }
 0x2c1   : > { %v11069_v34 = vpop.f32.mrb[6].mxu0  ;;  %v8053_v50 = vcombine.low %v4428_v20, %v4431_v46  ;;  %v4435_v42 = vsel %vm9129_vm5, %v8038_v30, %v4434_v22  ;;  %v4436_v35 = vrot.slane %v4434_v22, 4  ;;  %5333 = vst.msk [vmem:[#allocation2 + $0x50] sm:$0xff] %vm5322_vm7, %v5295_v44  ;;  %v4995_v59 = vrot.slane %v4993_v37, 5  ;;  %v8210_v39 = vld [vmem:[%s8997_s30 + $0xd0] sm:$0xf] }
 0x2c2   : > { %v11081_v52 = vpop.f32.mrb[7].mxu0  ;;  %v4998_v54 = vrot.slane %v4996_v29, 6  ;;  %v5005_v62 = vshll.u32 %v8098_v56, 16  ;;  %v4117_v8 = vsel %vm9009_vm2, %v4112_v45, %v4116_v3  ;;  %v5012_v31 = vshrl.u32 %v8099_v12, 16 }
 0x2c3   : > { %v4438_v13 = vsel %vm9129_vm5, %v4436_v35, %v4437_v23  ;;  %v5015_v28 = vshll.u32 %v8099_v12, 16  ;;  %v7974_v38 = vcombine.low %v4107_v60, %v4117_v8  ;;  %v5004_v32 = vrot.slane %v5002_v47, 5  ;;  %v1995_v27 = vpop.permute.xlu0 %1994  ;;  %v8211_v12 = vld [vmem:[%s8997_s30 + $0xd4] sm:$0x1]  ;;  %v8213_v47 = vld [vmem:[%s8997_s30 + $0xdc] sm:$0xf] }
 0x2c4   : > { %v8054_v10 = vcombine.low %v4435_v42, %v4438_v13  ;;  %v4999_v9 = vor.u32 %v4998_v54, %v4995_v59  ;;  %v2538_v21 = vpop.permute.xlu1 %2537  ;;  %4515 = vrot.lane.b32.xlu0 %v8053_v50, %s8908_s19  ;;  %v5007_v4 = vrot.slane %v5005_v62, 6  ;;  %v5014_v48 = vrot.slane %v5012_v31, 5  ;;  %2030 = vst.msk [vmem:[#allocation2 + $0x68] sm:$0xff] %vm2016_vm13, %v1995_v27  ;;  %v8212_v50 = vld [vmem:[%s8997_s30 + $0xd8] sm:$0xf]  ;;  %v8785_v62 = vld [vmem:[%s8997_s30 + $0xcc] sm:$0xff]  }
 0x2c5   : > { %v5017_v40 = vrot.slane %v5015_v28, 6  ;;  %v5021_v2 = vshrl.u32 %v8100_v61, 16  ;;  %2574 = vst.msk [vmem:[#allocation2 + $0x60] sm:$0xff] %vm2561_vm14, %v2538_v21  ;;  %4196 = vrot.lane.b32.xlu1 %v7974_v38, %s8907_s18  ;;  %v5024_v19 = vshll.u32 %v8100_v61, 16  ;;  %v5030_v25 = vshrl.u32 %v8101_v36, 16 }
 0x2c6   : > { %v5000_v7 = vrot.slane %v4999_v9, 4  ;;  %v5033_v5 = vshll.u32 %v8101_v36, 16  ;;  %v5008_v41 = vor.u32 %v5007_v4, %v5004_v32  ;;  %v5040_v55 = vshrl.u32 %v8102_v57, 16  ;;  %v8786_v4 = vld [vmem:[%s8997_s30 + $0xd8] sm:$0xff]  }
 0x2c7   : > { %v5018_v51 = vor.u32 %v5017_v40, %v5014_v48  ;;  %v5023_v1 = vrot.slane %v5021_v2, 5  ;;  %v5026_v3 = vrot.slane %v5024_v19, 6  ;;  %v5032_v16 = vrot.slane %v5030_v25, 5  ;;  %v5297_v20 = vpop.permute.xlu0 %5296 }
 0x2c8   : > { %v5035_v30 = vrot.slane %v5033_v5, 6  ;;  %v5043_v58 = vshll.u32 %v8102_v57, 16  ;;  %v5009_v49 = vsel %vm9272_vm8, %v5000_v7, %v5008_v41  ;;  %v5010_v53 = vrot.slane %v5008_v41, 4  ;;  %5334 = vst.msk [vmem:[#allocation2 + $0x58] sm:$0xff] %vm5322_vm7, %v5297_v20  ;;  %v8273_v57 = vld [vmem:[%s8997_s30 + $0xcc] sm:$0xe] }
 0x2c9   : > { %v5042_v11 = vrot.slane %v5040_v55, 5  ;;  %v5724_v22 = vshrl.u32 %v8209_v6, 16  ;;  %v5840_v23 = vpop.permute.xlu1 %5839  ;;  %4517 = vrot.lane.b32.xlu1 %v8054_v10, %s8908_s19  ;;  %v5027_v56 = vor.u32 %v5026_v3, %v5023_v1  ;;  %v5727_v37 = vshll.u32 %v8209_v6, 16  ;;  %v8214_v10 = vld [vmem:[%s8997_s30 + $0xe0] sm:$0x1] }
 0x2ca   : > { %v5036_v60 = vor.u32 %v5035_v30, %v5032_v16  ;;  %v5045_v46 = vrot.slane %v5043_v58, 6  ;;  %5878 = vst.msk [vmem:[#allocation2 + $0x50] sm:$0xff] %vm5867_vm9, %v5840_v23  ;;  %v5019_v29 = vsel %vm9272_vm8, %v5010_v53, %v5018_v51  ;;  %v5733_v44 = vshll.u32 %v8210_v39, 16  ;;  %v8274_v7 = vld [vmem:[%s8997_s30 + $0xd0] sm:$0xf] }
 0x2cb   : > { %v5726_v33 = vrot.slane %v5724_v22, 4  ;;  %v5737_v45 = vshrl.u32 %v8210_v39, 16  ;;  %v8117_v42 = vcombine.low %v5009_v49, %v5019_v29  ;;  %v5028_v35 = vrot.slane %v5027_v56, 4  ;;  %v8275_v41 = vld [vmem:[%s8997_s30 + $0xd4] sm:$0x1] }
 0x2cc   : > { %v5038_v59 = vrot.slane %v5036_v60, 4  ;;  %v5046_v54 = vor.u32 %v5045_v46, %v5042_v11  ;;  %v5729_v61 = vrot.slane %v5727_v37, 5  ;;  %v5735_v8 = vrot.slane %v5733_v44, 5  ;;  %v8277_v51 = vld [vmem:[%s8997_s30 + $0xdc] sm:$0xf] }
 0x2cd   : > { %v5739_v13 = vrot.slane %v5737_v45, 4  ;;  %v5743_v31 = vshll.u32 %v8211_v12, 16  ;;  %v2859_v28 = vpop.permute.xlu1 %2858  ;;  %5124 = vrot.lane.b32.xlu0 %v8117_v42, %s8909_s21  ;;  %v5037_v36 = vsel %vm9272_vm8, %v5028_v35, %v5036_v60  ;;  %v5748_v9 = vshrl.u32 %v8212_v50, 16  ;;  %v2540_v27 = vpop.permute.xlu0 %2539  ;;  %v8276_v30 = vld [vmem:[%s8997_s30 + $0xd8] sm:$0xe] }
 0x2ce   : > { %v5047_v38 = vsel %vm9272_vm8, %v5038_v59, %v5046_v54  ;;  %v5751_v32 = vshll.u32 %v8212_v50, 16  ;;  %2895 = vst.msk [vmem:[#allocation2 + $0x60] sm:$0xff] %vm2882_vm15, %v2859_v28  ;;  %v5730_v48 = vor.u32 %v5729_v61, %v5726_v33  ;;  %v5757_v5 = vshll.u32 %v8213_v47, 16  ;;  %v8278_v53 = vld [vmem:[%s8997_s30 + $0xe0] sm:$0x1] }
 0x2cf   : > { %v8118_v21 = vcombine.low %v5037_v36, %v5047_v38  ;;  %v5740_v40 = vor.u32 %v5739_v13, %v5735_v8  ;;  %v5745_v2 = vrot.slane %v5743_v31, 5  ;;  %2575 = vst.msk [vmem:[#allocation2 + $0x68] sm:$0xff] %vm2561_vm14, %v2540_v27  ;;  %v5750_v19 = vrot.slane %v5748_v9, 4  ;;  %v8353_v46 = vld [vmem:[%s8997_s30 + $0xcc] sm:$0xe] }
 0x2d0   : > { %v5753_v25 = vrot.slane %v5751_v32, 5  ;;  %v5761_v6 = vshrl.u32 %v8213_v47, 16  ;;  %v5731_v1 = vrot.slane %v5730_v48, 4  ;;  %v5767_v3 = vshll.u32 %v8214_v10, 16  ;;  %v8354_v45 = vld [vmem:[%s8997_s30 + $0xd0] sm:$0xf] }
 0x2d1   : > { %5126 = vrot.lane.b32.xlu1 %v8118_v21, %s8909_s21  ;;  %v5741_v55 = vrot.slane %v5740_v40, 4  ;;  %v8293_v16 = vrot.slane %v8273_v57, 9  ;;  %5302 = vrot.lane.b32.xlu0 %v8785_v62, %s8910_s23  ;;  %v5759_v39 = vrot.slane %v5757_v5, 5  ;;  %v6080_v49 = vrot.slane %v8274_v7, 5  ;;  %v6161_v11 = vpop.permute.xlu1 %6160  ;;  %v8355_v28 = vld [vmem:[%s8997_s30 + $0xd4] sm:$0x3]  ;;  %s11242_s21 = scalar_lea.hbm %s11329_s2, %s8454_s9 }
 0x2d2   : > { %v5754_v58 = vor.u32 %v5753_v25, %v5750_v19  ;;  %v5763_v20 = vrot.slane %v5761_v6, 4  ;;  %v5736_v22 = vsel %vm9009_vm2, %v5731_v1, %v5735_v8  ;;  %v5769_v56 = vrot.slane %v5767_v3, 5  ;;  %6199 = vst.msk [vmem:[#allocation2 + $0x50] sm:$0xff] %vm6188_vm10, %v6161_v11  ;;  %v8356_v38 = vld [vmem:[%s8997_s30 + $0xd8] sm:$0xe] }
 0x2d3   : > { %v5746_v23 = vsel %vm9009_vm2, %v5741_v55, %v5745_v2  ;;  %v6083_v60 = vrot.slane %v8275_v41, 5  ;;  %v5842_v12 = vpop.permute.xlu0 %5841  ;;  %v6081_v44 = vsel %vm9129_vm5, %v8293_v16, %v6080_v49  ;;  %v6082_v50 = vrot.slane %v6080_v49, 4  ;;  %v8357_v21 = vld [vmem:[%s8997_s30 + $0xdc] sm:$0xf]  ;;  %v8358_v5 = vld [vmem:[%s8997_s30 + $0xe0] sm:$0x3] }
 0x2d4   : > { %v8229_v37 = vcombine.low %v5736_v22, %v5746_v23  ;;  %v5755_v29 = vrot.slane %v5754_v58, 4  ;;  %v5764_v33 = vor.u32 %v5763_v20, %v5759_v39  ;;  %5879 = vst.msk [vmem:[#allocation2 + $0x58] sm:$0xff] %vm5867_vm9, %v5842_v12  ;;  %v8294_v42 = vrot.slane %v8276_v30, 9  ;;  %s11168_s30 = scalar_lea.vmem [#allocation3], %s7524_s8 }
 0x2d5   : > { %5304 = vrot.lane.b32.xlu1 %v8786_v4, %s8910_s23  ;;  %v6087_v35 = vrot.slane %v8277_v51, 5  ;;  %v6090_v59 = vrot.slane %v8278_v53, 5  ;;  %v6646_v62 = vshrl.u32 %v8353_v46, 16  ;;  %v6649_v61 = vshll.u32 %v8353_v46, 16  ;;  %s7377_s10 = sshll.u32 %s11168_s30, 4  ;;  %s7356_s23 = scalar_lea.sflag [#allocation4], %s11148_s7  ;;  %s11244_s10 = int_to_ptr.vmem [resolvable:$true] %s7377_s10 }
 0x2d6   : > { %5847 = vrot.lane.b32.xlu0 %v8229_v37, %s8911_s26  ;;  %v5760_v54 = vsel %vm9009_vm2, %v5755_v29, %v5759_v39  ;;  %v5765_v47 = vrot.slane %v5764_v33, 4  ;;  %v6084_v8 = vsel %vm9129_vm5, %v6082_v50, %v6083_v60  ;;  %v6655_v36 = vshrl.u32 %v8354_v45, 16 }
 0x2d7   : > { %v6088_v13 = vsel %vm9129_vm5, %v8294_v42, %v6087_v35  ;;  %v6089_v31 = vrot.slane %v6087_v35, 4  ;;  %v2861_v10 = vpop.permute.xlu0 %2860  ;;  %v8309_v32 = vcombine.low %v6081_v44, %v6084_v8  ;;  %v6648_v57 = vrot.slane %v6646_v62, 5 }
 0x2d8   : > { %v5770_v9 = vsel %vm9009_vm2, %v5765_v47, %v5769_v56  ;;  %v6651_v27 = vrot.slane %v6649_v61, 6  ;;  %2896 = vst.msk [vmem:[#allocation2 + $0x68] sm:$0xff] %vm2882_vm15, %v2861_v10  ;;  %v6657_v40 = vrot.slane %v6655_v36, 5  ;;  %v6658_v2 = vshll.u32 %v8354_v45, 16 }
 0x2d9   : > { %v8230_v4 = vcombine.low %v5760_v54, %v5770_v9  ;;  %v6091_v48 = vsel %vm9129_vm5, %v6089_v31, %v6090_v59  ;;  %v6665_v19 = vshrl.u32 %v8355_v28, 16  ;;  %v6668_v25 = vshll.u32 %v8355_v28, 16 }
 0x2da   : > { %6168 = vrot.lane.b32.xlu0 %v8309_v32, %s8912_s27  ;;  %v8310_v26 = vcombine.low %v6088_v13, %v6091_v48  ;;  %v6652_v7 = vor.u32 %v6651_v27, %v6648_v57  ;;  %v6660_v6 = vrot.slane %v6658_v2, 6  ;;  %v6674_v41 = vshrl.u32 %v8356_v38, 16 }
 0x2db   : > { %5849 = vrot.lane.b32.xlu1 %v8230_v4, %s8911_s26  ;;  %v6677_v51 = vshll.u32 %v8356_v38, 16  ;;  %v6683_v1 = vshrl.u32 %v8357_v21, 16  ;;  %v6163_v55 = vpop.permute.xlu0 %6162  ;;  %v6667_v63 = vrot.slane %v6665_v19, 5  ;;  %v6670_v16 = vrot.slane %v6668_v25, 6  ;;  %v3468_v58 = vpop.permute.xlu1 %3467  ;;  %s8787_s26 = scalar_lea.vmem %s11244_s10, 2048 }
 0x2dc   : > { %v6653_v3 = vrot.slane %v6652_v7, 4  ;;  %v6686_v30 = vshll.u32 %v8357_v21, 16  ;;  %6200 = vst.msk [vmem:[#allocation2 + $0x58] sm:$0xff] %vm6188_vm10, %v6163_v55  ;;  %v6661_v39 = vor.u32 %v6660_v6, %v6657_v40  ;;  %v6676_v20 = vrot.slane %v6674_v41, 5  ;;  %p8788_p12 = scmp.ne.s32.totalorder %s11244_s10, %s8787_s26 }
 0x2dd   : > { %v6679_v49 = vrot.slane %v6677_v51, 6  ;;  %v6685_v53 = vrot.slane %v6683_v1, 5  ;;  %3504 = vst.msk [vmem:[#allocation2 + $0x60] sm:$0xff] %vm3491_vm0, %v3468_v58  ;;  %v6671_v11 = vor.u32 %v6670_v16, %v6667_v63  ;;  %v6693_v23 = vshrl.u32 %v8358_v5, 16 }
 0x2de   : > { %v6688_v22 = vrot.slane %v6686_v30, 6  ;;  %v6696_v56 = vshll.u32 %v8358_v5, 16  ;;  %v6662_v60 = vsel %vm9272_vm8, %v6653_v3, %v6661_v39  ;;  %v6663_v46 = vrot.slane %v6661_v39, 4  ;;  %p8789_p13 = pnand %p8788_p12, %p8977_p4 }
 0x2df   : > { %6170 = vrot.lane.b32.xlu1 %v8310_v26, %s8912_s27  ;;  %v6680_v12 = vor.u32 %v6679_v49, %v6676_v20  ;;  %v7056_v37 = vpack.c.bf16 %v10970_v15, %v10961_v43  ;;  %v6695_v33 = vrot.slane %v6693_v23, 5  ;;  %v7055_v45 = vpack.c.bf16 %v10972_v18, %v10964_v14  ;;  %s8914_s27 = smov [#allocation3]  }
 0x2e0   : > { %v6689_v29 = vor.u32 %v6688_v22, %v6685_v53  ;;  %v6698_v44 = vrot.slane %v6696_v56, 6  ;;  %v6672_v50 = vsel %vm9272_vm8, %v6663_v46, %v6671_v11  ;;  %v7058_v13 = vpack.c.bf16 %v11069_v34, %v11060_v17  ;;  %p8790_p0 = pneg %p8789_p13 }
 0x2e1   : > { %v6681_v42 = vrot.slane %v6680_v12, 4  ;;  %8535 = vst [vmem:[%s11168_s30 + $0x8] sm:$0xff] %v7056_v37   ;;  %v8373_v35 = vcombine.low %v6662_v60, %v6672_v50  ;;  %8459 = vst [vmem:[%s11168_s30] sm:$0xff] %v7055_v45   ;;  %v7215_v43 = vunpack.c.l.bf16 %v7055_v45  ;;  %v7217_v18 = vunpack.c.l.bf16 %v7056_v37 }
 0x2e2   : > { %v6691_v59 = vrot.slane %v6689_v29, 4  ;;  %v6699_v54 = vor.u32 %v6698_v44, %v6695_v33  ;;  %v6770_v15 = vpop.permute.xlu1 %6769  ;;  %v7218_v47 = vunpack.c.h.bf16 %v7056_v37  ;;  %v7216_v62 = vunpack.c.h.bf16 %v7055_v45  ;;  %8537 = vst [vmem:[%s11168_s30 + $0x18] sm:$0xff] %v7058_v13  }
 0x2e3   : > { %v6690_v14 = vsel %vm9272_vm8, %v6681_v42, %v6689_v29  ;;  %6808 = vst.msk [vmem:[#allocation2 + $0x50] sm:$0xff] %vm6797_vm11, %v6770_v15  ;;  %6777 = vrot.lane.b32.xlu0 %v8373_v35, %s8913_s28  ;;  %v7285_v8 = vmul.f32 %v7215_v43, %v7215_v43  ;;  %v7057_v31 = vpack.c.bf16 %v11081_v52, %v11066_v24  ;;  %v7221_v40 = vunpack.c.l.bf16 %v7058_v13 }
 0x2e4   : > { %v6700_v61 = vsel %vm9272_vm8, %v6691_v59, %v6699_v54  ;;  %v7247_v36 = vadd.f32 %v7216_v62, %v7215_v43  ;;  %v7286_v38 = vmul.f32 %v7216_v62, %v7216_v62  ;;  %v7287_v32 = vmul.f32 %v7217_v18, %v7217_v18 }
 0x2e5   : > { %v8374_v28 = vcombine.low %v6690_v14, %v6700_v61  ;;  %8536 = vst [vmem:[%s11168_s30 + $0x10] sm:$0xff] %v7057_v31   ;;  %v7219_v9 = vunpack.c.l.bf16 %v7057_v31  ;;  %v7288_v21 = vmul.f32 %v7218_v47, %v7218_v47  ;;  %v7220_v24 = vunpack.c.h.bf16 %v7057_v31 }
 0x2e6   : > { %v3646_v10 = vpop.permute.xlu1 %3645  ;;  %v7248_v57 = vadd.f32 %v7247_v36, %v7217_v18  ;;  %v7317_v0 = vadd.f32 %v7286_v38, %v7285_v8  ;;  %v3470_v27 = vpop.permute.xlu0 %3469  ;;  %v7222_v19 = vunpack.c.h.bf16 %v7058_v13  ;;  %v7291_v41 = vmul.f32 %v7221_v40, %v7221_v40 }
 0x2e7   : > { %6779 = vrot.lane.b32.xlu1 %v8374_v28, %s8913_s28  ;;  %3682 = vst.msk [vmem:[#allocation2 + $0x60] sm:$0xff] %vm3669_vm1, %v3646_v10  ;;  %v7289_v52 = vmul.f32 %v7219_v9, %v7219_v9  ;;  %v7290_v5 = vmul.f32 %v7220_v24, %v7220_v24  ;;  %s8791_s28 = sshll.u32 %s8914_s27, 4  ;;  %s8792_s28 = int_to_ptr.vmem [resolvable:$false] %s8791_s28 }
 0x2e8   : > { %3505 = vst.msk [vmem:[#allocation2 + $0x68] sm:$0xff] %vm3491_vm0, %v3470_v27  ;;  %v7318_v17 = vadd.f32 %v7317_v0, %v7287_v32  ;;  %v7249_v34 = vadd.f32 %v7248_v57, %v7218_v47  ;;  %v7292_v3 = vmul.f32 %v7222_v19, %v7222_v19  ;;  %s8793_s29 = scalar_lea.vmem %s8792_s28, 4096  ;;  %p8794_p1 = scmp.lt.s32.totalorder %s11244_s10, %s8792_s28 }
 0x2e9   : > { %p8795_p2 = scmp.lt.s32.totalorder %s8793_s29, %s8787_s26 }
 0x2ea   : > { %v3648_v4 = vpop.permute.xlu1 %3647  ;;  %v6824_v48 = vld [vmem:[#allocation2 + $0x50] sm:$0xff]  ;;  %v7250_v2 = vadd.f32 %v7249_v34, %v7219_v9  ;;  %v7319_v26 = vadd.f32 %v7318_v17, %v7288_v21 }
 0x2eb   : > { %3683 = vst.msk [vmem:[#allocation2 + $0x68] sm:$0xff] %vm3669_vm1, %v3648_v4  ;;  %8610 = vmatprep.mubr.bf16.mxu1 %v6824_v48  ;;  %p8796_p3 = por %p8795_p2, %p8794_p1 }
 0x2ec   : > { %v6772_v7 = vpop.permute.xlu0 %6771  ;;  %v7251_v25 = vadd.f32 %v7250_v2, %v7220_v24  ;;  %v7320_v6 = vadd.f32 %v7319_v26, %v7289_v52 }
 0x2ed   : > { %6809 = vst.msk [vmem:[#allocation2 + $0x58] sm:$0xff] %vm6797_vm11, %v6772_v7  ;;  %p8797_p5 = pnand %p8796_p3, %p8790_p0 }
 0x2ee   : > { %v7252_v51 = vadd.f32 %v7251_v25, %v7221_v40  ;;  %v7321_v1 = vadd.f32 %v7320_v6, %v7290_v5 }
 0x2f0   : > { %v4191_v55 = vpop.permute.xlu0 %4190  ;;  %v7322_v63 = vadd.f32 %v7321_v1, %v7291_v41  ;;  %v7253_v16 = vadd.f32 %v7252_v51, %v7222_v19 }
 0x2f1   : > { %4227 = vst.msk [vmem:[#allocation2 + $0x60] sm:$0xff] %vm4214_vm3, %v4191_v55 }
 0x2f2   : > { %v7323_v30 = vadd.f32 %v7322_v63, %v7292_v3 }
 0x2f4   : > { %v6825_v58 = vld [vmem:[#allocation2 + $0x58] sm:$0xff]  ;;  %v4512_v39 = vpop.permute.xlu0 %4511 }
 0x2f5   : > { %8611 = vmatmul.mubr.bf16.gmra.mrb[4].mxu1 %v6825_v58  ;;  %v4193_v20 = vpop.permute.xlu1 %4192  ;;  %4548 = vst.msk [vmem:[#allocation2 + $0x60] sm:$0xff] %vm4535_vm4, %v4512_v39 }
 0x2f6   : > { %4228 = vst.msk [vmem:[#allocation2 + $0x68] sm:$0xff] %vm4214_vm3, %v4193_v20 }
 0x2f9   : > { %v4514_v49 = vpop.permute.xlu1 %4513 }
 0x2fa   : > { %4549 = vst.msk [vmem:[#allocation2 + $0x68] sm:$0xff] %vm4535_vm4, %v4514_v49 }
 0x2fd   : > { %v5121_v53 = vpop.permute.xlu0 %5120  ;;  %v1997_v11 = vpop.permute.xlu1 %1996 }
 0x2fe   : > { %5157 = vst.msk [vmem:[#allocation2 + $0x60] sm:$0xff] %vm5144_vm6, %v5121_v53 }
 0x2ff   : > { %2031 = vst.msk [vmem:[#allocation2 + $0x70] sm:$0xff] %vm2016_vm13, %v1997_v11 }
 0x301   : > { %v5123_v22 = vpop.permute.xlu0 %5122  ;;  %v5299_v23 = vpop.permute.xlu1 %5298 }
 0x302   : > { %5158 = vst.msk [vmem:[#allocation2 + $0x68] sm:$0xff] %vm5144_vm6, %v5123_v22  ;;  %v8600_v56 = vpop.f32.mrb[8].mxu0 }
 0x303   : > { %5335 = vst.msk [vmem:[#allocation2 + $0x60] sm:$0xff] %vm5322_vm7, %v5299_v23  ;;  %v6960_v60 = vpop.f32.mrb[9].mxu0 }
 0x304   : > { %v8601_v46 = vpop.f32.mrb[10].mxu0 }
 0x305   : > { %v1999_v12 = vpop.permute.xlu0 %1998  ;;  %v7060_v29 = vpack.c.bf16 %v8601_v46, %v8600_v56  ;;  %v6963_v33 = vpop.f32.mrb[11].mxu0 }
 0x306   : > { %v2542_v37 = vpop.permute.xlu1 %2541  ;;  %2032 = vst.msk [vmem:[#allocation2 + $0x78] sm:$0xff] %vm2016_vm13, %v1999_v12  ;;  %v7059_v44 = vpack.c.bf16 %v6963_v33, %v6960_v60 }
 0x307   : > { %2576 = vst.msk [vmem:[#allocation2 + $0x70] sm:$0xff] %vm2561_vm14, %v2542_v37  ;;  %8539 = vst [vmem:[%s11168_s30 + $0x28] sm:$0xff] %v7060_v29   ;;  %v7225_v59 = vunpack.c.l.bf16 %v7060_v29  ;;  %v7226_v15 = vunpack.c.h.bf16 %v7060_v29 }
 0x308   : > { %8538 = vst [vmem:[%s11168_s30 + $0x20] sm:$0xff] %v7059_v44   ;;  %v7223_v50 = vunpack.c.l.bf16 %v7059_v44  ;;  %v7224_v42 = vunpack.c.h.bf16 %v7059_v44 }
 0x309   : > { %v5301_v45 = vpop.permute.xlu0 %5300  ;;  %v7295_v8 = vmul.f32 %v7225_v59, %v7225_v59  ;;  %v7296_v28 = vmul.f32 %v7226_v15, %v7226_v15 }
 0x30a   : > { %5336 = vst.msk [vmem:[#allocation2 + $0x68] sm:$0xff] %vm5322_vm7, %v5301_v45  ;;  %v7254_v54 = vadd.f32 %v7253_v16, %v7223_v50  ;;  %v7293_v43 = vmul.f32 %v7223_v50, %v7223_v50  ;;  %v7294_v18 = vmul.f32 %v7224_v42, %v7224_v42 }
 0x30b   : > { %v5844_v35 = vpop.permute.xlu1 %5843 }
 0x30c   : > { %5880 = vst.msk [vmem:[#allocation2 + $0x60] sm:$0xff] %vm5867_vm9, %v5844_v35  ;;  %v7255_v14 = vadd.f32 %v7254_v54, %v7224_v42  ;;  %v7324_v47 = vadd.f32 %v7323_v30, %v7293_v43 }
 0x30e   : > { %v7256_v13 = vadd.f32 %v7255_v14, %v7225_v59  ;;  %v7325_v31 = vadd.f32 %v7324_v47, %v7294_v18 }
 0x30f   : > { %v2863_v62 = vpop.permute.xlu1 %2862  ;;  %v2544_v61 = vpop.permute.xlu0 %2543 }
 0x310   : > { %2897 = vst.msk [vmem:[#allocation2 + $0x70] sm:$0xff] %vm2882_vm15, %v2863_v62  ;;  %v7326_v36 = vadd.f32 %v7325_v31, %v7295_v8  ;;  %v7257_v38 = vadd.f32 %v7256_v13, %v7226_v15 }
 0x311   : > { %2577 = vst.msk [vmem:[#allocation2 + $0x78] sm:$0xff] %vm2561_vm14, %v2544_v61 }
 0x312   : > { %v7327_v9 = vadd.f32 %v7326_v36, %v7296_v28 }
 0x313   : > { %v6165_v10 = vpop.permute.xlu1 %6164 }
 0x314   : > { %6201 = vst.msk [vmem:[#allocation2 + $0x60] sm:$0xff] %vm6188_vm10, %v6165_v10 }
 0x315   : > { %v5846_v32 = vpop.permute.xlu0 %5845 }
 0x316   : > { %5881 = vst.msk [vmem:[#allocation2 + $0x68] sm:$0xff] %vm5867_vm9, %v5846_v32 }
 0x319   : > { %v2865_v57 = vpop.permute.xlu0 %2864 }
 0x31a   : > { %2898 = vst.msk [vmem:[#allocation2 + $0x78] sm:$0xff] %vm2882_vm15, %v2865_v57 }
 0x31d   : > { %v6167_v0 = vpop.permute.xlu0 %6166  ;;  %v3472_v27 = vpop.permute.xlu1 %3471 }
 0x31e   : > { %6202 = vst.msk [vmem:[#allocation2 + $0x68] sm:$0xff] %vm6188_vm10, %v6167_v0 }
 0x31f   : > { %3506 = vst.msk [vmem:[#allocation2 + $0x70] sm:$0xff] %vm3491_vm0, %v3472_v27 }
 0x324   : > { %v6774_v21 = vpop.permute.xlu1 %6773 }
 0x325   : > { %6810 = vst.msk [vmem:[#allocation2 + $0x60] sm:$0xff] %vm6797_vm11, %v6774_v21 }
 0x328   : > { %v3650_v17 = vpop.permute.xlu1 %3649  ;;  %v3474_v24 = vpop.permute.xlu0 %3473 }
 0x329   : > { %3684 = vst.msk [vmem:[#allocation2 + $0x70] sm:$0xff] %vm3669_vm1, %v3650_v17 }
 0x32a   : > { %3507 = vst.msk [vmem:[#allocation2 + $0x78] sm:$0xff] %vm3491_vm0, %v3474_v24 }
 0x32c   : > { %v3652_v34 = vpop.permute.xlu1 %3651  ;;  %v6826_v52 = vld [vmem:[#allocation2 + $0x60] sm:$0xff] }
 0x32d   : > { %3685 = vst.msk [vmem:[#allocation2 + $0x78] sm:$0xff] %vm3669_vm1, %v3652_v34  ;;  %8614 = vmatprep.mubr.bf16.mxu1 %v6826_v52 }
 0x32e   : > { %v6776_v4 = vpop.permute.xlu0 %6775 }
 0x32f   : > { %6811 = vst.msk [vmem:[#allocation2 + $0x68] sm:$0xff] %vm6797_vm11, %v6776_v4 }
 0x332   : > { %v4195_v48 = vpop.permute.xlu0 %4194 }
 0x333   : > { %4229 = vst.msk [vmem:[#allocation2 + $0x70] sm:$0xff] %vm4214_vm3, %v4195_v48 }
 0x336   : > { %v6827_v40 = vld [vmem:[#allocation2 + $0x68] sm:$0xff]  ;;  %v4516_v2 = vpop.permute.xlu0 %4515 }
 0x337   : > { %8615 = vmatmul.mubr.bf16.gmra.mrb[8].mxu1 %v6827_v40  ;;  %v4197_v26 = vpop.permute.xlu1 %4196  ;;  %4550 = vst.msk [vmem:[#allocation2 + $0x70] sm:$0xff] %vm4535_vm4, %v4516_v2 }
 0x338   : > { %4230 = vst.msk [vmem:[#allocation2 + $0x78] sm:$0xff] %vm4214_vm3, %v4197_v26 }
 0x33b   : > { %v4518_v7 = vpop.permute.xlu1 %4517 }
 0x33c   : > { %4551 = vst.msk [vmem:[#allocation2 + $0x78] sm:$0xff] %vm4535_vm4, %v4518_v7 }
 0x33f   : > { %v5125_v19 = vpop.permute.xlu0 %5124 }
 0x340   : > { %5159 = vst.msk [vmem:[#allocation2 + $0x70] sm:$0xff] %vm5144_vm6, %v5125_v19 }
 0x343   : > { %v5127_v25 = vpop.permute.xlu1 %5126  ;;  %v5303_v5 = vpop.permute.xlu0 %5302 }
 0x344   : > { %5160 = vst.msk [vmem:[#allocation2 + $0x78] sm:$0xff] %vm5144_vm6, %v5127_v25  ;;  %v8604_v6 = vpop.f32.mrb[12].mxu0 }
 0x345   : > { %5337 = vst.msk [vmem:[#allocation2 + $0x70] sm:$0xff] %vm5322_vm7, %v5303_v5  ;;  %v6976_v41 = vpop.f32.mrb[13].mxu0 }
 0x346   : > { %v8605_v51 = vpop.f32.mrb[14].mxu0 }
 0x347   : > { %v5305_v1 = vpop.permute.xlu1 %5304  ;;  %v7062_v55 = vpack.c.bf16 %v8605_v51, %v8604_v6  ;;  %v6979_v3 = vpop.f32.mrb[15].mxu0 }
 0x348   : > { %5338 = vst.msk [vmem:[#allocation2 + $0x78] sm:$0xff] %vm5322_vm7, %v5305_v1  ;;  %v5848_v63 = vpop.permute.xlu0 %5847  ;;  %v7061_v16 = vpack.c.bf16 %v6979_v3, %v6976_v41 }
 0x349   : > { %5882 = vst.msk [vmem:[#allocation2 + $0x70] sm:$0xff] %vm5867_vm9, %v5848_v63  ;;  %8541 = vst [vmem:[%s11168_s30 + $0x38] sm:$0xff] %v7062_v55   ;;  %v7229_v20 = vunpack.c.l.bf16 %v7062_v55  ;;  %v7230_v22 = vunpack.c.h.bf16 %v7062_v55 }
 0x34a   : > { %8540 = vst [vmem:[%s11168_s30 + $0x30] sm:$0xff] %v7061_v16   ;;  %v7227_v30 = vunpack.c.l.bf16 %v7061_v16  ;;  %v7228_v58 = vunpack.c.h.bf16 %v7061_v16 }
 0x34b   : > { %v7299_v46 = vmul.f32 %v7229_v20, %v7229_v20  ;;  %v7300_v33 = vmul.f32 %v7230_v22, %v7230_v22 }
 0x34c   : > { %v6169_v39 = vpop.permute.xlu0 %6168  ;;  %v7258_v49 = vadd.f32 %v7257_v38, %v7227_v30  ;;  %v7297_v53 = vmul.f32 %v7227_v30, %v7227_v30  ;;  %v7298_v56 = vmul.f32 %v7228_v58, %v7228_v58 }
 0x34d   : > { %v5850_v11 = vpop.permute.xlu1 %5849  ;;  %6203 = vst.msk [vmem:[#allocation2 + $0x70] sm:$0xff] %vm6188_vm10, %v6169_v39 }
 0x34e   : > { %5883 = vst.msk [vmem:[#allocation2 + $0x78] sm:$0xff] %vm5867_vm9, %v5850_v11  ;;  %v7259_v23 = vadd.f32 %v7258_v49, %v7228_v58  ;;  %v7328_v60 = vadd.f32 %v7327_v9, %v7297_v53 }
 0x350   : > { %v7260_v12 = vadd.f32 %v7259_v23, %v7229_v20  ;;  %v7329_v37 = vadd.f32 %v7328_v60, %v7298_v56 }
 0x351   : > { %v6171_v29 = vpop.permute.xlu1 %6170 }
 0x352   : > { %6204 = vst.msk [vmem:[#allocation2 + $0x78] sm:$0xff] %vm6188_vm10, %v6171_v29  ;;  %v7330_v44 = vadd.f32 %v7329_v37, %v7299_v46  ;;  %v7261_v45 = vadd.f32 %v7260_v12, %v7230_v22 }
 0x354   : > { %v7331_v50 = vadd.f32 %v7330_v44, %v7300_v33 }
 0x355   : > { %v6778_v42 = vpop.permute.xlu0 %6777 }
 0x356   : > { %6812 = vst.msk [vmem:[#allocation2 + $0x70] sm:$0xff] %vm6797_vm11, %v6778_v42 }
 0x359   : > { %v6780_v35 = vpop.permute.xlu1 %6779 }
 0x35a   : > { %6813 = vst.msk [vmem:[#allocation2 + $0x78] sm:$0xff] %vm6797_vm11, %v6780_v35 }
 0x35d   : > { %v6828_v59 = vld [vmem:[#allocation2 + $0x70] sm:$0xff] }
 0x35e   : > { %8618 = vmatprep.mubr.bf16.mxu1 %v6828_v59 }
 0x361   : > { %v6829_v54 = vld [vmem:[#allocation2 + $0x78] sm:$0xff] }
 0x362   : > { %8619 = vmatmul.mubr.bf16.gmra.mrb[12].mxu1 %v6829_v54 }
 0x386   : > { %v8608_v43 = vpop.f32.mrb[0].mxu1 }
 0x387   : > { %v6992_v15 = vpop.f32.mrb[1].mxu1 }
 0x388   : > { %v8609_v14 = vpop.f32.mrb[2].mxu1 }
 0x389   : > { %v7064_v18 = vpack.c.bf16 %v8609_v14, %v8608_v43  ;;  %v6995_v47 = vpop.f32.mrb[3].mxu1 }
 0x38a   : > { %v7063_v62 = vpack.c.bf16 %v6995_v47, %v6992_v15 }
 0x38b   : > { %8543 = vst [vmem:[%s11168_s30 + $0x48] sm:$0xff] %v7064_v18   ;;  %v7233_v13 = vunpack.c.l.bf16 %v7064_v18  ;;  %v7234_v36 = vunpack.c.h.bf16 %v7064_v18 }
 0x38c   : > { %8542 = vst [vmem:[%s11168_s30 + $0x40] sm:$0xff] %v7063_v62   ;;  %v7231_v61 = vunpack.c.l.bf16 %v7063_v62  ;;  %v7232_v8 = vunpack.c.h.bf16 %v7063_v62 }
 0x38d   : > { %v7303_v32 = vmul.f32 %v7233_v13, %v7233_v13  ;;  %v7304_v27 = vmul.f32 %v7234_v36, %v7234_v36 }
 0x38e   : > { %v7262_v31 = vadd.f32 %v7261_v45, %v7231_v61  ;;  %v7301_v28 = vmul.f32 %v7231_v61, %v7231_v61  ;;  %v7302_v10 = vmul.f32 %v7232_v8, %v7232_v8 }
 0x390   : > { %v7263_v38 = vadd.f32 %v7262_v31, %v7232_v8  ;;  %v7332_v9 = vadd.f32 %v7331_v50, %v7301_v28 }
 0x392   : > { %v7264_v57 = vadd.f32 %v7263_v38, %v7233_v13  ;;  %v7333_v0 = vadd.f32 %v7332_v9, %v7302_v10 }
 0x394   : > { %v7334_v21 = vadd.f32 %v7333_v0, %v7303_v32  ;;  %v7265_v17 = vadd.f32 %v7264_v57, %v7234_v36 }
 0x396   : > { %v7335_v24 = vadd.f32 %v7334_v21, %v7304_v27 }
 0x3c8   : > { %v8612_v34 = vpop.f32.mrb[4].mxu1 }
 0x3c9   : > { %v7008_v52 = vpop.f32.mrb[5].mxu1 }
 0x3ca   : > { %v8613_v4 = vpop.f32.mrb[6].mxu1 }
 0x3cb   : > { %v7066_v48 = vpack.c.bf16 %v8613_v4, %v8612_v34  ;;  %v7011_v40 = vpop.f32.mrb[7].mxu1 }
 0x3cc   : > { %v7065_v2 = vpack.c.bf16 %v7011_v40, %v7008_v52 }
 0x3cd   : > { %8545 = vst [vmem:[%s11168_s30 + $0x58] sm:$0xff] %v7066_v48   ;;  %v7237_v19 = vunpack.c.l.bf16 %v7066_v48  ;;  %v7238_v6 = vunpack.c.h.bf16 %v7066_v48 }
 0x3ce   : > { %8544 = vst [vmem:[%s11168_s30 + $0x50] sm:$0xff] %v7065_v2   ;;  %v7235_v26 = vunpack.c.l.bf16 %v7065_v2  ;;  %v7236_v7 = vunpack.c.h.bf16 %v7065_v2 }
 0x3cf   : > { %v7307_v55 = vmul.f32 %v7237_v19, %v7237_v19  ;;  %v7308_v16 = vmul.f32 %v7238_v6, %v7238_v6 }
 0x3d0   : > { %v7266_v25 = vadd.f32 %v7265_v17, %v7235_v26  ;;  %v7305_v5 = vmul.f32 %v7235_v26, %v7235_v26  ;;  %v7306_v51 = vmul.f32 %v7236_v7, %v7236_v7 }
 0x3d2   : > { %v7267_v41 = vadd.f32 %v7266_v25, %v7236_v7  ;;  %v7336_v1 = vadd.f32 %v7335_v24, %v7305_v5 }
 0x3d4   : > { %v7268_v3 = vadd.f32 %v7267_v41, %v7237_v19  ;;  %v7337_v63 = vadd.f32 %v7336_v1, %v7306_v51 }
 0x3d6   : > { %v7338_v30 = vadd.f32 %v7337_v63, %v7307_v55  ;;  %v7269_v58 = vadd.f32 %v7268_v3, %v7238_v6 }
 0x3d8   : > { %v7339_v39 = vadd.f32 %v7338_v30, %v7308_v16 }
 0x40a   : > { %v8616_v20 = vpop.f32.mrb[8].mxu1 }
 0x40b   : > { %v7024_v49 = vpop.f32.mrb[9].mxu1 }
 0x40c   : > { %v8617_v53 = vpop.f32.mrb[10].mxu1 }
 0x40d   : > { %v7068_v11 = vpack.c.bf16 %v8617_v53, %v8616_v20  ;;  %v7027_v22 = vpop.f32.mrb[11].mxu1 }
 0x40e   : > { %v7067_v23 = vpack.c.bf16 %v7027_v22, %v7024_v49 }
 0x40f   : > { %8547 = vst [vmem:[%s11168_s30 + $0x68] sm:$0xff] %v7068_v11   ;;  %v7241_v46 = vunpack.c.l.bf16 %v7068_v11  ;;  %v7242_v29 = vunpack.c.h.bf16 %v7068_v11 }
 0x410   : > { %8546 = vst [vmem:[%s11168_s30 + $0x60] sm:$0xff] %v7067_v23   ;;  %v7239_v56 = vunpack.c.l.bf16 %v7067_v23  ;;  %v7240_v60 = vunpack.c.h.bf16 %v7067_v23 }
 0x411   : > { %v7311_v50 = vmul.f32 %v7241_v46, %v7241_v46  ;;  %v7312_v59 = vmul.f32 %v7242_v29, %v7242_v29 }
 0x412   : > { %v7270_v12 = vadd.f32 %v7269_v58, %v7239_v56  ;;  %v7309_v37 = vmul.f32 %v7239_v56, %v7239_v56  ;;  %v7310_v44 = vmul.f32 %v7240_v60, %v7240_v60 }
 0x414   : > { %v7271_v33 = vadd.f32 %v7270_v12, %v7240_v60  ;;  %v7340_v45 = vadd.f32 %v7339_v39, %v7309_v37 }
 0x416   : > { %v7272_v42 = vadd.f32 %v7271_v33, %v7241_v46  ;;  %v7341_v35 = vadd.f32 %v7340_v45, %v7310_v44 }
 0x418   : > { %v7342_v54 = vadd.f32 %v7341_v35, %v7311_v50  ;;  %v7273_v43 = vadd.f32 %v7272_v42, %v7242_v29 }
 0x41a   : > { %v7343_v15 = vadd.f32 %v7342_v54, %v7312_v59 }
 0x435   : > { %v8620_v14 = vpop.f32.mrb[12].mxu1 }
 0x436   : > { %v7040_v18 = vpop.f32.mrb[13].mxu1 }
 0x437   : > { %v8621_v47 = vpop.f32.mrb[14].mxu1 }
 0x438   : > { %v7070_v62 = vpack.c.bf16 %v8621_v47, %v8620_v14  ;;  %v7043_v61 = vpop.f32.mrb[15].mxu1 }
 0x439   : > { %v7069_v8 = vpack.c.bf16 %v7043_v61, %v7040_v18 }
 0x43a   : > { %8549 = vst [vmem:[%s11168_s30 + $0x78] sm:$0xff] %v7070_v62  }
 0x43b   : > { %8548 = vst [vmem:[%s11168_s30 + $0x70] sm:$0xff] %v7069_v8   ;;  %v7243_v13 = vunpack.c.l.bf16 %v7069_v8  ;;  %v7244_v31 = vunpack.c.h.bf16 %v7069_v8 }
 0x43c   : > { %8800 = shalt.err (!%p8797_p5)
}
 0x43d   : > { %s8801_s4 = scalar_lea.hbm %s11242_s21, 2048  ;;  %s8805_s8 = scalar_lea.hbm %s11329_s2, 4096 }
 0x43e   : > { %p8802_p6 = scmp.ne.s32.totalorder %s11242_s21, %s8801_s4  ;;  %p8806_p10 = scmp.lt.u32.totalorder %s11242_s21, %s11329_s2 }
 0x43f   : > { %p8807_p11 = scmp.lt.u32.totalorder %s8805_s8, %s8801_s4  ;;  %p8809_p13 = scmp.lt.u32.totalorder %s8801_s4, %s11242_s21 }
 0x440   : > { %p8803_p7 = pnand %p8802_p6, %p8977_p4 }
 0x441   : > { %p8808_p12 = por %p8807_p11, %p8806_p10 }
 0x442   : > { %p8804_p9 = pneg %p8803_p7 }
 0x443   : > { %p8810_p0 = por %p8809_p13, %p8808_p12 }
 0x445   : > { %p8811_p1 = pnand %p8810_p0, %p8804_p9 }
 0x447   : > { %8814 = shalt.err (!%p8811_p1)
}
 0x448   : > { %s8915_s18 = smov 4   ;;  %v7245_v28 = vunpack.c.l.bf16 %v7070_v62  ;;  %v7274_v36 = vadd.f32 %v7273_v43, %v7243_v13  ;;  %v7313_v38 = vmul.f32 %v7243_v13, %v7243_v13  ;;  %v7246_v10 = vunpack.c.h.bf16 %v7070_v62  ;;  %s7361_s28 = scalar_lea.sflag [#allocation6], %s11148_s7 }
 0x449   : > { %8639 = dma.vmem_to_hbm [thread:$0]  (%p8977_p4), %s11244_s10, 2048, %s11242_s21, %s7356_s23, %s8906_s11, %s8906_s11, %s8915_s18   ;;  %v7314_v32 = vmul.f32 %v7244_v31, %v7244_v31 }
 0x44a   : > { %v7275_v9 = vadd.f32 %v7274_v36, %v7244_v31  ;;  %v7344_v57 = vadd.f32 %v7343_v15, %v7313_v38  ;;  %v7315_v0 = vmul.f32 %v7245_v28, %v7245_v28  ;;  %v7316_v17 = vmul.f32 %v7246_v10, %v7246_v10  ;;  %s7525_s11 = sshll.u32 %s11148_s7, 1  ;;  %s8419_s10 = sshll.u32 %s8889_s15, 5 }
 0x44b   : > { %s214_s19 = scalar_lea.vmem [#allocation5], %s7525_s11  ;;  %s11279_s27 = scalar_lea.hbm %s11330_s3, %s8419_s10 }
 0x44c   : > { %v7276_v27 = vadd.f32 %v7275_v9, %v7245_v28  ;;  %v7345_v21 = vadd.f32 %v7344_v57, %v7314_v32  ;;  %s7395_s21 = sshll.u32 %s214_s19, 4  ;;  %s8916_s15 = smov [#allocation5]   ;;  %s11281_s21 = int_to_ptr.vmem [resolvable:$true] %s7395_s21 }
 0x44d   : > { %s8815_s29 = scalar_lea.vmem %s11281_s21, 32  ;;  %s8819_s4 = sshll.u32 %s8916_s15, 4  ;;  %s8820_s4 = int_to_ptr.vmem [resolvable:$false] %s8819_s4 }
 0x44e   : > { %v7277_v24 = vadd.f32 %v7276_v27, %v7246_v10  ;;  %v7346_v34 = vadd.f32 %v7345_v21, %v7315_v0  ;;  %p8816_p2 = scmp.ne.s32.totalorder %s11281_s21, %s8815_s29  ;;  %s8821_s5 = scalar_lea.vmem %s8820_s4, 64 }
 0x44f   : > { %p8822_p6 = scmp.lt.s32.totalorder %s11281_s21, %s8820_s4  ;;  %p8823_p7 = scmp.lt.s32.totalorder %s8821_s5, %s8815_s29 }
 0x450   : > { %v7278_v52 = vrot.slane %v7277_v24, 4  ;;  %v7347_v4 = vadd.f32 %v7346_v34, %v7316_v17  ;;  %p8817_p3 = pnand %p8816_p2, %p8977_p4 }
 0x451   : > { %p8824_p9 = por %p8823_p7, %p8822_p6 }
 0x452   : > { %v7279_v48 = vadd.f32 %v7278_v52, %v7277_v24  ;;  %v7348_v40 = vrot.slane %v7347_v4, 4  ;;  %p8818_p5 = pneg %p8817_p3 }
 0x454   : > { %v7280_v2 = vrot.slane %v7279_v48, 2  ;;  %v7349_v26 = vadd.f32 %v7348_v40, %v7347_v4  ;;  %p8825_p10 = pnand %p8824_p9, %p8818_p5 }
 0x456   : > { %v7281_v7 = vadd.f32 %v7280_v2, %v7279_v48  ;;  %v7350_v19 = vrot.slane %v7349_v26, 2 }
 0x458   : > { %v7282_v25 = vrot.slane %v7281_v7, 1  ;;  %v7351_v5 = vadd.f32 %v7350_v19, %v7349_v26 }
 0x45a   : > { %v7283_v6 = vadd.f32 %v7282_v25, %v7281_v7  ;;  %v7352_v41 = vrot.slane %v7351_v5, 1 }
 0x45c   : > { %7284 = vst [vmem:[%s214_s19] sm:$0x1] %v7283_v6  ;;  %v7353_v51 = vadd.f32 %v7352_v41, %v7351_v5 }
 0x45e   : > { %7354 = vst [vmem:[%s214_s19 + $0x1] sm:$0x1] %v7353_v51 }
 0x45f   : > { %8828 = shalt.err (!%p8825_p10)
}
 0x460   : > { %s8829_s7 = scalar_lea.hbm %s11279_s27, 32  ;;  %s8833_s30 = scalar_lea.hbm %s11330_s3, 64 }
 0x461   : > { %p8830_p11 = scmp.ne.s32.totalorder %s11279_s27, %s8829_s7  ;;  %p8834_p0 = scmp.lt.u32.totalorder %s11279_s27, %s11330_s3 }
 0x462   : > { %p8835_p1 = scmp.lt.u32.totalorder %s8833_s30, %s8829_s7  ;;  %p8837_p3 = scmp.lt.u32.totalorder %s8829_s7, %s11279_s27 }
 0x463   : > { %p8831_p12 = pnand %p8830_p11, %p8977_p4 }
 0x464   : > { %p8836_p2 = por %p8835_p1, %p8834_p0 }
 0x465   : > { %p8832_p13 = pneg %p8831_p12 }
 0x466   : > { %p8838_p5 = por %p8837_p3, %p8836_p2 }
 0x468   : > { %p8839_p6 = pnand %p8838_p5, %p8832_p13 }
 0x46a   : > { %8842 = shalt.err (!%p8839_p6)
}
 0x46b   : > { %8640 = dma.vmem_to_hbm [thread:$0]  (%p8977_p4), %s11281_s21, 32, %s11279_s27, %s7361_s28  }
 0x46c PF: > { %p8650_p7 = scmp.ge.s32.totalorder %s8897_s17, 2  ;;  %s7407_s11 = sand.u32 1, %s8877_s12  }
 0x46d   : > { %s7408_s10 = scalar_lea.sflag [#allocation4], %s7407_s11 }
 0x46e   : > { %p8644_p9 = pnand %p8650_p7, %p8984_p8 }
 0x470   : > { %8868 = dma.done.wait (!%p8644_p9), %s7408_s10, 2048  }
 0x471   : > { %8870 = vsyncadd (!%p8644_p9), %s7408_s10, 4294965248  ;;  %s7417_s19 = scalar_lea.sflag [#allocation6], %s7407_s11 }
 0x472   : > { %8872 = dma.done.wait (!%p8644_p9), %s7417_s19, 32  }
 0x473   : > { %8874 = vsyncadd (!%p8644_p9), %s7417_s19, 4294967264  ;;  %s20_s17 = sadd.s32 1, %s8897_s17   ;;  %s11339_s12 = smov %s8881_s13 }
 0x474   : > { %p17_p10 = scmp.ge.s32.totalorder %s20_s17, 4   ;;  %s11340_s13 = smov %s8885_s14 }
 0x475   : > { %s11341_s14 = smov %s8990_s25  ;;  %s11342_s15 = smov %s8893_s16 }
 0x476   : > { %s11343_s16 = smov %s11345_s20  ;;  %19 = sbr.rel (!%p17_p10) target bundleno = 6 (0x6), region = 86 }
 0x47d   :  { %7422 = vsyncpa [#allocation4], 1 }
 0x47e   :  { %7424 = vsyncpa [#allocation4 + $0x1], 1 }
 0x47f   :  { %7425 = vsyncpa [#allocation6], 1 }
 0x480   :  { %7427 = vsyncpa [#allocation6 + $0x1], 1 }

</bundles_post_ra>
